<compile_context>
chip_gen: v6e
topology: v6e:2x2x1
jax: 0.10.0
libtpu: 0.0.40
codegen_flags: <defaults>
</compile_context>

<pallas_src>
import functools

import numpy as np
import jax
import jax.numpy as jnp
from jax import lax
from jax.experimental import pallas as pl
from jax.experimental.pallas import tpu as pltpu  # noqa: F401

EPS = 1e-5          # torch.nn.LayerNorm default eps
NEG_INF = -1e30     # finite additive mask value; exp() underflows to exactly 0


# --------------------------------------------------------------------------
# In-kernel helpers (pure jnp on VMEM-resident values)
# --------------------------------------------------------------------------
def _ln(x, g, b):
    mean = jnp.mean(x, axis=-1, keepdims=True)
    var = jnp.mean(jnp.square(x - mean), axis=-1, keepdims=True)
    return (x - mean) * lax.rsqrt(var + EPS) * g + b


def _mha(q2, kv2, kv2T, mask, ai, H,
         wq_ref, bq_ref, wkT_ref, bk_ref, wvo_ref, bo_ref):
    """torch nn.MultiheadAttention (batch_first, eval), batch folded into rows.

    q2:(Rq,D) queries, kv2:(Rk,D) keys/values, kv2T:(D,Rk) pre-transposed keys,
    mask:(Rq,Rk) additive block mask.  Per-head weights are pre-split at pack
    time (no lane slicing); the softmax scale is baked into wq/bq; the V and
    output projections are pre-fused into wvo (their biases live in bo).
    """
    out = jnp.zeros(q2.shape, jnp.float32) + bo_ref[ai]            # (Rq, D)
    for h in range(H):                                             # static unroll
        idx = ai * H + h
        qh = jnp.dot(q2, wq_ref[idx],
                     preferred_element_type=jnp.float32) + bq_ref[idx]     # (Rq, hd)
        khT = jnp.dot(wkT_ref[idx], kv2T,
                      preferred_element_type=jnp.float32) + bk_ref[idx]    # (hd, Rk)
        s = jnp.dot(qh, khT, preferred_element_type=jnp.float32) + mask    # (Rq, Rk)
        s = s - jnp.max(s, axis=-1, keepdims=True)
        p = jnp.exp(s)
        p = p * pl.reciprocal(jnp.sum(p, axis=-1, keepdims=True), approx=True)
        vwo = jnp.dot(kv2, wvo_ref[idx],
                      preferred_element_type=jnp.float32)                  # (Rk, D)
        out = out + jnp.dot(p, vwo, preferred_element_type=jnp.float32)    # (Rq, D)
    return out


# --------------------------------------------------------------------------
# Single fused kernel: whole forward pass
# --------------------------------------------------------------------------
def _fused_forward_kernel(img_ref, mc_ref, ms_ref,
                          wimg_ref, bimg_ref, ga_ref, ba_ref, exp_ref,
                          wq_ref, bq_ref, wkT_ref, bk_ref, wvo_ref, bo_ref,
                          w1_ref, b1_ref, w2_ref, b2_ref, lng_ref, lnb_ref,
                          cw_ref, cb_ref, out_ref, *, B, N, Ap, D, C, L, H):
    # ---- CrossModalEmbeddingAlignment (image path only) ----
    x = img_ref[...].reshape(B * N, -1)
    img2 = _ln(jnp.dot(x, wimg_ref[...], preferred_element_type=jnp.float32)
               + bimg_ref[...], ga_ref[...], ba_ref[...])              # (B*N, D)
    img2T = jnp.transpose(img2)                                        # (D, B*N), hoisted

    mask_c = mc_ref[...]                                               # (B*Ap, B*N)
    mask_s = ms_ref[...]                                               # (B*Ap, B*Ap)

    expert2 = None
    for l in range(L):                                                 # static unroll
        g, bt = lng_ref[l], lnb_ref[l]
        if l == 0:
            # layer-0 pre-attention LN is batch-invariant: do it once on (Ap, D)
            att_small = _ln(exp_ref[...], g, bt)
            attended = jnp.broadcast_to(att_small[None],
                                        (B, Ap, D)).reshape(B * Ap, D)
        else:
            attended = _ln(expert2, g, bt)
        # expert -> image cross-attention
        e2f = _mha(attended, img2, img2T, mask_c, 2 * l, H,
                   wq_ref, bq_ref, wkT_ref, bk_ref, wvo_ref, bo_ref)
        e2f = _ln(e2f + attended, g, bt)
        # feed-forward with residual (dropouts identity in eval)
        h1 = jnp.maximum(
            jnp.dot(e2f, w1_ref[l], preferred_element_type=jnp.float32) + b1_ref[l],
            0.0)
        feat = e2f + jnp.dot(h1, w2_ref[l],
                             preferred_element_type=jnp.float32) + b2_ref[l]
        # expert self-attention
        featT = jnp.transpose(feat)
        sa = _mha(feat, feat, featT, mask_s, 2 * l + 1, H,
                  wq_ref, bq_ref, wkT_ref, bk_ref, wvo_ref, bo_ref)
        expert2 = _ln(sa + e2f, g, bt)

    # ---- per-abnormality classifiers: VPU multiply + lane reduce over D ----
    expert3 = expert2.reshape(B, Ap, D)
    for c in range(C):
        out_ref[c] = jnp.sum(expert3 * cw_ref[c][None], axis=-1) + cb_ref[c]


@functools.partial(jax.jit, static_argnames=("num_heads", "num_abn"))
def forward(packed, image_patches, *, num_heads, num_abn):
    """AbnormalityClassifierWithPartialTraining.forward(image_patches)."""
    B, N, _ = image_patches.shape
    Ap, D = packed["expert"].shape
    C = packed["cls_w"].shape[0]
    L = packed["ln_g"].shape[0]

    # cross-batch (and padded-expert) additive masks, built as trace-time constants
    row_b = np.repeat(np.arange(B), Ap)
    img_b = np.repeat(np.arange(B), N)
    key_b = np.repeat(np.arange(B), Ap)
    key_valid = np.tile(np.arange(Ap) < num_abn, B)
    mask_c = np.where(row_b[:, None] == img_b[None, :], 0.0, NEG_INF).astype(np.float32)
    mask_s = np.where((row_b[:, None] == key_b[None, :]) & key_valid[None, :],
                      0.0, NEG_INF).astype(np.float32)

    kernel = functools.partial(_fused_forward_kernel,
                               B=B, N=N, Ap=Ap, D=D, C=C, L=L, H=num_heads)
    out = pl.pallas_call(
        kernel,
        out_shape=jax.ShapeDtypeStruct((C, B, Ap), jnp.float32),
    )(image_patches, jnp.asarray(mask_c), jnp.asarray(mask_s),
      packed["w_img"], packed["b_img"], packed["g_align"], packed["b_align"],
      packed["expert"],
      packed["attn_wq"], packed["attn_bq"], packed["attn_wkT"], packed["attn_bk"],
      packed["attn_wvo"], packed["attn_bo"],
      packed["ffn_w1"], packed["ffn_b1"], packed["ffn_w2"], packed["ffn_b2"],
      packed["ln_g"], packed["ln_b"],
      packed["cls_w"], packed["cls_b"])
    logits = jnp.transpose(out, (1, 2, 0))[:, :num_abn, :]             # (B, A, C)
    return logits


# --------------------------------------------------------------------------
# Parameter init (torch layout, deterministic) and one-time packing
# --------------------------------------------------------------------------
def init_params(key, *, embed_dim, num_abn, num_classes, num_layers, img_dim):
    D = embed_dim
    keys = iter(jax.random.split(key, 128))

    def nrm(shape, scale=0.05):
        return (scale * jax.random.normal(next(keys), shape)).astype(jnp.float32)

    params = {
        "img_proj_w": nrm((D, img_dim)),
        "img_proj_b": nrm((D,)),
        "align_ln_g": jnp.ones((D,), jnp.float32),
        "align_ln_b": jnp.zeros((D,), jnp.float32),
        "expert_tokens": nrm((num_abn, D), scale=0.5),
        "cls_w": nrm((num_abn, num_classes, D)),
        "cls_b": nrm((num_abn, num_classes)),
        "layers": [],
    }
    for _ in range(num_layers):
        params["layers"].append({
            "e2f": {"in_proj_w": nrm((3 * D, D)), "in_proj_b": nrm((3 * D,)),
                    "out_proj_w": nrm((D, D)), "out_proj_b": nrm((D,))},
            "self": {"in_proj_w": nrm((3 * D, D)), "in_proj_b": nrm((3 * D,)),
                     "out_proj_w": nrm((D, D)), "out_proj_b": nrm((D,))},
            "ffn_w1": nrm((4 * D, D)), "ffn_b1": nrm((4 * D,)),
            "ffn_w2": nrm((D, 4 * D)), "ffn_b2": nrm((D,)),
            "ln_g": jnp.ones((D,), jnp.float32),
            "ln_b": jnp.zeros((D,), jnp.float32),
        })
    return params


def pack_params(params, *, num_heads, sublane=8):
    """One-time repack: per-head pre-split weights (scale baked into Q, V·Wo
    pre-fused), sublane-padded experts/classifiers, per-layer stacks."""
    A, D = params["expert_tokens"].shape
    C = params["cls_b"].shape[1]
    H = num_heads
    hd = D // H
    scale = 1.0 / float(hd) ** 0.5
    Ap = ((A + sublane - 1) // sublane) * sublane

    def attn_pack(p):
        wq, wk, wv = jnp.split(p["in_proj_w"], 3, axis=0)      # (D,D) torch (out,in)
        bq, bk, bv = jnp.split(p["in_proj_b"], 3, axis=0)
        wo_t = p["out_proj_w"].T                                 # (D_concat, D_out)
        wq_h = (wq.reshape(H, hd, D) * scale).transpose(0, 2, 1)   # (H, D, hd)
        bq_h = (bq * scale).reshape(H, 1, hd)
        wkT_h = wk.reshape(H, hd, D)                               # (H, hd, D)
        bk_h = bk.reshape(H, hd, 1)
        wv_h = wv.reshape(H, hd, D).transpose(0, 2, 1)             # (H, D, hd)
        wo_h = wo_t.reshape(H, hd, D)                              # (H, hd, D)
        wvo_h = jnp.einsum("hdk,hke->hde", wv_h, wo_h)             # (H, D, D)
        bo_tot = (p["out_proj_b"] + bv @ wo_t).reshape(1, D)       # V bias folded in
        return dict(wq=wq_h, bq=bq_h, wkT=wkT_h, bk=bk_h, wvo=wvo_h, bo=bo_tot)

    attns = []
    for lp in params["layers"]:
        attns.append(attn_pack(lp["e2f"]))     # attention index 2*l
        attns.append(attn_pack(lp["self"]))    # attention index 2*l + 1

    def stack_heads(key_):
        return jnp.concatenate([a[key_] for a in attns], axis=0)   # (2L*H, ...)

    expert_p = jnp.zeros((Ap, D), jnp.float32).at[:A].set(params["expert_tokens"])
    cls_w = jnp.transpose(params["cls_w"], (1, 0, 2))               # (C, A, D)
    cls_w_p = jnp.zeros((C, Ap, D), jnp.float32).at[:, :A].set(cls_w)
    cls_b_p = jnp.zeros((C, 1, Ap), jnp.float32).at[:, 0, :A].set(params["cls_b"].T)

    return {
        "w_img": params["img_proj_w"].T,
        "b_img": params["img_proj_b"].reshape(1, D),
        "g_align": params["align_ln_g"].reshape(1, D),
        "b_align": params["align_ln_b"].reshape(1, D),
        "expert": expert_p,
        "attn_wq": stack_heads("wq"),
        "attn_bq": stack_heads("bq"),
        "attn_wkT": stack_heads("wkT"),
        "attn_bk": stack_heads("bk"),
        "attn_wvo": stack_heads("wvo"),
        "attn_bo": jnp.stack([a["bo"] for a in attns]),             # (2L, 1, D)
        "ffn_w1": jnp.stack([lp["ffn_w1"].T for lp in params["layers"]]),
        "ffn_b1": jnp.stack([lp["ffn_b1"].reshape(1, -1) for lp in params["layers"]]),
        "ffn_w2": jnp.stack([lp["ffn_w2"].T for lp in params["layers"]]),
        "ffn_b2": jnp.stack([lp["ffn_b2"].reshape(1, -1) for lp in params["layers"]]),
        "ln_g": jnp.stack([lp["ln_g"].reshape(1, -1) for lp in params["layers"]]),
        "ln_b": jnp.stack([lp["ln_b"].reshape(1, -1) for lp in params["layers"]]),
        "cls_w": cls_w_p,                                           # (C, Ap, D)
        "cls_b": cls_b_p,                                           # (C, 1, Ap)
    }


# --------------------------------------------------------------------------
# Pure-JAX reference (torch-layout params) for correctness check
# --------------------------------------------------------------------------
def reference_forward(params, image_patches, *, num_heads):
    def ln(x, g, b):
        m = x.mean(-1, keepdims=True)
        v = ((x - m) ** 2).mean(-1, keepdims=True)
        return (x - m) / jnp.sqrt(v + EPS) * g + b

    def mha_ref(q, kv, p):
        B, A, D = q.shape
        hd = D // num_heads
        wq, wk, wv = jnp.split(p["in_proj_w"], 3, axis=0)
        bq, bk, bv = jnp.split(p["in_proj_b"], 3, axis=0)
        Q = (q @ wq.T + bq).reshape(B, A, num_heads, hd).transpose(0, 2, 1, 3)
        K = (kv @ wk.T + bk).reshape(B, -1, num_heads, hd).transpose(0, 2, 1, 3)
        V = (kv @ wv.T + bv).reshape(B, -1, num_heads, hd).transpose(0, 2, 1, 3)
        s = jnp.einsum("bhqd,bhkd->bhqk", Q, K) / (hd ** 0.5)
        pmat = jax.nn.softmax(s, axis=-1)
        o = jnp.einsum("bhqk,bhkd->bhqd", pmat, V).transpose(0, 2, 1, 3)
        o = o.reshape(B, A, D)
        return o @ p["out_proj_w"].T + p["out_proj_b"]

    B = image_patches.shape[0]
    A, D = params["expert_tokens"].shape
    img_proj = ln(image_patches @ params["img_proj_w"].T + params["img_proj_b"],
                  params["align_ln_g"], params["align_ln_b"])
    expert = jnp.broadcast_to(params["expert_tokens"][None], (B, A, D))
    for lp in params["layers"]:
        attended = ln(expert, lp["ln_g"], lp["ln_b"])
        e2f = ln(mha_ref(attended, img_proj, lp["e2f"]) + attended,
                 lp["ln_g"], lp["ln_b"])
        h = jnp.maximum(e2f @ lp["ffn_w1"].T + lp["ffn_b1"], 0.0)
        feat = e2f + h @ lp["ffn_w2"].T + lp["ffn_b2"]
        expert = ln(mha_ref(feat, feat, lp["self"]) + e2f, lp["ln_g"], lp["ln_b"])
    logits = jnp.einsum("bad,acd->bac", expert, params["cls_w"]) + params["cls_b"][None]
    return logits


# --------------------------------------------------------------------------
if __name__ == "__main__":
    # Small, module-consistent shapes: image_patches: (B, N_patches, img_dim)
    B, N_PATCH, IMG_DIM = 2, 16, 64
    EMBED, HEADS, ABN, CLASSES, LAYERS = 32, 4, 14, 3, 2

    key = jax.random.PRNGKey(0)
    kp, kx = jax.random.split(key)
    params = init_params(kp, embed_dim=EMBED, num_abn=ABN,
                         num_classes=CLASSES, num_layers=LAYERS, img_dim=IMG_DIM)
    packed = pack_params(params, num_heads=HEADS)
    image_patches = jax.random.normal(kx, (B, N_PATCH, IMG_DIM), dtype=jnp.float32)

    logits = forward(packed, image_patches, num_heads=HEADS, num_abn=ABN)
    logits = jax.block_until_ready(logits)
    assert logits.shape == (B, ABN, CLASSES)

    ref = reference_forward(params, image_patches, num_heads=HEADS)
    max_err = float(jnp.max(jnp.abs(logits - ref)))
    # tolerance accounts for the EUP approximate reciprocal in the softmax
    assert max_err < 2e-3, f"mismatch vs reference: max_err={max_err}"

    print("KERNEL_OK")
</pallas_src>

<mosaic_0001>
module attributes {stable_mosaic.version = 11 : i64} {
  func.func @_fused_forward_kernel(%arg0: memref<2x16x64xf32, #tpu.memory_space<vmem>>, %arg1: memref<32x32xf32, #tpu.memory_space<vmem>>, %arg2: memref<32x32xf32, #tpu.memory_space<vmem>>, %arg3: memref<64x32xf32, #tpu.memory_space<vmem>>, %arg4: memref<1x32xf32, #tpu.memory_space<vmem>>, %arg5: memref<1x32xf32, #tpu.memory_space<vmem>>, %arg6: memref<1x32xf32, #tpu.memory_space<vmem>>, %arg7: memref<16x32xf32, #tpu.memory_space<vmem>>, %arg8: memref<16x32x8xf32, #tpu.memory_space<vmem>>, %arg9: memref<16x1x8xf32, #tpu.memory_space<vmem>>, %arg10: memref<16x8x32xf32, #tpu.memory_space<vmem>>, %arg11: memref<16x8x1xf32, #tpu.memory_space<vmem>>, %arg12: memref<16x32x32xf32, #tpu.memory_space<vmem>>, %arg13: memref<4x1x32xf32, #tpu.memory_space<vmem>>, %arg14: memref<2x32x128xf32, #tpu.memory_space<vmem>>, %arg15: memref<2x1x128xf32, #tpu.memory_space<vmem>>, %arg16: memref<2x128x32xf32, #tpu.memory_space<vmem>>, %arg17: memref<2x1x32xf32, #tpu.memory_space<vmem>>, %arg18: memref<2x1x32xf32, #tpu.memory_space<vmem>>, %arg19: memref<2x1x32xf32, #tpu.memory_space<vmem>>, %arg20: memref<3x16x32xf32, #tpu.memory_space<vmem>>, %arg21: memref<3x1x16xf32, #tpu.memory_space<vmem>>, %arg22: memref<3x2x16xf32, #tpu.memory_space<vmem>>) attributes {dimension_semantics = [], scalar_prefetch = 0 : i64, scratch_operands = 0 : i64, tpu.core_type = #tpu.core_type<tc>} {
    %c0 = arith.constant 0 : index
    %c0_0 = arith.constant 0 : index
    %c0_1 = arith.constant 0 : index
    %0 = vector.load %arg0[%c0, %c0_0, %c0_1] : memref<2x16x64xf32, #tpu.memory_space<vmem>>, vector<2x16x64xf32>
    %1 = vector.shape_cast %0 : vector<2x16x64xf32> to vector<32x64xf32>
    %c0_2 = arith.constant 0 : index
    %c0_3 = arith.constant 0 : index
    %2 = vector.load %arg3[%c0_2, %c0_3] : memref<64x32xf32, #tpu.memory_space<vmem>>, vector<64x32xf32>
    %cst = arith.constant dense<0.000000e+00> : vector<32x32xf32>
    %3 = tpu.matmul %1, %2, %cst {dimension_numbers = #tpu.dot_dimension_numbers<[1], [0], [0], [1], [0, 0, 1, 1], [], []>} : vector<32x64xf32>, vector<64x32xf32>, vector<32x32xf32> -> vector<32x32xf32>
    %c0_4 = arith.constant 0 : index
    %c0_5 = arith.constant 0 : index
    %4 = vector.load %arg4[%c0_4, %c0_5] : memref<1x32xf32, #tpu.memory_space<vmem>>, vector<1x32xf32>
    %5 = vector.broadcast %4 : vector<1x32xf32> to vector<32x32xf32>
    %6 = arith.addf %3, %5 : vector<32x32xf32>
    %c0_6 = arith.constant 0 : index
    %c0_7 = arith.constant 0 : index
    %7 = vector.load %arg5[%c0_6, %c0_7] : memref<1x32xf32, #tpu.memory_space<vmem>>, vector<1x32xf32>
    %c0_8 = arith.constant 0 : index
    %c0_9 = arith.constant 0 : index
    %8 = vector.load %arg6[%c0_8, %c0_9] : memref<1x32xf32, #tpu.memory_space<vmem>>, vector<1x32xf32>
    %cst_10 = arith.constant dense<0.000000e+00> : vector<32xf32>
    %9 = vector.multi_reduction <add>, %6, %cst_10 [1] : vector<32x32xf32> to vector<32xf32>
    %10 = vector.shape_cast %9 : vector<32xf32> to vector<32x1xf32>
    %cst_11 = arith.constant 3.200000e+01 : f32
    %11 = vector.broadcast %cst_11 : f32 to vector<32x1xf32>
    %12 = arith.divf %10, %11 : vector<32x1xf32>
    %13 = vector.broadcast %12 : vector<32x1xf32> to vector<32x32xf32>
    %14 = arith.subf %6, %13 : vector<32x32xf32>
    %15 = arith.mulf %14, %14 : vector<32x32xf32>
    %cst_12 = arith.constant dense<0.000000e+00> : vector<32xf32>
    %16 = vector.multi_reduction <add>, %15, %cst_12 [1] : vector<32x32xf32> to vector<32xf32>
    %17 = vector.shape_cast %16 : vector<32xf32> to vector<32x1xf32>
    %cst_13 = arith.constant 3.200000e+01 : f32
    %18 = vector.broadcast %cst_13 : f32 to vector<32x1xf32>
    %19 = arith.divf %17, %18 : vector<32x1xf32>
    %20 = vector.broadcast %12 : vector<32x1xf32> to vector<32x32xf32>
    %21 = arith.subf %6, %20 : vector<32x32xf32>
    %cst_14 = arith.constant 9.99999974E-6 : f32
    %22 = vector.broadcast %cst_14 : f32 to vector<32x1xf32>
    %23 = arith.addf %19, %22 : vector<32x1xf32>
    %24 = math.rsqrt %23 : vector<32x1xf32>
    %25 = vector.broadcast %24 : vector<32x1xf32> to vector<32x32xf32>
    %26 = arith.mulf %21, %25 : vector<32x32xf32>
    %27 = vector.broadcast %7 : vector<1x32xf32> to vector<32x32xf32>
    %28 = arith.mulf %26, %27 : vector<32x32xf32>
    %29 = vector.broadcast %8 : vector<1x32xf32> to vector<32x32xf32>
    %30 = arith.addf %28, %29 : vector<32x32xf32>
    %31 = tpu.transpose %30, [1, 0] : vector<32x32xf32> -> vector<32x32xf32>
    %c0_15 = arith.constant 0 : index
    %c0_16 = arith.constant 0 : index
    %32 = vector.load %arg1[%c0_15, %c0_16] : memref<32x32xf32, #tpu.memory_space<vmem>>, vector<32x32xf32>
    %c0_17 = arith.constant 0 : index
    %c0_18 = arith.constant 0 : index
    %33 = vector.load %arg2[%c0_17, %c0_18] : memref<32x32xf32, #tpu.memory_space<vmem>>, vector<32x32xf32>
    %c0_19 = arith.constant 0 : index
    %c0_20 = arith.constant 0 : index
    %c0_21 = arith.constant 0 : index
    %34 = vector.load %arg18[%c0_19, %c0_20, %c0_21] : memref<2x1x32xf32, #tpu.memory_space<vmem>>, vector<1x1x32xf32>
    %35 = vector.shape_cast %34 : vector<1x1x32xf32> to vector<1x32xf32>
    %c0_22 = arith.constant 0 : index
    %c0_23 = arith.constant 0 : index
    %c0_24 = arith.constant 0 : index
    %36 = vector.load %arg19[%c0_22, %c0_23, %c0_24] : memref<2x1x32xf32, #tpu.memory_space<vmem>>, vector<1x1x32xf32>
    %37 = vector.shape_cast %36 : vector<1x1x32xf32> to vector<1x32xf32>
    %c0_25 = arith.constant 0 : index
    %c0_26 = arith.constant 0 : index
    %38 = vector.load %arg7[%c0_25, %c0_26] : memref<16x32xf32, #tpu.memory_space<vmem>>, vector<16x32xf32>
    %cst_27 = arith.constant dense<0.000000e+00> : vector<16xf32>
    %39 = vector.multi_reduction <add>, %38, %cst_27 [1] : vector<16x32xf32> to vector<16xf32>
    %40 = vector.shape_cast %39 : vector<16xf32> to vector<16x1xf32>
    %cst_28 = arith.constant 3.200000e+01 : f32
    %41 = vector.broadcast %cst_28 : f32 to vector<16x1xf32>
    %42 = arith.divf %40, %41 : vector<16x1xf32>
    %43 = vector.broadcast %42 : vector<16x1xf32> to vector<16x32xf32>
    %44 = arith.subf %38, %43 : vector<16x32xf32>
    %45 = arith.mulf %44, %44 : vector<16x32xf32>
    %cst_29 = arith.constant dense<0.000000e+00> : vector<16xf32>
    %46 = vector.multi_reduction <add>, %45, %cst_29 [1] : vector<16x32xf32> to vector<16xf32>
    %47 = vector.shape_cast %46 : vector<16xf32> to vector<16x1xf32>
    %cst_30 = arith.constant 3.200000e+01 : f32
    %48 = vector.broadcast %cst_30 : f32 to vector<16x1xf32>
    %49 = arith.divf %47, %48 : vector<16x1xf32>
    %50 = vector.broadcast %42 : vector<16x1xf32> to vector<16x32xf32>
    %51 = arith.subf %38, %50 : vector<16x32xf32>
    %cst_31 = arith.constant 9.99999974E-6 : f32
    %52 = vector.broadcast %cst_31 : f32 to vector<16x1xf32>
    %53 = arith.addf %49, %52 : vector<16x1xf32>
    %54 = math.rsqrt %53 : vector<16x1xf32>
    %55 = vector.broadcast %54 : vector<16x1xf32> to vector<16x32xf32>
    %56 = arith.mulf %51, %55 : vector<16x32xf32>
    %57 = vector.broadcast %35 : vector<1x32xf32> to vector<16x32xf32>
    %58 = arith.mulf %56, %57 : vector<16x32xf32>
    %59 = vector.broadcast %37 : vector<1x32xf32> to vector<16x32xf32>
    %60 = arith.addf %58, %59 : vector<16x32xf32>
    %61 = vector.shape_cast %60 : vector<16x32xf32> to vector<1x16x32xf32>
    %62 = vector.shape_cast %61 : vector<1x16x32xf32> to vector<1x16x32xf32>
    %63 = vector.broadcast %62 : vector<1x16x32xf32> to vector<2x16x32xf32>
    %64 = vector.shape_cast %63 : vector<2x16x32xf32> to vector<32x32xf32>
    %cst_32 = arith.constant 0.000000e+00 : f32
    %65 = vector.broadcast %cst_32 : f32 to vector<32x32xf32>
    %c0_33 = arith.constant 0 : index
    %c0_34 = arith.constant 0 : index
    %c0_35 = arith.constant 0 : index
    %66 = vector.load %arg13[%c0_33, %c0_34, %c0_35] : memref<4x1x32xf32, #tpu.memory_space<vmem>>, vector<1x1x32xf32>
    %67 = vector.shape_cast %66 : vector<1x1x32xf32> to vector<1x32xf32>
    %68 = vector.broadcast %67 : vector<1x32xf32> to vector<32x32xf32>
    %69 = arith.addf %65, %68 : vector<32x32xf32>
    %c0_36 = arith.constant 0 : index
    %c0_37 = arith.constant 0 : index
    %c0_38 = arith.constant 0 : index
    %70 = vector.load %arg8[%c0_36, %c0_37, %c0_38] : memref<16x32x8xf32, #tpu.memory_space<vmem>>, vector<1x32x8xf32>
    %71 = vector.shape_cast %70 : vector<1x32x8xf32> to vector<32x8xf32>
    %cst_39 = arith.constant dense<0.000000e+00> : vector<32x8xf32>
    %72 = tpu.matmul %64, %71, %cst_39 {dimension_numbers = #tpu.dot_dimension_numbers<[1], [0], [0], [1], [0, 0, 1, 1], [], []>} : vector<32x32xf32>, vector<32x8xf32>, vector<32x8xf32> -> vector<32x8xf32>
    %c0_40 = arith.constant 0 : index
    %c0_41 = arith.constant 0 : index
    %c0_42 = arith.constant 0 : index
    %73 = vector.load %arg9[%c0_40, %c0_41, %c0_42] : memref<16x1x8xf32, #tpu.memory_space<vmem>>, vector<1x1x8xf32>
    %74 = vector.shape_cast %73 : vector<1x1x8xf32> to vector<1x8xf32>
    %75 = vector.broadcast %74 : vector<1x8xf32> to vector<32x8xf32>
    %76 = arith.addf %72, %75 : vector<32x8xf32>
    %c0_43 = arith.constant 0 : index
    %c0_44 = arith.constant 0 : index
    %c0_45 = arith.constant 0 : index
    %77 = vector.load %arg10[%c0_43, %c0_44, %c0_45] : memref<16x8x32xf32, #tpu.memory_space<vmem>>, vector<1x8x32xf32>
    %78 = vector.shape_cast %77 : vector<1x8x32xf32> to vector<8x32xf32>
    %cst_46 = arith.constant dense<0.000000e+00> : vector<8x32xf32>
    %79 = tpu.matmul %78, %31, %cst_46 {dimension_numbers = #tpu.dot_dimension_numbers<[1], [0], [0], [1], [0, 0, 1, 1], [], []>} : vector<8x32xf32>, vector<32x32xf32>, vector<8x32xf32> -> vector<8x32xf32>
    %c0_47 = arith.constant 0 : index
    %c0_48 = arith.constant 0 : index
    %c0_49 = arith.constant 0 : index
    %80 = vector.load %arg11[%c0_47, %c0_48, %c0_49] : memref<16x8x1xf32, #tpu.memory_space<vmem>>, vector<1x8x1xf32>
    %81 = vector.shape_cast %80 : vector<1x8x1xf32> to vector<8x1xf32>
    %82 = vector.broadcast %81 : vector<8x1xf32> to vector<8x32xf32>
    %83 = arith.addf %79, %82 : vector<8x32xf32>
    %cst_50 = arith.constant dense<0.000000e+00> : vector<32x32xf32>
    %84 = tpu.matmul %76, %83, %cst_50 {dimension_numbers = #tpu.dot_dimension_numbers<[1], [0], [0], [1], [0, 0, 1, 1], [], []>} : vector<32x8xf32>, vector<8x32xf32>, vector<32x32xf32> -> vector<32x32xf32>
    %85 = arith.addf %84, %32 : vector<32x32xf32>
    %cst_51 = arith.constant dense<0xFF800000> : vector<32xf32>
    %86 = vector.multi_reduction <maximumf>, %85, %cst_51 [1] : vector<32x32xf32> to vector<32xf32>
    %87 = vector.shape_cast %86 : vector<32xf32> to vector<32x1xf32>
    %88 = vector.broadcast %87 : vector<32x1xf32> to vector<32x32xf32>
    %89 = arith.subf %85, %88 : vector<32x32xf32>
    %90 = math.exp %89 : vector<32x32xf32>
    %cst_52 = arith.constant dense<0.000000e+00> : vector<32xf32>
    %91 = vector.multi_reduction <add>, %90, %cst_52 [1] : vector<32x32xf32> to vector<32xf32>
    %92 = vector.shape_cast %91 : vector<32xf32> to vector<32x1xf32>
    %93 = tpu.reciprocal %92 {approx = true} : vector<32x1xf32> -> vector<32x1xf32>
    %94 = vector.broadcast %93 : vector<32x1xf32> to vector<32x32xf32>
    %95 = arith.mulf %90, %94 : vector<32x32xf32>
    %c0_53 = arith.constant 0 : index
    %c0_54 = arith.constant 0 : index
    %c0_55 = arith.constant 0 : index
    %96 = vector.load %arg12[%c0_53, %c0_54, %c0_55] : memref<16x32x32xf32, #tpu.memory_space<vmem>>, vector<1x32x32xf32>
    %97 = vector.shape_cast %96 : vector<1x32x32xf32> to vector<32x32xf32>
    %cst_56 = arith.constant dense<0.000000e+00> : vector<32x32xf32>
    %98 = tpu.matmul %30, %97, %cst_56 {dimension_numbers = #tpu.dot_dimension_numbers<[1], [0], [0], [1], [0, 0, 1, 1], [], []>} : vector<32x32xf32>, vector<32x32xf32>, vector<32x32xf32> -> vector<32x32xf32>
    %cst_57 = arith.constant dense<0.000000e+00> : vector<32x32xf32>
    %99 = tpu.matmul %95, %98, %cst_57 {dimension_numbers = #tpu.dot_dimension_numbers<[1], [0], [0], [1], [0, 0, 1, 1], [], []>} : vector<32x32xf32>, vector<32x32xf32>, vector<32x32xf32> -> vector<32x32xf32>
    %100 = arith.addf %69, %99 : vector<32x32xf32>
    %c1 = arith.constant 1 : index
    %c0_58 = arith.constant 0 : index
    %c0_59 = arith.constant 0 : index
    %101 = vector.load %arg8[%c1, %c0_58, %c0_59] : memref<16x32x8xf32, #tpu.memory_space<vmem>>, vector<1x32x8xf32>
    %102 = vector.shape_cast %101 : vector<1x32x8xf32> to vector<32x8xf32>
    %cst_60 = arith.constant dense<0.000000e+00> : vector<32x8xf32>
    %103 = tpu.matmul %64, %102, %cst_60 {dimension_numbers = #tpu.dot_dimension_numbers<[1], [0], [0], [1], [0, 0, 1, 1], [], []>} : vector<32x32xf32>, vector<32x8xf32>, vector<32x8xf32> -> vector<32x8xf32>
    %c1_61 = arith.constant 1 : index
    %c0_62 = arith.constant 0 : index
    %c0_63 = arith.constant 0 : index
    %104 = vector.load %arg9[%c1_61, %c0_62, %c0_63] : memref<16x1x8xf32, #tpu.memory_space<vmem>>, vector<1x1x8xf32>
    %105 = vector.shape_cast %104 : vector<1x1x8xf32> to vector<1x8xf32>
    %106 = vector.broadcast %105 : vector<1x8xf32> to vector<32x8xf32>
    %107 = arith.addf %103, %106 : vector<32x8xf32>
    %c1_64 = arith.constant 1 : index
    %c0_65 = arith.constant 0 : index
    %c0_66 = arith.constant 0 : index
    %108 = vector.load %arg10[%c1_64, %c0_65, %c0_66] : memref<16x8x32xf32, #tpu.memory_space<vmem>>, vector<1x8x32xf32>
    %109 = vector.shape_cast %108 : vector<1x8x32xf32> to vector<8x32xf32>
    %cst_67 = arith.constant dense<0.000000e+00> : vector<8x32xf32>
    %110 = tpu.matmul %109, %31, %cst_67 {dimension_numbers = #tpu.dot_dimension_numbers<[1], [0], [0], [1], [0, 0, 1, 1], [], []>} : vector<8x32xf32>, vector<32x32xf32>, vector<8x32xf32> -> vector<8x32xf32>
    %c1_68 = arith.constant 1 : index
    %c0_69 = arith.constant 0 : index
    %c0_70 = arith.constant 0 : index
    %111 = vector.load %arg11[%c1_68, %c0_69, %c0_70] : memref<16x8x1xf32, #tpu.memory_space<vmem>>, vector<1x8x1xf32>
    %112 = vector.shape_cast %111 : vector<1x8x1xf32> to vector<8x1xf32>
    %113 = vector.broadcast %112 : vector<8x1xf32> to vector<8x32xf32>
    %114 = arith.addf %110, %113 : vector<8x32xf32>
    %cst_71 = arith.constant dense<0.000000e+00> : vector<32x32xf32>
    %115 = tpu.matmul %107, %114, %cst_71 {dimension_numbers = #tpu.dot_dimension_numbers<[1], [0], [0], [1], [0, 0, 1, 1], [], []>} : vector<32x8xf32>, vector<8x32xf32>, vector<32x32xf32> -> vector<32x32xf32>
    %116 = arith.addf %115, %32 : vector<32x32xf32>
    %cst_72 = arith.constant dense<0xFF800000> : vector<32xf32>
    %117 = vector.multi_reduction <maximumf>, %116, %cst_72 [1] : vector<32x32xf32> to vector<32xf32>
    %118 = vector.shape_cast %117 : vector<32xf32> to vector<32x1xf32>
    %119 = vector.broadcast %118 : vector<32x1xf32> to vector<32x32xf32>
    %120 = arith.subf %116, %119 : vector<32x32xf32>
    %121 = math.exp %120 : vector<32x32xf32>
    %cst_73 = arith.constant dense<0.000000e+00> : vector<32xf32>
    %122 = vector.multi_reduction <add>, %121, %cst_73 [1] : vector<32x32xf32> to vector<32xf32>
    %123 = vector.shape_cast %122 : vector<32xf32> to vector<32x1xf32>
    %124 = tpu.reciprocal %123 {approx = true} : vector<32x1xf32> -> vector<32x1xf32>
    %125 = vector.broadcast %124 : vector<32x1xf32> to vector<32x32xf32>
    %126 = arith.mulf %121, %125 : vector<32x32xf32>
    %c1_74 = arith.constant 1 : index
    %c0_75 = arith.constant 0 : index
    %c0_76 = arith.constant 0 : index
    %127 = vector.load %arg12[%c1_74, %c0_75, %c0_76] : memref<16x32x32xf32, #tpu.memory_space<vmem>>, vector<1x32x32xf32>
    %128 = vector.shape_cast %127 : vector<1x32x32xf32> to vector<32x32xf32>
    %cst_77 = arith.constant dense<0.000000e+00> : vector<32x32xf32>
    %129 = tpu.matmul %30, %128, %cst_77 {dimension_numbers = #tpu.dot_dimension_numbers<[1], [0], [0], [1], [0, 0, 1, 1], [], []>} : vector<32x32xf32>, vector<32x32xf32>, vector<32x32xf32> -> vector<32x32xf32>
    %cst_78 = arith.constant dense<0.000000e+00> : vector<32x32xf32>
    %130 = tpu.matmul %126, %129, %cst_78 {dimension_numbers = #tpu.dot_dimension_numbers<[1], [0], [0], [1], [0, 0, 1, 1], [], []>} : vector<32x32xf32>, vector<32x32xf32>, vector<32x32xf32> -> vector<32x32xf32>
    %131 = arith.addf %100, %130 : vector<32x32xf32>
    %c2 = arith.constant 2 : index
    %c0_79 = arith.constant 0 : index
    %c0_80 = arith.constant 0 : index
    %132 = vector.load %arg8[%c2, %c0_79, %c0_80] : memref<16x32x8xf32, #tpu.memory_space<vmem>>, vector<1x32x8xf32>
    %133 = vector.shape_cast %132 : vector<1x32x8xf32> to vector<32x8xf32>
    %cst_81 = arith.constant dense<0.000000e+00> : vector<32x8xf32>
    %134 = tpu.matmul %64, %133, %cst_81 {dimension_numbers = #tpu.dot_dimension_numbers<[1], [0], [0], [1], [0, 0, 1, 1], [], []>} : vector<32x32xf32>, vector<32x8xf32>, vector<32x8xf32> -> vector<32x8xf32>
    %c2_82 = arith.constant 2 : index
    %c0_83 = arith.constant 0 : index
    %c0_84 = arith.constant 0 : index
    %135 = vector.load %arg9[%c2_82, %c0_83, %c0_84] : memref<16x1x8xf32, #tpu.memory_space<vmem>>, vector<1x1x8xf32>
    %136 = vector.shape_cast %135 : vector<1x1x8xf32> to vector<1x8xf32>
    %137 = vector.broadcast %136 : vector<1x8xf32> to vector<32x8xf32>
    %138 = arith.addf %134, %137 : vector<32x8xf32>
    %c2_85 = arith.constant 2 : index
    %c0_86 = arith.constant 0 : index
    %c0_87 = arith.constant 0 : index
    %139 = vector.load %arg10[%c2_85, %c0_86, %c0_87] : memref<16x8x32xf32, #tpu.memory_space<vmem>>, vector<1x8x32xf32>
    %140 = vector.shape_cast %139 : vector<1x8x32xf32> to vector<8x32xf32>
    %cst_88 = arith.constant dense<0.000000e+00> : vector<8x32xf32>
    %141 = tpu.matmul %140, %31, %cst_88 {dimension_numbers = #tpu.dot_dimension_numbers<[1], [0], [0], [1], [0, 0, 1, 1], [], []>} : vector<8x32xf32>, vector<32x32xf32>, vector<8x32xf32> -> vector<8x32xf32>
    %c2_89 = arith.constant 2 : index
    %c0_90 = arith.constant 0 : index
    %c0_91 = arith.constant 0 : index
    %142 = vector.load %arg11[%c2_89, %c0_90, %c0_91] : memref<16x8x1xf32, #tpu.memory_space<vmem>>, vector<1x8x1xf32>
    %143 = vector.shape_cast %142 : vector<1x8x1xf32> to vector<8x1xf32>
    %144 = vector.broadcast %143 : vector<8x1xf32> to vector<8x32xf32>
    %145 = arith.addf %141, %144 : vector<8x32xf32>
    %cst_92 = arith.constant dense<0.000000e+00> : vector<32x32xf32>
    %146 = tpu.matmul %138, %145, %cst_92 {dimension_numbers = #tpu.dot_dimension_numbers<[1], [0], [0], [1], [0, 0, 1, 1], [], []>} : vector<32x8xf32>, vector<8x32xf32>, vector<32x32xf32> -> vector<32x32xf32>
    %147 = arith.addf %146, %32 : vector<32x32xf32>
    %cst_93 = arith.constant dense<0xFF800000> : vector<32xf32>
    %148 = vector.multi_reduction <maximumf>, %147, %cst_93 [1] : vector<32x32xf32> to vector<32xf32>
    %149 = vector.shape_cast %148 : vector<32xf32> to vector<32x1xf32>
    %150 = vector.broadcast %149 : vector<32x1xf32> to vector<32x32xf32>
    %151 = arith.subf %147, %150 : vector<32x32xf32>
    %152 = math.exp %151 : vector<32x32xf32>
    %cst_94 = arith.constant dense<0.000000e+00> : vector<32xf32>
    %153 = vector.multi_reduction <add>, %152, %cst_94 [1] : vector<32x32xf32> to vector<32xf32>
    %154 = vector.shape_cast %153 : vector<32xf32> to vector<32x1xf32>
    %155 = tpu.reciprocal %154 {approx = true} : vector<32x1xf32> -> vector<32x1xf32>
    %156 = vector.broadcast %155 : vector<32x1xf32> to vector<32x32xf32>
    %157 = arith.mulf %152, %156 : vector<32x32xf32>
    %c2_95 = arith.constant 2 : index
    %c0_96 = arith.constant 0 : index
    %c0_97 = arith.constant 0 : index
    %158 = vector.load %arg12[%c2_95, %c0_96, %c0_97] : memref<16x32x32xf32, #tpu.memory_space<vmem>>, vector<1x32x32xf32>
    %159 = vector.shape_cast %158 : vector<1x32x32xf32> to vector<32x32xf32>
    %cst_98 = arith.constant dense<0.000000e+00> : vector<32x32xf32>
    %160 = tpu.matmul %30, %159, %cst_98 {dimension_numbers = #tpu.dot_dimension_numbers<[1], [0], [0], [1], [0, 0, 1, 1], [], []>} : vector<32x32xf32>, vector<32x32xf32>, vector<32x32xf32> -> vector<32x32xf32>
    %cst_99 = arith.constant dense<0.000000e+00> : vector<32x32xf32>
    %161 = tpu.matmul %157, %160, %cst_99 {dimension_numbers = #tpu.dot_dimension_numbers<[1], [0], [0], [1], [0, 0, 1, 1], [], []>} : vector<32x32xf32>, vector<32x32xf32>, vector<32x32xf32> -> vector<32x32xf32>
    %162 = arith.addf %131, %161 : vector<32x32xf32>
    %c3 = arith.constant 3 : index
    %c0_100 = arith.constant 0 : index
    %c0_101 = arith.constant 0 : index
    %163 = vector.load %arg8[%c3, %c0_100, %c0_101] : memref<16x32x8xf32, #tpu.memory_space<vmem>>, vector<1x32x8xf32>
    %164 = vector.shape_cast %163 : vector<1x32x8xf32> to vector<32x8xf32>
    %cst_102 = arith.constant dense<0.000000e+00> : vector<32x8xf32>
    %165 = tpu.matmul %64, %164, %cst_102 {dimension_numbers = #tpu.dot_dimension_numbers<[1], [0], [0], [1], [0, 0, 1, 1], [], []>} : vector<32x32xf32>, vector<32x8xf32>, vector<32x8xf32> -> vector<32x8xf32>
    %c3_103 = arith.constant 3 : index
    %c0_104 = arith.constant 0 : index
    %c0_105 = arith.constant 0 : index
    %166 = vector.load %arg9[%c3_103, %c0_104, %c0_105] : memref<16x1x8xf32, #tpu.memory_space<vmem>>, vector<1x1x8xf32>
    %167 = vector.shape_cast %166 : vector<1x1x8xf32> to vector<1x8xf32>
    %168 = vector.broadcast %167 : vector<1x8xf32> to vector<32x8xf32>
    %169 = arith.addf %165, %168 : vector<32x8xf32>
    %c3_106 = arith.constant 3 : index
    %c0_107 = arith.constant 0 : index
    %c0_108 = arith.constant 0 : index
    %170 = vector.load %arg10[%c3_106, %c0_107, %c0_108] : memref<16x8x32xf32, #tpu.memory_space<vmem>>, vector<1x8x32xf32>
    %171 = vector.shape_cast %170 : vector<1x8x32xf32> to vector<8x32xf32>
    %cst_109 = arith.constant dense<0.000000e+00> : vector<8x32xf32>
    %172 = tpu.matmul %171, %31, %cst_109 {dimension_numbers = #tpu.dot_dimension_numbers<[1], [0], [0], [1], [0, 0, 1, 1], [], []>} : vector<8x32xf32>, vector<32x32xf32>, vector<8x32xf32> -> vector<8x32xf32>
    %c3_110 = arith.constant 3 : index
    %c0_111 = arith.constant 0 : index
    %c0_112 = arith.constant 0 : index
    %173 = vector.load %arg11[%c3_110, %c0_111, %c0_112] : memref<16x8x1xf32, #tpu.memory_space<vmem>>, vector<1x8x1xf32>
    %174 = vector.shape_cast %173 : vector<1x8x1xf32> to vector<8x1xf32>
    %175 = vector.broadcast %174 : vector<8x1xf32> to vector<8x32xf32>
    %176 = arith.addf %172, %175 : vector<8x32xf32>
    %cst_113 = arith.constant dense<0.000000e+00> : vector<32x32xf32>
    %177 = tpu.matmul %169, %176, %cst_113 {dimension_numbers = #tpu.dot_dimension_numbers<[1], [0], [0], [1], [0, 0, 1, 1], [], []>} : vector<32x8xf32>, vector<8x32xf32>, vector<32x32xf32> -> vector<32x32xf32>
    %178 = arith.addf %177, %32 : vector<32x32xf32>
    %cst_114 = arith.constant dense<0xFF800000> : vector<32xf32>
    %179 = vector.multi_reduction <maximumf>, %178, %cst_114 [1] : vector<32x32xf32> to vector<32xf32>
    %180 = vector.shape_cast %179 : vector<32xf32> to vector<32x1xf32>
    %181 = vector.broadcast %180 : vector<32x1xf32> to vector<32x32xf32>
    %182 = arith.subf %178, %181 : vector<32x32xf32>
    %183 = math.exp %182 : vector<32x32xf32>
    %cst_115 = arith.constant dense<0.000000e+00> : vector<32xf32>
    %184 = vector.multi_reduction <add>, %183, %cst_115 [1] : vector<32x32xf32> to vector<32xf32>
    %185 = vector.shape_cast %184 : vector<32xf32> to vector<32x1xf32>
    %186 = tpu.reciprocal %185 {approx = true} : vector<32x1xf32> -> vector<32x1xf32>
    %187 = vector.broadcast %186 : vector<32x1xf32> to vector<32x32xf32>
    %188 = arith.mulf %183, %187 : vector<32x32xf32>
    %c3_116 = arith.constant 3 : index
    %c0_117 = arith.constant 0 : index
    %c0_118 = arith.constant 0 : index
    %189 = vector.load %arg12[%c3_116, %c0_117, %c0_118] : memref<16x32x32xf32, #tpu.memory_space<vmem>>, vector<1x32x32xf32>
    %190 = vector.shape_cast %189 : vector<1x32x32xf32> to vector<32x32xf32>
    %cst_119 = arith.constant dense<0.000000e+00> : vector<32x32xf32>
    %191 = tpu.matmul %30, %190, %cst_119 {dimension_numbers = #tpu.dot_dimension_numbers<[1], [0], [0], [1], [0, 0, 1, 1], [], []>} : vector<32x32xf32>, vector<32x32xf32>, vector<32x32xf32> -> vector<32x32xf32>
    %cst_120 = arith.constant dense<0.000000e+00> : vector<32x32xf32>
    %192 = tpu.matmul %188, %191, %cst_120 {dimension_numbers = #tpu.dot_dimension_numbers<[1], [0], [0], [1], [0, 0, 1, 1], [], []>} : vector<32x32xf32>, vector<32x32xf32>, vector<32x32xf32> -> vector<32x32xf32>
    %193 = arith.addf %162, %192 : vector<32x32xf32>
    %194 = arith.addf %193, %64 : vector<32x32xf32>
    %cst_121 = arith.constant dense<0.000000e+00> : vector<32xf32>
    %195 = vector.multi_reduction <add>, %194, %cst_121 [1] : vector<32x32xf32> to vector<32xf32>
    %196 = vector.shape_cast %195 : vector<32xf32> to vector<32x1xf32>
    %cst_122 = arith.constant 3.200000e+01 : f32
    %197 = vector.broadcast %cst_122 : f32 to vector<32x1xf32>
    %198 = arith.divf %196, %197 : vector<32x1xf32>
    %199 = vector.broadcast %198 : vector<32x1xf32> to vector<32x32xf32>
    %200 = arith.subf %194, %199 : vector<32x32xf32>
    %201 = arith.mulf %200, %200 : vector<32x32xf32>
    %cst_123 = arith.constant dense<0.000000e+00> : vector<32xf32>
    %202 = vector.multi_reduction <add>, %201, %cst_123 [1] : vector<32x32xf32> to vector<32xf32>
    %203 = vector.shape_cast %202 : vector<32xf32> to vector<32x1xf32>
    %cst_124 = arith.constant 3.200000e+01 : f32
    %204 = vector.broadcast %cst_124 : f32 to vector<32x1xf32>
    %205 = arith.divf %203, %204 : vector<32x1xf32>
    %206 = vector.broadcast %198 : vector<32x1xf32> to vector<32x32xf32>
    %207 = arith.subf %194, %206 : vector<32x32xf32>
    %cst_125 = arith.constant 9.99999974E-6 : f32
    %208 = vector.broadcast %cst_125 : f32 to vector<32x1xf32>
    %209 = arith.addf %205, %208 : vector<32x1xf32>
    %210 = math.rsqrt %209 : vector<32x1xf32>
    %211 = vector.broadcast %210 : vector<32x1xf32> to vector<32x32xf32>
    %212 = arith.mulf %207, %211 : vector<32x32xf32>
    %213 = vector.broadcast %35 : vector<1x32xf32> to vector<32x32xf32>
    %214 = arith.mulf %212, %213 : vector<32x32xf32>
    %215 = vector.broadcast %37 : vector<1x32xf32> to vector<32x32xf32>
    %216 = arith.addf %214, %215 : vector<32x32xf32>
    %c0_126 = arith.constant 0 : index
    %c0_127 = arith.constant 0 : index
    %c0_128 = arith.constant 0 : index
    %217 = vector.load %arg14[%c0_126, %c0_127, %c0_128] : memref<2x32x128xf32, #tpu.memory_space<vmem>>, vector<1x32x128xf32>
    %218 = vector.shape_cast %217 : vector<1x32x128xf32> to vector<32x128xf32>
    %cst_129 = arith.constant dense<0.000000e+00> : vector<32x128xf32>
    %219 = tpu.matmul %216, %218, %cst_129 {dimension_numbers = #tpu.dot_dimension_numbers<[1], [0], [0], [1], [0, 0, 1, 1], [], []>} : vector<32x32xf32>, vector<32x128xf32>, vector<32x128xf32> -> vector<32x128xf32>
    %c0_130 = arith.constant 0 : index
    %c0_131 = arith.constant 0 : index
    %c0_132 = arith.constant 0 : index
    %220 = vector.load %arg15[%c0_130, %c0_131, %c0_132] : memref<2x1x128xf32, #tpu.memory_space<vmem>>, vector<1x1x128xf32>
    %221 = vector.shape_cast %220 : vector<1x1x128xf32> to vector<1x128xf32>
    %222 = vector.broadcast %221 : vector<1x128xf32> to vector<32x128xf32>
    %223 = arith.addf %219, %222 : vector<32x128xf32>
    %cst_133 = arith.constant 0.000000e+00 : f32
    %224 = vector.broadcast %cst_133 : f32 to vector<32x128xf32>
    %225 = arith.maximumf %223, %224 : vector<32x128xf32>
    %c0_134 = arith.constant 0 : index
    %c0_135 = arith.constant 0 : index
    %c0_136 = arith.constant 0 : index
    %226 = vector.load %arg16[%c0_134, %c0_135, %c0_136] : memref<2x128x32xf32, #tpu.memory_space<vmem>>, vector<1x128x32xf32>
    %227 = vector.shape_cast %226 : vector<1x128x32xf32> to vector<128x32xf32>
    %cst_137 = arith.constant dense<0.000000e+00> : vector<32x32xf32>
    %228 = tpu.matmul %225, %227, %cst_137 {dimension_numbers = #tpu.dot_dimension_numbers<[1], [0], [0], [1], [0, 0, 1, 1], [], []>} : vector<32x128xf32>, vector<128x32xf32>, vector<32x32xf32> -> vector<32x32xf32>
    %229 = arith.addf %216, %228 : vector<32x32xf32>
    %c0_138 = arith.constant 0 : index
    %c0_139 = arith.constant 0 : index
    %c0_140 = arith.constant 0 : index
    %230 = vector.load %arg17[%c0_138, %c0_139, %c0_140] : memref<2x1x32xf32, #tpu.memory_space<vmem>>, vector<1x1x32xf32>
    %231 = vector.shape_cast %230 : vector<1x1x32xf32> to vector<1x32xf32>
    %232 = vector.broadcast %231 : vector<1x32xf32> to vector<32x32xf32>
    %233 = arith.addf %229, %232 : vector<32x32xf32>
    %234 = tpu.transpose %233, [1, 0] : vector<32x32xf32> -> vector<32x32xf32>
    %cst_141 = arith.constant 0.000000e+00 : f32
    %235 = vector.broadcast %cst_141 : f32 to vector<32x32xf32>
    %c1_142 = arith.constant 1 : index
    %c0_143 = arith.constant 0 : index
    %c0_144 = arith.constant 0 : index
    %236 = vector.load %arg13[%c1_142, %c0_143, %c0_144] : memref<4x1x32xf32, #tpu.memory_space<vmem>>, vector<1x1x32xf32>
    %237 = vector.shape_cast %236 : vector<1x1x32xf32> to vector<1x32xf32>
    %238 = vector.broadcast %237 : vector<1x32xf32> to vector<32x32xf32>
    %239 = arith.addf %235, %238 : vector<32x32xf32>
    %c4 = arith.constant 4 : index
    %c0_145 = arith.constant 0 : index
    %c0_146 = arith.constant 0 : index
    %240 = vector.load %arg8[%c4, %c0_145, %c0_146] : memref<16x32x8xf32, #tpu.memory_space<vmem>>, vector<1x32x8xf32>
    %241 = vector.shape_cast %240 : vector<1x32x8xf32> to vector<32x8xf32>
    %cst_147 = arith.constant dense<0.000000e+00> : vector<32x8xf32>
    %242 = tpu.matmul %233, %241, %cst_147 {dimension_numbers = #tpu.dot_dimension_numbers<[1], [0], [0], [1], [0, 0, 1, 1], [], []>} : vector<32x32xf32>, vector<32x8xf32>, vector<32x8xf32> -> vector<32x8xf32>
    %c4_148 = arith.constant 4 : index
    %c0_149 = arith.constant 0 : index
    %c0_150 = arith.constant 0 : index
    %243 = vector.load %arg9[%c4_148, %c0_149, %c0_150] : memref<16x1x8xf32, #tpu.memory_space<vmem>>, vector<1x1x8xf32>
    %244 = vector.shape_cast %243 : vector<1x1x8xf32> to vector<1x8xf32>
    %245 = vector.broadcast %244 : vector<1x8xf32> to vector<32x8xf32>
    %246 = arith.addf %242, %245 : vector<32x8xf32>
    %c4_151 = arith.constant 4 : index
    %c0_152 = arith.constant 0 : index
    %c0_153 = arith.constant 0 : index
    %247 = vector.load %arg10[%c4_151, %c0_152, %c0_153] : memref<16x8x32xf32, #tpu.memory_space<vmem>>, vector<1x8x32xf32>
    %248 = vector.shape_cast %247 : vector<1x8x32xf32> to vector<8x32xf32>
    %cst_154 = arith.constant dense<0.000000e+00> : vector<8x32xf32>
    %249 = tpu.matmul %248, %234, %cst_154 {dimension_numbers = #tpu.dot_dimension_numbers<[1], [0], [0], [1], [0, 0, 1, 1], [], []>} : vector<8x32xf32>, vector<32x32xf32>, vector<8x32xf32> -> vector<8x32xf32>
    %c4_155 = arith.constant 4 : index
    %c0_156 = arith.constant 0 : index
    %c0_157 = arith.constant 0 : index
    %250 = vector.load %arg11[%c4_155, %c0_156, %c0_157] : memref<16x8x1xf32, #tpu.memory_space<vmem>>, vector<1x8x1xf32>
    %251 = vector.shape_cast %250 : vector<1x8x1xf32> to vector<8x1xf32>
    %252 = vector.broadcast %251 : vector<8x1xf32> to vector<8x32xf32>
    %253 = arith.addf %249, %252 : vector<8x32xf32>
    %cst_158 = arith.constant dense<0.000000e+00> : vector<32x32xf32>
    %254 = tpu.matmul %246, %253, %cst_158 {dimension_numbers = #tpu.dot_dimension_numbers<[1], [0], [0], [1], [0, 0, 1, 1], [], []>} : vector<32x8xf32>, vector<8x32xf32>, vector<32x32xf32> -> vector<32x32xf32>
    %255 = arith.addf %254, %33 : vector<32x32xf32>
    %cst_159 = arith.constant dense<0xFF800000> : vector<32xf32>
    %256 = vector.multi_reduction <maximumf>, %255, %cst_159 [1] : vector<32x32xf32> to vector<32xf32>
    %257 = vector.shape_cast %256 : vector<32xf32> to vector<32x1xf32>
    %258 = vector.broadcast %257 : vector<32x1xf32> to vector<32x32xf32>
    %259 = arith.subf %255, %258 : vector<32x32xf32>
    %260 = math.exp %259 : vector<32x32xf32>
    %cst_160 = arith.constant dense<0.000000e+00> : vector<32xf32>
    %261 = vector.multi_reduction <add>, %260, %cst_160 [1] : vector<32x32xf32> to vector<32xf32>
    %262 = vector.shape_cast %261 : vector<32xf32> to vector<32x1xf32>
    %263 = tpu.reciprocal %262 {approx = true} : vector<32x1xf32> -> vector<32x1xf32>
    %264 = vector.broadcast %263 : vector<32x1xf32> to vector<32x32xf32>
    %265 = arith.mulf %260, %264 : vector<32x32xf32>
    %c4_161 = arith.constant 4 : index
    %c0_162 = arith.constant 0 : index
    %c0_163 = arith.constant 0 : index
    %266 = vector.load %arg12[%c4_161, %c0_162, %c0_163] : memref<16x32x32xf32, #tpu.memory_space<vmem>>, vector<1x32x32xf32>
    %267 = vector.shape_cast %266 : vector<1x32x32xf32> to vector<32x32xf32>
    %cst_164 = arith.constant dense<0.000000e+00> : vector<32x32xf32>
    %268 = tpu.matmul %233, %267, %cst_164 {dimension_numbers = #tpu.dot_dimension_numbers<[1], [0], [0], [1], [0, 0, 1, 1], [], []>} : vector<32x32xf32>, vector<32x32xf32>, vector<32x32xf32> -> vector<32x32xf32>
    %cst_165 = arith.constant dense<0.000000e+00> : vector<32x32xf32>
    %269 = tpu.matmul %265, %268, %cst_165 {dimension_numbers = #tpu.dot_dimension_numbers<[1], [0], [0], [1], [0, 0, 1, 1], [], []>} : vector<32x32xf32>, vector<32x32xf32>, vector<32x32xf32> -> vector<32x32xf32>
    %270 = arith.addf %239, %269 : vector<32x32xf32>
    %c5 = arith.constant 5 : index
    %c0_166 = arith.constant 0 : index
    %c0_167 = arith.constant 0 : index
    %271 = vector.load %arg8[%c5, %c0_166, %c0_167] : memref<16x32x8xf32, #tpu.memory_space<vmem>>, vector<1x32x8xf32>
    %272 = vector.shape_cast %271 : vector<1x32x8xf32> to vector<32x8xf32>
    %cst_168 = arith.constant dense<0.000000e+00> : vector<32x8xf32>
    %273 = tpu.matmul %233, %272, %cst_168 {dimension_numbers = #tpu.dot_dimension_numbers<[1], [0], [0], [1], [0, 0, 1, 1], [], []>} : vector<32x32xf32>, vector<32x8xf32>, vector<32x8xf32> -> vector<32x8xf32>
    %c5_169 = arith.constant 5 : index
    %c0_170 = arith.constant 0 : index
    %c0_171 = arith.constant 0 : index
    %274 = vector.load %arg9[%c5_169, %c0_170, %c0_171] : memref<16x1x8xf32, #tpu.memory_space<vmem>>, vector<1x1x8xf32>
    %275 = vector.shape_cast %274 : vector<1x1x8xf32> to vector<1x8xf32>
    %276 = vector.broadcast %275 : vector<1x8xf32> to vector<32x8xf32>
    %277 = arith.addf %273, %276 : vector<32x8xf32>
    %c5_172 = arith.constant 5 : index
    %c0_173 = arith.constant 0 : index
    %c0_174 = arith.constant 0 : index
    %278 = vector.load %arg10[%c5_172, %c0_173, %c0_174] : memref<16x8x32xf32, #tpu.memory_space<vmem>>, vector<1x8x32xf32>
    %279 = vector.shape_cast %278 : vector<1x8x32xf32> to vector<8x32xf32>
    %cst_175 = arith.constant dense<0.000000e+00> : vector<8x32xf32>
    %280 = tpu.matmul %279, %234, %cst_175 {dimension_numbers = #tpu.dot_dimension_numbers<[1], [0], [0], [1], [0, 0, 1, 1], [], []>} : vector<8x32xf32>, vector<32x32xf32>, vector<8x32xf32> -> vector<8x32xf32>
    %c5_176 = arith.constant 5 : index
    %c0_177 = arith.constant 0 : index
    %c0_178 = arith.constant 0 : index
    %281 = vector.load %arg11[%c5_176, %c0_177, %c0_178] : memref<16x8x1xf32, #tpu.memory_space<vmem>>, vector<1x8x1xf32>
    %282 = vector.shape_cast %281 : vector<1x8x1xf32> to vector<8x1xf32>
    %283 = vector.broadcast %282 : vector<8x1xf32> to vector<8x32xf32>
    %284 = arith.addf %280, %283 : vector<8x32xf32>
    %cst_179 = arith.constant dense<0.000000e+00> : vector<32x32xf32>
    %285 = tpu.matmul %277, %284, %cst_179 {dimension_numbers = #tpu.dot_dimension_numbers<[1], [0], [0], [1], [0, 0, 1, 1], [], []>} : vector<32x8xf32>, vector<8x32xf32>, vector<32x32xf32> -> vector<32x32xf32>
    %286 = arith.addf %285, %33 : vector<32x32xf32>
    %cst_180 = arith.constant dense<0xFF800000> : vector<32xf32>
    %287 = vector.multi_reduction <maximumf>, %286, %cst_180 [1] : vector<32x32xf32> to vector<32xf32>
    %288 = vector.shape_cast %287 : vector<32xf32> to vector<32x1xf32>
    %289 = vector.broadcast %288 : vector<32x1xf32> to vector<32x32xf32>
    %290 = arith.subf %286, %289 : vector<32x32xf32>
    %291 = math.exp %290 : vector<32x32xf32>
    %cst_181 = arith.constant dense<0.000000e+00> : vector<32xf32>
    %292 = vector.multi_reduction <add>, %291, %cst_181 [1] : vector<32x32xf32> to vector<32xf32>
    %293 = vector.shape_cast %292 : vector<32xf32> to vector<32x1xf32>
    %294 = tpu.reciprocal %293 {approx = true} : vector<32x1xf32> -> vector<32x1xf32>
    %295 = vector.broadcast %294 : vector<32x1xf32> to vector<32x32xf32>
    %296 = arith.mulf %291, %295 : vector<32x32xf32>
    %c5_182 = arith.constant 5 : index
    %c0_183 = arith.constant 0 : index
    %c0_184 = arith.constant 0 : index
    %297 = vector.load %arg12[%c5_182, %c0_183, %c0_184] : memref<16x32x32xf32, #tpu.memory_space<vmem>>, vector<1x32x32xf32>
    %298 = vector.shape_cast %297 : vector<1x32x32xf32> to vector<32x32xf32>
    %cst_185 = arith.constant dense<0.000000e+00> : vector<32x32xf32>
    %299 = tpu.matmul %233, %298, %cst_185 {dimension_numbers = #tpu.dot_dimension_numbers<[1], [0], [0], [1], [0, 0, 1, 1], [], []>} : vector<32x32xf32>, vector<32x32xf32>, vector<32x32xf32> -> vector<32x32xf32>
    %cst_186 = arith.constant dense<0.000000e+00> : vector<32x32xf32>
    %300 = tpu.matmul %296, %299, %cst_186 {dimension_numbers = #tpu.dot_dimension_numbers<[1], [0], [0], [1], [0, 0, 1, 1], [], []>} : vector<32x32xf32>, vector<32x32xf32>, vector<32x32xf32> -> vector<32x32xf32>
    %301 = arith.addf %270, %300 : vector<32x32xf32>
    %c6 = arith.constant 6 : index
    %c0_187 = arith.constant 0 : index
    %c0_188 = arith.constant 0 : index
    %302 = vector.load %arg8[%c6, %c0_187, %c0_188] : memref<16x32x8xf32, #tpu.memory_space<vmem>>, vector<1x32x8xf32>
    %303 = vector.shape_cast %302 : vector<1x32x8xf32> to vector<32x8xf32>
    %cst_189 = arith.constant dense<0.000000e+00> : vector<32x8xf32>
    %304 = tpu.matmul %233, %303, %cst_189 {dimension_numbers = #tpu.dot_dimension_numbers<[1], [0], [0], [1], [0, 0, 1, 1], [], []>} : vector<32x32xf32>, vector<32x8xf32>, vector<32x8xf32> -> vector<32x8xf32>
    %c6_190 = arith.constant 6 : index
    %c0_191 = arith.constant 0 : index
    %c0_192 = arith.constant 0 : index
    %305 = vector.load %arg9[%c6_190, %c0_191, %c0_192] : memref<16x1x8xf32, #tpu.memory_space<vmem>>, vector<1x1x8xf32>
    %306 = vector.shape_cast %305 : vector<1x1x8xf32> to vector<1x8xf32>
    %307 = vector.broadcast %306 : vector<1x8xf32> to vector<32x8xf32>
    %308 = arith.addf %304, %307 : vector<32x8xf32>
    %c6_193 = arith.constant 6 : index
    %c0_194 = arith.constant 0 : index
    %c0_195 = arith.constant 0 : index
    %309 = vector.load %arg10[%c6_193, %c0_194, %c0_195] : memref<16x8x32xf32, #tpu.memory_space<vmem>>, vector<1x8x32xf32>
    %310 = vector.shape_cast %309 : vector<1x8x32xf32> to vector<8x32xf32>
    %cst_196 = arith.constant dense<0.000000e+00> : vector<8x32xf32>
    %311 = tpu.matmul %310, %234, %cst_196 {dimension_numbers = #tpu.dot_dimension_numbers<[1], [0], [0], [1], [0, 0, 1, 1], [], []>} : vector<8x32xf32>, vector<32x32xf32>, vector<8x32xf32> -> vector<8x32xf32>
    %c6_197 = arith.constant 6 : index
    %c0_198 = arith.constant 0 : index
    %c0_199 = arith.constant 0 : index
    %312 = vector.load %arg11[%c6_197, %c0_198, %c0_199] : memref<16x8x1xf32, #tpu.memory_space<vmem>>, vector<1x8x1xf32>
    %313 = vector.shape_cast %312 : vector<1x8x1xf32> to vector<8x1xf32>
    %314 = vector.broadcast %313 : vector<8x1xf32> to vector<8x32xf32>
    %315 = arith.addf %311, %314 : vector<8x32xf32>
    %cst_200 = arith.constant dense<0.000000e+00> : vector<32x32xf32>
    %316 = tpu.matmul %308, %315, %cst_200 {dimension_numbers = #tpu.dot_dimension_numbers<[1], [0], [0], [1], [0, 0, 1, 1], [], []>} : vector<32x8xf32>, vector<8x32xf32>, vector<32x32xf32> -> vector<32x32xf32>
    %317 = arith.addf %316, %33 : vector<32x32xf32>
    %cst_201 = arith.constant dense<0xFF800000> : vector<32xf32>
    %318 = vector.multi_reduction <maximumf>, %317, %cst_201 [1] : vector<32x32xf32> to vector<32xf32>
    %319 = vector.shape_cast %318 : vector<32xf32> to vector<32x1xf32>
    %320 = vector.broadcast %319 : vector<32x1xf32> to vector<32x32xf32>
    %321 = arith.subf %317, %320 : vector<32x32xf32>
    %322 = math.exp %321 : vector<32x32xf32>
    %cst_202 = arith.constant dense<0.000000e+00> : vector<32xf32>
    %323 = vector.multi_reduction <add>, %322, %cst_202 [1] : vector<32x32xf32> to vector<32xf32>
    %324 = vector.shape_cast %323 : vector<32xf32> to vector<32x1xf32>
    %325 = tpu.reciprocal %324 {approx = true} : vector<32x1xf32> -> vector<32x1xf32>
    %326 = vector.broadcast %325 : vector<32x1xf32> to vector<32x32xf32>
    %327 = arith.mulf %322, %326 : vector<32x32xf32>
    %c6_203 = arith.constant 6 : index
    %c0_204 = arith.constant 0 : index
    %c0_205 = arith.constant 0 : index
    %328 = vector.load %arg12[%c6_203, %c0_204, %c0_205] : memref<16x32x32xf32, #tpu.memory_space<vmem>>, vector<1x32x32xf32>
    %329 = vector.shape_cast %328 : vector<1x32x32xf32> to vector<32x32xf32>
    %cst_206 = arith.constant dense<0.000000e+00> : vector<32x32xf32>
    %330 = tpu.matmul %233, %329, %cst_206 {dimension_numbers = #tpu.dot_dimension_numbers<[1], [0], [0], [1], [0, 0, 1, 1], [], []>} : vector<32x32xf32>, vector<32x32xf32>, vector<32x32xf32> -> vector<32x32xf32>
    %cst_207 = arith.constant dense<0.000000e+00> : vector<32x32xf32>
    %331 = tpu.matmul %327, %330, %cst_207 {dimension_numbers = #tpu.dot_dimension_numbers<[1], [0], [0], [1], [0, 0, 1, 1], [], []>} : vector<32x32xf32>, vector<32x32xf32>, vector<32x32xf32> -> vector<32x32xf32>
    %332 = arith.addf %301, %331 : vector<32x32xf32>
    %c7 = arith.constant 7 : index
    %c0_208 = arith.constant 0 : index
    %c0_209 = arith.constant 0 : index
    %333 = vector.load %arg8[%c7, %c0_208, %c0_209] : memref<16x32x8xf32, #tpu.memory_space<vmem>>, vector<1x32x8xf32>
    %334 = vector.shape_cast %333 : vector<1x32x8xf32> to vector<32x8xf32>
    %cst_210 = arith.constant dense<0.000000e+00> : vector<32x8xf32>
    %335 = tpu.matmul %233, %334, %cst_210 {dimension_numbers = #tpu.dot_dimension_numbers<[1], [0], [0], [1], [0, 0, 1, 1], [], []>} : vector<32x32xf32>, vector<32x8xf32>, vector<32x8xf32> -> vector<32x8xf32>
    %c7_211 = arith.constant 7 : index
    %c0_212 = arith.constant 0 : index
    %c0_213 = arith.constant 0 : index
    %336 = vector.load %arg9[%c7_211, %c0_212, %c0_213] : memref<16x1x8xf32, #tpu.memory_space<vmem>>, vector<1x1x8xf32>
    %337 = vector.shape_cast %336 : vector<1x1x8xf32> to vector<1x8xf32>
    %338 = vector.broadcast %337 : vector<1x8xf32> to vector<32x8xf32>
    %339 = arith.addf %335, %338 : vector<32x8xf32>
    %c7_214 = arith.constant 7 : index
    %c0_215 = arith.constant 0 : index
    %c0_216 = arith.constant 0 : index
    %340 = vector.load %arg10[%c7_214, %c0_215, %c0_216] : memref<16x8x32xf32, #tpu.memory_space<vmem>>, vector<1x8x32xf32>
    %341 = vector.shape_cast %340 : vector<1x8x32xf32> to vector<8x32xf32>
    %cst_217 = arith.constant dense<0.000000e+00> : vector<8x32xf32>
    %342 = tpu.matmul %341, %234, %cst_217 {dimension_numbers = #tpu.dot_dimension_numbers<[1], [0], [0], [1], [0, 0, 1, 1], [], []>} : vector<8x32xf32>, vector<32x32xf32>, vector<8x32xf32> -> vector<8x32xf32>
    %c7_218 = arith.constant 7 : index
    %c0_219 = arith.constant 0 : index
    %c0_220 = arith.constant 0 : index
    %343 = vector.load %arg11[%c7_218, %c0_219, %c0_220] : memref<16x8x1xf32, #tpu.memory_space<vmem>>, vector<1x8x1xf32>
    %344 = vector.shape_cast %343 : vector<1x8x1xf32> to vector<8x1xf32>
    %345 = vector.broadcast %344 : vector<8x1xf32> to vector<8x32xf32>
    %346 = arith.addf %342, %345 : vector<8x32xf32>
    %cst_221 = arith.constant dense<0.000000e+00> : vector<32x32xf32>
    %347 = tpu.matmul %339, %346, %cst_221 {dimension_numbers = #tpu.dot_dimension_numbers<[1], [0], [0], [1], [0, 0, 1, 1], [], []>} : vector<32x8xf32>, vector<8x32xf32>, vector<32x32xf32> -> vector<32x32xf32>
    %348 = arith.addf %347, %33 : vector<32x32xf32>
    %cst_222 = arith.constant dense<0xFF800000> : vector<32xf32>
    %349 = vector.multi_reduction <maximumf>, %348, %cst_222 [1] : vector<32x32xf32> to vector<32xf32>
    %350 = vector.shape_cast %349 : vector<32xf32> to vector<32x1xf32>
    %351 = vector.broadcast %350 : vector<32x1xf32> to vector<32x32xf32>
    %352 = arith.subf %348, %351 : vector<32x32xf32>
    %353 = math.exp %352 : vector<32x32xf32>
    %cst_223 = arith.constant dense<0.000000e+00> : vector<32xf32>
    %354 = vector.multi_reduction <add>, %353, %cst_223 [1] : vector<32x32xf32> to vector<32xf32>
    %355 = vector.shape_cast %354 : vector<32xf32> to vector<32x1xf32>
    %356 = tpu.reciprocal %355 {approx = true} : vector<32x1xf32> -> vector<32x1xf32>
    %357 = vector.broadcast %356 : vector<32x1xf32> to vector<32x32xf32>
    %358 = arith.mulf %353, %357 : vector<32x32xf32>
    %c7_224 = arith.constant 7 : index
    %c0_225 = arith.constant 0 : index
    %c0_226 = arith.constant 0 : index
    %359 = vector.load %arg12[%c7_224, %c0_225, %c0_226] : memref<16x32x32xf32, #tpu.memory_space<vmem>>, vector<1x32x32xf32>
    %360 = vector.shape_cast %359 : vector<1x32x32xf32> to vector<32x32xf32>
    %cst_227 = arith.constant dense<0.000000e+00> : vector<32x32xf32>
    %361 = tpu.matmul %233, %360, %cst_227 {dimension_numbers = #tpu.dot_dimension_numbers<[1], [0], [0], [1], [0, 0, 1, 1], [], []>} : vector<32x32xf32>, vector<32x32xf32>, vector<32x32xf32> -> vector<32x32xf32>
    %cst_228 = arith.constant dense<0.000000e+00> : vector<32x32xf32>
    %362 = tpu.matmul %358, %361, %cst_228 {dimension_numbers = #tpu.dot_dimension_numbers<[1], [0], [0], [1], [0, 0, 1, 1], [], []>} : vector<32x32xf32>, vector<32x32xf32>, vector<32x32xf32> -> vector<32x32xf32>
    %363 = arith.addf %332, %362 : vector<32x32xf32>
    %364 = arith.addf %363, %216 : vector<32x32xf32>
    %cst_229 = arith.constant dense<0.000000e+00> : vector<32xf32>
    %365 = vector.multi_reduction <add>, %364, %cst_229 [1] : vector<32x32xf32> to vector<32xf32>
    %366 = vector.shape_cast %365 : vector<32xf32> to vector<32x1xf32>
    %cst_230 = arith.constant 3.200000e+01 : f32
    %367 = vector.broadcast %cst_230 : f32 to vector<32x1xf32>
    %368 = arith.divf %366, %367 : vector<32x1xf32>
    %369 = vector.broadcast %368 : vector<32x1xf32> to vector<32x32xf32>
    %370 = arith.subf %364, %369 : vector<32x32xf32>
    %371 = arith.mulf %370, %370 : vector<32x32xf32>
    %cst_231 = arith.constant dense<0.000000e+00> : vector<32xf32>
    %372 = vector.multi_reduction <add>, %371, %cst_231 [1] : vector<32x32xf32> to vector<32xf32>
    %373 = vector.shape_cast %372 : vector<32xf32> to vector<32x1xf32>
    %cst_232 = arith.constant 3.200000e+01 : f32
    %374 = vector.broadcast %cst_232 : f32 to vector<32x1xf32>
    %375 = arith.divf %373, %374 : vector<32x1xf32>
    %376 = vector.broadcast %368 : vector<32x1xf32> to vector<32x32xf32>
    %377 = arith.subf %364, %376 : vector<32x32xf32>
    %cst_233 = arith.constant 9.99999974E-6 : f32
    %378 = vector.broadcast %cst_233 : f32 to vector<32x1xf32>
    %379 = arith.addf %375, %378 : vector<32x1xf32>
    %380 = math.rsqrt %379 : vector<32x1xf32>
    %381 = vector.broadcast %380 : vector<32x1xf32> to vector<32x32xf32>
    %382 = arith.mulf %377, %381 : vector<32x32xf32>
    %383 = vector.broadcast %35 : vector<1x32xf32> to vector<32x32xf32>
    %384 = arith.mulf %382, %383 : vector<32x32xf32>
    %385 = vector.broadcast %37 : vector<1x32xf32> to vector<32x32xf32>
    %386 = arith.addf %384, %385 : vector<32x32xf32>
    %c1_234 = arith.constant 1 : index
    %c0_235 = arith.constant 0 : index
    %c0_236 = arith.constant 0 : index
    %387 = vector.load %arg18[%c1_234, %c0_235, %c0_236] : memref<2x1x32xf32, #tpu.memory_space<vmem>>, vector<1x1x32xf32>
    %388 = vector.shape_cast %387 : vector<1x1x32xf32> to vector<1x32xf32>
    %c1_237 = arith.constant 1 : index
    %c0_238 = arith.constant 0 : index
    %c0_239 = arith.constant 0 : index
    %389 = vector.load %arg19[%c1_237, %c0_238, %c0_239] : memref<2x1x32xf32, #tpu.memory_space<vmem>>, vector<1x1x32xf32>
    %390 = vector.shape_cast %389 : vector<1x1x32xf32> to vector<1x32xf32>
    %cst_240 = arith.constant dense<0.000000e+00> : vector<32xf32>
    %391 = vector.multi_reduction <add>, %386, %cst_240 [1] : vector<32x32xf32> to vector<32xf32>
    %392 = vector.shape_cast %391 : vector<32xf32> to vector<32x1xf32>
    %cst_241 = arith.constant 3.200000e+01 : f32
    %393 = vector.broadcast %cst_241 : f32 to vector<32x1xf32>
    %394 = arith.divf %392, %393 : vector<32x1xf32>
    %395 = vector.broadcast %394 : vector<32x1xf32> to vector<32x32xf32>
    %396 = arith.subf %386, %395 : vector<32x32xf32>
    %397 = arith.mulf %396, %396 : vector<32x32xf32>
    %cst_242 = arith.constant dense<0.000000e+00> : vector<32xf32>
    %398 = vector.multi_reduction <add>, %397, %cst_242 [1] : vector<32x32xf32> to vector<32xf32>
    %399 = vector.shape_cast %398 : vector<32xf32> to vector<32x1xf32>
    %cst_243 = arith.constant 3.200000e+01 : f32
    %400 = vector.broadcast %cst_243 : f32 to vector<32x1xf32>
    %401 = arith.divf %399, %400 : vector<32x1xf32>
    %402 = vector.broadcast %394 : vector<32x1xf32> to vector<32x32xf32>
    %403 = arith.subf %386, %402 : vector<32x32xf32>
    %cst_244 = arith.constant 9.99999974E-6 : f32
    %404 = vector.broadcast %cst_244 : f32 to vector<32x1xf32>
    %405 = arith.addf %401, %404 : vector<32x1xf32>
    %406 = math.rsqrt %405 : vector<32x1xf32>
    %407 = vector.broadcast %406 : vector<32x1xf32> to vector<32x32xf32>
    %408 = arith.mulf %403, %407 : vector<32x32xf32>
    %409 = vector.broadcast %388 : vector<1x32xf32> to vector<32x32xf32>
    %410 = arith.mulf %408, %409 : vector<32x32xf32>
    %411 = vector.broadcast %390 : vector<1x32xf32> to vector<32x32xf32>
    %412 = arith.addf %410, %411 : vector<32x32xf32>
    %cst_245 = arith.constant 0.000000e+00 : f32
    %413 = vector.broadcast %cst_245 : f32 to vector<32x32xf32>
    %c2_246 = arith.constant 2 : index
    %c0_247 = arith.constant 0 : index
    %c0_248 = arith.constant 0 : index
    %414 = vector.load %arg13[%c2_246, %c0_247, %c0_248] : memref<4x1x32xf32, #tpu.memory_space<vmem>>, vector<1x1x32xf32>
    %415 = vector.shape_cast %414 : vector<1x1x32xf32> to vector<1x32xf32>
    %416 = vector.broadcast %415 : vector<1x32xf32> to vector<32x32xf32>
    %417 = arith.addf %413, %416 : vector<32x32xf32>
    %c8 = arith.constant 8 : index
    %c0_249 = arith.constant 0 : index
    %c0_250 = arith.constant 0 : index
    %418 = vector.load %arg8[%c8, %c0_249, %c0_250] : memref<16x32x8xf32, #tpu.memory_space<vmem>>, vector<1x32x8xf32>
    %419 = vector.shape_cast %418 : vector<1x32x8xf32> to vector<32x8xf32>
    %cst_251 = arith.constant dense<0.000000e+00> : vector<32x8xf32>
    %420 = tpu.matmul %412, %419, %cst_251 {dimension_numbers = #tpu.dot_dimension_numbers<[1], [0], [0], [1], [0, 0, 1, 1], [], []>} : vector<32x32xf32>, vector<32x8xf32>, vector<32x8xf32> -> vector<32x8xf32>
    %c8_252 = arith.constant 8 : index
    %c0_253 = arith.constant 0 : index
    %c0_254 = arith.constant 0 : index
    %421 = vector.load %arg9[%c8_252, %c0_253, %c0_254] : memref<16x1x8xf32, #tpu.memory_space<vmem>>, vector<1x1x8xf32>
    %422 = vector.shape_cast %421 : vector<1x1x8xf32> to vector<1x8xf32>
    %423 = vector.broadcast %422 : vector<1x8xf32> to vector<32x8xf32>
    %424 = arith.addf %420, %423 : vector<32x8xf32>
    %c8_255 = arith.constant 8 : index
    %c0_256 = arith.constant 0 : index
    %c0_257 = arith.constant 0 : index
    %425 = vector.load %arg10[%c8_255, %c0_256, %c0_257] : memref<16x8x32xf32, #tpu.memory_space<vmem>>, vector<1x8x32xf32>
    %426 = vector.shape_cast %425 : vector<1x8x32xf32> to vector<8x32xf32>
    %cst_258 = arith.constant dense<0.000000e+00> : vector<8x32xf32>
    %427 = tpu.matmul %426, %31, %cst_258 {dimension_numbers = #tpu.dot_dimension_numbers<[1], [0], [0], [1], [0, 0, 1, 1], [], []>} : vector<8x32xf32>, vector<32x32xf32>, vector<8x32xf32> -> vector<8x32xf32>
    %c8_259 = arith.constant 8 : index
    %c0_260 = arith.constant 0 : index
    %c0_261 = arith.constant 0 : index
    %428 = vector.load %arg11[%c8_259, %c0_260, %c0_261] : memref<16x8x1xf32, #tpu.memory_space<vmem>>, vector<1x8x1xf32>
    %429 = vector.shape_cast %428 : vector<1x8x1xf32> to vector<8x1xf32>
    %430 = vector.broadcast %429 : vector<8x1xf32> to vector<8x32xf32>
    %431 = arith.addf %427, %430 : vector<8x32xf32>
    %cst_262 = arith.constant dense<0.000000e+00> : vector<32x32xf32>
    %432 = tpu.matmul %424, %431, %cst_262 {dimension_numbers = #tpu.dot_dimension_numbers<[1], [0], [0], [1], [0, 0, 1, 1], [], []>} : vector<32x8xf32>, vector<8x32xf32>, vector<32x32xf32> -> vector<32x32xf32>
    %433 = arith.addf %432, %32 : vector<32x32xf32>
    %cst_263 = arith.constant dense<0xFF800000> : vector<32xf32>
    %434 = vector.multi_reduction <maximumf>, %433, %cst_263 [1] : vector<32x32xf32> to vector<32xf32>
    %435 = vector.shape_cast %434 : vector<32xf32> to vector<32x1xf32>
    %436 = vector.broadcast %435 : vector<32x1xf32> to vector<32x32xf32>
    %437 = arith.subf %433, %436 : vector<32x32xf32>
    %438 = math.exp %437 : vector<32x32xf32>
    %cst_264 = arith.constant dense<0.000000e+00> : vector<32xf32>
    %439 = vector.multi_reduction <add>, %438, %cst_264 [1] : vector<32x32xf32> to vector<32xf32>
    %440 = vector.shape_cast %439 : vector<32xf32> to vector<32x1xf32>
    %441 = tpu.reciprocal %440 {approx = true} : vector<32x1xf32> -> vector<32x1xf32>
    %442 = vector.broadcast %441 : vector<32x1xf32> to vector<32x32xf32>
    %443 = arith.mulf %438, %442 : vector<32x32xf32>
    %c8_265 = arith.constant 8 : index
    %c0_266 = arith.constant 0 : index
    %c0_267 = arith.constant 0 : index
    %444 = vector.load %arg12[%c8_265, %c0_266, %c0_267] : memref<16x32x32xf32, #tpu.memory_space<vmem>>, vector<1x32x32xf32>
    %445 = vector.shape_cast %444 : vector<1x32x32xf32> to vector<32x32xf32>
    %cst_268 = arith.constant dense<0.000000e+00> : vector<32x32xf32>
    %446 = tpu.matmul %30, %445, %cst_268 {dimension_numbers = #tpu.dot_dimension_numbers<[1], [0], [0], [1], [0, 0, 1, 1], [], []>} : vector<32x32xf32>, vector<32x32xf32>, vector<32x32xf32> -> vector<32x32xf32>
    %cst_269 = arith.constant dense<0.000000e+00> : vector<32x32xf32>
    %447 = tpu.matmul %443, %446, %cst_269 {dimension_numbers = #tpu.dot_dimension_numbers<[1], [0], [0], [1], [0, 0, 1, 1], [], []>} : vector<32x32xf32>, vector<32x32xf32>, vector<32x32xf32> -> vector<32x32xf32>
    %448 = arith.addf %417, %447 : vector<32x32xf32>
    %c9 = arith.constant 9 : index
    %c0_270 = arith.constant 0 : index
    %c0_271 = arith.constant 0 : index
    %449 = vector.load %arg8[%c9, %c0_270, %c0_271] : memref<16x32x8xf32, #tpu.memory_space<vmem>>, vector<1x32x8xf32>
    %450 = vector.shape_cast %449 : vector<1x32x8xf32> to vector<32x8xf32>
    %cst_272 = arith.constant dense<0.000000e+00> : vector<32x8xf32>
    %451 = tpu.matmul %412, %450, %cst_272 {dimension_numbers = #tpu.dot_dimension_numbers<[1], [0], [0], [1], [0, 0, 1, 1], [], []>} : vector<32x32xf32>, vector<32x8xf32>, vector<32x8xf32> -> vector<32x8xf32>
    %c9_273 = arith.constant 9 : index
    %c0_274 = arith.constant 0 : index
    %c0_275 = arith.constant 0 : index
    %452 = vector.load %arg9[%c9_273, %c0_274, %c0_275] : memref<16x1x8xf32, #tpu.memory_space<vmem>>, vector<1x1x8xf32>
    %453 = vector.shape_cast %452 : vector<1x1x8xf32> to vector<1x8xf32>
    %454 = vector.broadcast %453 : vector<1x8xf32> to vector<32x8xf32>
    %455 = arith.addf %451, %454 : vector<32x8xf32>
    %c9_276 = arith.constant 9 : index
    %c0_277 = arith.constant 0 : index
    %c0_278 = arith.constant 0 : index
    %456 = vector.load %arg10[%c9_276, %c0_277, %c0_278] : memref<16x8x32xf32, #tpu.memory_space<vmem>>, vector<1x8x32xf32>
    %457 = vector.shape_cast %456 : vector<1x8x32xf32> to vector<8x32xf32>
    %cst_279 = arith.constant dense<0.000000e+00> : vector<8x32xf32>
    %458 = tpu.matmul %457, %31, %cst_279 {dimension_numbers = #tpu.dot_dimension_numbers<[1], [0], [0], [1], [0, 0, 1, 1], [], []>} : vector<8x32xf32>, vector<32x32xf32>, vector<8x32xf32> -> vector<8x32xf32>
    %c9_280 = arith.constant 9 : index
    %c0_281 = arith.constant 0 : index
    %c0_282 = arith.constant 0 : index
    %459 = vector.load %arg11[%c9_280, %c0_281, %c0_282] : memref<16x8x1xf32, #tpu.memory_space<vmem>>, vector<1x8x1xf32>
    %460 = vector.shape_cast %459 : vector<1x8x1xf32> to vector<8x1xf32>
    %461 = vector.broadcast %460 : vector<8x1xf32> to vector<8x32xf32>
    %462 = arith.addf %458, %461 : vector<8x32xf32>
    %cst_283 = arith.constant dense<0.000000e+00> : vector<32x32xf32>
    %463 = tpu.matmul %455, %462, %cst_283 {dimension_numbers = #tpu.dot_dimension_numbers<[1], [0], [0], [1], [0, 0, 1, 1], [], []>} : vector<32x8xf32>, vector<8x32xf32>, vector<32x32xf32> -> vector<32x32xf32>
    %464 = arith.addf %463, %32 : vector<32x32xf32>
    %cst_284 = arith.constant dense<0xFF800000> : vector<32xf32>
    %465 = vector.multi_reduction <maximumf>, %464, %cst_284 [1] : vector<32x32xf32> to vector<32xf32>
    %466 = vector.shape_cast %465 : vector<32xf32> to vector<32x1xf32>
    %467 = vector.broadcast %466 : vector<32x1xf32> to vector<32x32xf32>
    %468 = arith.subf %464, %467 : vector<32x32xf32>
    %469 = math.exp %468 : vector<32x32xf32>
    %cst_285 = arith.constant dense<0.000000e+00> : vector<32xf32>
    %470 = vector.multi_reduction <add>, %469, %cst_285 [1] : vector<32x32xf32> to vector<32xf32>
    %471 = vector.shape_cast %470 : vector<32xf32> to vector<32x1xf32>
    %472 = tpu.reciprocal %471 {approx = true} : vector<32x1xf32> -> vector<32x1xf32>
    %473 = vector.broadcast %472 : vector<32x1xf32> to vector<32x32xf32>
    %474 = arith.mulf %469, %473 : vector<32x32xf32>
    %c9_286 = arith.constant 9 : index
    %c0_287 = arith.constant 0 : index
    %c0_288 = arith.constant 0 : index
    %475 = vector.load %arg12[%c9_286, %c0_287, %c0_288] : memref<16x32x32xf32, #tpu.memory_space<vmem>>, vector<1x32x32xf32>
    %476 = vector.shape_cast %475 : vector<1x32x32xf32> to vector<32x32xf32>
    %cst_289 = arith.constant dense<0.000000e+00> : vector<32x32xf32>
    %477 = tpu.matmul %30, %476, %cst_289 {dimension_numbers = #tpu.dot_dimension_numbers<[1], [0], [0], [1], [0, 0, 1, 1], [], []>} : vector<32x32xf32>, vector<32x32xf32>, vector<32x32xf32> -> vector<32x32xf32>
    %cst_290 = arith.constant dense<0.000000e+00> : vector<32x32xf32>
    %478 = tpu.matmul %474, %477, %cst_290 {dimension_numbers = #tpu.dot_dimension_numbers<[1], [0], [0], [1], [0, 0, 1, 1], [], []>} : vector<32x32xf32>, vector<32x32xf32>, vector<32x32xf32> -> vector<32x32xf32>
    %479 = arith.addf %448, %478 : vector<32x32xf32>
    %c10 = arith.constant 10 : index
    %c0_291 = arith.constant 0 : index
    %c0_292 = arith.constant 0 : index
    %480 = vector.load %arg8[%c10, %c0_291, %c0_292] : memref<16x32x8xf32, #tpu.memory_space<vmem>>, vector<1x32x8xf32>
    %481 = vector.shape_cast %480 : vector<1x32x8xf32> to vector<32x8xf32>
    %cst_293 = arith.constant dense<0.000000e+00> : vector<32x8xf32>
    %482 = tpu.matmul %412, %481, %cst_293 {dimension_numbers = #tpu.dot_dimension_numbers<[1], [0], [0], [1], [0, 0, 1, 1], [], []>} : vector<32x32xf32>, vector<32x8xf32>, vector<32x8xf32> -> vector<32x8xf32>
    %c10_294 = arith.constant 10 : index
    %c0_295 = arith.constant 0 : index
    %c0_296 = arith.constant 0 : index
    %483 = vector.load %arg9[%c10_294, %c0_295, %c0_296] : memref<16x1x8xf32, #tpu.memory_space<vmem>>, vector<1x1x8xf32>
    %484 = vector.shape_cast %483 : vector<1x1x8xf32> to vector<1x8xf32>
    %485 = vector.broadcast %484 : vector<1x8xf32> to vector<32x8xf32>
    %486 = arith.addf %482, %485 : vector<32x8xf32>
    %c10_297 = arith.constant 10 : index
    %c0_298 = arith.constant 0 : index
    %c0_299 = arith.constant 0 : index
    %487 = vector.load %arg10[%c10_297, %c0_298, %c0_299] : memref<16x8x32xf32, #tpu.memory_space<vmem>>, vector<1x8x32xf32>
    %488 = vector.shape_cast %487 : vector<1x8x32xf32> to vector<8x32xf32>
    %cst_300 = arith.constant dense<0.000000e+00> : vector<8x32xf32>
    %489 = tpu.matmul %488, %31, %cst_300 {dimension_numbers = #tpu.dot_dimension_numbers<[1], [0], [0], [1], [0, 0, 1, 1], [], []>} : vector<8x32xf32>, vector<32x32xf32>, vector<8x32xf32> -> vector<8x32xf32>
    %c10_301 = arith.constant 10 : index
    %c0_302 = arith.constant 0 : index
    %c0_303 = arith.constant 0 : index
    %490 = vector.load %arg11[%c10_301, %c0_302, %c0_303] : memref<16x8x1xf32, #tpu.memory_space<vmem>>, vector<1x8x1xf32>
    %491 = vector.shape_cast %490 : vector<1x8x1xf32> to vector<8x1xf32>
    %492 = vector.broadcast %491 : vector<8x1xf32> to vector<8x32xf32>
    %493 = arith.addf %489, %492 : vector<8x32xf32>
    %cst_304 = arith.constant dense<0.000000e+00> : vector<32x32xf32>
    %494 = tpu.matmul %486, %493, %cst_304 {dimension_numbers = #tpu.dot_dimension_numbers<[1], [0], [0], [1], [0, 0, 1, 1], [], []>} : vector<32x8xf32>, vector<8x32xf32>, vector<32x32xf32> -> vector<32x32xf32>
    %495 = arith.addf %494, %32 : vector<32x32xf32>
    %cst_305 = arith.constant dense<0xFF800000> : vector<32xf32>
    %496 = vector.multi_reduction <maximumf>, %495, %cst_305 [1] : vector<32x32xf32> to vector<32xf32>
    %497 = vector.shape_cast %496 : vector<32xf32> to vector<32x1xf32>
    %498 = vector.broadcast %497 : vector<32x1xf32> to vector<32x32xf32>
    %499 = arith.subf %495, %498 : vector<32x32xf32>
    %500 = math.exp %499 : vector<32x32xf32>
    %cst_306 = arith.constant dense<0.000000e+00> : vector<32xf32>
    %501 = vector.multi_reduction <add>, %500, %cst_306 [1] : vector<32x32xf32> to vector<32xf32>
    %502 = vector.shape_cast %501 : vector<32xf32> to vector<32x1xf32>
    %503 = tpu.reciprocal %502 {approx = true} : vector<32x1xf32> -> vector<32x1xf32>
    %504 = vector.broadcast %503 : vector<32x1xf32> to vector<32x32xf32>
    %505 = arith.mulf %500, %504 : vector<32x32xf32>
    %c10_307 = arith.constant 10 : index
    %c0_308 = arith.constant 0 : index
    %c0_309 = arith.constant 0 : index
    %506 = vector.load %arg12[%c10_307, %c0_308, %c0_309] : memref<16x32x32xf32, #tpu.memory_space<vmem>>, vector<1x32x32xf32>
    %507 = vector.shape_cast %506 : vector<1x32x32xf32> to vector<32x32xf32>
    %cst_310 = arith.constant dense<0.000000e+00> : vector<32x32xf32>
    %508 = tpu.matmul %30, %507, %cst_310 {dimension_numbers = #tpu.dot_dimension_numbers<[1], [0], [0], [1], [0, 0, 1, 1], [], []>} : vector<32x32xf32>, vector<32x32xf32>, vector<32x32xf32> -> vector<32x32xf32>
    %cst_311 = arith.constant dense<0.000000e+00> : vector<32x32xf32>
    %509 = tpu.matmul %505, %508, %cst_311 {dimension_numbers = #tpu.dot_dimension_numbers<[1], [0], [0], [1], [0, 0, 1, 1], [], []>} : vector<32x32xf32>, vector<32x32xf32>, vector<32x32xf32> -> vector<32x32xf32>
    %510 = arith.addf %479, %509 : vector<32x32xf32>
    %c11 = arith.constant 11 : index
    %c0_312 = arith.constant 0 : index
    %c0_313 = arith.constant 0 : index
    %511 = vector.load %arg8[%c11, %c0_312, %c0_313] : memref<16x32x8xf32, #tpu.memory_space<vmem>>, vector<1x32x8xf32>
    %512 = vector.shape_cast %511 : vector<1x32x8xf32> to vector<32x8xf32>
    %cst_314 = arith.constant dense<0.000000e+00> : vector<32x8xf32>
    %513 = tpu.matmul %412, %512, %cst_314 {dimension_numbers = #tpu.dot_dimension_numbers<[1], [0], [0], [1], [0, 0, 1, 1], [], []>} : vector<32x32xf32>, vector<32x8xf32>, vector<32x8xf32> -> vector<32x8xf32>
    %c11_315 = arith.constant 11 : index
    %c0_316 = arith.constant 0 : index
    %c0_317 = arith.constant 0 : index
    %514 = vector.load %arg9[%c11_315, %c0_316, %c0_317] : memref<16x1x8xf32, #tpu.memory_space<vmem>>, vector<1x1x8xf32>
    %515 = vector.shape_cast %514 : vector<1x1x8xf32> to vector<1x8xf32>
    %516 = vector.broadcast %515 : vector<1x8xf32> to vector<32x8xf32>
    %517 = arith.addf %513, %516 : vector<32x8xf32>
    %c11_318 = arith.constant 11 : index
    %c0_319 = arith.constant 0 : index
    %c0_320 = arith.constant 0 : index
    %518 = vector.load %arg10[%c11_318, %c0_319, %c0_320] : memref<16x8x32xf32, #tpu.memory_space<vmem>>, vector<1x8x32xf32>
    %519 = vector.shape_cast %518 : vector<1x8x32xf32> to vector<8x32xf32>
    %cst_321 = arith.constant dense<0.000000e+00> : vector<8x32xf32>
    %520 = tpu.matmul %519, %31, %cst_321 {dimension_numbers = #tpu.dot_dimension_numbers<[1], [0], [0], [1], [0, 0, 1, 1], [], []>} : vector<8x32xf32>, vector<32x32xf32>, vector<8x32xf32> -> vector<8x32xf32>
    %c11_322 = arith.constant 11 : index
    %c0_323 = arith.constant 0 : index
    %c0_324 = arith.constant 0 : index
    %521 = vector.load %arg11[%c11_322, %c0_323, %c0_324] : memref<16x8x1xf32, #tpu.memory_space<vmem>>, vector<1x8x1xf32>
    %522 = vector.shape_cast %521 : vector<1x8x1xf32> to vector<8x1xf32>
    %523 = vector.broadcast %522 : vector<8x1xf32> to vector<8x32xf32>
    %524 = arith.addf %520, %523 : vector<8x32xf32>
    %cst_325 = arith.constant dense<0.000000e+00> : vector<32x32xf32>
    %525 = tpu.matmul %517, %524, %cst_325 {dimension_numbers = #tpu.dot_dimension_numbers<[1], [0], [0], [1], [0, 0, 1, 1], [], []>} : vector<32x8xf32>, vector<8x32xf32>, vector<32x32xf32> -> vector<32x32xf32>
    %526 = arith.addf %525, %32 : vector<32x32xf32>
    %cst_326 = arith.constant dense<0xFF800000> : vector<32xf32>
    %527 = vector.multi_reduction <maximumf>, %526, %cst_326 [1] : vector<32x32xf32> to vector<32xf32>
    %528 = vector.shape_cast %527 : vector<32xf32> to vector<32x1xf32>
    %529 = vector.broadcast %528 : vector<32x1xf32> to vector<32x32xf32>
    %530 = arith.subf %526, %529 : vector<32x32xf32>
    %531 = math.exp %530 : vector<32x32xf32>
    %cst_327 = arith.constant dense<0.000000e+00> : vector<32xf32>
    %532 = vector.multi_reduction <add>, %531, %cst_327 [1] : vector<32x32xf32> to vector<32xf32>
    %533 = vector.shape_cast %532 : vector<32xf32> to vector<32x1xf32>
    %534 = tpu.reciprocal %533 {approx = true} : vector<32x1xf32> -> vector<32x1xf32>
    %535 = vector.broadcast %534 : vector<32x1xf32> to vector<32x32xf32>
    %536 = arith.mulf %531, %535 : vector<32x32xf32>
    %c11_328 = arith.constant 11 : index
    %c0_329 = arith.constant 0 : index
    %c0_330 = arith.constant 0 : index
    %537 = vector.load %arg12[%c11_328, %c0_329, %c0_330] : memref<16x32x32xf32, #tpu.memory_space<vmem>>, vector<1x32x32xf32>
    %538 = vector.shape_cast %537 : vector<1x32x32xf32> to vector<32x32xf32>
    %cst_331 = arith.constant dense<0.000000e+00> : vector<32x32xf32>
    %539 = tpu.matmul %30, %538, %cst_331 {dimension_numbers = #tpu.dot_dimension_numbers<[1], [0], [0], [1], [0, 0, 1, 1], [], []>} : vector<32x32xf32>, vector<32x32xf32>, vector<32x32xf32> -> vector<32x32xf32>
    %cst_332 = arith.constant dense<0.000000e+00> : vector<32x32xf32>
    %540 = tpu.matmul %536, %539, %cst_332 {dimension_numbers = #tpu.dot_dimension_numbers<[1], [0], [0], [1], [0, 0, 1, 1], [], []>} : vector<32x32xf32>, vector<32x32xf32>, vector<32x32xf32> -> vector<32x32xf32>
    %541 = arith.addf %510, %540 : vector<32x32xf32>
    %542 = arith.addf %541, %412 : vector<32x32xf32>
    %cst_333 = arith.constant dense<0.000000e+00> : vector<32xf32>
    %543 = vector.multi_reduction <add>, %542, %cst_333 [1] : vector<32x32xf32> to vector<32xf32>
    %544 = vector.shape_cast %543 : vector<32xf32> to vector<32x1xf32>
    %cst_334 = arith.constant 3.200000e+01 : f32
    %545 = vector.broadcast %cst_334 : f32 to vector<32x1xf32>
    %546 = arith.divf %544, %545 : vector<32x1xf32>
    %547 = vector.broadcast %546 : vector<32x1xf32> to vector<32x32xf32>
    %548 = arith.subf %542, %547 : vector<32x32xf32>
    %549 = arith.mulf %548, %548 : vector<32x32xf32>
    %cst_335 = arith.constant dense<0.000000e+00> : vector<32xf32>
    %550 = vector.multi_reduction <add>, %549, %cst_335 [1] : vector<32x32xf32> to vector<32xf32>
    %551 = vector.shape_cast %550 : vector<32xf32> to vector<32x1xf32>
    %cst_336 = arith.constant 3.200000e+01 : f32
    %552 = vector.broadcast %cst_336 : f32 to vector<32x1xf32>
    %553 = arith.divf %551, %552 : vector<32x1xf32>
    %554 = vector.broadcast %546 : vector<32x1xf32> to vector<32x32xf32>
    %555 = arith.subf %542, %554 : vector<32x32xf32>
    %cst_337 = arith.constant 9.99999974E-6 : f32
    %556 = vector.broadcast %cst_337 : f32 to vector<32x1xf32>
    %557 = arith.addf %553, %556 : vector<32x1xf32>
    %558 = math.rsqrt %557 : vector<32x1xf32>
    %559 = vector.broadcast %558 : vector<32x1xf32> to vector<32x32xf32>
    %560 = arith.mulf %555, %559 : vector<32x32xf32>
    %561 = vector.broadcast %388 : vector<1x32xf32> to vector<32x32xf32>
    %562 = arith.mulf %560, %561 : vector<32x32xf32>
    %563 = vector.broadcast %390 : vector<1x32xf32> to vector<32x32xf32>
    %564 = arith.addf %562, %563 : vector<32x32xf32>
    %c1_338 = arith.constant 1 : index
    %c0_339 = arith.constant 0 : index
    %c0_340 = arith.constant 0 : index
    %565 = vector.load %arg14[%c1_338, %c0_339, %c0_340] : memref<2x32x128xf32, #tpu.memory_space<vmem>>, vector<1x32x128xf32>
    %566 = vector.shape_cast %565 : vector<1x32x128xf32> to vector<32x128xf32>
    %cst_341 = arith.constant dense<0.000000e+00> : vector<32x128xf32>
    %567 = tpu.matmul %564, %566, %cst_341 {dimension_numbers = #tpu.dot_dimension_numbers<[1], [0], [0], [1], [0, 0, 1, 1], [], []>} : vector<32x32xf32>, vector<32x128xf32>, vector<32x128xf32> -> vector<32x128xf32>
    %c1_342 = arith.constant 1 : index
    %c0_343 = arith.constant 0 : index
    %c0_344 = arith.constant 0 : index
    %568 = vector.load %arg15[%c1_342, %c0_343, %c0_344] : memref<2x1x128xf32, #tpu.memory_space<vmem>>, vector<1x1x128xf32>
    %569 = vector.shape_cast %568 : vector<1x1x128xf32> to vector<1x128xf32>
    %570 = vector.broadcast %569 : vector<1x128xf32> to vector<32x128xf32>
    %571 = arith.addf %567, %570 : vector<32x128xf32>
    %cst_345 = arith.constant 0.000000e+00 : f32
    %572 = vector.broadcast %cst_345 : f32 to vector<32x128xf32>
    %573 = arith.maximumf %571, %572 : vector<32x128xf32>
    %c1_346 = arith.constant 1 : index
    %c0_347 = arith.constant 0 : index
    %c0_348 = arith.constant 0 : index
    %574 = vector.load %arg16[%c1_346, %c0_347, %c0_348] : memref<2x128x32xf32, #tpu.memory_space<vmem>>, vector<1x128x32xf32>
    %575 = vector.shape_cast %574 : vector<1x128x32xf32> to vector<128x32xf32>
    %cst_349 = arith.constant dense<0.000000e+00> : vector<32x32xf32>
    %576 = tpu.matmul %573, %575, %cst_349 {dimension_numbers = #tpu.dot_dimension_numbers<[1], [0], [0], [1], [0, 0, 1, 1], [], []>} : vector<32x128xf32>, vector<128x32xf32>, vector<32x32xf32> -> vector<32x32xf32>
    %577 = arith.addf %564, %576 : vector<32x32xf32>
    %c1_350 = arith.constant 1 : index
    %c0_351 = arith.constant 0 : index
    %c0_352 = arith.constant 0 : index
    %578 = vector.load %arg17[%c1_350, %c0_351, %c0_352] : memref<2x1x32xf32, #tpu.memory_space<vmem>>, vector<1x1x32xf32>
    %579 = vector.shape_cast %578 : vector<1x1x32xf32> to vector<1x32xf32>
    %580 = vector.broadcast %579 : vector<1x32xf32> to vector<32x32xf32>
    %581 = arith.addf %577, %580 : vector<32x32xf32>
    %582 = tpu.transpose %581, [1, 0] : vector<32x32xf32> -> vector<32x32xf32>
    %cst_353 = arith.constant 0.000000e+00 : f32
    %583 = vector.broadcast %cst_353 : f32 to vector<32x32xf32>
    %c3_354 = arith.constant 3 : index
    %c0_355 = arith.constant 0 : index
    %c0_356 = arith.constant 0 : index
    %584 = vector.load %arg13[%c3_354, %c0_355, %c0_356] : memref<4x1x32xf32, #tpu.memory_space<vmem>>, vector<1x1x32xf32>
    %585 = vector.shape_cast %584 : vector<1x1x32xf32> to vector<1x32xf32>
    %586 = vector.broadcast %585 : vector<1x32xf32> to vector<32x32xf32>
    %587 = arith.addf %583, %586 : vector<32x32xf32>
    %c12 = arith.constant 12 : index
    %c0_357 = arith.constant 0 : index
    %c0_358 = arith.constant 0 : index
    %588 = vector.load %arg8[%c12, %c0_357, %c0_358] : memref<16x32x8xf32, #tpu.memory_space<vmem>>, vector<1x32x8xf32>
    %589 = vector.shape_cast %588 : vector<1x32x8xf32> to vector<32x8xf32>
    %cst_359 = arith.constant dense<0.000000e+00> : vector<32x8xf32>
    %590 = tpu.matmul %581, %589, %cst_359 {dimension_numbers = #tpu.dot_dimension_numbers<[1], [0], [0], [1], [0, 0, 1, 1], [], []>} : vector<32x32xf32>, vector<32x8xf32>, vector<32x8xf32> -> vector<32x8xf32>
    %c12_360 = arith.constant 12 : index
    %c0_361 = arith.constant 0 : index
    %c0_362 = arith.constant 0 : index
    %591 = vector.load %arg9[%c12_360, %c0_361, %c0_362] : memref<16x1x8xf32, #tpu.memory_space<vmem>>, vector<1x1x8xf32>
    %592 = vector.shape_cast %591 : vector<1x1x8xf32> to vector<1x8xf32>
    %593 = vector.broadcast %592 : vector<1x8xf32> to vector<32x8xf32>
    %594 = arith.addf %590, %593 : vector<32x8xf32>
    %c12_363 = arith.constant 12 : index
    %c0_364 = arith.constant 0 : index
    %c0_365 = arith.constant 0 : index
    %595 = vector.load %arg10[%c12_363, %c0_364, %c0_365] : memref<16x8x32xf32, #tpu.memory_space<vmem>>, vector<1x8x32xf32>
    %596 = vector.shape_cast %595 : vector<1x8x32xf32> to vector<8x32xf32>
    %cst_366 = arith.constant dense<0.000000e+00> : vector<8x32xf32>
    %597 = tpu.matmul %596, %582, %cst_366 {dimension_numbers = #tpu.dot_dimension_numbers<[1], [0], [0], [1], [0, 0, 1, 1], [], []>} : vector<8x32xf32>, vector<32x32xf32>, vector<8x32xf32> -> vector<8x32xf32>
    %c12_367 = arith.constant 12 : index
    %c0_368 = arith.constant 0 : index
    %c0_369 = arith.constant 0 : index
    %598 = vector.load %arg11[%c12_367, %c0_368, %c0_369] : memref<16x8x1xf32, #tpu.memory_space<vmem>>, vector<1x8x1xf32>
    %599 = vector.shape_cast %598 : vector<1x8x1xf32> to vector<8x1xf32>
    %600 = vector.broadcast %599 : vector<8x1xf32> to vector<8x32xf32>
    %601 = arith.addf %597, %600 : vector<8x32xf32>
    %cst_370 = arith.constant dense<0.000000e+00> : vector<32x32xf32>
    %602 = tpu.matmul %594, %601, %cst_370 {dimension_numbers = #tpu.dot_dimension_numbers<[1], [0], [0], [1], [0, 0, 1, 1], [], []>} : vector<32x8xf32>, vector<8x32xf32>, vector<32x32xf32> -> vector<32x32xf32>
    %603 = arith.addf %602, %33 : vector<32x32xf32>
    %cst_371 = arith.constant dense<0xFF800000> : vector<32xf32>
    %604 = vector.multi_reduction <maximumf>, %603, %cst_371 [1] : vector<32x32xf32> to vector<32xf32>
    %605 = vector.shape_cast %604 : vector<32xf32> to vector<32x1xf32>
    %606 = vector.broadcast %605 : vector<32x1xf32> to vector<32x32xf32>
    %607 = arith.subf %603, %606 : vector<32x32xf32>
    %608 = math.exp %607 : vector<32x32xf32>
    %cst_372 = arith.constant dense<0.000000e+00> : vector<32xf32>
    %609 = vector.multi_reduction <add>, %608, %cst_372 [1] : vector<32x32xf32> to vector<32xf32>
    %610 = vector.shape_cast %609 : vector<32xf32> to vector<32x1xf32>
    %611 = tpu.reciprocal %610 {approx = true} : vector<32x1xf32> -> vector<32x1xf32>
    %612 = vector.broadcast %611 : vector<32x1xf32> to vector<32x32xf32>
    %613 = arith.mulf %608, %612 : vector<32x32xf32>
    %c12_373 = arith.constant 12 : index
    %c0_374 = arith.constant 0 : index
    %c0_375 = arith.constant 0 : index
    %614 = vector.load %arg12[%c12_373, %c0_374, %c0_375] : memref<16x32x32xf32, #tpu.memory_space<vmem>>, vector<1x32x32xf32>
    %615 = vector.shape_cast %614 : vector<1x32x32xf32> to vector<32x32xf32>
    %cst_376 = arith.constant dense<0.000000e+00> : vector<32x32xf32>
    %616 = tpu.matmul %581, %615, %cst_376 {dimension_numbers = #tpu.dot_dimension_numbers<[1], [0], [0], [1], [0, 0, 1, 1], [], []>} : vector<32x32xf32>, vector<32x32xf32>, vector<32x32xf32> -> vector<32x32xf32>
    %cst_377 = arith.constant dense<0.000000e+00> : vector<32x32xf32>
    %617 = tpu.matmul %613, %616, %cst_377 {dimension_numbers = #tpu.dot_dimension_numbers<[1], [0], [0], [1], [0, 0, 1, 1], [], []>} : vector<32x32xf32>, vector<32x32xf32>, vector<32x32xf32> -> vector<32x32xf32>
    %618 = arith.addf %587, %617 : vector<32x32xf32>
    %c13 = arith.constant 13 : index
    %c0_378 = arith.constant 0 : index
    %c0_379 = arith.constant 0 : index
    %619 = vector.load %arg8[%c13, %c0_378, %c0_379] : memref<16x32x8xf32, #tpu.memory_space<vmem>>, vector<1x32x8xf32>
    %620 = vector.shape_cast %619 : vector<1x32x8xf32> to vector<32x8xf32>
    %cst_380 = arith.constant dense<0.000000e+00> : vector<32x8xf32>
    %621 = tpu.matmul %581, %620, %cst_380 {dimension_numbers = #tpu.dot_dimension_numbers<[1], [0], [0], [1], [0, 0, 1, 1], [], []>} : vector<32x32xf32>, vector<32x8xf32>, vector<32x8xf32> -> vector<32x8xf32>
    %c13_381 = arith.constant 13 : index
    %c0_382 = arith.constant 0 : index
    %c0_383 = arith.constant 0 : index
    %622 = vector.load %arg9[%c13_381, %c0_382, %c0_383] : memref<16x1x8xf32, #tpu.memory_space<vmem>>, vector<1x1x8xf32>
    %623 = vector.shape_cast %622 : vector<1x1x8xf32> to vector<1x8xf32>
    %624 = vector.broadcast %623 : vector<1x8xf32> to vector<32x8xf32>
    %625 = arith.addf %621, %624 : vector<32x8xf32>
    %c13_384 = arith.constant 13 : index
    %c0_385 = arith.constant 0 : index
    %c0_386 = arith.constant 0 : index
    %626 = vector.load %arg10[%c13_384, %c0_385, %c0_386] : memref<16x8x32xf32, #tpu.memory_space<vmem>>, vector<1x8x32xf32>
    %627 = vector.shape_cast %626 : vector<1x8x32xf32> to vector<8x32xf32>
    %cst_387 = arith.constant dense<0.000000e+00> : vector<8x32xf32>
    %628 = tpu.matmul %627, %582, %cst_387 {dimension_numbers = #tpu.dot_dimension_numbers<[1], [0], [0], [1], [0, 0, 1, 1], [], []>} : vector<8x32xf32>, vector<32x32xf32>, vector<8x32xf32> -> vector<8x32xf32>
    %c13_388 = arith.constant 13 : index
    %c0_389 = arith.constant 0 : index
    %c0_390 = arith.constant 0 : index
    %629 = vector.load %arg11[%c13_388, %c0_389, %c0_390] : memref<16x8x1xf32, #tpu.memory_space<vmem>>, vector<1x8x1xf32>
    %630 = vector.shape_cast %629 : vector<1x8x1xf32> to vector<8x1xf32>
    %631 = vector.broadcast %630 : vector<8x1xf32> to vector<8x32xf32>
    %632 = arith.addf %628, %631 : vector<8x32xf32>
    %cst_391 = arith.constant dense<0.000000e+00> : vector<32x32xf32>
    %633 = tpu.matmul %625, %632, %cst_391 {dimension_numbers = #tpu.dot_dimension_numbers<[1], [0], [0], [1], [0, 0, 1, 1], [], []>} : vector<32x8xf32>, vector<8x32xf32>, vector<32x32xf32> -> vector<32x32xf32>
    %634 = arith.addf %633, %33 : vector<32x32xf32>
    %cst_392 = arith.constant dense<0xFF800000> : vector<32xf32>
    %635 = vector.multi_reduction <maximumf>, %634, %cst_392 [1] : vector<32x32xf32> to vector<32xf32>
    %636 = vector.shape_cast %635 : vector<32xf32> to vector<32x1xf32>
    %637 = vector.broadcast %636 : vector<32x1xf32> to vector<32x32xf32>
    %638 = arith.subf %634, %637 : vector<32x32xf32>
    %639 = math.exp %638 : vector<32x32xf32>
    %cst_393 = arith.constant dense<0.000000e+00> : vector<32xf32>
    %640 = vector.multi_reduction <add>, %639, %cst_393 [1] : vector<32x32xf32> to vector<32xf32>
    %641 = vector.shape_cast %640 : vector<32xf32> to vector<32x1xf32>
    %642 = tpu.reciprocal %641 {approx = true} : vector<32x1xf32> -> vector<32x1xf32>
    %643 = vector.broadcast %642 : vector<32x1xf32> to vector<32x32xf32>
    %644 = arith.mulf %639, %643 : vector<32x32xf32>
    %c13_394 = arith.constant 13 : index
    %c0_395 = arith.constant 0 : index
    %c0_396 = arith.constant 0 : index
    %645 = vector.load %arg12[%c13_394, %c0_395, %c0_396] : memref<16x32x32xf32, #tpu.memory_space<vmem>>, vector<1x32x32xf32>
    %646 = vector.shape_cast %645 : vector<1x32x32xf32> to vector<32x32xf32>
    %cst_397 = arith.constant dense<0.000000e+00> : vector<32x32xf32>
    %647 = tpu.matmul %581, %646, %cst_397 {dimension_numbers = #tpu.dot_dimension_numbers<[1], [0], [0], [1], [0, 0, 1, 1], [], []>} : vector<32x32xf32>, vector<32x32xf32>, vector<32x32xf32> -> vector<32x32xf32>
    %cst_398 = arith.constant dense<0.000000e+00> : vector<32x32xf32>
    %648 = tpu.matmul %644, %647, %cst_398 {dimension_numbers = #tpu.dot_dimension_numbers<[1], [0], [0], [1], [0, 0, 1, 1], [], []>} : vector<32x32xf32>, vector<32x32xf32>, vector<32x32xf32> -> vector<32x32xf32>
    %649 = arith.addf %618, %648 : vector<32x32xf32>
    %c14 = arith.constant 14 : index
    %c0_399 = arith.constant 0 : index
    %c0_400 = arith.constant 0 : index
    %650 = vector.load %arg8[%c14, %c0_399, %c0_400] : memref<16x32x8xf32, #tpu.memory_space<vmem>>, vector<1x32x8xf32>
    %651 = vector.shape_cast %650 : vector<1x32x8xf32> to vector<32x8xf32>
    %cst_401 = arith.constant dense<0.000000e+00> : vector<32x8xf32>
    %652 = tpu.matmul %581, %651, %cst_401 {dimension_numbers = #tpu.dot_dimension_numbers<[1], [0], [0], [1], [0, 0, 1, 1], [], []>} : vector<32x32xf32>, vector<32x8xf32>, vector<32x8xf32> -> vector<32x8xf32>
    %c14_402 = arith.constant 14 : index
    %c0_403 = arith.constant 0 : index
    %c0_404 = arith.constant 0 : index
    %653 = vector.load %arg9[%c14_402, %c0_403, %c0_404] : memref<16x1x8xf32, #tpu.memory_space<vmem>>, vector<1x1x8xf32>
    %654 = vector.shape_cast %653 : vector<1x1x8xf32> to vector<1x8xf32>
    %655 = vector.broadcast %654 : vector<1x8xf32> to vector<32x8xf32>
    %656 = arith.addf %652, %655 : vector<32x8xf32>
    %c14_405 = arith.constant 14 : index
    %c0_406 = arith.constant 0 : index
    %c0_407 = arith.constant 0 : index
    %657 = vector.load %arg10[%c14_405, %c0_406, %c0_407] : memref<16x8x32xf32, #tpu.memory_space<vmem>>, vector<1x8x32xf32>
    %658 = vector.shape_cast %657 : vector<1x8x32xf32> to vector<8x32xf32>
    %cst_408 = arith.constant dense<0.000000e+00> : vector<8x32xf32>
    %659 = tpu.matmul %658, %582, %cst_408 {dimension_numbers = #tpu.dot_dimension_numbers<[1], [0], [0], [1], [0, 0, 1, 1], [], []>} : vector<8x32xf32>, vector<32x32xf32>, vector<8x32xf32> -> vector<8x32xf32>
    %c14_409 = arith.constant 14 : index
    %c0_410 = arith.constant 0 : index
    %c0_411 = arith.constant 0 : index
    %660 = vector.load %arg11[%c14_409, %c0_410, %c0_411] : memref<16x8x1xf32, #tpu.memory_space<vmem>>, vector<1x8x1xf32>
    %661 = vector.shape_cast %660 : vector<1x8x1xf32> to vector<8x1xf32>
    %662 = vector.broadcast %661 : vector<8x1xf32> to vector<8x32xf32>
    %663 = arith.addf %659, %662 : vector<8x32xf32>
    %cst_412 = arith.constant dense<0.000000e+00> : vector<32x32xf32>
    %664 = tpu.matmul %656, %663, %cst_412 {dimension_numbers = #tpu.dot_dimension_numbers<[1], [0], [0], [1], [0, 0, 1, 1], [], []>} : vector<32x8xf32>, vector<8x32xf32>, vector<32x32xf32> -> vector<32x32xf32>
    %665 = arith.addf %664, %33 : vector<32x32xf32>
    %cst_413 = arith.constant dense<0xFF800000> : vector<32xf32>
    %666 = vector.multi_reduction <maximumf>, %665, %cst_413 [1] : vector<32x32xf32> to vector<32xf32>
    %667 = vector.shape_cast %666 : vector<32xf32> to vector<32x1xf32>
    %668 = vector.broadcast %667 : vector<32x1xf32> to vector<32x32xf32>
    %669 = arith.subf %665, %668 : vector<32x32xf32>
    %670 = math.exp %669 : vector<32x32xf32>
    %cst_414 = arith.constant dense<0.000000e+00> : vector<32xf32>
    %671 = vector.multi_reduction <add>, %670, %cst_414 [1] : vector<32x32xf32> to vector<32xf32>
    %672 = vector.shape_cast %671 : vector<32xf32> to vector<32x1xf32>
    %673 = tpu.reciprocal %672 {approx = true} : vector<32x1xf32> -> vector<32x1xf32>
    %674 = vector.broadcast %673 : vector<32x1xf32> to vector<32x32xf32>
    %675 = arith.mulf %670, %674 : vector<32x32xf32>
    %c14_415 = arith.constant 14 : index
    %c0_416 = arith.constant 0 : index
    %c0_417 = arith.constant 0 : index
    %676 = vector.load %arg12[%c14_415, %c0_416, %c0_417] : memref<16x32x32xf32, #tpu.memory_space<vmem>>, vector<1x32x32xf32>
    %677 = vector.shape_cast %676 : vector<1x32x32xf32> to vector<32x32xf32>
    %cst_418 = arith.constant dense<0.000000e+00> : vector<32x32xf32>
    %678 = tpu.matmul %581, %677, %cst_418 {dimension_numbers = #tpu.dot_dimension_numbers<[1], [0], [0], [1], [0, 0, 1, 1], [], []>} : vector<32x32xf32>, vector<32x32xf32>, vector<32x32xf32> -> vector<32x32xf32>
    %cst_419 = arith.constant dense<0.000000e+00> : vector<32x32xf32>
    %679 = tpu.matmul %675, %678, %cst_419 {dimension_numbers = #tpu.dot_dimension_numbers<[1], [0], [0], [1], [0, 0, 1, 1], [], []>} : vector<32x32xf32>, vector<32x32xf32>, vector<32x32xf32> -> vector<32x32xf32>
    %680 = arith.addf %649, %679 : vector<32x32xf32>
    %c15 = arith.constant 15 : index
    %c0_420 = arith.constant 0 : index
    %c0_421 = arith.constant 0 : index
    %681 = vector.load %arg8[%c15, %c0_420, %c0_421] : memref<16x32x8xf32, #tpu.memory_space<vmem>>, vector<1x32x8xf32>
    %682 = vector.shape_cast %681 : vector<1x32x8xf32> to vector<32x8xf32>
    %cst_422 = arith.constant dense<0.000000e+00> : vector<32x8xf32>
    %683 = tpu.matmul %581, %682, %cst_422 {dimension_numbers = #tpu.dot_dimension_numbers<[1], [0], [0], [1], [0, 0, 1, 1], [], []>} : vector<32x32xf32>, vector<32x8xf32>, vector<32x8xf32> -> vector<32x8xf32>
    %c15_423 = arith.constant 15 : index
    %c0_424 = arith.constant 0 : index
    %c0_425 = arith.constant 0 : index
    %684 = vector.load %arg9[%c15_423, %c0_424, %c0_425] : memref<16x1x8xf32, #tpu.memory_space<vmem>>, vector<1x1x8xf32>
    %685 = vector.shape_cast %684 : vector<1x1x8xf32> to vector<1x8xf32>
    %686 = vector.broadcast %685 : vector<1x8xf32> to vector<32x8xf32>
    %687 = arith.addf %683, %686 : vector<32x8xf32>
    %c15_426 = arith.constant 15 : index
    %c0_427 = arith.constant 0 : index
    %c0_428 = arith.constant 0 : index
    %688 = vector.load %arg10[%c15_426, %c0_427, %c0_428] : memref<16x8x32xf32, #tpu.memory_space<vmem>>, vector<1x8x32xf32>
    %689 = vector.shape_cast %688 : vector<1x8x32xf32> to vector<8x32xf32>
    %cst_429 = arith.constant dense<0.000000e+00> : vector<8x32xf32>
    %690 = tpu.matmul %689, %582, %cst_429 {dimension_numbers = #tpu.dot_dimension_numbers<[1], [0], [0], [1], [0, 0, 1, 1], [], []>} : vector<8x32xf32>, vector<32x32xf32>, vector<8x32xf32> -> vector<8x32xf32>
    %c15_430 = arith.constant 15 : index
    %c0_431 = arith.constant 0 : index
    %c0_432 = arith.constant 0 : index
    %691 = vector.load %arg11[%c15_430, %c0_431, %c0_432] : memref<16x8x1xf32, #tpu.memory_space<vmem>>, vector<1x8x1xf32>
    %692 = vector.shape_cast %691 : vector<1x8x1xf32> to vector<8x1xf32>
    %693 = vector.broadcast %692 : vector<8x1xf32> to vector<8x32xf32>
    %694 = arith.addf %690, %693 : vector<8x32xf32>
    %cst_433 = arith.constant dense<0.000000e+00> : vector<32x32xf32>
    %695 = tpu.matmul %687, %694, %cst_433 {dimension_numbers = #tpu.dot_dimension_numbers<[1], [0], [0], [1], [0, 0, 1, 1], [], []>} : vector<32x8xf32>, vector<8x32xf32>, vector<32x32xf32> -> vector<32x32xf32>
    %696 = arith.addf %695, %33 : vector<32x32xf32>
    %cst_434 = arith.constant dense<0xFF800000> : vector<32xf32>
    %697 = vector.multi_reduction <maximumf>, %696, %cst_434 [1] : vector<32x32xf32> to vector<32xf32>
    %698 = vector.shape_cast %697 : vector<32xf32> to vector<32x1xf32>
    %699 = vector.broadcast %698 : vector<32x1xf32> to vector<32x32xf32>
    %700 = arith.subf %696, %699 : vector<32x32xf32>
    %701 = math.exp %700 : vector<32x32xf32>
    %cst_435 = arith.constant dense<0.000000e+00> : vector<32xf32>
    %702 = vector.multi_reduction <add>, %701, %cst_435 [1] : vector<32x32xf32> to vector<32xf32>
    %703 = vector.shape_cast %702 : vector<32xf32> to vector<32x1xf32>
    %704 = tpu.reciprocal %703 {approx = true} : vector<32x1xf32> -> vector<32x1xf32>
    %705 = vector.broadcast %704 : vector<32x1xf32> to vector<32x32xf32>
    %706 = arith.mulf %701, %705 : vector<32x32xf32>
    %c15_436 = arith.constant 15 : index
    %c0_437 = arith.constant 0 : index
    %c0_438 = arith.constant 0 : index
    %707 = vector.load %arg12[%c15_436, %c0_437, %c0_438] : memref<16x32x32xf32, #tpu.memory_space<vmem>>, vector<1x32x32xf32>
    %708 = vector.shape_cast %707 : vector<1x32x32xf32> to vector<32x32xf32>
    %cst_439 = arith.constant dense<0.000000e+00> : vector<32x32xf32>
    %709 = tpu.matmul %581, %708, %cst_439 {dimension_numbers = #tpu.dot_dimension_numbers<[1], [0], [0], [1], [0, 0, 1, 1], [], []>} : vector<32x32xf32>, vector<32x32xf32>, vector<32x32xf32> -> vector<32x32xf32>
    %cst_440 = arith.constant dense<0.000000e+00> : vector<32x32xf32>
    %710 = tpu.matmul %706, %709, %cst_440 {dimension_numbers = #tpu.dot_dimension_numbers<[1], [0], [0], [1], [0, 0, 1, 1], [], []>} : vector<32x32xf32>, vector<32x32xf32>, vector<32x32xf32> -> vector<32x32xf32>
    %711 = arith.addf %680, %710 : vector<32x32xf32>
    %712 = arith.addf %711, %564 : vector<32x32xf32>
    %cst_441 = arith.constant dense<0.000000e+00> : vector<32xf32>
    %713 = vector.multi_reduction <add>, %712, %cst_441 [1] : vector<32x32xf32> to vector<32xf32>
    %714 = vector.shape_cast %713 : vector<32xf32> to vector<32x1xf32>
    %cst_442 = arith.constant 3.200000e+01 : f32
    %715 = vector.broadcast %cst_442 : f32 to vector<32x1xf32>
    %716 = arith.divf %714, %715 : vector<32x1xf32>
    %717 = vector.broadcast %716 : vector<32x1xf32> to vector<32x32xf32>
    %718 = arith.subf %712, %717 : vector<32x32xf32>
    %719 = arith.mulf %718, %718 : vector<32x32xf32>
    %cst_443 = arith.constant dense<0.000000e+00> : vector<32xf32>
    %720 = vector.multi_reduction <add>, %719, %cst_443 [1] : vector<32x32xf32> to vector<32xf32>
    %721 = vector.shape_cast %720 : vector<32xf32> to vector<32x1xf32>
    %cst_444 = arith.constant 3.200000e+01 : f32
    %722 = vector.broadcast %cst_444 : f32 to vector<32x1xf32>
    %723 = arith.divf %721, %722 : vector<32x1xf32>
    %724 = vector.broadcast %716 : vector<32x1xf32> to vector<32x32xf32>
    %725 = arith.subf %712, %724 : vector<32x32xf32>
    %cst_445 = arith.constant 9.99999974E-6 : f32
    %726 = vector.broadcast %cst_445 : f32 to vector<32x1xf32>
    %727 = arith.addf %723, %726 : vector<32x1xf32>
    %728 = math.rsqrt %727 : vector<32x1xf32>
    %729 = vector.broadcast %728 : vector<32x1xf32> to vector<32x32xf32>
    %730 = arith.mulf %725, %729 : vector<32x32xf32>
    %731 = vector.broadcast %388 : vector<1x32xf32> to vector<32x32xf32>
    %732 = arith.mulf %730, %731 : vector<32x32xf32>
    %733 = vector.broadcast %390 : vector<1x32xf32> to vector<32x32xf32>
    %734 = arith.addf %732, %733 : vector<32x32xf32>
    %735 = vector.shape_cast %734 : vector<32x32xf32> to vector<2x16x32xf32>
    %c0_446 = arith.constant 0 : index
    %c0_447 = arith.constant 0 : index
    %c0_448 = arith.constant 0 : index
    %736 = vector.load %arg20[%c0_446, %c0_447, %c0_448] : memref<3x16x32xf32, #tpu.memory_space<vmem>>, vector<1x16x32xf32>
    %737 = vector.shape_cast %736 : vector<1x16x32xf32> to vector<16x32xf32>
    %738 = vector.shape_cast %737 : vector<16x32xf32> to vector<1x16x32xf32>
    %739 = vector.broadcast %738 : vector<1x16x32xf32> to vector<2x16x32xf32>
    %740 = arith.mulf %735, %739 : vector<2x16x32xf32>
    %cst_449 = arith.constant dense<0.000000e+00> : vector<2x16xf32>
    %741 = vector.multi_reduction <add>, %740, %cst_449 [2] : vector<2x16x32xf32> to vector<2x16xf32>
    %c0_450 = arith.constant 0 : index
    %c0_451 = arith.constant 0 : index
    %c0_452 = arith.constant 0 : index
    %742 = vector.load %arg21[%c0_450, %c0_451, %c0_452] : memref<3x1x16xf32, #tpu.memory_space<vmem>>, vector<1x1x16xf32>
    %743 = vector.shape_cast %742 : vector<1x1x16xf32> to vector<1x16xf32>
    %744 = vector.broadcast %743 : vector<1x16xf32> to vector<2x16xf32>
    %745 = arith.addf %741, %744 : vector<2x16xf32>
    %c0_453 = arith.constant 0 : index
    %c0_454 = arith.constant 0 : index
    %c0_455 = arith.constant 0 : index
    %746 = vector.load %arg22[%c0_453, %c0_454, %c0_455] : memref<3x2x16xf32, #tpu.memory_space<vmem>>, vector<1x2x16xf32>
    %747 = vector.shape_cast %746 : vector<1x2x16xf32> to vector<2x16xf32>
    %748 = vector.shape_cast %745 : vector<2x16xf32> to vector<1x2x16xf32>
    tpu.vector_store %arg22[%c0_453, %c0_454, %c0_455], %748 {strides = array<i32>} : memref<3x2x16xf32, #tpu.memory_space<vmem>>, vector<1x2x16xf32>,
    %c1_456 = arith.constant 1 : index
    %c0_457 = arith.constant 0 : index
    %c0_458 = arith.constant 0 : index
    %749 = vector.load %arg20[%c1_456, %c0_457, %c0_458] : memref<3x16x32xf32, #tpu.memory_space<vmem>>, vector<1x16x32xf32>
    %750 = vector.shape_cast %749 : vector<1x16x32xf32> to vector<16x32xf32>
    %751 = vector.shape_cast %750 : vector<16x32xf32> to vector<1x16x32xf32>
    %752 = vector.broadcast %751 : vector<1x16x32xf32> to vector<2x16x32xf32>
    %753 = arith.mulf %735, %752 : vector<2x16x32xf32>
    %cst_459 = arith.constant dense<0.000000e+00> : vector<2x16xf32>
    %754 = vector.multi_reduction <add>, %753, %cst_459 [2] : vector<2x16x32xf32> to vector<2x16xf32>
    %c1_460 = arith.constant 1 : index
    %c0_461 = arith.constant 0 : index
    %c0_462 = arith.constant 0 : index
    %755 = vector.load %arg21[%c1_460, %c0_461, %c0_462] : memref<3x1x16xf32, #tpu.memory_space<vmem>>, vector<1x1x16xf32>
    %756 = vector.shape_cast %755 : vector<1x1x16xf32> to vector<1x16xf32>
    %757 = vector.broadcast %756 : vector<1x16xf32> to vector<2x16xf32>
    %758 = arith.addf %754, %757 : vector<2x16xf32>
    %c1_463 = arith.constant 1 : index
    %c0_464 = arith.constant 0 : index
    %c0_465 = arith.constant 0 : index
    %759 = vector.load %arg22[%c1_463, %c0_464, %c0_465] : memref<3x2x16xf32, #tpu.memory_space<vmem>>, vector<1x2x16xf32>
    %760 = vector.shape_cast %759 : vector<1x2x16xf32> to vector<2x16xf32>
    %761 = vector.shape_cast %758 : vector<2x16xf32> to vector<1x2x16xf32>
    tpu.vector_store %arg22[%c1_463, %c0_464, %c0_465], %761 {strides = array<i32>} : memref<3x2x16xf32, #tpu.memory_space<vmem>>, vector<1x2x16xf32>,
    %c2_466 = arith.constant 2 : index
    %c0_467 = arith.constant 0 : index
    %c0_468 = arith.constant 0 : index
    %762 = vector.load %arg20[%c2_466, %c0_467, %c0_468] : memref<3x16x32xf32, #tpu.memory_space<vmem>>, vector<1x16x32xf32>
    %763 = vector.shape_cast %762 : vector<1x16x32xf32> to vector<16x32xf32>
    %764 = vector.shape_cast %763 : vector<16x32xf32> to vector<1x16x32xf32>
    %765 = vector.broadcast %764 : vector<1x16x32xf32> to vector<2x16x32xf32>
    %766 = arith.mulf %735, %765 : vector<2x16x32xf32>
    %cst_469 = arith.constant dense<0.000000e+00> : vector<2x16xf32>
    %767 = vector.multi_reduction <add>, %766, %cst_469 [2] : vector<2x16x32xf32> to vector<2x16xf32>
    %c2_470 = arith.constant 2 : index
    %c0_471 = arith.constant 0 : index
    %c0_472 = arith.constant 0 : index
    %768 = vector.load %arg21[%c2_470, %c0_471, %c0_472] : memref<3x1x16xf32, #tpu.memory_space<vmem>>, vector<1x1x16xf32>
    %769 = vector.shape_cast %768 : vector<1x1x16xf32> to vector<1x16xf32>
    %770 = vector.broadcast %769 : vector<1x16xf32> to vector<2x16xf32>
    %771 = arith.addf %767, %770 : vector<2x16xf32>
    %c2_473 = arith.constant 2 : index
    %c0_474 = arith.constant 0 : index
    %c0_475 = arith.constant 0 : index
    %772 = vector.load %arg22[%c2_473, %c0_474, %c0_475] : memref<3x2x16xf32, #tpu.memory_space<vmem>>, vector<1x2x16xf32>
    %773 = vector.shape_cast %772 : vector<1x2x16xf32> to vector<2x16xf32>
    %774 = vector.shape_cast %771 : vector<2x16xf32> to vector<1x2x16xf32>
    tpu.vector_store %arg22[%c2_473, %c0_474, %c0_475], %774 {strides = array<i32>} : memref<3x2x16xf32, #tpu.memory_space<vmem>>, vector<1x2x16xf32>,
    return
  }
}

</mosaic_0001>

<bundles_post_ra>
// kernel: forward.1
= control target key start
LH: loop header
LB: loop body
LE: loop exit
PB: predicated region body
PF: predicated region fallthrough
CT: control target
= control target key end

     0   :  { %s14592_s0 = inlined_call_operand.vmem [shape: f32[2,16,64], index: 0, kind: input, shape index: {}]   ;;  %s14593_s1 = inlined_call_operand.vmem [shape: f32[32,32], index: 1, kind: input, shape index: {}]   ;;  %s14594_s2 = inlined_call_operand.vmem [shape: f32[32,32], index: 2, kind: input, shape index: {}]   ;;  %s14595_s3 = inlined_call_operand.vmem [shape: f32[64,32], index: 3, kind: input, shape index: {}]   ;;  %s14596_s4 = inlined_call_operand.vmem [shape: f32[1,32], index: 4, kind: input, shape index: {}]   ;;  %s14597_s5 = inlined_call_operand.vmem [shape: f32[1,32], index: 5, kind: input, shape index: {}]   ;;  %s14598_s6 = inlined_call_operand.vmem [shape: f32[1,32], index: 6, kind: input, shape index: {}]   ;;  %s14599_s7 = inlined_call_operand.vmem [shape: f32[16,32], index: 7, kind: input, shape index: {}]   ;;  %s14600_s8 = inlined_call_operand.vmem [shape: f32[16,32,8], index: 8, kind: input, shape index: {}]   ;;  %s14601_s9 = inlined_call_operand.vmem [shape: f32[16,1,8], index: 9, kind: input, shape index: {}]   ;;  %s14602_s10 = inlined_call_operand.vmem [shape: f32[16,8,32], index: 10, kind: input, shape index: {}]   ;;  %s14603_s11 = inlined_call_operand.vmem [shape: f32[16,8,1], index: 11, kind: input, shape index: {}]   ;;  %s14604_s12 = inlined_call_operand.vmem [shape: f32[16,32,32], index: 12, kind: input, shape index: {}]   ;;  %s14605_s13 = inlined_call_operand.vmem [shape: f32[4,1,32], index: 13, kind: input, shape index: {}]   ;;  %s14606_s14 = inlined_call_operand.vmem [shape: f32[2,32,128], index: 14, kind: input, shape index: {}]   ;;  %s14607_s15 = inlined_call_operand.vmem [shape: f32[2,1,128], index: 15, kind: input, shape index: {}]   ;;  %s14608_s16 = inlined_call_operand.vmem [shape: f32[2,128,32], index: 16, kind: input, shape index: {}]   ;;  %s14609_s17 = inlined_call_operand.vmem [shape: f32[2,1,32], index: 17, kind: input, shape index: {}]   ;;  %s14610_s18 = inlined_call_operand.vmem [shape: f32[2,1,32], index: 18, kind: input, shape index: {}]   ;;  %s14611_s19 = inlined_call_operand.vmem [shape: f32[2,1,32], index: 19, kind: input, shape index: {}]   ;;  %s14612_s20 = inlined_call_operand.vmem [shape: f32[3,16,32], index: 20, kind: input, shape index: {}]   ;;  %s14613_s21 = inlined_call_operand.vmem [shape: f32[3,1,16], index: 21, kind: input, shape index: {}]   ;;  %s14614_s22 = inlined_call_operand.hbm [shape: f32[3,2,16], index: 22, kind: output, shape index: {}]  }
   0x1   :  { %14619 = sst [smem:[#allocation5_spill]] %s14592_s0 }
   0x2   :  { %14620 = sst [smem:[#allocation6_spill]] %s14593_s1 }
   0x3   :  { %14621 = sst [smem:[#allocation7_spill]] %s14594_s2 }
   0x4   :  { %14622 = sst [smem:[#allocation8_spill]] %s14595_s3 }
   0x5   :  { %14623 = sst [smem:[#allocation9_spill]] %s14596_s4 }
   0x6   :  { %14624 = sst [smem:[#allocation10_spill]] %s14597_s5 }
   0x7   :  { %14625 = sst [smem:[#allocation11_spill]] %s14598_s6 }
   0x8   :  { %s14626_s29 = sld [smem:[#allocation8_spill]]  ;;  %vm91_vm0 = vcmask 523264   ;;  %vm191_vm1 = vcmask 261120   ;;  %v275_v5 = vld [vmem:[%s14599_s7] sm:$0xff]  ;;  %v276_v6 = vld [vmem:[%s14599_s7 + $0x8] sm:$0xff] }
   0x9   :  { %s14627_s24 = sld [smem:[#allocation5_spill]] }
   0xe   :  { %v83_v0 = vld [vmem:[%s14626_s29 + $0x38] sm:$0xff]  ;;  %v82_v1 = vld [vmem:[%s14626_s29 + $0x30] sm:$0xff]  ;;  %v81_v2 = vld [vmem:[%s14626_s29 + $0x28] sm:$0xff] }
   0xf   :  { %10830 = vmatprep.subr.mxu0 %v83_v0  ;;  %v72_v3 = vld [vmem:[%s14627_s24] sm:$0xff] }
  0x10   :  { %10831 = vmatpush3.msra.mxu0 %v83_v0  ;;  %v80_v4 = vld [vmem:[%s14626_s29 + $0x20] sm:$0xff]  ;;  %10846 = vmatprep.mubr.msk.f32.mxu0 %vm91_vm0, %v72_v3 }
  0x11   :  { %10832 = vmatprep.subr.mxu0 %v82_v1 }
  0x12   :  { %10833 = vmatpush3.msra.mxu0 %v82_v1 }
  0x13   :  { %27 = vsyncpa [#allocation3], 0  ;;  %10834 = vmatprep.subr.mxu0 %v81_v2  ;;  %v277_v7 = vsel %vm191_vm1, %v275_v5, 0.0  ;;  %v280_v8 = vsel %vm191_vm1, %v276_v6, 0.0  ;;  %v79_v9 = vld [vmem:[%s14626_s29 + $0x18] sm:$0xff]  ;;  %v78_v10 = vld [vmem:[%s14626_s29 + $0x10] sm:$0xff] }
  0x14   :  { %10835 = vmatpush3.msra.mxu0 %v81_v2  ;;  %278 = vadd.xlane.f32.xlu0 %v277_v7  ;;  %v77_v11 = vld [vmem:[%s14626_s29 + $0x8] sm:$0xff]  ;;  %v76_v12 = vld [vmem:[%s14626_s29] sm:$0xff]  ;;  %v74_v14 = vld [vmem:[%s14627_s24 + $0x10] sm:$0xff]  ;;  %s14628_s30 = sld [smem:[#allocation9_spill]]  ;;  %vm12287_vm2 = vmmov 0   ;;  %vm521_vm3 = vcmask 64512  }
  0x15   :  { %10836 = vmatprep.subr.mxu0 %v80_v4  ;;  %281 = vadd.xlane.f32.xlu1 %v280_v8  ;;  %v73_v13 = vld [vmem:[%s14627_s24 + $0x8] sm:$0xff]  ;;  %v75_v15 = vld [vmem:[%s14627_s24 + $0x18] sm:$0xff]  ;;  %v329_v40 = vld [vmem:[%s14600_s8 + $0x10] sm:$0xff]  ;;  %s14629_s24 = sld [smem:[#allocation10_spill]]  ;;  %vm9452_vm4 = vcmask 130112   ;;  %vm9463_vm5 = vcmask 1041409  }
  0x16   :  { %10837 = vmatpush3.msra.mxu0 %v80_v4  ;;  %v330_v39 = vld [vmem:[%s14600_s8 + $0x18] sm:$0xff]  ;;  %v328_v41 = vld [vmem:[%s14600_s8 + $0x8] sm:$0xff]  ;;  %v327_v42 = vld [vmem:[%s14600_s8] sm:$0xff]  ;;  %s14630_s7 = sld [smem:[#allocation11_spill]]  ;;  %vm9466_vm6 = vcmask 123904  }
  0x17   :  { %10838 = vmatprep.subr.mxu0 %v79_v9  ;;  %10852 = vmatprep.subr.mxu1 %v330_v39  ;;  %v9646_v8 = vld [vmem:[%s14611_s19] ss:$0 sm:$0xff]  ;;  %s14631_s2 = sld [smem:[#allocation6_spill]] }
  0x18   :  { %10839 = vmatpush3.msra.mxu0 %v79_v9  ;;  %10853 = vmatpush3.msra.mxu1 %v330_v39  ;;  %s14632_s25 = sld [smem:[#allocation7_spill]] }
  0x19   :  { %10840 = vmatprep.subr.mxu0 %v78_v10  ;;  %10854 = vmatprep.subr.mxu1 %v329_v40 }
  0x1a   :  { %10841 = vmatpush3.msra.mxu0 %v78_v10  ;;  %v9638_v21 = vld [vmem:[%s14628_s30] ss:$0 sm:$0xff]  ;;  %10855 = vmatpush3.msra.mxu1 %v329_v40 }
  0x1b   :  { %10842 = vmatprep.subr.mxu0 %v77_v11  ;;  %10856 = vmatprep.subr.mxu1 %v328_v41 }
  0x1c   :  { %10843 = vmatpush3.msra.mxu0 %v77_v11  ;;  %10857 = vmatpush3.msra.mxu1 %v328_v41 }
  0x1d   :  { %10844 = vmatprep.subr.mxu0 %v76_v12  ;;  %10858 = vmatprep.subr.mxu1 %v327_v42 }
  0x1e   :  { %10845 = vmatpush3.msra.mxu0 %v76_v12  ;;  %10859 = vmatpush3.msra.mxu1 %v327_v42 }
  0x1f   :  { %10847 = vmatmul.mubr.msk.f32.vlgmr.msra.gmra.mxu0 %vm91_vm0, %v73_v13 }
  0x20   :  { %10849 = vmatprep.mubr.msk.f32.mxu0 %vm91_vm0, %v74_v14 }
  0x23   :  { %10850 = vmatmul.mubr.msk.f32.gmra.mxu0 %vm91_vm0, %v75_v15  ;;  %v12286_v15 = vmov 0.0  }
  0x24   :  { %10866 = vmatprep.subr.mxu1 %v12286_v15 }
  0x9d   :  { %v279_v16 = vpop.xlane.xlu0 %278 }
  0x9e   :  { %v283_v18 = vmul.f32 0.03125, %v279_v16  ;;  %v282_v20 = vpop.xlane.xlu1 %281  ;;  %v430_v16 = vld [vmem:[%s14603_s11] sm:$0xff] }
  0x9f   :  { %v284_v25 = vmul.f32 0.03125, %v282_v20 }
  0xa0   :  { %v12458_v24 = vsub.f32 %v275_v5, %v283_v18 }
  0xa1   :  { %v12462_v32 = vsub.f32 %v276_v6, %v284_v25  ;;  %v9645_v6 = vld [vmem:[%s14610_s18] ss:$0 sm:$0xff] }
  0xa2   :  { %v287_v33 = vmul.f32 %v12458_v24, %v12458_v24 }
  0xa3   :  { %v288_v37 = vmul.f32 %v12462_v32, %v12462_v32 }
  0xa4   :  { %v289_v36 = vsel %vm191_vm1, %v287_v33, 0.0  ;;  %v9644_v33 = vld [vmem:[%s14630_s7] ss:$0 sm:$0xff] }
  0xa5   :  { %v292_v38 = vsel %vm191_vm1, %v288_v37, 0.0 }
  0xdf   :  { %v10848_v17 = vpop.f32.mrf.mxu0 }
  0xe0   :  { %v176_v27 = vadd.f32 %v10848_v17, %v9638_v21  ;;  %v12288_v17 = vmov 0  }
  0xe1   :  { %v170_v19 = vpop.f32.mrf.mxu0  ;;  %11938 = vset.pattern.permute.xlu0 %v12288_v17  ;;  %11939 = vset.pattern.permute.xlu1 %v12288_v17 }
  0xe2   :  { %v171_v30 = vadd.f32 %v9638_v21, %v170_v19  ;;  %v195_v34 = vsel %vm191_vm1, %v176_v27, 0.0 }
  0xe3   :  { %v10851_v22 = vpop.f32.mrf.mxu0 }
  0xe4   :  { %v186_v23 = vadd.f32 %v10851_v22, %v9638_v21  ;;  %v192_v35 = vsel %vm191_vm1, %v171_v30, 0.0 }
  0xe5   :  { %v180_v26 = vpop.f32.mrf.mxu0 }
  0xe6   :  { %v181_v28 = vadd.f32 %v9638_v21, %v180_v26  ;;  %v201_v29 = vsel %vm191_vm1, %v186_v23, 0.0 }
  0xe7   :  { %202 = vadd.xlane.f32.xlu0 %v201_v29 }
  0xe8   :  { %v198_v31 = vsel %vm191_vm1, %v181_v28, 0.0 }
  0xe9   :  { %199 = vadd.xlane.f32.xlu1 %v198_v31  ;;  %v9643_v31 = vld [vmem:[%s14629_s24] ss:$0 sm:$0xff] }
  0xeb   :  { %196 = vadd.xlane.f32.xlu0 %v195_v34 }
  0xed   :  { %193 = vadd.xlane.f32.xlu1 %v192_v35 }
  0xef   :  { %290 = vadd.xlane.f32.xlu0 %v289_v36 }
  0xf3   :  { %293 = vadd.xlane.f32.xlu0 %v292_v38 }
 0x170   :  { %v203_v43 = vpop.xlane.xlu0 %202 }
 0x171   :  { %v208_v44 = vmul.f32 0.03125, %v203_v43 }
 0x172   :  { %v200_v45 = vpop.xlane.xlu1 %199 }
 0x173   :  { %v12484_v46 = vsub.f32 %v186_v23, %v208_v44  ;;  %v207_v47 = vmul.f32 0.03125, %v200_v45 }
 0x174   :  { %v197_v48 = vpop.xlane.xlu0 %196 }
 0x175   :  { %v12486_v49 = vsub.f32 %v181_v28, %v207_v47  ;;  %v206_v50 = vmul.f32 0.03125, %v197_v48  ;;  %v216_v51 = vmul.f32 %v12484_v46, %v12484_v46  ;;  %v429_v48 = vld [vmem:[%s14602_s10] sm:$0xff] }
 0x176   :  { %v194_v52 = vpop.xlane.xlu1 %193 }
 0x177   :  { %v12490_v53 = vsub.f32 %v176_v27, %v206_v50  ;;  %v205_v54 = vmul.f32 0.03125, %v194_v52  ;;  %v226_v55 = vsel %vm191_vm1, %v216_v51, 0.0  ;;  %v215_v56 = vmul.f32 %v12486_v49, %v12486_v49 }
 0x178   :  { %v291_v57 = vpop.xlane.xlu0 %290  ;;  %227 = vadd.xlane.f32.xlu1 %v226_v55 }
 0x179   :  { %v12495_v58 = vsub.f32 %v171_v30, %v205_v54  ;;  %v295_v59 = vmul.f32 0.03125, %v291_v57  ;;  %v214_v60 = vmul.f32 %v12490_v53, %v12490_v53  ;;  %v223_v63 = vsel %vm191_vm1, %v215_v56, 0.0 }
 0x17b   :  { %v297_v61 = vadd.f32 1e-05, %v295_v59  ;;  %v220_v62 = vsel %vm191_vm1, %v214_v60, 0.0  ;;  %v213_v0 = vmul.f32 %v12495_v58, %v12495_v58  ;;  %v666_v60 = vld [vmem:[%s14604_s12 + $0x18] sm:$0xff] }
 0x17c   :  { %221 = vadd.xlane.f32.xlu0 %v220_v62  ;;  %v294_v1 = vpop.xlane.xlu0 %293  ;;  %224 = vadd.xlane.f32.xlu1 %v223_v63  ;;  %v665_v62 = vld [vmem:[%s14604_s12 + $0x10] sm:$0xff]  ;;  %v664_v63 = vld [vmem:[%s14604_s12 + $0x8] sm:$0xff] }
 0x17d   :  { %11940 = vrsqrt.f32 %v297_v61  ;;  %v296_v2 = vmul.f32 0.03125, %v294_v1  ;;  %v217_v4 = vsel %vm191_vm1, %v213_v0, 0.0  ;;  %v663_v1 = vld [vmem:[%s14604_s12] sm:$0xff] }
 0x17f   :  { %v298_v3 = vadd.f32 1e-05, %v296_v2  ;;  %v9673_v2 = vld [vmem:[%s14600_s8 + $0x38] sm:$0xff] }
 0x180   :  { %218 = vadd.xlane.f32.xlu1 %v217_v4  ;;  %v9671_v4 = vld [vmem:[%s14600_s8 + $0x28] sm:$0xff] }
 0x181   :  { %11942 = vrsqrt.f32 %v298_v3  ;;  %v9672_v3 = vld [vmem:[%s14600_s8 + $0x30] sm:$0xff] }
 0x18a   :  { %v11941_v5 = vpop.eup %11940 }
 0x18b   :  { %v301_v7 = vmul.f32 %v11941_v5, %v12458_v24  ;;  %v9670_v5 = vld [vmem:[%s14600_s8 + $0x20] sm:$0xff] }
 0x18d   :  { %v309_v9 = vmul.f32 %v9645_v6, %v301_v7  ;;  %v12613_v7 = vld [vmem:[%s14631_s2] sm:$0xff] }
 0x18e   :  { %v11943_v10 = vpop.eup %11942 }
 0x18f   :  { %v12511_v11 = vadd.f32 %v9646_v8, %v309_v9  ;;  %v302_v12 = vmul.f32 %v11943_v10, %v12462_v32 }
 0x191   :  { %v310_v13 = vmul.f32 %v9645_v6, %v302_v12  ;;  %10860 = vmatprep.mubr.msk.f32.mxu1 %vm191_vm1, %v12511_v11 }
 0x192   :  { %433 = vperm.xlu0 %11938, %v430_v16  }
 0x193   :  { %v12516_v14 = vadd.f32 %v9646_v8, %v310_v13  ;;  %v12618_v8 = vld [vmem:[%s14631_s2 + $0x8] sm:$0xff] }
 0x195   :  { %10861 = vmatmul.mubr.msk.f32.vlgmr.msra.gmra.mxu1 %vm191_vm1, %v12516_v14 }
 0x196   :  { %10863 = vmatprep.mubr.msk.f32.mxu1 %vm191_vm1, %v12511_v11 }
 0x199   :  { %10864 = vmatmul.mubr.msk.f32.gmra.mxu1 %vm191_vm1, %v12516_v14 }
 0x19a   :  { %10874 = vmatprep.mubr.msk.f32.mxu1 %vm12287_vm2, %v12286_v15 }
 0x201   :  { %v228_v18 = vpop.xlane.xlu1 %227 }
 0x202   :  { %v232_v19 = vmul.f32 0.03125, %v228_v18  ;;  %v12626_v18 = vld [vmem:[%s14631_s2 + $0x10] sm:$0xff] }
 0x204   :  { %v236_v20 = vadd.f32 1e-05, %v232_v19 }
 0x205   :  { %v222_v21 = vpop.xlane.xlu0 %221  ;;  %v225_v22 = vpop.xlane.xlu1 %224 }
 0x206   :  { %11944 = vrsqrt.f32 %v236_v20  ;;  %v230_v23 = vmul.f32 0.03125, %v222_v21  ;;  %v231_v24 = vmul.f32 0.03125, %v225_v22  ;;  %v12633_v22 = vld [vmem:[%s14631_s2 + $0x18] sm:$0xff] }
 0x208   :  { %v234_v25 = vadd.f32 1e-05, %v230_v23  ;;  %v235_v26 = vadd.f32 1e-05, %v231_v24 }
 0x209   :  { %v219_v27 = vpop.xlane.xlu1 %218 }
 0x20a   :  { %11946 = vrsqrt.f32 %v234_v25  ;;  %v229_v28 = vmul.f32 0.03125, %v219_v27 }
 0x20b   :  { %11948 = vrsqrt.f32 %v235_v26 }
 0x20c   :  { %v233_v29 = vadd.f32 1e-05, %v229_v28  ;;  %v12640_v28 = vld [vmem:[%s14601_s9 + $0x1] ss:$0 sm:$0xff] }
 0x20d   :  { %v434_v56 = vpop.permute.xlu0 %433 }
 0x20e   :  { %11950 = vrsqrt.f32 %v233_v29 }
 0x213   :  { %v11945_v30 = vpop.eup %11944 }
 0x214   :  { %v244_v32 = vmul.f32 %v11945_v30, %v12484_v46 }
 0x216   :  { %v254_v34 = vmul.f32 %v9643_v31, %v244_v32 }
 0x217   :  { %v11947_v35 = vpop.eup %11946 }
 0x218   :  { %v11949_v36 = vpop.eup %11948  ;;  %v12537_v37 = vadd.f32 %v9644_v33, %v254_v34  ;;  %v242_v38 = vmul.f32 %v11947_v35, %v12490_v53 }
 0x219   :  { %v243_v39 = vmul.f32 %v11949_v36, %v12486_v49  ;;  %v9648_v49 = vld [vmem:[%s14601_s9] ss:$0 sm:$0xff] }
 0x21a   :  { %10867 = vmatpush3.xpose.msk.msra.mxu1 %vm191_vm1, %v12537_v37  ;;  %v252_v42 = vmul.f32 %v9643_v31, %v242_v38 }
 0x21b   :  { %v11951_v40 = vpop.eup %11950  ;;  %v253_v41 = vmul.f32 %v9643_v31, %v243_v39  ;;  %10868 = vmatprep.subr.mxu1 %v12286_v15 }
 0x21c   :  { %v241_v44 = vmul.f32 %v11951_v40, %v12495_v58  ;;  %v12550_v45 = vadd.f32 %v9644_v33, %v252_v42 }
 0x21d   :  { %v12544_v43 = vadd.f32 %v9644_v33, %v253_v41 }
 0x21e   :  { %v251_v46 = vmul.f32 %v9643_v31, %v241_v44 }
 0x21f   :  { %10869 = vmatpush3.xpose.msk.msra.mxu1 %vm191_vm1, %v12544_v43 }
 0x220   :  { %10870 = vmatprep.subr.mxu1 %v12286_v15  ;;  %v12555_v47 = vadd.f32 %v9644_v33, %v251_v46 }
 0x223   :  { %10871 = vmatpush3.xpose.msk.msra.mxu1 %vm191_vm1, %v12550_v45 }
 0x224   :  { %10872 = vmatprep.subr.mxu1 %v12286_v15 }
 0x227   :  { %10873 = vmatpush3.xpose.msk.msra.mxu1 %vm191_vm1, %v12555_v47 }
 0x22a   :  { %10875 = vmatmul.mubr.msk.f32.vlgmr.msra.gmra.mxu1 %vm191_vm1, %v429_v48 }
 0x255   :  { %v10862_v50 = vpop.f32.mrf.mxu1 }
 0x256   :  { %v416_v51 = vadd.f32 %v10862_v50, %v9648_v49 }
 0x257   :  { %v410_v52 = vpop.f32.mrf.mxu1 }
 0x258   :  { %v411_v53 = vadd.f32 %v9648_v49, %v410_v52 }
 0x259   :  { %v10865_v54 = vpop.f32.mrf.mxu1 }
 0x25a   :  { %10879 = vmatprep.mubr.msk.f32.mxu0 %vm521_vm3, %v411_v53  ;;  %v426_v0 = vadd.f32 %v10865_v54, %v9648_v49 }
 0x25b   :  { %v420_v55 = vpop.f32.mrf.mxu1 }
 0x25c   :  { %v421_v61 = vadd.f32 %v9648_v49, %v420_v55 }
 0x2ea   :  { %v517_v57 = vpop.f32.mrf.mxu1 }
 0x2eb   :  { %v518_v58 = vadd.f32 %v517_v57, %v434_v56 }
 0x2ec   :  { %v10876_v59 = vpop.f32.mrf.mxu1 }
 0x2ed   :  { %10877 = vmatprep.subr.mxu0 %v518_v58 }
 0x2ee   :  { %10878 = vmatpush3.msra.mxu0 %v518_v58  ;;  %v9681_v58 = vld [vmem:[%s14603_s11 + $0x8] sm:$0xff] }
 0x2ef   :  { %10880 = vmatmul.mubr.msk.f32.vlgmr.msra.gmra.mxu0 %vm521_vm3, %v416_v51  ;;  %10885 = vmatprep.subr.mxu0 %v666_v60 }
 0x2f0   :  { %10882 = vmatprep.mubr.msk.f32.mxu0 %vm521_vm3, %v421_v61  ;;  %10886 = vmatpush3.msra.mxu0 %v666_v60 }
 0x2f1   :  { %10887 = vmatprep.subr.mxu0 %v665_v62 }
 0x2f2   :  { %10888 = vmatpush3.msra.mxu0 %v665_v62 }
 0x2f3   :  { %10883 = vmatmul.mubr.msk.f32.gmra.mxu0 %vm521_vm3, %v426_v0  ;;  %10889 = vmatprep.subr.mxu0 %v664_v63 }
 0x2f4   :  { %10890 = vmatpush3.msra.mxu0 %v664_v63  ;;  %10893 = vmatprep.mubr.msk.f32.mxu0 %vm191_vm1, %v12555_v47 }
 0x2f5   :  { %10891 = vmatprep.subr.mxu0 %v663_v1 }
 0x2f6   :  { %10892 = vmatpush3.msra.mxu0 %v663_v1 }
 0x2f7   :  { %10894 = vmatmul.mubr.msk.f32.vlgmr.msra.gmra.mxu0 %vm191_vm1, %v12550_v45  ;;  %10913 = vmatprep.subr.mxu0 %v9673_v2 }
 0x2f8   :  { %10896 = vmatprep.mubr.msk.f32.mxu0 %vm191_vm1, %v12544_v43  ;;  %10914 = vmatpush3.msra.mxu0 %v9673_v2 }
 0x2f9   :  { %10915 = vmatprep.subr.mxu0 %v9672_v3 }
 0x2fa   :  { %10916 = vmatpush3.msra.mxu0 %v9672_v3 }
 0x2fb   :  { %10897 = vmatmul.mubr.msk.f32.gmra.mxu0 %vm191_vm1, %v12537_v37  ;;  %10917 = vmatprep.subr.mxu0 %v9671_v4 }
 0x2fc   :  { %10918 = vmatpush3.msra.mxu0 %v9671_v4  ;;  %10921 = vmatprep.mubr.msk.f32.mxu0 %vm191_vm1, %v12511_v11 }
 0x2fd   :  { %10919 = vmatprep.subr.mxu0 %v9670_v5 }
 0x2fe   :  { %10920 = vmatpush3.msra.mxu0 %v9670_v5 }
 0x2ff   :  { %10922 = vmatmul.mubr.msk.f32.vlgmr.msra.gmra.mxu0 %vm191_vm1, %v12516_v14 }
 0x300   :  { %10924 = vmatprep.mubr.msk.f32.mxu0 %vm191_vm1, %v12511_v11 }
 0x303   :  { %10925 = vmatmul.mubr.msk.f32.gmra.mxu0 %vm191_vm1, %v12516_v14 }
 0x3af   :  { %v10881_v6 = vpop.f32.mrf.mxu0 }
 0x3b0   :  { %v606_v13 = vadd.f32 %v10881_v6, %v12618_v8 }
 0x3b1   :  { %v600_v9 = vpop.f32.mrf.mxu0 }
 0x3b2   :  { %v601_v10 = vadd.f32 %v600_v9, %v12613_v7  ;;  %v622_v21 = vsel %vm191_vm1, %v606_v13, -inf  ;;  %v9680_v9 = vld [vmem:[%s14602_s10 + $0x8] sm:$0xff] }
 0x3b3   :  { %v10884_v12 = vpop.f32.mrf.mxu0 }
 0x3b4   :  { %v619_v16 = vsel %vm191_vm1, %v601_v10, -inf  ;;  %v616_v25 = vadd.f32 %v10884_v12, %v12633_v22 }
 0x3b5   :  { %v610_v17 = vpop.f32.mrf.mxu0  ;;  %620 = vmax.xlane.f32.xlu1 %v619_v16 }
 0x3b6   :  { %v611_v20 = vadd.f32 %v610_v17, %v12626_v18  ;;  %v628_v31 = vsel %vm191_vm1, %v616_v25, -inf }
 0x3b7   :  { %v10895_v19 = vpop.f32.mrf.mxu0 }
 0x3b8   :  { %v625_v26 = vsel %vm191_vm1, %v611_v20, -inf }
 0x3b9   :  { %v733_v23 = vpop.f32.mrf.mxu0  ;;  %623 = vmax.xlane.f32.xlu1 %v622_v21 }
 0x3bb   :  { %v10898_v24 = vpop.f32.mrf.mxu0 }
 0x3bc   :  { %10899 = vmatprep.subr.mxu1 %v10898_v24 }
 0x3bd   :  { %v743_v27 = vpop.f32.mrf.mxu0  ;;  %10900 = vmatpush3.msra.mxu1 %v10898_v24  ;;  %626 = vmax.xlane.f32.xlu1 %v625_v26 }
 0x3be   :  { %10901 = vmatprep.subr.mxu1 %v743_v27 }
 0x3bf   :  { %10902 = vmatpush3.msra.mxu1 %v743_v27  ;;  %v10923_v29 = vpop.f32.mrf.mxu0  ;;  %v9693_v27 = vld [vmem:[%s14604_s12 + $0x30] sm:$0xff] }
 0x3c0   :  { %v12643_v30 = vadd.f32 %v10923_v29, %v12640_v28  ;;  %10903 = vmatprep.subr.mxu1 %v10895_v19  ;;  %v9692_v29 = vld [vmem:[%s14604_s12 + $0x28] sm:$0xff] }
 0x3c1   :  { %10904 = vmatpush3.msra.mxu1 %v10895_v19  ;;  %v932_v32 = vpop.f32.mrf.mxu0  ;;  %629 = vmax.xlane.f32.xlu1 %v628_v31 }
 0x3c2   :  { %v933_v33 = vadd.f32 %v12640_v28, %v932_v32  ;;  %10905 = vmatprep.subr.mxu1 %v733_v23  ;;  %v9691_v32 = vld [vmem:[%s14604_s12 + $0x20] sm:$0xff] }
 0x3c3   :  { %10906 = vmatpush3.msra.mxu1 %v733_v23  ;;  %v10926_v16 = vpop.f32.mrf.mxu0 }
 0x3c4   :  { %10940 = vmatprep.mubr.msk.f32.mxu0 %vm521_vm3, %v933_v33  ;;  %10927 = vmatprep.subr.mxu1 %v12286_v15  ;;  %v948_v31 = vadd.f32 %v10926_v16, %v12640_v28  ;;  %v9704_v33 = vld [vmem:[%s14600_s8 + $0x48] sm:$0xff] }
 0x3c5   :  { %v942_v21 = vpop.f32.mrf.mxu0 }
 0x3c6   :  { %v943_v26 = vadd.f32 %v12640_v28, %v942_v21  ;;  %v9705_v28 = vld [vmem:[%s14600_s8 + $0x50] sm:$0xff] }
 0x43e   :  { %v621_v34 = vpop.xlane.xlu1 %620 }
 0x43f   :  { %v631_v35 = vsub.f32 %v601_v10, %v621_v34  ;;  %v9703_v34 = vld [vmem:[%s14600_s8 + $0x40] sm:$0xff] }
 0x441   :  { %v635_v36 = vmul.f32 1.442695, %v631_v35 }
 0x442   :  { %v624_v38 = vpop.xlane.xlu1 %623 }
 0x443   :  { %11952 = vpow2.f32 %v635_v36  ;;  %v632_v39 = vsub.f32 %v606_v13, %v624_v38 }
 0x445   :  { %v637_v40 = vmul.f32 1.442695, %v632_v39 }
 0x446   :  { %v627_v41 = vpop.xlane.xlu1 %626 }
 0x447   :  { %11954 = vpow2.f32 %v637_v40  ;;  %v633_v42 = vsub.f32 %v611_v20, %v627_v41 }
 0x449   :  { %v639_v44 = vmul.f32 1.442695, %v633_v42 }
 0x44a   :  { %v630_v46 = vpop.xlane.xlu1 %629 }
 0x44b   :  { %11956 = vpow2.f32 %v639_v44  ;;  %v634_v48 = vsub.f32 %v616_v25, %v630_v46  ;;  %v9694_v25 = vld [vmem:[%s14604_s12 + $0x38] sm:$0xff] }
 0x44d   :  { %v641_v49 = vmul.f32 1.442695, %v634_v48 }
 0x44f   :  { %11958 = vpow2.f32 %v641_v49 }
 0x450   :  { %v11953_v50 = vpop.eup %11952 }
 0x451   :  { %v643_v51 = vsel %vm191_vm1, %v11953_v50, 0.0 }
 0x452   :  { %644 = vadd.xlane.f32.xlu1 %v643_v51 }
 0x454   :  { %v11955_v52 = vpop.eup %11954 }
 0x455   :  { %v646_v53 = vsel %vm191_vm1, %v11955_v52, 0.0 }
 0x456   :  { %647 = vadd.xlane.f32.xlu1 %v646_v53 }
 0x458   :  { %v11957_v54 = vpop.eup %11956 }
 0x459   :  { %v649_v55 = vsel %vm191_vm1, %v11957_v54, 0.0 }
 0x45a   :  { %650 = vadd.xlane.f32.xlu1 %v649_v55  ;;  %v12742_v55 = vld [vmem:[%s14601_s9 + $0x2] ss:$0 sm:$0xff] }
 0x45c   :  { %v11959_v56 = vpop.eup %11958 }
 0x45d   :  { %v652_v57 = vsel %vm191_vm1, %v11959_v56, 0.0 }
 0x45e   :  { %653 = vadd.xlane.f32.xlu1 %v652_v57 }
 0x46f   :  { %957 = vperm.xlu1 %11939, %v9681_v58  }
 0x4db   :  { %v645_v59 = vpop.xlane.xlu1 %644 }
 0x4dc   :  { %11960 = vrcp.f32 %v645_v59 }
 0x4df   :  { %v648_v60 = vpop.xlane.xlu1 %647 }
 0x4e0   :  { %11962 = vrcp.f32 %v648_v60 }
 0x4e3   :  { %v651_v61 = vpop.xlane.xlu1 %650 }
 0x4e4   :  { %11964 = vrcp.f32 %v651_v61 }
 0x4e7   :  { %v654_v62 = vpop.xlane.xlu1 %653 }
 0x4e8   :  { %11966 = vrcp.f32 %v654_v62 }
 0x4e9   :  { %v11961_v63 = vpop.eup %11960 }
 0x4ea   :  { %v659_v0 = vmul.f32 %v11961_v63, %v11953_v50 }
 0x4eb   :  { %v958_v19 = vpop.permute.xlu1 %957 }
 0x4ec   :  { %10907 = vmatprep.mubr.msk.f32.mxu1 %vm191_vm1, %v659_v0 }
 0x4ed   :  { %v11963_v1 = vpop.eup %11962 }
 0x4ee   :  { %v660_v2 = vmul.f32 %v11963_v1, %v11955_v52 }
 0x4f0   :  { %10908 = vmatmul.mubr.msk.f32.vlgmr.msra.gmra.mxu1 %vm191_vm1, %v660_v2 }
 0x4f1   :  { %v11965_v3 = vpop.eup %11964  ;;  %10928 = vmatpush3.xpose.msk.msra.mxu1 %vm191_vm1, %v12537_v37 }
 0x4f2   :  { %10929 = vmatprep.subr.mxu1 %v12286_v15  ;;  %v661_v4 = vmul.f32 %v11965_v3, %v11957_v54 }
 0x4f4   :  { %10910 = vmatprep.mubr.msk.f32.mxu1 %vm191_vm1, %v661_v4 }
 0x4f5   :  { %v11967_v5 = vpop.eup %11966  ;;  %10930 = vmatpush3.xpose.msk.msra.mxu1 %vm191_vm1, %v12544_v43 }
 0x4f6   :  { %10931 = vmatprep.subr.mxu1 %v12286_v15  ;;  %v662_v6 = vmul.f32 %v11967_v5, %v11959_v56 }
 0x4f8   :  { %10911 = vmatmul.mubr.msk.f32.gmra.mxu1 %vm191_vm1, %v662_v6 }
 0x4f9   :  { %10932 = vmatpush3.xpose.msk.msra.mxu1 %vm191_vm1, %v12550_v45  ;;  %10935 = vmatprep.mubr.msk.f32.mxu1 %vm12287_vm2, %v12286_v15 }
 0x4fa   :  { %10933 = vmatprep.subr.mxu1 %v12286_v15 }
 0x4fd   :  { %10934 = vmatpush3.xpose.msk.msra.mxu1 %vm191_vm1, %v12555_v47 }
 0x500   :  { %10936 = vmatmul.mubr.msk.f32.vlgmr.msra.gmra.mxu1 %vm191_vm1, %v9680_v9 }
 0x5b0   :  { %v12677_v10 = vpop.f32.mrf.mxu1 }
 0x5b2   :  { %v12679_v12 = vpop.f32.mrf.mxu1 }
 0x5b8   :  { %v12681_v13 = vpop.f32.mrf.mxu1 }
 0x5ba   :  { %v12683_v17 = vpop.f32.mrf.mxu1 }
 0x5c0   :  { %v1029_v20 = vpop.f32.mrf.mxu1 }
 0x5c1   :  { %v1030_v23 = vadd.f32 %v1029_v20, %v958_v19 }
 0x5c2   :  { %v10937_v24 = vpop.f32.mrf.mxu1 }
 0x5c3   :  { %10938 = vmatprep.subr.mxu0 %v1030_v23 }
 0x5c4   :  { %10939 = vmatpush3.msra.mxu0 %v1030_v23 }
 0x5c5   :  { %10941 = vmatmul.mubr.msk.f32.vlgmr.msra.gmra.mxu0 %vm521_vm3, %v12643_v30  ;;  %10946 = vmatprep.subr.mxu0 %v9694_v25  ;;  %v9706_v30 = vld [vmem:[%s14600_s8 + $0x58] sm:$0xff] }
 0x5c6   :  { %10943 = vmatprep.mubr.msk.f32.mxu0 %vm521_vm3, %v943_v26  ;;  %10947 = vmatpush3.msra.mxu0 %v9694_v25 }
 0x5c7   :  { %10948 = vmatprep.subr.mxu0 %v9693_v27 }
 0x5c8   :  { %10949 = vmatpush3.msra.mxu0 %v9693_v27  ;;  %v9714_v27 = vld [vmem:[%s14603_s11 + $0x10] sm:$0xff] }
 0x5c9   :  { %10944 = vmatmul.mubr.msk.f32.gmra.mxu0 %vm521_vm3, %v948_v31  ;;  %10950 = vmatprep.subr.mxu0 %v9692_v29 }
 0x5ca   :  { %10951 = vmatpush3.msra.mxu0 %v9692_v29  ;;  %10954 = vmatprep.mubr.msk.f32.mxu0 %vm191_vm1, %v12555_v47 }
 0x5cb   :  { %10952 = vmatprep.subr.mxu0 %v9691_v32 }
 0x5cc   :  { %10953 = vmatpush3.msra.mxu0 %v9691_v32 }
 0x5cd   :  { %10955 = vmatmul.mubr.msk.f32.vlgmr.msra.gmra.mxu0 %vm191_vm1, %v12550_v45  ;;  %10974 = vmatprep.subr.mxu0 %v9706_v30 }
 0x5ce   :  { %10957 = vmatprep.mubr.msk.f32.mxu0 %vm191_vm1, %v12544_v43  ;;  %10975 = vmatpush3.msra.mxu0 %v9706_v30 }
 0x5cf   :  { %10976 = vmatprep.subr.mxu0 %v9705_v28 }
 0x5d0   :  { %10977 = vmatpush3.msra.mxu0 %v9705_v28 }
 0x5d1   :  { %10958 = vmatmul.mubr.msk.f32.gmra.mxu0 %vm191_vm1, %v12537_v37  ;;  %10978 = vmatprep.subr.mxu0 %v9704_v33 }
 0x5d2   :  { %10979 = vmatpush3.msra.mxu0 %v9704_v33  ;;  %10982 = vmatprep.mubr.msk.f32.mxu0 %vm191_vm1, %v12511_v11 }
 0x5d3   :  { %10980 = vmatprep.subr.mxu0 %v9703_v34 }
 0x5d4   :  { %10981 = vmatpush3.msra.mxu0 %v9703_v34 }
 0x5d5   :  { %10983 = vmatmul.mubr.msk.f32.vlgmr.msra.gmra.mxu0 %vm191_vm1, %v12516_v14 }
 0x5d6   :  { %10985 = vmatprep.mubr.msk.f32.mxu0 %vm191_vm1, %v12511_v11 }
 0x5d9   :  { %10986 = vmatmul.mubr.msk.f32.gmra.mxu0 %vm191_vm1, %v12516_v14 }
 0x685   :  { %v10942_v35 = vpop.f32.mrf.mxu0 }
 0x686   :  { %v1117_v36 = vadd.f32 %v10942_v35, %v12618_v8 }
 0x687   :  { %v1111_v38 = vpop.f32.mrf.mxu0 }
 0x688   :  { %v1112_v39 = vadd.f32 %v1111_v38, %v12613_v7  ;;  %v1133_v40 = vsel %vm191_vm1, %v1117_v36, -inf }
 0x689   :  { %1134 = vmax.xlane.f32.xlu1 %v1133_v40  ;;  %v10945_v41 = vpop.f32.mrf.mxu0 }
 0x68a   :  { %v1130_v42 = vsel %vm191_vm1, %v1112_v39, -inf  ;;  %v1127_v49 = vadd.f32 %v10945_v41, %v12633_v22  ;;  %v9713_v41 = vld [vmem:[%s14602_s10 + $0x10] sm:$0xff] }
 0x68b   :  { %v1121_v44 = vpop.f32.mrf.mxu0  ;;  %1131 = vmax.xlane.f32.xlu0 %v1130_v42  ;;  %v12781_v42 = vld [vmem:[%s14605_s13] ss:$0 sm:$0xff] }
 0x68c   :  { %v1122_v46 = vadd.f32 %v1121_v44, %v12626_v18  ;;  %v1139_v53 = vsel %vm191_vm1, %v1127_v49, -inf  ;;  %v850_v44 = vadd.f32 %v12677_v10, %v12781_v42  ;;  %v9727_v10 = vld [vmem:[%s14604_s12 + $0x58] sm:$0xff] }
 0x68d   :  { %v10956_v48 = vpop.f32.mrf.mxu0 }
 0x68e   :  { %v1136_v50 = vsel %vm191_vm1, %v1122_v46, -inf }
 0x68f   :  { %v1245_v51 = vpop.f32.mrf.mxu0  ;;  %1137 = vmax.xlane.f32.xlu0 %v1136_v50  ;;  %v852_v50 = vadd.f32 %v12681_v13, %v12781_v42  ;;  %v9726_v13 = vld [vmem:[%s14604_s12 + $0x50] sm:$0xff] }
 0x691   :  { %v10959_v52 = vpop.f32.mrf.mxu0 }
 0x692   :  { %10960 = vmatprep.subr.mxu1 %v10959_v52 }
 0x693   :  { %v1255_v54 = vpop.f32.mrf.mxu0  ;;  %10961 = vmatpush3.msra.mxu1 %v10959_v52  ;;  %1140 = vmax.xlane.f32.xlu0 %v1139_v53 }
 0x694   :  { %10962 = vmatprep.subr.mxu1 %v1255_v54 }
 0x695   :  { %10963 = vmatpush3.msra.mxu1 %v1255_v54  ;;  %v10984_v56 = vpop.f32.mrf.mxu0 }
 0x696   :  { %v12745_v57 = vadd.f32 %v10984_v56, %v12742_v55  ;;  %10964 = vmatprep.subr.mxu1 %v10956_v48 }
 0x697   :  { %10965 = vmatpush3.msra.mxu1 %v10956_v48  ;;  %v1444_v58 = vpop.f32.mrf.mxu0 }
 0x698   :  { %v1445_v59 = vadd.f32 %v12742_v55, %v1444_v58  ;;  %10966 = vmatprep.subr.mxu1 %v1245_v51 }
 0x699   :  { %10967 = vmatpush3.msra.mxu1 %v1245_v51  ;;  %v10987_v53 = vpop.f32.mrf.mxu0 }
 0x69a   :  { %11001 = vmatprep.mubr.msk.f32.mxu0 %vm521_vm3, %v1445_v59  ;;  %10988 = vmatprep.subr.mxu1 %v12286_v15 }
 0x69b   :  { %v1454_v59 = vpop.f32.mrf.mxu0 }
 0x712   :  { %v1135_v60 = vpop.xlane.xlu1 %1134 }
 0x713   :  { %v1143_v61 = vsub.f32 %v1117_v36, %v1135_v60 }
 0x714   :  { %v1132_v62 = vpop.xlane.xlu0 %1131 }
 0x715   :  { %v1148_v63 = vmul.f32 1.442695, %v1143_v61  ;;  %v1142_v0 = vsub.f32 %v1112_v39, %v1132_v62  ;;  %v1455_v62 = vadd.f32 %v12742_v55, %v1454_v59 }
 0x717   :  { %11968 = vpow2.f32 %v1148_v63  ;;  %v1146_v1 = vmul.f32 1.442695, %v1142_v0  ;;  %v9725_v63 = vld [vmem:[%s14604_s12 + $0x48] sm:$0xff]  ;;  %v1460_v0 = vadd.f32 %v10987_v53, %v12742_v55  ;;  %v9738_v55 = vld [vmem:[%s14600_s8 + $0x70] sm:$0xff] }
 0x718   :  { %v1138_v2 = vpop.xlane.xlu0 %1137 }
 0x719   :  { %11970 = vpow2.f32 %v1146_v1  ;;  %v1144_v3 = vsub.f32 %v1122_v46, %v1138_v2  ;;  %v9724_v1 = vld [vmem:[%s14604_s12 + $0x40] sm:$0xff]  ;;  %v9737_v2 = vld [vmem:[%s14600_s8 + $0x68] sm:$0xff] }
 0x71b   :  { %v1150_v4 = vmul.f32 1.442695, %v1144_v3  ;;  %v9736_v3 = vld [vmem:[%s14600_s8 + $0x60] sm:$0xff] }
 0x71c   :  { %v1141_v5 = vpop.xlane.xlu0 %1140 }
 0x71d   :  { %11972 = vpow2.f32 %v1150_v4  ;;  %v1145_v6 = vsub.f32 %v1127_v49, %v1141_v5 }
 0x71f   :  { %v1152_v9 = vmul.f32 1.442695, %v1145_v6 }
 0x721   :  { %11974 = vpow2.f32 %v1152_v9 }
 0x724   :  { %v11969_v16 = vpop.eup %11968 }
 0x725   :  { %v1157_v19 = vsel %vm191_vm1, %v11969_v16, 0.0 }
 0x726   :  { %v11971_v20 = vpop.eup %11970  ;;  %1158 = vadd.xlane.f32.xlu1 %v1157_v19 }
 0x727   :  { %v1154_v21 = vsel %vm191_vm1, %v11971_v20, 0.0 }
 0x728   :  { %1155 = vadd.xlane.f32.xlu0 %v1154_v21 }
 0x72a   :  { %v11973_v23 = vpop.eup %11972 }
 0x72b   :  { %v1160_v24 = vsel %vm191_vm1, %v11973_v23, 0.0 }
 0x72c   :  { %1161 = vadd.xlane.f32.xlu0 %v1160_v24 }
 0x72e   :  { %v11975_v25 = vpop.eup %11974 }
 0x72f   :  { %v1163_v26 = vsel %vm191_vm1, %v11975_v25, 0.0 }
 0x730   :  { %1164 = vadd.xlane.f32.xlu1 %v1163_v26 }
 0x742   :  { %1469 = vperm.xlu0 %11938, %v9714_v27  }
 0x7af   :  { %v1159_v29 = vpop.xlane.xlu1 %1158 }
 0x7b0   :  { %11976 = vrcp.f32 %v1159_v29 }
 0x7b1   :  { %v1156_v31 = vpop.xlane.xlu0 %1155 }
 0x7b2   :  { %11978 = vrcp.f32 %v1156_v31 }
 0x7b5   :  { %v1162_v32 = vpop.xlane.xlu0 %1161 }
 0x7b6   :  { %11980 = vrcp.f32 %v1162_v32  ;;  %v12851_v32 = vld [vmem:[%s14601_s9 + $0x3] ss:$0 sm:$0xff] }
 0x7b9   :  { %v1165_v30 = vpop.xlane.xlu1 %1164 }
 0x7ba   :  { %11982 = vrcp.f32 %v1165_v30 }
 0x7bd   :  { %v11977_v28 = vpop.eup %11976  ;;  %v1470_v56 = vpop.permute.xlu0 %1469 }
 0x7be   :  { %v1171_v35 = vmul.f32 %v11977_v28, %v11969_v16 }
 0x7bf   :  { %v11979_v33 = vpop.eup %11978 }
 0x7c0   :  { %v1170_v34 = vmul.f32 %v11979_v33, %v11971_v20 }
 0x7c2   :  { %10968 = vmatprep.mubr.msk.f32.mxu1 %vm191_vm1, %v1170_v34 }
 0x7c3   :  { %v11981_v36 = vpop.eup %11980  ;;  %10969 = vmatmul.mubr.msk.f32.vlgmr.msra.gmra.mxu1 %vm191_vm1, %v1171_v35 }
 0x7c4   :  { %10989 = vmatpush3.xpose.msk.msra.mxu1 %vm191_vm1, %v12537_v37  ;;  %v1172_v38 = vmul.f32 %v11981_v36, %v11973_v23 }
 0x7c5   :  { %10990 = vmatprep.subr.mxu1 %v12286_v15 }
 0x7c6   :  { %10971 = vmatprep.mubr.msk.f32.mxu1 %vm191_vm1, %v1172_v38 }
 0x7c7   :  { %v11983_v39 = vpop.eup %11982 }
 0x7c8   :  { %10991 = vmatpush3.xpose.msk.msra.mxu1 %vm191_vm1, %v12544_v43  ;;  %v1173_v40 = vmul.f32 %v11983_v39, %v11975_v25 }
 0x7c9   :  { %10992 = vmatprep.subr.mxu1 %v12286_v15 }
 0x7ca   :  { %10972 = vmatmul.mubr.msk.f32.gmra.mxu1 %vm191_vm1, %v1173_v40 }
 0x7cb   :  { %10996 = vmatprep.mubr.msk.f32.mxu1 %vm12287_vm2, %v12286_v15 }
 0x7cc   :  { %10993 = vmatpush3.xpose.msk.msra.mxu1 %vm191_vm1, %v12550_v45 }
 0x7cd   :  { %10994 = vmatprep.subr.mxu1 %v12286_v15 }
 0x7d0   :  { %10995 = vmatpush3.xpose.msk.msra.mxu1 %vm191_vm1, %v12555_v47 }
 0x7d3   :  { %10997 = vmatmul.mubr.msk.f32.vlgmr.msra.gmra.mxu1 %vm191_vm1, %v9713_v41 }
 0x883   :  { %v10970_v46 = vpop.f32.mrf.mxu1 }
 0x884   :  { %v12785_v48 = vadd.f32 %v10970_v46, %v850_v44 }
 0x885   :  { %v12787_v49 = vpop.f32.mrf.mxu1 }
 0x88a   :  { %v10973_v51 = vpop.f32.mrf.mxu1 }
 0x88b   :  { %v12791_v52 = vadd.f32 %v10973_v51, %v852_v50 }
 0x88c   :  { %v12793_v54 = vpop.f32.mrf.mxu1 }
 0x893   :  { %v1541_v58 = vpop.f32.mrf.mxu1 }
 0x894   :  { %v1542_v60 = vadd.f32 %v1541_v58, %v1470_v56 }
 0x895   :  { %v10998_v61 = vpop.f32.mrf.mxu1 }
 0x896   :  { %10999 = vmatprep.subr.mxu0 %v1542_v60 }
 0x897   :  { %11000 = vmatpush3.msra.mxu0 %v1542_v60 }
 0x898   :  { %11002 = vmatmul.mubr.msk.f32.vlgmr.msra.gmra.mxu0 %vm521_vm3, %v12745_v57  ;;  %11007 = vmatprep.subr.mxu0 %v9727_v10  ;;  %v9739_v57 = vld [vmem:[%s14600_s8 + $0x78] sm:$0xff] }
 0x899   :  { %11004 = vmatprep.mubr.msk.f32.mxu0 %vm521_vm3, %v1455_v62  ;;  %11008 = vmatpush3.msra.mxu0 %v9727_v10 }
 0x89a   :  { %11009 = vmatprep.subr.mxu0 %v9726_v13 }
 0x89b   :  { %11010 = vmatpush3.msra.mxu0 %v9726_v13 }
 0x89c   :  { %11005 = vmatmul.mubr.msk.f32.gmra.mxu0 %vm521_vm3, %v1460_v0  ;;  %11011 = vmatprep.subr.mxu0 %v9725_v63 }
 0x89d   :  { %11012 = vmatpush3.msra.mxu0 %v9725_v63  ;;  %11015 = vmatprep.mubr.msk.f32.mxu0 %vm191_vm1, %v12555_v47 }
 0x89e   :  { %11013 = vmatprep.subr.mxu0 %v9724_v1 }
 0x89f   :  { %11014 = vmatpush3.msra.mxu0 %v9724_v1  ;;  %v9747_v1 = vld [vmem:[%s14603_s11 + $0x18] sm:$0xff] }
 0x8a0   :  { %11016 = vmatmul.mubr.msk.f32.vlgmr.msra.gmra.mxu0 %vm191_vm1, %v12550_v45  ;;  %11035 = vmatprep.subr.mxu0 %v9739_v57 }
 0x8a1   :  { %11018 = vmatprep.mubr.msk.f32.mxu0 %vm191_vm1, %v12544_v43  ;;  %11036 = vmatpush3.msra.mxu0 %v9739_v57 }
 0x8a2   :  { %11037 = vmatprep.subr.mxu0 %v9738_v55 }
 0x8a3   :  { %11038 = vmatpush3.msra.mxu0 %v9738_v55 }
 0x8a4   :  { %11019 = vmatmul.mubr.msk.f32.gmra.mxu0 %vm191_vm1, %v12537_v37  ;;  %11039 = vmatprep.subr.mxu0 %v9737_v2 }
 0x8a5   :  { %11040 = vmatpush3.msra.mxu0 %v9737_v2  ;;  %11043 = vmatprep.mubr.msk.f32.mxu0 %vm191_vm1, %v12511_v11 }
 0x8a6   :  { %11041 = vmatprep.subr.mxu0 %v9736_v3 }
 0x8a7   :  { %11042 = vmatpush3.msra.mxu0 %v9736_v3 }
 0x8a8   :  { %11044 = vmatmul.mubr.msk.f32.vlgmr.msra.gmra.mxu0 %vm191_vm1, %v12516_v14 }
 0x8a9   :  { %11046 = vmatprep.mubr.msk.f32.mxu0 %vm191_vm1, %v12511_v11 }
 0x8ac   :  { %11047 = vmatmul.mubr.msk.f32.gmra.mxu0 %vm191_vm1, %v12516_v14 }
 0x958   :  { %v11003_v4 = vpop.f32.mrf.mxu0 }
 0x959   :  { %v1629_v16 = vadd.f32 %v11003_v4, %v12618_v8 }
 0x95a   :  { %v1623_v5 = vpop.f32.mrf.mxu0 }
 0x95b   :  { %v1624_v6 = vadd.f32 %v1623_v5, %v12613_v7  ;;  %v1645_v24 = vsel %vm191_vm1, %v1629_v16, -inf }
 0x95c   :  { %v11006_v9 = vpop.f32.mrf.mxu0 }
 0x95d   :  { %v1642_v19 = vsel %vm191_vm1, %v1624_v6, -inf  ;;  %v1639_v27 = vadd.f32 %v11006_v9, %v12633_v22 }
 0x95e   :  { %v1633_v20 = vpop.f32.mrf.mxu0  ;;  %1643 = vmax.xlane.f32.xlu1 %v1642_v19 }
 0x95f   :  { %v1634_v23 = vadd.f32 %v1633_v20, %v12626_v18  ;;  %v1651_v33 = vsel %vm191_vm1, %v1639_v27, -inf }
 0x960   :  { %v11017_v21 = vpop.f32.mrf.mxu0 }
 0x961   :  { %v1648_v29 = vsel %vm191_vm1, %v1634_v23, -inf }
 0x962   :  { %v1757_v25 = vpop.f32.mrf.mxu0  ;;  %1646 = vmax.xlane.f32.xlu1 %v1645_v24 }
 0x964   :  { %v11020_v26 = vpop.f32.mrf.mxu0 }
 0x965   :  { %11021 = vmatprep.subr.mxu1 %v11020_v26 }
 0x966   :  { %v1767_v31 = vpop.f32.mrf.mxu0  ;;  %11022 = vmatpush3.msra.mxu1 %v11020_v26  ;;  %1649 = vmax.xlane.f32.xlu1 %v1648_v29 }
 0x967   :  { %11023 = vmatprep.subr.mxu1 %v1767_v31 }
 0x968   :  { %11024 = vmatpush3.msra.mxu1 %v1767_v31  ;;  %v11045_v30 = vpop.f32.mrf.mxu0 }
 0x969   :  { %v12854_v28 = vadd.f32 %v11045_v30, %v12851_v32  ;;  %11025 = vmatprep.subr.mxu1 %v11017_v21 }
 0x96a   :  { %11026 = vmatpush3.msra.mxu1 %v11017_v21  ;;  %v1956_v34 = vpop.f32.mrf.mxu0  ;;  %1652 = vmax.xlane.f32.xlu1 %v1651_v33 }
 0x96b   :  { %v1957_v35 = vadd.f32 %v12851_v32, %v1956_v34  ;;  %11027 = vmatprep.subr.mxu1 %v1757_v25 }
 0x96c   :  { %11028 = vmatpush3.msra.mxu1 %v1757_v25  ;;  %v11048_v31 = vpop.f32.mrf.mxu0 }
 0x96d   :  { %11062 = vmatprep.mubr.msk.f32.mxu0 %vm521_vm3, %v1957_v35  ;;  %11049 = vmatprep.subr.mxu1 %v12286_v15 }
 0x96e   :  { %v1966_v35 = vpop.f32.mrf.mxu0 }
 0x9e7   :  { %v1644_v36 = vpop.xlane.xlu1 %1643 }
 0x9e8   :  { %v1654_v38 = vsub.f32 %v1624_v6, %v1644_v36 }
 0x9ea   :  { %v1658_v39 = vmul.f32 1.442695, %v1654_v38 }
 0x9eb   :  { %v1647_v40 = vpop.xlane.xlu1 %1646 }
 0x9ec   :  { %11984 = vpow2.f32 %v1658_v39  ;;  %v1655_v41 = vsub.f32 %v1629_v16, %v1647_v40  ;;  %v9760_v39 = vld [vmem:[%s14604_s12 + $0x78] sm:$0xff]  ;;  %v9758_v40 = vld [vmem:[%s14604_s12 + $0x68] sm:$0xff] }
 0x9ee   :  { %v1660_v44 = vmul.f32 1.442695, %v1655_v41  ;;  %v1972_v41 = vadd.f32 %v11048_v31, %v12851_v32 }
 0x9ef   :  { %v1650_v46 = vpop.xlane.xlu1 %1649 }
 0x9f0   :  { %11986 = vpow2.f32 %v1660_v44  ;;  %v1656_v50 = vsub.f32 %v1634_v23, %v1650_v46  ;;  %v9746_v23 = vld [vmem:[%s14602_s10 + $0x18] sm:$0xff]  ;;  %v9757_v44 = vld [vmem:[%s14604_s12 + $0x60] sm:$0xff] }
 0x9f2   :  { %v1662_v51 = vmul.f32 1.442695, %v1656_v50 }
 0x9f3   :  { %v1653_v53 = vpop.xlane.xlu1 %1652 }
 0x9f4   :  { %11988 = vpow2.f32 %v1662_v51  ;;  %v1657_v56 = vsub.f32 %v1639_v27, %v1653_v53 }
 0x9f6   :  { %v1664_v58 = vmul.f32 1.442695, %v1657_v56 }
 0x9f8   :  { %11990 = vpow2.f32 %v1664_v58 }
 0x9f9   :  { %v11985_v59 = vpop.eup %11984 }
 0x9fa   :  { %v1666_v60 = vsel %vm191_vm1, %v11985_v59, 0.0 }
 0x9fb   :  { %1667 = vadd.xlane.f32.xlu1 %v1666_v60 }
 0x9fd   :  { %v11987_v61 = vpop.eup %11986 }
 0x9fe   :  { %v1669_v10 = vsel %vm191_vm1, %v11987_v61, 0.0 }
 0x9ff   :  { %1670 = vadd.xlane.f32.xlu0 %v1669_v10 }
 0xa01   :  { %v11989_v62 = vpop.eup %11988 }
 0xa02   :  { %v1672_v13 = vsel %vm191_vm1, %v11989_v62, 0.0 }
 0xa03   :  { %1673 = vadd.xlane.f32.xlu1 %v1672_v13 }
 0xa05   :  { %v11991_v63 = vpop.eup %11990 }
 0xa06   :  { %v1675_v0 = vsel %vm191_vm1, %v11991_v63, 0.0 }
 0xa07   :  { %1676 = vadd.xlane.f32.xlu1 %v1675_v0 }
 0xa18   :  { %1981 = vperm.xlu1 %11939, %v9747_v1  }
 0xa84   :  { %v1668_v57 = vpop.xlane.xlu1 %1667 }
 0xa85   :  { %11992 = vrcp.f32 %v1668_v57 }
 0xa88   :  { %v1671_v55 = vpop.xlane.xlu0 %1670 }
 0xa89   :  { %11994 = vrcp.f32 %v1671_v55 }
 0xa8c   :  { %v1674_v2 = vpop.xlane.xlu1 %1673 }
 0xa8d   :  { %11996 = vrcp.f32 %v1674_v2 }
 0xa90   :  { %v1677_v3 = vpop.xlane.xlu1 %1676 }
 0xa91   :  { %11998 = vrcp.f32 %v1677_v3 }
 0xa92   :  { %v11993_v4 = vpop.eup %11992 }
 0xa93   :  { %v1682_v5 = vmul.f32 %v11993_v4, %v11985_v59 }
 0xa94   :  { %v1982_v33 = vpop.permute.xlu1 %1981 }
 0xa95   :  { %11029 = vmatprep.mubr.msk.f32.mxu1 %vm191_vm1, %v1682_v5 }
 0xa96   :  { %v11995_v6 = vpop.eup %11994 }
 0xa97   :  { %v1683_v9 = vmul.f32 %v11995_v6, %v11987_v61 }
 0xa99   :  { %11030 = vmatmul.mubr.msk.f32.vlgmr.msra.gmra.mxu1 %vm191_vm1, %v1683_v9 }
 0xa9a   :  { %v11997_v16 = vpop.eup %11996  ;;  %11050 = vmatpush3.xpose.msk.msra.mxu1 %vm191_vm1, %v12537_v37 }
 0xa9b   :  { %11051 = vmatprep.subr.mxu1 %v12286_v15  ;;  %v1684_v19 = vmul.f32 %v11997_v16, %v11989_v62 }
 0xa9d   :  { %11032 = vmatprep.mubr.msk.f32.mxu1 %vm191_vm1, %v1684_v19 }
 0xa9e   :  { %v11999_v20 = vpop.eup %11998  ;;  %11052 = vmatpush3.xpose.msk.msra.mxu1 %vm191_vm1, %v12544_v43 }
 0xa9f   :  { %11053 = vmatprep.subr.mxu1 %v12286_v15  ;;  %v1685_v21 = vmul.f32 %v11999_v20, %v11991_v63 }
 0xaa1   :  { %11033 = vmatmul.mubr.msk.f32.gmra.mxu1 %vm191_vm1, %v1685_v21 }
 0xaa2   :  { %11054 = vmatpush3.xpose.msk.msra.mxu1 %vm191_vm1, %v12550_v45  ;;  %11057 = vmatprep.mubr.msk.f32.mxu1 %vm12287_vm2, %v12286_v15 }
 0xaa3   :  { %11055 = vmatprep.subr.mxu1 %v12286_v15 }
 0xaa6   :  { %11056 = vmatpush3.xpose.msk.msra.mxu1 %vm191_vm1, %v12555_v47 }
 0xaa9   :  { %11058 = vmatmul.mubr.msk.f32.vlgmr.msra.gmra.mxu1 %vm191_vm1, %v9746_v23 }
 0xb59   :  { %v11031_v24 = vpop.f32.mrf.mxu1 }
 0xb5a   :  { %v12889_v25 = vadd.f32 %v11031_v24, %v12785_v48  ;;  %v1967_v48 = vadd.f32 %v12851_v32, %v1966_v35 }
 0xb5b   :  { %v12891_v26 = vpop.f32.mrf.mxu1 }
 0xb61   :  { %v11034_v27 = vpop.f32.mrf.mxu1 }
 0xb62   :  { %v12894_v29 = vadd.f32 %v11034_v27, %v12791_v52  ;;  %v9759_v52 = vld [vmem:[%s14604_s12 + $0x70] sm:$0xff] }
 0xb63   :  { %v12896_v30 = vpop.f32.mrf.mxu1 }
 0xb69   :  { %v2053_v34 = vpop.f32.mrf.mxu1 }
 0xb6a   :  { %v2054_v36 = vadd.f32 %v2053_v34, %v1982_v33 }
 0xb6b   :  { %v11059_v38 = vpop.f32.mrf.mxu1 }
 0xb6c   :  { %11060 = vmatprep.subr.mxu0 %v2054_v36 }
 0xb6d   :  { %11061 = vmatpush3.msra.mxu0 %v2054_v36 }
 0xb6e   :  { %11063 = vmatmul.mubr.msk.f32.vlgmr.msra.gmra.mxu0 %vm521_vm3, %v12854_v28  ;;  %11068 = vmatprep.subr.mxu0 %v9760_v39 }
 0xb6f   :  { %11065 = vmatprep.mubr.msk.f32.mxu0 %vm521_vm3, %v1967_v48  ;;  %11069 = vmatpush3.msra.mxu0 %v9760_v39 }
 0xb70   :  { %11070 = vmatprep.subr.mxu0 %v9759_v52 }
 0xb71   :  { %11071 = vmatpush3.msra.mxu0 %v9759_v52 }
 0xb72   :  { %11066 = vmatmul.mubr.msk.f32.gmra.mxu0 %vm521_vm3, %v1972_v41  ;;  %11072 = vmatprep.subr.mxu0 %v9758_v40 }
 0xb73   :  { %11073 = vmatpush3.msra.mxu0 %v9758_v40  ;;  %11076 = vmatprep.mubr.msk.f32.mxu0 %vm191_vm1, %v12555_v47 }
 0xb74   :  { %11074 = vmatprep.subr.mxu0 %v9757_v44 }
 0xb75   :  { %11075 = vmatpush3.msra.mxu0 %v9757_v44 }
 0xb76   :  { %11077 = vmatmul.mubr.msk.f32.vlgmr.msra.gmra.mxu0 %vm191_vm1, %v12550_v45 }
 0xb77   :  { %11079 = vmatprep.mubr.msk.f32.mxu0 %vm191_vm1, %v12544_v43 }
 0xb7a   :  { %11080 = vmatmul.mubr.msk.f32.gmra.mxu0 %vm191_vm1, %v12537_v37 }
 0xc2e   :  { %v11064_v32 = vpop.f32.mrf.mxu0 }
 0xc2f   :  { %v2141_v28 = vadd.f32 %v11064_v32, %v12618_v8  ;;  %v849_v32 = vadd.f32 %v12781_v42, %v12679_v12 }
 0xc30   :  { %v2135_v46 = vpop.f32.mrf.mxu0 }
 0xc31   :  { %v2136_v50 = vadd.f32 %v2135_v46, %v12613_v7  ;;  %v2157_v51 = vsel %vm191_vm1, %v2141_v28, -inf }
 0xc32   :  { %2158 = vmax.xlane.f32.xlu0 %v2157_v51  ;;  %v11067_v53 = vpop.f32.mrf.mxu0 }
 0xc33   :  { %v2154_v56 = vsel %vm191_vm1, %v2136_v50, -inf  ;;  %v2151_v61 = vadd.f32 %v11067_v53, %v12633_v22 }
 0xc34   :  { %v2145_v58 = vpop.f32.mrf.mxu0  ;;  %2155 = vmax.xlane.f32.xlu1 %v2154_v56 }
 0xc35   :  { %v2146_v59 = vadd.f32 %v2145_v58, %v12626_v18  ;;  %v2163_v7 = vsel %vm191_vm1, %v2151_v61, -inf }
 0xc36   :  { %v11078_v60 = vpop.f32.mrf.mxu0 }
 0xc37   :  { %v2160_v10 = vsel %vm191_vm1, %v2146_v59, -inf }
 0xc38   :  { %v2269_v62 = vpop.f32.mrf.mxu0  ;;  %2161 = vmax.xlane.f32.xlu0 %v2160_v10 }
 0xc3a   :  { %v11081_v8 = vpop.f32.mrf.mxu0 }
 0xc3b   :  { %11082 = vmatprep.subr.mxu1 %v11081_v8 }
 0xc3c   :  { %v2279_v13 = vpop.f32.mrf.mxu0  ;;  %11083 = vmatpush3.msra.mxu1 %v11081_v8  ;;  %2164 = vmax.xlane.f32.xlu0 %v2163_v7 }
 0xc3d   :  { %11084 = vmatprep.subr.mxu1 %v2279_v13 }
 0xc3e   :  { %11085 = vmatpush3.msra.mxu1 %v2279_v13 }
 0xc3f   :  { %11086 = vmatprep.subr.mxu1 %v11078_v60 }
 0xc40   :  { %11087 = vmatpush3.msra.mxu1 %v11078_v60 }
 0xc41   :  { %11088 = vmatprep.subr.mxu1 %v2269_v62 }
 0xc42   :  { %11089 = vmatpush3.msra.mxu1 %v2269_v62 }
 0xcbb   :  { %v2159_v18 = vpop.xlane.xlu0 %2158 }
 0xcbc   :  { %v2167_v63 = vsub.f32 %v2141_v28, %v2159_v18  ;;  %v1361_v28 = vadd.f32 %v12787_v49, %v849_v32 }
 0xcbd   :  { %v2156_v22 = vpop.xlane.xlu1 %2155 }
 0xcbe   :  { %v2172_v0 = vmul.f32 1.442695, %v2167_v63  ;;  %v2166_v1 = vsub.f32 %v2136_v50, %v2156_v22  ;;  %v1873_v50 = vadd.f32 %v12891_v26, %v1361_v28 }
 0xcc0   :  { %12000 = vpow2.f32 %v2172_v0  ;;  %v2170_v57 = vmul.f32 1.442695, %v2166_v1 }
 0xcc1   :  { %v2162_v55 = vpop.xlane.xlu0 %2161 }
 0xcc2   :  { %12002 = vpow2.f32 %v2170_v57  ;;  %v2168_v2 = vsub.f32 %v2146_v59, %v2162_v55  ;;  %v851_v59 = vadd.f32 %v12781_v42, %v12683_v17 }
 0xcc4   :  { %v2174_v3 = vmul.f32 1.442695, %v2168_v2  ;;  %v1363_v12 = vadd.f32 %v12793_v54, %v851_v59 }
 0xcc5   :  { %v2165_v4 = vpop.xlane.xlu0 %2164 }
 0xcc6   :  { %12004 = vpow2.f32 %v2174_v3  ;;  %v2169_v5 = vsub.f32 %v2151_v61, %v2165_v4  ;;  %v1875_v26 = vadd.f32 %v12896_v30, %v1363_v12 }
 0xcc8   :  { %v2176_v6 = vmul.f32 1.442695, %v2169_v5 }
 0xcca   :  { %12006 = vpow2.f32 %v2176_v6 }
 0xccd   :  { %v12001_v9 = vpop.eup %12000 }
 0xcce   :  { %v2181_v16 = vsel %vm191_vm1, %v12001_v9, 0.0 }
 0xccf   :  { %v12003_v19 = vpop.eup %12002  ;;  %2182 = vadd.xlane.f32.xlu0 %v2181_v16 }
 0xcd0   :  { %v2178_v20 = vsel %vm191_vm1, %v12003_v19, 0.0 }
 0xcd3   :  { %v12005_v21 = vpop.eup %12004  ;;  %2179 = vadd.xlane.f32.xlu0 %v2178_v20  ;;  %v9788_v20 = vld [vmem:[%s14603_s11 + $0x20] sm:$0xff] }
 0xcd4   :  { %v2184_v23 = vsel %vm191_vm1, %v12005_v21, 0.0 }
 0xcd7   :  { %v12007_v24 = vpop.eup %12006  ;;  %2185 = vadd.xlane.f32.xlu0 %v2184_v23  ;;  %v2455_v23 = vld [vmem:[%s14606_s14 + $0x10] sm:$0xff] }
 0xcd8   :  { %v2187_v27 = vsel %vm191_vm1, %v12007_v24, 0.0 }
 0xcdb   :  { %2188 = vadd.xlane.f32.xlu0 %v2187_v27  ;;  %v2453_v27 = vld [vmem:[%s14606_s14] sm:$0xff] }
 0xd58   :  { %v2183_v31 = vpop.xlane.xlu0 %2182 }
 0xd59   :  { %12008 = vrcp.f32 %v2183_v31  ;;  %v2580_v31 = vld [vmem:[%s14608_s16 + $0x78] sm:$0xff] }
 0xd5a   :  { %11110 = vmatprep.subr.mxu1 %v2580_v31 }
 0xd5c   :  { %v2180_v33 = vpop.xlane.xlu0 %2179 }
 0xd5d   :  { %12010 = vrcp.f32 %v2180_v33  ;;  %v2579_v33 = vld [vmem:[%s14608_s16 + $0x70] sm:$0xff] }
 0xd60   :  { %v2186_v34 = vpop.xlane.xlu0 %2185 }
 0xd61   :  { %12012 = vrcp.f32 %v2186_v34  ;;  %v2578_v34 = vld [vmem:[%s14608_s16 + $0x68] sm:$0xff] }
 0xd64   :  { %v2189_v35 = vpop.xlane.xlu0 %2188 }
 0xd65   :  { %12014 = vrcp.f32 %v2189_v35  ;;  %v2577_v35 = vld [vmem:[%s14608_s16 + $0x60] sm:$0xff] }
 0xd66   :  { %v12009_v36 = vpop.eup %12008 }
 0xd67   :  { %v2195_v48 = vmul.f32 %v12009_v36, %v12001_v9  ;;  %v2576_v36 = vld [vmem:[%s14608_s16 + $0x58] sm:$0xff] }
 0xd6a   :  { %v12011_v38 = vpop.eup %12010 }
 0xd6b   :  { %v2194_v39 = vmul.f32 %v12011_v38, %v12003_v19  ;;  %v2575_v38 = vld [vmem:[%s14608_s16 + $0x50] sm:$0xff] }
 0xd6d   :  { %11090 = vmatprep.mubr.msk.f32.mxu1 %vm191_vm1, %v2194_v39  ;;  %v2574_v39 = vld [vmem:[%s14608_s16 + $0x48] sm:$0xff] }
 0xd6e   :  { %v12013_v52 = vpop.eup %12012  ;;  %11091 = vmatmul.mubr.msk.f32.vlgmr.msra.gmra.mxu1 %vm191_vm1, %v2195_v48  ;;  %v2573_v48 = vld [vmem:[%s14608_s16 + $0x40] sm:$0xff] }
 0xd6f   :  { %v2196_v40 = vmul.f32 %v12013_v52, %v12005_v21  ;;  %v2456_v21 = vld [vmem:[%s14606_s14 + $0x18] sm:$0xff]  ;;  %11111 = vmatpush3.msra.mxu1 %v2580_v31 }
 0xd70   :  { %11096 = vmatprep.subr.mxu0 %v2456_v21  ;;  %11112 = vmatprep.subr.mxu1 %v2579_v33  ;;  %v2572_v52 = vld [vmem:[%s14608_s16 + $0x38] sm:$0xff] }
 0xd71   :  { %11093 = vmatprep.mubr.msk.f32.mxu1 %vm191_vm1, %v2196_v40  ;;  %11097 = vmatpush3.msra.mxu0 %v2456_v21  ;;  %v2571_v40 = vld [vmem:[%s14608_s16 + $0x30] sm:$0xff]  ;;  %v9780_v31 = vld [vmem:[%s14600_s8 + $0x98] sm:$0xff] }
 0xd72   :  { %v12015_v41 = vpop.eup %12014  ;;  %11098 = vmatprep.subr.mxu0 %v2455_v23  ;;  %11113 = vmatpush3.msra.mxu1 %v2579_v33  ;;  %v9801_v33 = vld [vmem:[%s14604_s12 + $0x98] sm:$0xff] }
 0xd73   :  { %v2197_v44 = vmul.f32 %v12015_v41, %v12007_v24  ;;  %v2454_v24 = vld [vmem:[%s14606_s14 + $0x8] sm:$0xff]  ;;  %11099 = vmatpush3.msra.mxu0 %v2455_v23  ;;  %11114 = vmatprep.subr.mxu1 %v2578_v34 }
 0xd74   :  { %11100 = vmatprep.subr.mxu0 %v2454_v24  ;;  %11115 = vmatpush3.msra.mxu1 %v2578_v34  ;;  %v2570_v41 = vld [vmem:[%s14608_s16 + $0x28] sm:$0xff]  ;;  %v9779_v34 = vld [vmem:[%s14600_s8 + $0x90] sm:$0xff] }
 0xd75   :  { %11094 = vmatmul.mubr.msk.f32.gmra.mxu1 %vm191_vm1, %v2197_v44  ;;  %11101 = vmatpush3.msra.mxu0 %v2454_v24  ;;  %v2569_v44 = vld [vmem:[%s14608_s16 + $0x20] sm:$0xff] }
 0xd76   :  { %11102 = vmatprep.subr.mxu0 %v2453_v27  ;;  %11116 = vmatprep.subr.mxu1 %v2577_v35 }
 0xd77   :  { %11103 = vmatpush3.msra.mxu0 %v2453_v27  ;;  %11117 = vmatpush3.msra.mxu1 %v2577_v35  ;;  %v9800_v35 = vld [vmem:[%s14604_s12 + $0x90] sm:$0xff] }
 0xd78   :  { %11118 = vmatprep.subr.mxu1 %v2576_v36  ;;  %11148 = vmatprep.subr.mxu0 %v9780_v31 }
 0xd79   :  { %11119 = vmatpush3.msra.mxu1 %v2576_v36  ;;  %v9778_v36 = vld [vmem:[%s14600_s8 + $0x88] sm:$0xff] }
 0xd7a   :  { %11120 = vmatprep.subr.mxu1 %v2575_v38 }
 0xd7b   :  { %11121 = vmatpush3.msra.mxu1 %v2575_v38  ;;  %v9799_v38 = vld [vmem:[%s14604_s12 + $0x88] sm:$0xff] }
 0xd7c   :  { %11122 = vmatprep.subr.mxu1 %v2574_v39 }
 0xd7d   :  { %11123 = vmatpush3.msra.mxu1 %v2574_v39  ;;  %v9777_v39 = vld [vmem:[%s14600_s8 + $0x80] sm:$0xff] }
 0xd7e   :  { %11124 = vmatprep.subr.mxu1 %v2573_v48 }
 0xd7f   :  { %11125 = vmatpush3.msra.mxu1 %v2573_v48  ;;  %v9798_v48 = vld [vmem:[%s14604_s12 + $0x80] sm:$0xff] }
 0xd80   :  { %11126 = vmatprep.subr.mxu1 %v2572_v52 }
 0xd81   :  { %11127 = vmatpush3.msra.mxu1 %v2572_v52  ;;  %v9813_v52 = vld [vmem:[%s14600_s8 + $0xb8] sm:$0xff] }
 0xd82   :  { %11128 = vmatprep.subr.mxu1 %v2571_v40 }
 0xd83   :  { %11129 = vmatpush3.msra.mxu1 %v2571_v40 }
 0xd84   :  { %11130 = vmatprep.subr.mxu1 %v2570_v41 }
 0xd85   :  { %11131 = vmatpush3.msra.mxu1 %v2570_v41 }
 0xd86   :  { %11132 = vmatprep.subr.mxu1 %v2569_v44 }
 0xd87   :  { %11133 = vmatpush3.msra.mxu1 %v2569_v44 }
 0xe2e   :  { %v11092_v46 = vpop.f32.mrf.mxu1 }
 0xe2f   :  { %v2386_v51 = vadd.f32 %v11092_v46, %v12889_v25 }
 0xe30   :  { %v2366_v53 = vpop.f32.mrf.mxu1 }
 0xe31   :  { %v2385_v56 = vadd.f32 %v2366_v53, %v1873_v50  ;;  %v2390_v58 = vadd.f32 %v2386_v51, %v12516_v14 }
 0xe33   :  { %v2396_v60 = vsel %vm191_vm1, %v2390_v58, 0.0  ;;  %v2389_v61 = vadd.f32 %v2385_v56, %v12511_v11 }
 0xe34   :  { %2397 = vadd.xlane.f32.xlu1 %v2396_v60 }
 0xe35   :  { %v11095_v49 = vpop.f32.mrf.mxu1  ;;  %v2393_v10 = vsel %vm191_vm1, %v2389_v61, 0.0 }
 0xe36   :  { %v2388_v25 = vadd.f32 %v11095_v49, %v12894_v29  ;;  %2394 = vadd.xlane.f32.xlu0 %v2393_v10 }
 0xe37   :  { %v2376_v62 = vpop.f32.mrf.mxu1 }
 0xe38   :  { %v2387_v8 = vadd.f32 %v2376_v62, %v1875_v26  ;;  %v2392_v7 = vadd.f32 %v2388_v25, %v12516_v14  ;;  %v12248_v62 = vld [vmem:[%s14610_s18] ss:$0 sm:$0xff] }
 0xe3a   :  { %v2402_v17 = vsel %vm191_vm1, %v2392_v7, 0.0  ;;  %v2391_v42 = vadd.f32 %v2387_v8, %v12511_v11 }
 0xe3b   :  { %2403 = vadd.xlane.f32.xlu1 %v2402_v17 }
 0xe3c   :  { %v2399_v54 = vsel %vm191_vm1, %v2391_v42, 0.0 }
 0xe3d   :  { %2400 = vadd.xlane.f32.xlu0 %v2399_v54 }
 0xebd   :  { %v2398_v13 = vpop.xlane.xlu1 %2397 }
 0xebe   :  { %v2406_v18 = vmul.f32 0.03125, %v2398_v13 }
 0xebf   :  { %v2395_v63 = vpop.xlane.xlu0 %2394 }
 0xec0   :  { %v12958_v22 = vsub.f32 %v2390_v58, %v2406_v18  ;;  %v2405_v30 = vmul.f32 0.03125, %v2395_v63 }
 0xec2   :  { %v12960_v29 = vsub.f32 %v2389_v61, %v2405_v30  ;;  %v2414_v0 = vmul.f32 %v12958_v22, %v12958_v22 }
 0xec4   :  { %v2404_v14 = vpop.xlane.xlu1 %2403  ;;  %v2420_v1 = vsel %vm191_vm1, %v2414_v0, 0.0  ;;  %v2413_v11 = vmul.f32 %v12960_v29, %v12960_v29 }
 0xec5   :  { %v2408_v57 = vmul.f32 0.03125, %v2404_v14  ;;  %2421 = vadd.xlane.f32.xlu1 %v2420_v1  ;;  %v2568_v1 = vld [vmem:[%s14608_s16 + $0x18] sm:$0xff] }
 0xec6   :  { %v2401_v55 = vpop.xlane.xlu0 %2400  ;;  %v2417_v2 = vsel %vm191_vm1, %v2413_v11, 0.0  ;;  %11134 = vmatprep.subr.mxu1 %v2568_v1  ;;  %v2567_v11 = vld [vmem:[%s14608_s16 + $0x10] sm:$0xff] }
 0xec7   :  { %v12968_v3 = vsub.f32 %v2392_v7, %v2408_v57  ;;  %v2407_v4 = vmul.f32 0.03125, %v2401_v55  ;;  %2418 = vadd.xlane.f32.xlu0 %v2417_v2  ;;  %11135 = vmatpush3.msra.mxu1 %v2568_v1  ;;  %v2566_v57 = vld [vmem:[%s14608_s16 + $0x8] sm:$0xff]  ;;  %v2565_v55 = vld [vmem:[%s14608_s16] sm:$0xff] }
 0xec8   :  { %11136 = vmatprep.subr.mxu1 %v2567_v11  ;;  %v9769_v2 = vld [vmem:[%s14607_s15] ss:$0 sm:$0xff] }
 0xec9   :  { %v12970_v5 = vsub.f32 %v2391_v42, %v2407_v4  ;;  %v2416_v6 = vmul.f32 %v12968_v3, %v12968_v3  ;;  %v12249_v42 = vld [vmem:[%s14611_s19] ss:$0 sm:$0xff]  ;;  %11137 = vmatpush3.msra.mxu1 %v2567_v11 }
 0xeca   :  { %11138 = vmatprep.subr.mxu1 %v2566_v57 }
 0xecb   :  { %v2426_v9 = vsel %vm191_vm1, %v2416_v6, 0.0  ;;  %v2415_v16 = vmul.f32 %v12970_v5, %v12970_v5  ;;  %11139 = vmatpush3.msra.mxu1 %v2566_v57 }
 0xecc   :  { %2427 = vadd.xlane.f32.xlu1 %v2426_v9  ;;  %11140 = vmatprep.subr.mxu1 %v2565_v55 }
 0xecd   :  { %v2423_v19 = vsel %vm191_vm1, %v2415_v16, 0.0  ;;  %11141 = vmatpush3.msra.mxu1 %v2565_v55 }
 0xece   :  { %2424 = vadd.xlane.f32.xlu0 %v2423_v19  ;;  %11181 = vmatprep.subr.mxu1 %v9801_v33 }
 0xee4   :  { %2806 = vperm.xlu0 %11938, %v9788_v20  }
 0xf4e   :  { %v2422_v32 = vpop.xlane.xlu1 %2421 }
 0xf4f   :  { %v2430_v28 = vmul.f32 0.03125, %v2422_v32  ;;  %v9774_v32 = vld [vmem:[%s14609_s17] ss:$0 sm:$0xff] }
 0xf50   :  { %v2419_v46 = vpop.xlane.xlu0 %2418 }
 0xf51   :  { %v2434_v50 = vadd.f32 1e-05, %v2430_v28  ;;  %v2429_v51 = vmul.f32 0.03125, %v2419_v46 }
 0xf53   :  { %12016 = vrsqrt.f32 %v2434_v50  ;;  %v2433_v53 = vadd.f32 1e-05, %v2429_v51 }
 0xf55   :  { %12018 = vrsqrt.f32 %v2433_v53  ;;  %v2428_v56 = vpop.xlane.xlu1 %2427  ;;  %v9812_v53 = vld [vmem:[%s14600_s8 + $0xb0] sm:$0xff] }
 0xf56   :  { %v2432_v58 = vmul.f32 0.03125, %v2428_v56 }
 0xf57   :  { %v2425_v59 = vpop.xlane.xlu0 %2424 }
 0xf58   :  { %v2436_v60 = vadd.f32 1e-05, %v2432_v58  ;;  %v2431_v61 = vmul.f32 0.03125, %v2425_v59  ;;  %v9811_v59 = vld [vmem:[%s14600_s8 + $0xa8] sm:$0xff] }
 0xf5a   :  { %12020 = vrsqrt.f32 %v2436_v60  ;;  %v2435_v12 = vadd.f32 1e-05, %v2431_v61 }
 0xf5c   :  { %12022 = vrsqrt.f32 %v2435_v12 }
 0xf5f   :  { %v2807_v55 = vpop.permute.xlu0 %2806 }
 0xf60   :  { %v12017_v49 = vpop.eup %12016 }
 0xf61   :  { %v2442_v10 = vmul.f32 %v12017_v49, %v12958_v22  ;;  %v9810_v49 = vld [vmem:[%s14600_s8 + $0xa0] sm:$0xff] }
 0xf62   :  { %v12019_v26 = vpop.eup %12018 }
 0xf63   :  { %v2441_v25 = vmul.f32 %v12019_v26, %v12960_v29  ;;  %v2446_v8 = vmul.f32 %v12248_v62, %v2442_v10  ;;  %v9787_v10 = vld [vmem:[%s14602_s10 + $0x20] sm:$0xff] }
 0xf65   :  { %v2445_v7 = vmul.f32 %v12248_v62, %v2441_v25  ;;  %v13039_v13 = vadd.f32 %v12249_v42, %v2446_v8 }
 0xf67   :  { %v12021_v17 = vpop.eup %12020  ;;  %v13037_v54 = vadd.f32 %v12249_v42, %v2445_v7 }
 0xf68   :  { %v2444_v18 = vmul.f32 %v12021_v17, %v12968_v3 }
 0xf69   :  { %v12023_v63 = vpop.eup %12022  ;;  %11104 = vmatprep.mubr.msk.f32.mxu0 %vm191_vm1, %v13037_v54 }
 0xf6a   :  { %11105 = vmatmul.mubr.msk.f32.vlgmr.msra.gmra.mxu0 %vm191_vm1, %v13039_v13  ;;  %v2443_v22 = vmul.f32 %v12023_v63, %v12970_v5  ;;  %v2448_v30 = vmul.f32 %v12248_v62, %v2444_v18  ;;  %v13170_v63 = vld [vmem:[%s14601_s9 + $0x5] ss:$0 sm:$0xff] }
 0xf6b   :  { %11149 = vmatpush3.msra.mxu0 %v9780_v31 }
 0xf6c   :  { %v2447_v29 = vmul.f32 %v12248_v62, %v2443_v22  ;;  %v13049_v14 = vadd.f32 %v12249_v42, %v2448_v30  ;;  %11150 = vmatprep.subr.mxu0 %v9779_v34  ;;  %v9782_v62 = vld [vmem:[%s14601_s9 + $0x4] ss:$0 sm:$0xff] }
 0xf6d   :  { %11151 = vmatpush3.msra.mxu0 %v9779_v34  ;;  %v13197_v34 = vld [vmem:[%s14632_s25 + $0x10] sm:$0xff] }
 0xf6e   :  { %v13047_v0 = vadd.f32 %v12249_v42, %v2447_v29  ;;  %11152 = vmatprep.subr.mxu0 %v9778_v36 }
 0xf6f   :  { %11153 = vmatpush3.msra.mxu0 %v9778_v36 }
 0xf70   :  { %11107 = vmatprep.mubr.msk.f32.mxu0 %vm191_vm1, %v13047_v0  ;;  %11154 = vmatprep.subr.mxu0 %v9777_v39 }
 0xf71   :  { %11108 = vmatmul.mubr.msk.f32.gmra.mxu0 %vm191_vm1, %v13049_v14 }
 0xf72   :  { %11155 = vmatpush3.msra.mxu0 %v9777_v39 }
 0xf73   :  { %11162 = vmatprep.subr.mxu0 %v12286_v15 }
0x102a   :  { %v11106_v3 = vpop.f32.mrf.mxu0 }
0x102b   :  { %v2548_v4 = vadd.f32 %v11106_v3, %v9769_v2 }
0x102c   :  { %v2542_v5 = vpop.f32.mrf.mxu0 }
0x102d   :  { %v2543_v6 = vadd.f32 %v9769_v2, %v2542_v5  ;;  %v2562_v16 = vmax.f32 %v2548_v4, 0.0 }
0x102f   :  { %v2561_v9 = vmax.f32 %v2543_v6, 0.0 }
0x1031   :  { %v11109_v19 = vpop.f32.mrf.mxu0  ;;  %11142 = vmatprep.mubr.f32.mxu1 %v2561_v9 }
0x1032   :  { %11143 = vmatmul.mubr.f32.vlgmr.msra.gmra.mxu1 %v2562_v16  ;;  %v2558_v20 = vadd.f32 %v11109_v19, %v9769_v2  ;;  %v13184_v19 = vld [vmem:[%s14632_s25] sm:$0xff] }
0x1033   :  { %v2552_v21 = vpop.f32.mrf.mxu0  ;;  %11182 = vmatpush3.msra.mxu1 %v9801_v33 }
0x1034   :  { %v2553_v23 = vadd.f32 %v9769_v2, %v2552_v21  ;;  %v2564_v27 = vmax.f32 %v2558_v20, 0.0  ;;  %11183 = vmatprep.subr.mxu1 %v9800_v35  ;;  %v13189_v20 = vld [vmem:[%s14632_s25 + $0x8] sm:$0xff] }
0x1035   :  { %11184 = vmatpush3.msra.mxu1 %v9800_v35 }
0x1036   :  { %v2563_v24 = vmax.f32 %v2553_v23, 0.0  ;;  %11185 = vmatprep.subr.mxu1 %v9799_v38 }
0x1037   :  { %11186 = vmatpush3.msra.mxu1 %v9799_v38  ;;  %v13204_v38 = vld [vmem:[%s14632_s25 + $0x18] sm:$0xff] }
0x1038   :  { %11145 = vmatprep.mubr.f32.mxu1 %v2563_v24  ;;  %11187 = vmatprep.subr.mxu1 %v9798_v48 }
0x1039   :  { %11146 = vmatmul.mubr.f32.gmra.mxu1 %v2564_v27 }
0x103a   :  { %11188 = vmatpush3.msra.mxu1 %v9798_v48 }
0x103b   :  { %11209 = vmatprep.subr.mxu1 %v9813_v52 }
0x10f2   :  { %v11144_v40 = vpop.f32.mrf.mxu1 }
0x10f3   :  { %v2667_v41 = vadd.f32 %v11144_v40, %v13039_v13 }
0x10f4   :  { %v2647_v44 = vpop.f32.mrf.mxu1 }
0x10f5   :  { %v2666_v28 = vadd.f32 %v2647_v44, %v13037_v54  ;;  %v13105_v50 = vadd.f32 %v9774_v32, %v2667_v41 }
0x10f7   :  { %v13103_v46 = vadd.f32 %v9774_v32, %v2666_v28 }
0x10f9   :  { %v11147_v51 = vpop.f32.mrf.mxu1  ;;  %11156 = vmatprep.mubr.msk.f32.mxu0 %vm191_vm1, %v13103_v46  ;;  %11189 = vmatprep.mubr.msk.f32.mxu1 %vm191_vm1, %v13103_v46 }
0x10fa   :  { %v2669_v56 = vadd.f32 %v11147_v51, %v13049_v14  ;;  %11157 = vmatmul.mubr.msk.f32.vlgmr.msra.gmra.mxu0 %vm191_vm1, %v13105_v50  ;;  %11190 = vmatmul.mubr.msk.f32.vlgmr.msra.gmra.mxu1 %vm191_vm1, %v13105_v50 }
0x10fb   :  { %v2657_v58 = vpop.f32.mrf.mxu1  ;;  %11210 = vmatpush3.msra.mxu1 %v9813_v52 }
0x10fc   :  { %v13122_v60 = vadd.f32 %v9774_v32, %v2669_v56  ;;  %v2668_v61 = vadd.f32 %v2657_v58, %v13047_v0  ;;  %11211 = vmatprep.subr.mxu1 %v9812_v53 }
0x10fd   :  { %11212 = vmatpush3.msra.mxu1 %v9812_v53 }
0x10fe   :  { %v13125_v12 = vadd.f32 %v9774_v32, %v2668_v61  ;;  %11163 = vmatpush3.xpose.msk.msra.mxu0 %vm191_vm1, %v13122_v60  ;;  %11213 = vmatprep.subr.mxu1 %v9811_v59 }
0x10ff   :  { %11164 = vmatprep.subr.mxu0 %v12286_v15  ;;  %11214 = vmatpush3.msra.mxu1 %v9811_v59 }
0x1100   :  { %11159 = vmatprep.mubr.msk.f32.mxu0 %vm191_vm1, %v13125_v12  ;;  %11192 = vmatprep.mubr.msk.f32.mxu1 %vm191_vm1, %v13125_v12 }
0x1101   :  { %11160 = vmatmul.mubr.msk.f32.gmra.mxu0 %vm191_vm1, %v13122_v60  ;;  %11193 = vmatmul.mubr.msk.f32.gmra.mxu1 %vm191_vm1, %v13122_v60 }
0x1102   :  { %11165 = vmatpush3.xpose.msk.msra.mxu0 %vm191_vm1, %v13125_v12  ;;  %11217 = vmatprep.mubr.msk.f32.mxu1 %vm191_vm1, %v13103_v46 }
0x1103   :  { %11215 = vmatprep.subr.mxu1 %v9810_v49  ;;  %11166 = vmatprep.subr.mxu0 %v12286_v15 }
0x1104   :  { %11216 = vmatpush3.msra.mxu1 %v9810_v49  ;;  %11170 = vmatprep.mubr.msk.f32.mxu0 %vm12287_vm2, %v12286_v15 }
0x1105   :  { %11218 = vmatmul.mubr.msk.f32.vlgmr.msra.gmra.mxu1 %vm191_vm1, %v13105_v50 }
0x1106   :  { %11167 = vmatpush3.xpose.msk.msra.mxu0 %vm191_vm1, %v13105_v50  ;;  %11220 = vmatprep.mubr.msk.f32.mxu1 %vm191_vm1, %v13125_v12 }
0x1107   :  { %11168 = vmatprep.subr.mxu0 %v12286_v15 }
0x1109   :  { %11221 = vmatmul.mubr.msk.f32.gmra.mxu1 %vm191_vm1, %v13122_v60 }
0x110a   :  { %11169 = vmatpush3.xpose.msk.msra.mxu0 %vm191_vm1, %v13103_v46 }
0x110d   :  { %11171 = vmatmul.mubr.msk.f32.vlgmr.msra.gmra.mxu0 %vm191_vm1, %v9787_v10 }
0x11ba   :  { %v11158_v26 = vpop.f32.mrf.mxu0  ;;  %v11191_v25 = vpop.f32.mrf.mxu1 }
0x11bb   :  { %v2787_v5 = vadd.f32 %v11158_v26, %v9782_v62 }
0x11bc   :  { %v2781_v8 = vpop.f32.mrf.mxu0  ;;  %v3094_v17 = vpop.f32.mrf.mxu1 }
0x11bd   :  { %v2782_v7 = vadd.f32 %v9782_v62, %v2781_v8 }
0x11bf   :  { %11175 = vmatprep.mubr.msk.f32.mxu0 %vm521_vm3, %v2782_v7 }
0x11c1   :  { %v11194_v42 = vpop.f32.mrf.mxu1  ;;  %v11161_v29 = vpop.f32.mrf.mxu0 }
0x11c2   :  { %v2797_v9 = vadd.f32 %v11161_v29, %v9782_v62 }
0x11c3   :  { %v3104_v18 = vpop.f32.mrf.mxu1  ;;  %v2791_v57 = vpop.f32.mrf.mxu0 }
0x11c4   :  { %v2792_v6 = vadd.f32 %v9782_v62, %v2791_v57 }
0x11c5   :  { %v11219_v22 = vpop.f32.mrf.mxu1 }
0x11c6   :  { %v13173_v30 = vadd.f32 %v11219_v22, %v13170_v63 }
0x11c7   :  { %v3293_v1 = vpop.f32.mrf.mxu1 }
0x11c8   :  { %v3294_v11 = vadd.f32 %v13170_v63, %v3293_v1 }
0x11ca   :  { %11236 = vmatprep.mubr.msk.f32.mxu1 %vm521_vm3, %v3294_v11 }
0x11cd   :  { %v2878_v2 = vpop.f32.mrf.mxu0 }
0x11ce   :  { %v2879_v3 = vadd.f32 %v2878_v2, %v2807_v55 }
0x11cf   :  { %v11172_v4 = vpop.f32.mrf.mxu0 }
0x11d0   :  { %11173 = vmatprep.subr.mxu0 %v2879_v3 }
0x11d1   :  { %11174 = vmatpush3.msra.mxu0 %v2879_v3 }
0x11d2   :  { %11176 = vmatmul.mubr.msk.f32.vlgmr.msra.gmra.mxu0 %vm521_vm3, %v2787_v5  ;;  %11195 = vmatprep.subr.mxu0 %v11194_v42 }
0x11d3   :  { %11178 = vmatprep.mubr.msk.f32.mxu0 %vm521_vm3, %v2792_v6  ;;  %11196 = vmatpush3.msra.mxu0 %v11194_v42 }
0x11d4   :  { %11197 = vmatprep.subr.mxu0 %v3104_v18 }
0x11d5   :  { %11198 = vmatpush3.msra.mxu0 %v3104_v18  ;;  %v9821_v18 = vld [vmem:[%s14603_s11 + $0x28] sm:$0xff] }
0x11d6   :  { %11179 = vmatmul.mubr.msk.f32.gmra.mxu0 %vm521_vm3, %v2797_v9  ;;  %11199 = vmatprep.subr.mxu0 %v11191_v25 }
0x11d7   :  { %11200 = vmatpush3.msra.mxu0 %v11191_v25 }
0x11d8   :  { %11201 = vmatprep.subr.mxu0 %v3094_v17 }
0x11d9   :  { %11202 = vmatpush3.msra.mxu0 %v3094_v17 }
0x11da   :  { %11223 = vmatprep.subr.mxu0 %v12286_v15 }
0x1292   :  { %v11177_v16 = vpop.f32.mrf.mxu0 }
0x1293   :  { %v2966_v27 = vadd.f32 %v11177_v16, %v13189_v20  ;;  %v9820_v16 = vld [vmem:[%s14602_s10 + $0x28] sm:$0xff] }
0x1294   :  { %v2960_v21 = vpop.f32.mrf.mxu0 }
0x1295   :  { %v2961_v23 = vadd.f32 %v2960_v21, %v13184_v19  ;;  %v2982_v36 = vsel %vm191_vm1, %v2966_v27, -inf }
0x1296   :  { %v11180_v24 = vpop.f32.mrf.mxu0 }
0x1297   :  { %v2979_v31 = vsel %vm191_vm1, %v2961_v23, -inf  ;;  %v2976_v39 = vadd.f32 %v11180_v24, %v13204_v38 }
0x1298   :  { %v2970_v33 = vpop.f32.mrf.mxu0  ;;  %2980 = vmax.xlane.f32.xlu1 %v2979_v31 }
0x1299   :  { %v2971_v35 = vadd.f32 %v2970_v33, %v13197_v34  ;;  %v2988_v52 = vsel %vm191_vm1, %v2976_v39, -inf }
0x129b   :  { %v2985_v48 = vsel %vm191_vm1, %v2971_v35, -inf }
0x129c   :  { %2983 = vmax.xlane.f32.xlu1 %v2982_v36 }
0x12a0   :  { %2986 = vmax.xlane.f32.xlu1 %v2985_v48 }
0x12a4   :  { %2989 = vmax.xlane.f32.xlu1 %v2988_v52  ;;  %v9834_v52 = vld [vmem:[%s14604_s12 + $0xb8] sm:$0xff] }
0x1321   :  { %v2981_v40 = vpop.xlane.xlu1 %2980 }
0x1322   :  { %v2991_v41 = vsub.f32 %v2961_v23, %v2981_v40 }
0x1324   :  { %v2995_v44 = vmul.f32 1.442695, %v2991_v41  ;;  %v9833_v41 = vld [vmem:[%s14604_s12 + $0xb0] sm:$0xff] }
0x1325   :  { %v2984_v32 = vpop.xlane.xlu1 %2983 }
0x1326   :  { %12024 = vpow2.f32 %v2995_v44  ;;  %v2992_v28 = vsub.f32 %v2966_v27, %v2984_v32  ;;  %v11222_v27 = vpop.f32.mrf.mxu1  ;;  %v9832_v44 = vld [vmem:[%s14604_s12 + $0xa8] sm:$0xff] }
0x1327   :  { %v3309_v32 = vadd.f32 %v11222_v27, %v13170_v63 }
0x1328   :  { %v2997_v51 = vmul.f32 1.442695, %v2992_v28  ;;  %v3303_v36 = vpop.f32.mrf.mxu1  ;;  %v9831_v28 = vld [vmem:[%s14604_s12 + $0xa0] sm:$0xff] }
0x1329   :  { %v2987_v53 = vpop.xlane.xlu1 %2986  ;;  %v3304_v40 = vadd.f32 %v13170_v63, %v3303_v36  ;;  %v9845_v63 = vld [vmem:[%s14600_s8 + $0xd0] sm:$0xff] }
0x132a   :  { %12026 = vpow2.f32 %v2997_v51  ;;  %v2993_v56 = vsub.f32 %v2971_v35, %v2987_v53  ;;  %v9844_v51 = vld [vmem:[%s14600_s8 + $0xc8] sm:$0xff]  ;;  %v9843_v53 = vld [vmem:[%s14600_s8 + $0xc0] sm:$0xff] }
0x132c   :  { %v2999_v58 = vmul.f32 1.442695, %v2993_v56 }
0x132d   :  { %v2990_v59 = vpop.xlane.xlu1 %2989 }
0x132e   :  { %12028 = vpow2.f32 %v2999_v58  ;;  %v2994_v61 = vsub.f32 %v2976_v39, %v2990_v59 }
0x1330   :  { %v3001_v49 = vmul.f32 1.442695, %v2994_v61 }
0x1332   :  { %12030 = vpow2.f32 %v3001_v49 }
0x1333   :  { %v12025_v10 = vpop.eup %12024 }
0x1334   :  { %v3003_v26 = vsel %vm191_vm1, %v12025_v10, 0.0 }
0x1335   :  { %3004 = vadd.xlane.f32.xlu1 %v3003_v26 }
0x1337   :  { %v12027_v25 = vpop.eup %12026 }
0x1338   :  { %v3006_v62 = vsel %vm191_vm1, %v12027_v25, 0.0 }
0x1339   :  { %3007 = vadd.xlane.f32.xlu0 %v3006_v62 }
0x133b   :  { %v12029_v8 = vpop.eup %12028 }
0x133c   :  { %v3009_v7 = vsel %vm191_vm1, %v12029_v8, 0.0 }
0x133d   :  { %3010 = vadd.xlane.f32.xlu1 %v3009_v7 }
0x133f   :  { %v12031_v17 = vpop.eup %12030 }
0x1340   :  { %v3012_v42 = vsel %vm191_vm1, %v12031_v17, 0.0 }
0x1341   :  { %3013 = vadd.xlane.f32.xlu1 %v3012_v42 }
0x1352   :  { %3318 = vperm.xlu1 %11939, %v9821_v18  }
0x13be   :  { %v3005_v22 = vpop.xlane.xlu1 %3004 }
0x13bf   :  { %12032 = vrcp.f32 %v3005_v22 }
0x13c2   :  { %v3008_v29 = vpop.xlane.xlu0 %3007 }
0x13c3   :  { %12034 = vrcp.f32 %v3008_v29 }
0x13c6   :  { %v3011_v1 = vpop.xlane.xlu1 %3010 }
0x13c7   :  { %12036 = vrcp.f32 %v3011_v1  ;;  %v13302_v1 = vld [vmem:[%s14601_s9 + $0x6] ss:$0 sm:$0xff] }
0x13ca   :  { %v3014_v11 = vpop.xlane.xlu1 %3013 }
0x13cb   :  { %12038 = vrcp.f32 %v3014_v11 }
0x13cc   :  { %v12033_v57 = vpop.eup %12032 }
0x13cd   :  { %v3019_v55 = vmul.f32 %v12033_v57, %v12025_v10 }
0x13ce   :  { %v3319_v33 = vpop.permute.xlu1 %3318 }
0x13cf   :  { %11203 = vmatprep.mubr.msk.f32.mxu0 %vm191_vm1, %v3019_v55 }
0x13d0   :  { %v12035_v2 = vpop.eup %12034 }
0x13d1   :  { %v3020_v3 = vmul.f32 %v12035_v2, %v12027_v25 }
0x13d3   :  { %11204 = vmatmul.mubr.msk.f32.vlgmr.msra.gmra.mxu0 %vm191_vm1, %v3020_v3 }
0x13d4   :  { %v12037_v4 = vpop.eup %12036  ;;  %11224 = vmatpush3.xpose.msk.msra.mxu0 %vm191_vm1, %v13122_v60 }
0x13d5   :  { %11225 = vmatprep.subr.mxu0 %v12286_v15  ;;  %v3021_v5 = vmul.f32 %v12037_v4, %v12029_v8 }
0x13d7   :  { %11206 = vmatprep.mubr.msk.f32.mxu0 %vm191_vm1, %v3021_v5 }
0x13d8   :  { %v12039_v6 = vpop.eup %12038  ;;  %11226 = vmatpush3.xpose.msk.msra.mxu0 %vm191_vm1, %v13125_v12 }
0x13d9   :  { %11227 = vmatprep.subr.mxu0 %v12286_v15  ;;  %v3022_v9 = vmul.f32 %v12039_v6, %v12031_v17 }
0x13db   :  { %11207 = vmatmul.mubr.msk.f32.gmra.mxu0 %vm191_vm1, %v3022_v9 }
0x13dc   :  { %11228 = vmatpush3.xpose.msk.msra.mxu0 %vm191_vm1, %v13105_v50  ;;  %11231 = vmatprep.mubr.msk.f32.mxu0 %vm12287_vm2, %v12286_v15 }
0x13dd   :  { %11229 = vmatprep.subr.mxu0 %v12286_v15 }
0x13e0   :  { %11230 = vmatpush3.xpose.msk.msra.mxu0 %vm191_vm1, %v13103_v46 }
0x13e3   :  { %11232 = vmatmul.mubr.msk.f32.vlgmr.msra.gmra.mxu0 %vm191_vm1, %v9820_v16 }
0x1493   :  { %v13237_v21 = vpop.f32.mrf.mxu0 }
0x1495   :  { %v13239_v23 = vpop.f32.mrf.mxu0 }
0x149b   :  { %v13241_v24 = vpop.f32.mrf.mxu0 }
0x149d   :  { %v13243_v31 = vpop.f32.mrf.mxu0 }
0x14a3   :  { %v3390_v35 = vpop.f32.mrf.mxu0 }
0x14a4   :  { %v3391_v39 = vadd.f32 %v3390_v35, %v3319_v33 }
0x14a5   :  { %v11233_v48 = vpop.f32.mrf.mxu0 }
0x14a6   :  { %11234 = vmatprep.subr.mxu1 %v3391_v39 }
0x14a7   :  { %11235 = vmatpush3.msra.mxu1 %v3391_v39 }
0x14a8   :  { %11237 = vmatmul.mubr.msk.f32.vlgmr.msra.gmra.mxu1 %vm521_vm3, %v13173_v30  ;;  %11242 = vmatprep.subr.mxu1 %v9834_v52  ;;  %v9846_v30 = vld [vmem:[%s14600_s8 + $0xd8] sm:$0xff] }
0x14a9   :  { %11239 = vmatprep.mubr.msk.f32.mxu1 %vm521_vm3, %v3304_v40  ;;  %11243 = vmatpush3.msra.mxu1 %v9834_v52 }
0x14aa   :  { %11244 = vmatprep.subr.mxu1 %v9833_v41 }
0x14ab   :  { %11245 = vmatpush3.msra.mxu1 %v9833_v41 }
0x14ac   :  { %11240 = vmatmul.mubr.msk.f32.gmra.mxu1 %vm521_vm3, %v3309_v32  ;;  %11246 = vmatprep.subr.mxu1 %v9832_v44 }
0x14ad   :  { %11247 = vmatpush3.msra.mxu1 %v9832_v44  ;;  %11250 = vmatprep.mubr.msk.f32.mxu1 %vm191_vm1, %v13103_v46 }
0x14ae   :  { %11248 = vmatprep.subr.mxu1 %v9831_v28 }
0x14af   :  { %11249 = vmatpush3.msra.mxu1 %v9831_v28 }
0x14b0   :  { %11251 = vmatmul.mubr.msk.f32.vlgmr.msra.gmra.mxu1 %vm191_vm1, %v13105_v50  ;;  %11270 = vmatprep.subr.mxu1 %v9846_v30 }
0x14b1   :  { %11253 = vmatprep.mubr.msk.f32.mxu1 %vm191_vm1, %v13125_v12  ;;  %11271 = vmatpush3.msra.mxu1 %v9846_v30 }
0x14b2   :  { %11272 = vmatprep.subr.mxu1 %v9845_v63 }
0x14b3   :  { %11273 = vmatpush3.msra.mxu1 %v9845_v63 }
0x14b4   :  { %11254 = vmatmul.mubr.msk.f32.gmra.mxu1 %vm191_vm1, %v13122_v60  ;;  %11274 = vmatprep.subr.mxu1 %v9844_v51 }
0x14b5   :  { %11275 = vmatpush3.msra.mxu1 %v9844_v51  ;;  %11278 = vmatprep.mubr.msk.f32.mxu1 %vm191_vm1, %v13103_v46  ;;  %v9854_v51 = vld [vmem:[%s14603_s11 + $0x30] sm:$0xff] }
0x14b6   :  { %11276 = vmatprep.subr.mxu1 %v9843_v53 }
0x14b7   :  { %11277 = vmatpush3.msra.mxu1 %v9843_v53 }
0x14b8   :  { %11279 = vmatmul.mubr.msk.f32.vlgmr.msra.gmra.mxu1 %vm191_vm1, %v13105_v50 }
0x14b9   :  { %11281 = vmatprep.mubr.msk.f32.mxu1 %vm191_vm1, %v13125_v12 }
0x14bc   :  { %11282 = vmatmul.mubr.msk.f32.gmra.mxu1 %vm191_vm1, %v13122_v60 }
0x1568   :  { %v11238_v56 = vpop.f32.mrf.mxu1 }
0x1569   :  { %v3478_v58 = vadd.f32 %v11238_v56, %v13189_v20 }
0x156a   :  { %v3472_v59 = vpop.f32.mrf.mxu1 }
0x156b   :  { %v3473_v61 = vadd.f32 %v3472_v59, %v13184_v19  ;;  %v3494_v49 = vsel %vm191_vm1, %v3478_v58, -inf }
0x156c   :  { %3495 = vmax.xlane.f32.xlu0 %v3494_v49  ;;  %v11241_v10 = vpop.f32.mrf.mxu1 }
0x156d   :  { %v3491_v26 = vsel %vm191_vm1, %v3473_v61, -inf  ;;  %v3488_v7 = vadd.f32 %v11241_v10, %v13204_v38 }
0x156e   :  { %v3482_v25 = vpop.f32.mrf.mxu1  ;;  %3492 = vmax.xlane.f32.xlu1 %v3491_v26 }
0x156f   :  { %v3483_v62 = vadd.f32 %v3482_v25, %v13197_v34  ;;  %v3500_v22 = vsel %vm191_vm1, %v3488_v7, -inf }
0x1570   :  { %v11252_v8 = vpop.f32.mrf.mxu1 }
0x1571   :  { %v3497_v17 = vsel %vm191_vm1, %v3483_v62, -inf }
0x1572   :  { %v3606_v42 = vpop.f32.mrf.mxu1  ;;  %3498 = vmax.xlane.f32.xlu0 %v3497_v17  ;;  %v9853_v17 = vld [vmem:[%s14602_s10 + $0x30] sm:$0xff] }
0x1574   :  { %v11255_v18 = vpop.f32.mrf.mxu1 }
0x1575   :  { %11256 = vmatprep.subr.mxu0 %v11255_v18 }
0x1576   :  { %v3616_v29 = vpop.f32.mrf.mxu1  ;;  %11257 = vmatpush3.msra.mxu0 %v11255_v18  ;;  %3501 = vmax.xlane.f32.xlu0 %v3500_v22 }
0x1577   :  { %11258 = vmatprep.subr.mxu0 %v3616_v29 }
0x1578   :  { %11259 = vmatpush3.msra.mxu0 %v3616_v29  ;;  %v11280_v11 = vpop.f32.mrf.mxu1 }
0x1579   :  { %v13305_v57 = vadd.f32 %v11280_v11, %v13302_v1  ;;  %11260 = vmatprep.subr.mxu0 %v11252_v8 }
0x157a   :  { %11261 = vmatpush3.msra.mxu0 %v11252_v8  ;;  %v3805_v55 = vpop.f32.mrf.mxu1 }
0x157b   :  { %v3806_v2 = vadd.f32 %v13302_v1, %v3805_v55  ;;  %11262 = vmatprep.subr.mxu0 %v3606_v42 }
0x157c   :  { %11263 = vmatpush3.msra.mxu0 %v3606_v42  ;;  %v9776_v42 = vld [vmem:[%s14605_s13 + $0x1] ss:$0 sm:$0xff] }
0x157d   :  { %11297 = vmatprep.mubr.msk.f32.mxu1 %vm521_vm3, %v3806_v2  ;;  %11284 = vmatprep.subr.mxu0 %v12286_v15  ;;  %v3211_v18 = vadd.f32 %v13237_v21, %v9776_v42  ;;  %v3210_v29 = vadd.f32 %v9776_v42, %v13239_v23 }
0x15f5   :  { %v3496_v3 = vpop.xlane.xlu0 %3495 }
0x15f6   :  { %v3504_v4 = vsub.f32 %v3478_v58, %v3496_v3  ;;  %v3213_v3 = vadd.f32 %v13241_v24, %v9776_v42 }
0x15f7   :  { %v3493_v5 = vpop.xlane.xlu1 %3492 }
0x15f8   :  { %v3503_v6 = vsub.f32 %v3473_v61, %v3493_v5  ;;  %v3509_v9 = vmul.f32 1.442695, %v3504_v4  ;;  %v3212_v5 = vadd.f32 %v9776_v42, %v13243_v31  ;;  %v9866_v31 = vld [vmem:[%s14604_s12 + $0xd0] sm:$0xff] }
0x15fa   :  { %v3507_v16 = vmul.f32 1.442695, %v3503_v6 }
0x15fb   :  { %v3499_v27 = vpop.xlane.xlu0 %3498 }
0x15fc   :  { %12040 = vpow2.f32 %v3507_v16  ;;  %v3505_v33 = vsub.f32 %v3483_v62, %v3499_v27  ;;  %v11283_v27 = vpop.f32.mrf.mxu1 }
0x15fd   :  { %12042 = vpow2.f32 %v3509_v9 }
0x15fe   :  { %v3511_v35 = vmul.f32 1.442695, %v3505_v33 }
0x15ff   :  { %v3502_v36 = vpop.xlane.xlu0 %3501 }
0x1600   :  { %v3506_v39 = vsub.f32 %v3488_v7, %v3502_v36  ;;  %12044 = vpow2.f32 %v3511_v35  ;;  %v3815_v35 = vpop.f32.mrf.mxu1 }
0x1601   :  { %v3816_v24 = vadd.f32 %v13302_v1, %v3815_v35 }
0x1602   :  { %v3513_v48 = vmul.f32 1.442695, %v3506_v39  ;;  %v9867_v39 = vld [vmem:[%s14604_s12 + $0xd8] sm:$0xff] }
0x1604   :  { %12046 = vpow2.f32 %v3513_v48  ;;  %v9865_v48 = vld [vmem:[%s14604_s12 + $0xc8] sm:$0xff] }
0x1609   :  { %v12041_v52 = vpop.eup %12040 }
0x160a   :  { %v3515_v40 = vsel %vm191_vm1, %v12041_v52, 0.0  ;;  %v12043_v41 = vpop.eup %12042 }
0x160b   :  { %3516 = vadd.xlane.f32.xlu0 %v3515_v40  ;;  %v3518_v44 = vsel %vm191_vm1, %v12043_v41, 0.0  ;;  %v9864_v40 = vld [vmem:[%s14604_s12 + $0xc0] sm:$0xff] }
0x160d   :  { %v12045_v32 = vpop.eup %12044 }
0x160e   :  { %v3521_v28 = vsel %vm191_vm1, %v12045_v32, 0.0 }
0x160f   :  { %3519 = vadd.xlane.f32.xlu0 %v3518_v44  ;;  %v9876_v44 = vld [vmem:[%s14600_s8 + $0xe0] sm:$0xff] }
0x1611   :  { %v12047_v30 = vpop.eup %12046 }
0x1612   :  { %v3524_v63 = vsel %vm191_vm1, %v12047_v30, 0.0 }
0x1613   :  { %3522 = vadd.xlane.f32.xlu0 %v3521_v28 }
0x1617   :  { %3525 = vadd.xlane.f32.xlu0 %v3524_v63 }
0x162d   :  { %3830 = vperm.xlu0 %11938, %v9854_v51  }
0x1694   :  { %v3517_v53 = vpop.xlane.xlu0 %3516 }
0x1695   :  { %12048 = vrcp.f32 %v3517_v53 }
0x1698   :  { %v3520_v56 = vpop.xlane.xlu0 %3519 }
0x1699   :  { %12050 = vrcp.f32 %v3520_v56 }
0x169c   :  { %v3523_v58 = vpop.xlane.xlu0 %3522 }
0x169d   :  { %12052 = vrcp.f32 %v3523_v58 }
0x16a0   :  { %v3526_v59 = vpop.xlane.xlu0 %3525 }
0x16a1   :  { %12054 = vrcp.f32 %v3526_v59 }
0x16a2   :  { %v12049_v61 = vpop.eup %12048 }
0x16a3   :  { %v3531_v49 = vmul.f32 %v12049_v61, %v12041_v52  ;;  %v3821_v52 = vadd.f32 %v11283_v27, %v13302_v1  ;;  %v9878_v1 = vld [vmem:[%s14600_s8 + $0xf0] sm:$0xff] }
0x16a5   :  { %11264 = vmatprep.mubr.msk.f32.mxu0 %vm191_vm1, %v3531_v49 }
0x16a6   :  { %v12051_v10 = vpop.eup %12050 }
0x16a7   :  { %v3532_v26 = vmul.f32 %v12051_v10, %v12043_v41  ;;  %v9877_v41 = vld [vmem:[%s14600_s8 + $0xe8] sm:$0xff] }
0x16a8   :  { %v3831_v21 = vpop.permute.xlu0 %3830 }
0x16a9   :  { %11265 = vmatmul.mubr.msk.f32.vlgmr.msra.gmra.mxu0 %vm191_vm1, %v3532_v26 }
0x16aa   :  { %v12053_v25 = vpop.eup %12052  ;;  %11285 = vmatpush3.xpose.msk.msra.mxu0 %vm191_vm1, %v13122_v60 }
0x16ab   :  { %11286 = vmatprep.subr.mxu0 %v12286_v15  ;;  %v3533_v62 = vmul.f32 %v12053_v25, %v12045_v32 }
0x16ad   :  { %11267 = vmatprep.mubr.msk.f32.mxu0 %vm191_vm1, %v3533_v62 }
0x16ae   :  { %v12055_v8 = vpop.eup %12054  ;;  %11287 = vmatpush3.xpose.msk.msra.mxu0 %vm191_vm1, %v13125_v12 }
0x16af   :  { %11288 = vmatprep.subr.mxu0 %v12286_v15  ;;  %v3534_v7 = vmul.f32 %v12055_v8, %v12047_v30  ;;  %v13409_v8 = vld [vmem:[%s14601_s9 + $0x7] ss:$0 sm:$0xff] }
0x16b1   :  { %11268 = vmatmul.mubr.msk.f32.gmra.mxu0 %vm191_vm1, %v3534_v7 }
0x16b2   :  { %11289 = vmatpush3.xpose.msk.msra.mxu0 %vm191_vm1, %v13105_v50  ;;  %11292 = vmatprep.mubr.msk.f32.mxu0 %vm12287_vm2, %v12286_v15 }
0x16b3   :  { %11290 = vmatprep.subr.mxu0 %v12286_v15 }
0x16b6   :  { %11291 = vmatpush3.xpose.msk.msra.mxu0 %vm191_vm1, %v13103_v46 }
0x16b9   :  { %11293 = vmatmul.mubr.msk.f32.vlgmr.msra.gmra.mxu0 %vm191_vm1, %v9853_v17 }
0x1769   :  { %v11266_v22 = vpop.f32.mrf.mxu0 }
0x176a   :  { %v13343_v11 = vadd.f32 %v11266_v22, %v3211_v18 }
0x176b   :  { %v3703_v55 = vpop.f32.mrf.mxu0 }
0x176c   :  { %v13345_v2 = vadd.f32 %v3703_v55, %v3210_v29 }
0x1771   :  { %v11269_v4 = vpop.f32.mrf.mxu0 }
0x1772   :  { %v13349_v6 = vadd.f32 %v11269_v4, %v3213_v3 }
0x1773   :  { %v3713_v9 = vpop.f32.mrf.mxu0 }
0x1774   :  { %v13351_v16 = vadd.f32 %v3713_v9, %v3212_v5 }
0x1779   :  { %v3902_v33 = vpop.f32.mrf.mxu0 }
0x177a   :  { %v3903_v23 = vadd.f32 %v3902_v33, %v3831_v21 }
0x177b   :  { %v11294_v36 = vpop.f32.mrf.mxu0 }
0x177c   :  { %11295 = vmatprep.subr.mxu1 %v3903_v23 }
0x177d   :  { %11296 = vmatpush3.msra.mxu1 %v3903_v23 }
0x177e   :  { %11298 = vmatmul.mubr.msk.f32.vlgmr.msra.gmra.mxu1 %vm521_vm3, %v13305_v57  ;;  %11303 = vmatprep.subr.mxu1 %v9867_v39  ;;  %v9879_v57 = vld [vmem:[%s14600_s8 + $0xf8] sm:$0xff] }
0x177f   :  { %11300 = vmatprep.mubr.msk.f32.mxu1 %vm521_vm3, %v3816_v24  ;;  %11304 = vmatpush3.msra.mxu1 %v9867_v39 }
0x1780   :  { %11305 = vmatprep.subr.mxu1 %v9866_v31 }
0x1781   :  { %11306 = vmatpush3.msra.mxu1 %v9866_v31 }
0x1782   :  { %11301 = vmatmul.mubr.msk.f32.gmra.mxu1 %vm521_vm3, %v3821_v52  ;;  %11307 = vmatprep.subr.mxu1 %v9865_v48 }
0x1783   :  { %11308 = vmatpush3.msra.mxu1 %v9865_v48  ;;  %11311 = vmatprep.mubr.msk.f32.mxu1 %vm191_vm1, %v13103_v46 }
0x1784   :  { %11309 = vmatprep.subr.mxu1 %v9864_v40 }
0x1785   :  { %11310 = vmatpush3.msra.mxu1 %v9864_v40 }
0x1786   :  { %11312 = vmatmul.mubr.msk.f32.vlgmr.msra.gmra.mxu1 %vm191_vm1, %v13105_v50  ;;  %11331 = vmatprep.subr.mxu1 %v9879_v57 }
0x1787   :  { %11314 = vmatprep.mubr.msk.f32.mxu1 %vm191_vm1, %v13125_v12  ;;  %11332 = vmatpush3.msra.mxu1 %v9879_v57 }
0x1788   :  { %11333 = vmatprep.subr.mxu1 %v9878_v1 }
0x1789   :  { %11334 = vmatpush3.msra.mxu1 %v9878_v1 }
0x178a   :  { %11315 = vmatmul.mubr.msk.f32.gmra.mxu1 %vm191_vm1, %v13122_v60  ;;  %11335 = vmatprep.subr.mxu1 %v9877_v41 }
0x178b   :  { %11336 = vmatpush3.msra.mxu1 %v9877_v41  ;;  %11339 = vmatprep.mubr.msk.f32.mxu1 %vm191_vm1, %v13103_v46  ;;  %v9887_v41 = vld [vmem:[%s14603_s11 + $0x38] sm:$0xff] }
0x178c   :  { %11337 = vmatprep.subr.mxu1 %v9876_v44 }
0x178d   :  { %11338 = vmatpush3.msra.mxu1 %v9876_v44 }
0x178e   :  { %11340 = vmatmul.mubr.msk.f32.vlgmr.msra.gmra.mxu1 %vm191_vm1, %v13105_v50 }
0x178f   :  { %11342 = vmatprep.mubr.msk.f32.mxu1 %vm191_vm1, %v13125_v12 }
0x1792   :  { %11343 = vmatmul.mubr.msk.f32.gmra.mxu1 %vm191_vm1, %v13122_v60 }
0x183e   :  { %v11299_v32 = vpop.f32.mrf.mxu1 }
0x183f   :  { %v3990_v51 = vadd.f32 %v11299_v32, %v13189_v20 }
0x1840   :  { %v3984_v28 = vpop.f32.mrf.mxu1 }
0x1841   :  { %v3985_v30 = vadd.f32 %v3984_v28, %v13184_v19  ;;  %v4006_v61 = vsel %vm191_vm1, %v3990_v51, -inf }
0x1842   :  { %v11302_v63 = vpop.f32.mrf.mxu1 }
0x1843   :  { %v4003_v53 = vsel %vm191_vm1, %v3985_v30, -inf  ;;  %v4000_v26 = vadd.f32 %v11302_v63, %v13204_v38 }
0x1844   :  { %v3994_v56 = vpop.f32.mrf.mxu1  ;;  %4004 = vmax.xlane.f32.xlu1 %v4003_v53 }
0x1845   :  { %v3995_v59 = vadd.f32 %v3994_v56, %v13197_v34  ;;  %v4012_v42 = vsel %vm191_vm1, %v4000_v26, -inf }
0x1846   :  { %v11313_v58 = vpop.f32.mrf.mxu1 }
0x1847   :  { %v4009_v25 = vsel %vm191_vm1, %v3995_v59, -inf }
0x1848   :  { %v4118_v49 = vpop.f32.mrf.mxu1  ;;  %4007 = vmax.xlane.f32.xlu1 %v4006_v61 }
0x184a   :  { %v11316_v10 = vpop.f32.mrf.mxu1 }
0x184b   :  { %11317 = vmatprep.subr.mxu0 %v11316_v10 }
0x184c   :  { %v4128_v62 = vpop.f32.mrf.mxu1  ;;  %11318 = vmatpush3.msra.mxu0 %v11316_v10  ;;  %4010 = vmax.xlane.f32.xlu1 %v4009_v25  ;;  %v9886_v10 = vld [vmem:[%s14602_s10 + $0x38] sm:$0xff] }
0x184d   :  { %11319 = vmatprep.subr.mxu0 %v4128_v62 }
0x184e   :  { %11320 = vmatpush3.msra.mxu0 %v4128_v62  ;;  %v11341_v7 = vpop.f32.mrf.mxu1 }
0x184f   :  { %v13412_v17 = vadd.f32 %v11341_v7, %v13409_v8  ;;  %11321 = vmatprep.subr.mxu0 %v11313_v58 }
0x1850   :  { %11322 = vmatpush3.msra.mxu0 %v11313_v58  ;;  %v4317_v18 = vpop.f32.mrf.mxu1  ;;  %4013 = vmax.xlane.f32.xlu1 %v4012_v42 }
0x1851   :  { %v4318_v22 = vadd.f32 %v13409_v8, %v4317_v18  ;;  %11323 = vmatprep.subr.mxu0 %v4118_v49 }
0x1852   :  { %11324 = vmatpush3.msra.mxu0 %v4118_v49 }
0x1853   :  { %11358 = vmatprep.mubr.msk.f32.mxu1 %vm521_vm3, %v4318_v22  ;;  %11345 = vmatprep.subr.mxu0 %v12286_v15 }
0x18cd   :  { %v4005_v29 = vpop.xlane.xlu1 %4004 }
0x18ce   :  { %v4015_v55 = vsub.f32 %v3985_v30, %v4005_v29 }
0x18d0   :  { %v4019_v3 = vmul.f32 1.442695, %v4015_v55  ;;  %v11344_v55 = vpop.f32.mrf.mxu1 }
0x18d1   :  { %v4008_v4 = vpop.xlane.xlu1 %4007 }
0x18d2   :  { %12056 = vpow2.f32 %v4019_v3  ;;  %v4016_v5 = vsub.f32 %v3990_v51, %v4008_v4 }
0x18d4   :  { %v4021_v9 = vmul.f32 1.442695, %v4016_v5  ;;  %v4327_v5 = vpop.f32.mrf.mxu1 }
0x18d5   :  { %v4011_v27 = vpop.xlane.xlu1 %4010 }
0x18d6   :  { %12058 = vpow2.f32 %v4021_v9  ;;  %v4017_v21 = vsub.f32 %v3995_v59, %v4011_v27 }
0x18d8   :  { %v4023_v33 = vmul.f32 1.442695, %v4017_v21  ;;  %v4333_v21 = vadd.f32 %v11344_v55, %v13409_v8 }
0x18d9   :  { %v4014_v35 = vpop.xlane.xlu1 %4013 }
0x18da   :  { %12060 = vpow2.f32 %v4023_v33  ;;  %v4018_v23 = vsub.f32 %v4000_v26, %v4014_v35  ;;  %v9897_v33 = vld [vmem:[%s14604_s12 + $0xe0] sm:$0xff] }
0x18dc   :  { %v4025_v36 = vmul.f32 1.442695, %v4018_v23 }
0x18de   :  { %12062 = vpow2.f32 %v4025_v36 }
0x18df   :  { %v12057_v39 = vpop.eup %12056 }
0x18e0   :  { %v4027_v24 = vsel %vm191_vm1, %v12057_v39, 0.0 }
0x18e1   :  { %4028 = vadd.xlane.f32.xlu1 %v4027_v24 }
0x18e3   :  { %v12059_v31 = vpop.eup %12058 }
0x18e4   :  { %v4030_v48 = vsel %vm191_vm1, %v12059_v31, 0.0 }
0x18e5   :  { %4031 = vadd.xlane.f32.xlu0 %v4030_v48 }
0x18e7   :  { %v12061_v52 = vpop.eup %12060 }
0x18e8   :  { %v4033_v40 = vsel %vm191_vm1, %v12061_v52, 0.0 }
0x18e9   :  { %4034 = vadd.xlane.f32.xlu1 %v4033_v40 }
0x18eb   :  { %v12063_v57 = vpop.eup %12062 }
0x18ec   :  { %v4036_v1 = vsel %vm191_vm1, %v12063_v57, 0.0 }
0x18ed   :  { %4037 = vadd.xlane.f32.xlu1 %v4036_v1 }
0x18fe   :  { %4342 = vperm.xlu1 %11939, %v9887_v41  }
0x196a   :  { %v4029_v44 = vpop.xlane.xlu1 %4028 }
0x196b   :  { %12064 = vrcp.f32 %v4029_v44 }
0x196e   :  { %v4032_v32 = vpop.xlane.xlu0 %4031 }
0x196f   :  { %12066 = vrcp.f32 %v4032_v32 }
0x1972   :  { %v4035_v28 = vpop.xlane.xlu1 %4034 }
0x1973   :  { %12068 = vrcp.f32 %v4035_v28 }
0x1976   :  { %v4038_v30 = vpop.xlane.xlu1 %4037 }
0x1977   :  { %12070 = vrcp.f32 %v4038_v30 }
0x1978   :  { %v12065_v63 = vpop.eup %12064 }
0x1979   :  { %v4043_v51 = vmul.f32 %v12065_v63, %v12057_v39 }
0x197a   :  { %v4343_v3 = vpop.permute.xlu1 %4342 }
0x197b   :  { %11325 = vmatprep.mubr.msk.f32.mxu0 %vm191_vm1, %v4043_v51 }
0x197c   :  { %v12067_v53 = vpop.eup %12066 }
0x197d   :  { %v4044_v56 = vmul.f32 %v12067_v53, %v12059_v31 }
0x197f   :  { %11326 = vmatmul.mubr.msk.f32.vlgmr.msra.gmra.mxu0 %vm191_vm1, %v4044_v56 }
0x1980   :  { %v12069_v58 = vpop.eup %12068  ;;  %11346 = vmatpush3.xpose.msk.msra.mxu0 %vm191_vm1, %v13122_v60 }
0x1981   :  { %11347 = vmatprep.subr.mxu0 %v12286_v15  ;;  %v4045_v59 = vmul.f32 %v12069_v58, %v12061_v52 }
0x1983   :  { %11328 = vmatprep.mubr.msk.f32.mxu0 %vm191_vm1, %v4045_v59 }
0x1984   :  { %v12071_v61 = vpop.eup %12070  ;;  %11348 = vmatpush3.xpose.msk.msra.mxu0 %vm191_vm1, %v13125_v12 }
0x1985   :  { %11349 = vmatprep.subr.mxu0 %v12286_v15  ;;  %v4046_v49 = vmul.f32 %v12071_v61, %v12063_v57 }
0x1987   :  { %11329 = vmatmul.mubr.msk.f32.gmra.mxu0 %vm191_vm1, %v4046_v49 }
0x1988   :  { %11350 = vmatpush3.xpose.msk.msra.mxu0 %vm191_vm1, %v13105_v50  ;;  %11353 = vmatprep.mubr.msk.f32.mxu0 %vm12287_vm2, %v12286_v15 }
0x1989   :  { %11351 = vmatprep.subr.mxu0 %v12286_v15 }
0x198c   :  { %11352 = vmatpush3.xpose.msk.msra.mxu0 %vm191_vm1, %v13103_v46 }
0x198f   :  { %11354 = vmatmul.mubr.msk.f32.vlgmr.msra.gmra.mxu0 %vm191_vm1, %v9886_v10 }
0x1a3f   :  { %v11327_v26 = vpop.f32.mrf.mxu0 }
0x1a40   :  { %v13447_v25 = vadd.f32 %v11327_v26, %v13343_v11  ;;  %v9900_v11 = vld [vmem:[%s14604_s12 + $0xf8] sm:$0xff] }
0x1a41   :  { %v4215_v62 = vpop.f32.mrf.mxu0 }
0x1a42   :  { %v13450_v7 = vadd.f32 %v4215_v62, %v13345_v2  ;;  %v4328_v2 = vadd.f32 %v13409_v8, %v4327_v5 }
0x1a47   :  { %v11330_v42 = vpop.f32.mrf.mxu0 }
0x1a48   :  { %v13453_v18 = vadd.f32 %v11330_v42, %v13349_v6  ;;  %v9899_v6 = vld [vmem:[%s14604_s12 + $0xf0] sm:$0xff] }
0x1a49   :  { %v4225_v22 = vpop.f32.mrf.mxu0 }
0x1a4a   :  { %v13456_v29 = vadd.f32 %v4225_v22, %v13351_v16  ;;  %v9898_v16 = vld [vmem:[%s14604_s12 + $0xe8] sm:$0xff] }
0x1a4f   :  { %v4414_v4 = vpop.f32.mrf.mxu0 }
0x1a50   :  { %v4415_v9 = vadd.f32 %v4414_v4, %v4343_v3 }
0x1a51   :  { %v11355_v27 = vpop.f32.mrf.mxu0 }
0x1a52   :  { %11356 = vmatprep.subr.mxu1 %v4415_v9 }
0x1a53   :  { %11357 = vmatpush3.msra.mxu1 %v4415_v9 }
0x1a54   :  { %11359 = vmatmul.mubr.msk.f32.vlgmr.msra.gmra.mxu1 %vm521_vm3, %v13412_v17  ;;  %11364 = vmatprep.subr.mxu1 %v9900_v11 }
0x1a55   :  { %11361 = vmatprep.mubr.msk.f32.mxu1 %vm521_vm3, %v4328_v2  ;;  %11365 = vmatpush3.msra.mxu1 %v9900_v11 }
0x1a56   :  { %11366 = vmatprep.subr.mxu1 %v9899_v6 }
0x1a57   :  { %11367 = vmatpush3.msra.mxu1 %v9899_v6 }
0x1a58   :  { %11362 = vmatmul.mubr.msk.f32.gmra.mxu1 %vm521_vm3, %v4333_v21  ;;  %11368 = vmatprep.subr.mxu1 %v9898_v16 }
0x1a59   :  { %11369 = vmatpush3.msra.mxu1 %v9898_v16  ;;  %11372 = vmatprep.mubr.msk.f32.mxu1 %vm191_vm1, %v13103_v46 }
0x1a5a   :  { %11370 = vmatprep.subr.mxu1 %v9897_v33 }
0x1a5b   :  { %11371 = vmatpush3.msra.mxu1 %v9897_v33 }
0x1a5c   :  { %11373 = vmatmul.mubr.msk.f32.vlgmr.msra.gmra.mxu1 %vm191_vm1, %v13105_v50 }
0x1a5d   :  { %11375 = vmatprep.mubr.msk.f32.mxu1 %vm191_vm1, %v13125_v12 }
0x1a60   :  { %11376 = vmatmul.mubr.msk.f32.gmra.mxu1 %vm191_vm1, %v13122_v60 }
0x1b14   :  { %v11360_v8 = vpop.f32.mrf.mxu1 }
0x1b15   :  { %v4502_v17 = vadd.f32 %v11360_v8, %v13189_v20 }
0x1b16   :  { %v4496_v35 = vpop.f32.mrf.mxu1 }
0x1b17   :  { %v4497_v23 = vadd.f32 %v4496_v35, %v13184_v19  ;;  %v4518_v36 = vsel %vm191_vm1, %v4502_v17, -inf }
0x1b18   :  { %4519 = vmax.xlane.f32.xlu0 %v4518_v36  ;;  %v11363_v46 = vpop.f32.mrf.mxu1 }
0x1b19   :  { %v4515_v39 = vsel %vm191_vm1, %v4497_v23, -inf  ;;  %v4512_v31 = vadd.f32 %v11363_v46, %v13204_v38 }
0x1b1a   :  { %v4506_v24 = vpop.f32.mrf.mxu1  ;;  %4516 = vmax.xlane.f32.xlu1 %v4515_v39 }
0x1b1b   :  { %v4507_v50 = vadd.f32 %v4506_v24, %v13197_v34  ;;  %v4524_v19 = vsel %vm191_vm1, %v4512_v31, -inf }
0x1b1c   :  { %v11374_v12 = vpop.f32.mrf.mxu1 }
0x1b1d   :  { %v4521_v60 = vsel %vm191_vm1, %v4507_v50, -inf }
0x1b1e   :  { %v4630_v48 = vpop.f32.mrf.mxu1  ;;  %4522 = vmax.xlane.f32.xlu0 %v4521_v60 }
0x1b20   :  { %v11377_v20 = vpop.f32.mrf.mxu1 }
0x1b21   :  { %11378 = vmatprep.subr.mxu0 %v11377_v20 }
0x1b22   :  { %v4640_v52 = vpop.f32.mrf.mxu1  ;;  %11379 = vmatpush3.msra.mxu0 %v11377_v20  ;;  %4525 = vmax.xlane.f32.xlu0 %v4524_v19 }
0x1b23   :  { %11380 = vmatprep.subr.mxu0 %v4640_v52 }
0x1b24   :  { %11381 = vmatpush3.msra.mxu0 %v4640_v52 }
0x1b25   :  { %11382 = vmatprep.subr.mxu0 %v11374_v12 }
0x1b26   :  { %11383 = vmatpush3.msra.mxu0 %v11374_v12 }
0x1b27   :  { %11384 = vmatprep.subr.mxu0 %v4630_v48 }
0x1b28   :  { %11385 = vmatpush3.msra.mxu0 %v4630_v48 }
0x1b29   :  { %11406 = vmatprep.subr.mxu0 %v12286_v15 }
0x1ba1   :  { %v4520_v34 = vpop.xlane.xlu0 %4519 }
0x1ba2   :  { %v4528_v38 = vsub.f32 %v4502_v17, %v4520_v34 }
0x1ba3   :  { %v4517_v40 = vpop.xlane.xlu1 %4516 }
0x1ba4   :  { %v4527_v57 = vsub.f32 %v4497_v23, %v4517_v40  ;;  %v4533_v1 = vmul.f32 1.442695, %v4528_v38 }
0x1ba6   :  { %v4531_v41 = vmul.f32 1.442695, %v4527_v57 }
0x1ba7   :  { %v4523_v44 = vpop.xlane.xlu0 %4522 }
0x1ba8   :  { %12072 = vpow2.f32 %v4531_v41  ;;  %v4529_v32 = vsub.f32 %v4507_v50, %v4523_v44 }
0x1ba9   :  { %12074 = vpow2.f32 %v4533_v1 }
0x1baa   :  { %v4535_v28 = vmul.f32 1.442695, %v4529_v32 }
0x1bab   :  { %v4526_v30 = vpop.xlane.xlu0 %4525 }
0x1bac   :  { %v4530_v63 = vsub.f32 %v4512_v31, %v4526_v30  ;;  %12076 = vpow2.f32 %v4535_v28  ;;  %v9925_v30 = vld [vmem:[%s14602_s10 + $0x40] sm:$0xff] }
0x1bae   :  { %v4537_v51 = vmul.f32 1.442695, %v4530_v63 }
0x1bb0   :  { %12078 = vpow2.f32 %v4537_v51 }
0x1bb5   :  { %v12073_v53 = vpop.eup %12072 }
0x1bb6   :  { %v4539_v56 = vsel %vm191_vm1, %v12073_v53, 0.0  ;;  %v12075_v58 = vpop.eup %12074 }
0x1bb7   :  { %4540 = vadd.xlane.f32.xlu0 %v4539_v56  ;;  %v4542_v59 = vsel %vm191_vm1, %v12075_v58, 0.0 }
0x1bb9   :  { %v12077_v61 = vpop.eup %12076 }
0x1bba   :  { %v4545_v49 = vsel %vm191_vm1, %v12077_v61, 0.0 }
0x1bbb   :  { %4543 = vadd.xlane.f32.xlu0 %v4542_v59 }
0x1bbd   :  { %v12079_v10 = vpop.eup %12078 }
0x1bbe   :  { %v4548_v26 = vsel %vm191_vm1, %v12079_v10, 0.0 }
0x1bbf   :  { %4546 = vadd.xlane.f32.xlu0 %v4545_v49 }
0x1bc3   :  { %4549 = vadd.xlane.f32.xlu0 %v4548_v26 }
0x1c40   :  { %v4541_v62 = vpop.xlane.xlu0 %4540 }
0x1c41   :  { %12080 = vrcp.f32 %v4541_v62 }
0x1c44   :  { %v4544_v42 = vpop.xlane.xlu0 %4543 }
0x1c45   :  { %12082 = vrcp.f32 %v4544_v42 }
0x1c48   :  { %v4547_v22 = vpop.xlane.xlu0 %4546 }
0x1c49   :  { %12084 = vrcp.f32 %v4547_v22 }
0x1c4c   :  { %v4550_v55 = vpop.xlane.xlu0 %4549 }
0x1c4d   :  { %12086 = vrcp.f32 %v4550_v55 }
0x1c4e   :  { %v12081_v3 = vpop.eup %12080 }
0x1c4f   :  { %v4555_v4 = vmul.f32 %v12081_v3, %v12073_v53 }
0x1c51   :  { %11386 = vmatprep.mubr.msk.f32.mxu0 %vm191_vm1, %v4555_v4  ;;  %v12250_v4 = vld [vmem:[%s14610_s18] ss:$0 sm:$0xff] }
0x1c52   :  { %v12083_v5 = vpop.eup %12082 }
0x1c53   :  { %v4556_v9 = vmul.f32 %v12083_v5, %v12075_v58 }
0x1c55   :  { %11387 = vmatmul.mubr.msk.f32.vlgmr.msra.gmra.mxu0 %vm191_vm1, %v4556_v9 }
0x1c56   :  { %v12085_v27 = vpop.eup %12084  ;;  %11407 = vmatpush3.xpose.msk.msra.mxu0 %vm191_vm1, %v12537_v37 }
0x1c57   :  { %11408 = vmatprep.subr.mxu0 %v12286_v15  ;;  %v4557_v11 = vmul.f32 %v12085_v27, %v12077_v61  ;;  %v12251_v27 = vld [vmem:[%s14611_s19] ss:$0 sm:$0xff] }
0x1c59   :  { %11389 = vmatprep.mubr.msk.f32.mxu0 %vm191_vm1, %v4557_v11 }
0x1c5a   :  { %v12087_v2 = vpop.eup %12086  ;;  %11409 = vmatpush3.xpose.msk.msra.mxu0 %vm191_vm1, %v12544_v43 }
0x1c5b   :  { %11410 = vmatprep.subr.mxu0 %v12286_v15  ;;  %v4558_v6 = vmul.f32 %v12087_v2, %v12079_v10 }
0x1c5d   :  { %11390 = vmatmul.mubr.msk.f32.gmra.mxu0 %vm191_vm1, %v4558_v6 }
0x1c5e   :  { %11411 = vmatpush3.xpose.msk.msra.mxu0 %vm191_vm1, %v12550_v45  ;;  %11414 = vmatprep.mubr.msk.f32.mxu0 %vm12287_vm2, %v12286_v15 }
0x1c5f   :  { %11412 = vmatprep.subr.mxu0 %v12286_v15 }
0x1c62   :  { %11413 = vmatpush3.xpose.msk.msra.mxu0 %vm191_vm1, %v12555_v47 }
0x1c65   :  { %11415 = vmatmul.mubr.msk.f32.vlgmr.msra.gmra.mxu0 %vm191_vm1, %v9925_v30  ;;  %v9915_v30 = vld [vmem:[%s14600_s8 + $0x100] sm:$0xff] }
0x1d15   :  { %v11388_v16 = vpop.f32.mrf.mxu0 }
0x1d16   :  { %v4747_v21 = vadd.f32 %v11388_v16, %v13447_v25 }
0x1d17   :  { %v4727_v33 = vpop.f32.mrf.mxu0 }
0x1d18   :  { %v4751_v8 = vadd.f32 %v4747_v21, %v13039_v13  ;;  %v4746_v17 = vadd.f32 %v4727_v33, %v13450_v7 }
0x1d1a   :  { %v4757_v35 = vsel %vm191_vm1, %v4751_v8, 0.0  ;;  %v4750_v23 = vadd.f32 %v4746_v17, %v13037_v54 }
0x1d1b   :  { %4758 = vadd.xlane.f32.xlu1 %v4757_v35 }
0x1d1c   :  { %v4754_v36 = vsel %vm191_vm1, %v4750_v23, 0.0 }
0x1d1d   :  { %4755 = vadd.xlane.f32.xlu0 %v4754_v36  ;;  %v11391_v46 = vpop.f32.mrf.mxu0 }
0x1d1e   :  { %v4749_v39 = vadd.f32 %v11391_v46, %v13453_v18 }
0x1d1f   :  { %v4737_v24 = vpop.f32.mrf.mxu0 }
0x1d20   :  { %v4753_v50 = vadd.f32 %v4749_v39, %v13049_v14  ;;  %v4748_v25 = vadd.f32 %v4737_v24, %v13456_v29 }
0x1d22   :  { %v4763_v13 = vsel %vm191_vm1, %v4753_v50, 0.0  ;;  %v4752_v7 = vadd.f32 %v4748_v25, %v13047_v0 }
0x1d23   :  { %4764 = vadd.xlane.f32.xlu1 %v4763_v13 }
0x1d24   :  { %v4760_v12 = vsel %vm191_vm1, %v4752_v7, 0.0 }
0x1d25   :  { %4761 = vadd.xlane.f32.xlu0 %v4760_v12 }
0x1da4   :  { %v4759_v54 = vpop.xlane.xlu1 %4758 }
0x1da5   :  { %v4767_v31 = vmul.f32 0.03125, %v4759_v54 }
0x1da6   :  { %v4756_v60 = vpop.xlane.xlu0 %4755 }
0x1da7   :  { %v4771_v48 = vsub.f32 %v4751_v8, %v4767_v31  ;;  %v4766_v20 = vmul.f32 0.03125, %v4756_v60 }
0x1da9   :  { %v4770_v19 = vsub.f32 %v4750_v23, %v4766_v20  ;;  %v4775_v18 = vmul.f32 %v4771_v48, %v4771_v48 }
0x1dab   :  { %v4781_v52 = vsel %vm191_vm1, %v4775_v18, 0.0  ;;  %v4774_v14 = vmul.f32 %v4770_v19, %v4770_v19 }
0x1dac   :  { %4782 = vadd.xlane.f32.xlu1 %v4781_v52  ;;  %v4765_v29 = vpop.xlane.xlu1 %4764 }
0x1dad   :  { %v4769_v34 = vmul.f32 0.03125, %v4765_v29  ;;  %v4778_v38 = vsel %vm191_vm1, %v4774_v14, 0.0 }
0x1dae   :  { %4779 = vadd.xlane.f32.xlu0 %v4778_v38  ;;  %v4762_v0 = vpop.xlane.xlu0 %4761 }
0x1daf   :  { %v4773_v40 = vsub.f32 %v4753_v50, %v4769_v34  ;;  %v4768_v57 = vmul.f32 0.03125, %v4762_v0 }
0x1db1   :  { %v4772_v1 = vsub.f32 %v4752_v7, %v4768_v57  ;;  %v4777_v41 = vmul.f32 %v4773_v40, %v4773_v40 }
0x1db3   :  { %v4787_v44 = vsel %vm191_vm1, %v4777_v41, 0.0  ;;  %v4776_v32 = vmul.f32 %v4772_v1, %v4772_v1  ;;  %v9918_v41 = vld [vmem:[%s14600_s8 + $0x118] sm:$0xff] }
0x1db4   :  { %4788 = vadd.xlane.f32.xlu1 %v4787_v44  ;;  %11392 = vmatprep.subr.mxu1 %v9918_v41  ;;  %v9917_v44 = vld [vmem:[%s14600_s8 + $0x110] sm:$0xff] }
0x1db5   :  { %v4784_v28 = vsel %vm191_vm1, %v4776_v32, 0.0  ;;  %11393 = vmatpush3.msra.mxu1 %v9918_v41  ;;  %v9916_v32 = vld [vmem:[%s14600_s8 + $0x108] sm:$0xff] }
0x1db6   :  { %4785 = vadd.xlane.f32.xlu0 %v4784_v28  ;;  %11394 = vmatprep.subr.mxu1 %v9917_v44  ;;  %v5087_v28 = vpop.f32.mrf.mxu0 }
0x1db7   :  { %11395 = vmatpush3.msra.mxu1 %v9917_v44  ;;  %v13641_v44 = vld [vmem:[%s14631_s2 + $0x8] sm:$0xff] }
0x1db8   :  { %11396 = vmatprep.subr.mxu1 %v9916_v32 }
0x1db9   :  { %11397 = vmatpush3.msra.mxu1 %v9916_v32 }
0x1dba   :  { %11398 = vmatprep.subr.mxu1 %v9915_v30 }
0x1dbb   :  { %11399 = vmatpush3.msra.mxu1 %v9915_v30 }
0x1e35   :  { %v4783_v63 = vpop.xlane.xlu1 %4782 }
0x1e36   :  { %v4791_v51 = vmul.f32 0.03125, %v4783_v63  ;;  %v9926_v63 = vld [vmem:[%s14603_s11 + $0x40] sm:$0xff] }
0x1e37   :  { %v4780_v53 = vpop.xlane.xlu0 %4779 }
0x1e38   :  { %v4795_v56 = vadd.f32 1e-05, %v4791_v51  ;;  %v4790_v58 = vmul.f32 0.03125, %v4780_v53  ;;  %v11416_v51 = vpop.f32.mrf.mxu0 }
0x1e3a   :  { %12088 = vrsqrt.f32 %v4795_v56  ;;  %v4794_v59 = vadd.f32 1e-05, %v4790_v58 }
0x1e3c   :  { %12090 = vrsqrt.f32 %v4794_v59 }
0x1e3d   :  { %v4789_v61 = vpop.xlane.xlu1 %4788 }
0x1e3e   :  { %v4793_v49 = vmul.f32 0.03125, %v4789_v61 }
0x1e3f   :  { %v4786_v10 = vpop.xlane.xlu0 %4785 }
0x1e40   :  { %v4797_v26 = vadd.f32 1e-05, %v4793_v49  ;;  %v4792_v62 = vmul.f32 0.03125, %v4786_v10 }
0x1e42   :  { %12092 = vrsqrt.f32 %v4797_v26  ;;  %v4796_v42 = vadd.f32 1e-05, %v4792_v62 }
0x1e44   :  { %12094 = vrsqrt.f32 %v4796_v42 }
0x1e47   :  { %v12089_v22 = vpop.eup %12088 }
0x1e48   :  { %v4803_v55 = vmul.f32 %v12089_v22, %v4771_v48 }
0x1e49   :  { %v12091_v3 = vpop.eup %12090 }
0x1e4a   :  { %v4807_v5 = vmul.f32 %v12250_v4, %v4803_v55  ;;  %v4802_v9 = vmul.f32 %v12091_v3, %v4770_v19 }
0x1e4c   :  { %v4811_v11 = vadd.f32 %v12251_v27, %v4807_v5  ;;  %v4806_v2 = vmul.f32 %v12250_v4, %v4802_v9  ;;  %v9911_v5 = vld [vmem:[%s14610_s18 + $0x1] ss:$0 sm:$0xff] }
0x1e4e   :  { %v4821_v6 = vsel %vm191_vm1, %v4811_v11, 0.0  ;;  %v4810_v16 = vadd.f32 %v12251_v27, %v4806_v2 }
0x1e4f   :  { %v12093_v21 = vpop.eup %12092  ;;  %4822 = vadd.xlane.f32.xlu1 %v4821_v6 }
0x1e50   :  { %v4818_v33 = vsel %vm191_vm1, %v4810_v16, 0.0  ;;  %v4805_v8 = vmul.f32 %v12093_v21, %v4773_v40 }
0x1e51   :  { %v12095_v17 = vpop.eup %12094  ;;  %4819 = vadd.xlane.f32.xlu0 %v4818_v33 }
0x1e52   :  { %v4809_v35 = vmul.f32 %v12250_v4, %v4805_v8  ;;  %v4804_v23 = vmul.f32 %v12095_v17, %v4772_v1 }
0x1e54   :  { %v4813_v36 = vadd.f32 %v12251_v27, %v4809_v35  ;;  %v4808_v46 = vmul.f32 %v12250_v4, %v4804_v23 }
0x1e56   :  { %v4827_v39 = vsel %vm191_vm1, %v4813_v36, 0.0  ;;  %v4812_v24 = vadd.f32 %v12251_v27, %v4808_v46 }
0x1e57   :  { %4828 = vadd.xlane.f32.xlu1 %v4827_v39 }
0x1e58   :  { %v4824_v50 = vsel %vm191_vm1, %v4812_v24, 0.0 }
0x1e59   :  { %4825 = vadd.xlane.f32.xlu0 %v4824_v50 }
0x1ed8   :  { %v4823_v25 = vpop.xlane.xlu1 %4822 }
0x1ed9   :  { %v4831_v13 = vmul.f32 0.03125, %v4823_v25  ;;  %v9939_v25 = vld [vmem:[%s14604_s12 + $0x118] sm:$0xff] }
0x1eda   :  { %v4820_v7 = vpop.xlane.xlu0 %4819 }
0x1edb   :  { %v4835_v12 = vsub.f32 %v4811_v11, %v4831_v13  ;;  %v4830_v54 = vmul.f32 0.03125, %v4820_v7  ;;  %v9920_v7 = vld [vmem:[%s14601_s9 + $0x8] ss:$0 sm:$0xff] }
0x1edd   :  { %v4834_v31 = vsub.f32 %v4810_v16, %v4830_v54  ;;  %v4839_v60 = vmul.f32 %v4835_v12, %v4835_v12  ;;  %v9912_v16 = vld [vmem:[%s14611_s19 + $0x1] ss:$0 sm:$0xff] }
0x1edf   :  { %v4845_v48 = vsel %vm191_vm1, %v4839_v60, 0.0  ;;  %v4838_v20 = vmul.f32 %v4834_v31, %v4834_v31  ;;  %v9938_v60 = vld [vmem:[%s14604_s12 + $0x110] sm:$0xff] }
0x1ee0   :  { %4846 = vadd.xlane.f32.xlu1 %v4845_v48  ;;  %v4829_v19 = vpop.xlane.xlu1 %4828  ;;  %v9937_v48 = vld [vmem:[%s14604_s12 + $0x108] sm:$0xff] }
0x1ee1   :  { %v4833_v18 = vmul.f32 0.03125, %v4829_v19  ;;  %v4842_v52 = vsel %vm191_vm1, %v4838_v20, 0.0  ;;  %v9936_v19 = vld [vmem:[%s14604_s12 + $0x100] sm:$0xff] }
0x1ee2   :  { %4843 = vadd.xlane.f32.xlu0 %v4842_v52  ;;  %v4826_v14 = vpop.xlane.xlu0 %4825 }
0x1ee3   :  { %v4837_v29 = vsub.f32 %v4813_v36, %v4833_v18  ;;  %v4832_v34 = vmul.f32 0.03125, %v4826_v14  ;;  %v9951_v14 = vld [vmem:[%s14600_s8 + $0x138] sm:$0xff] }
0x1ee5   :  { %v4836_v38 = vsub.f32 %v4812_v24, %v4832_v34  ;;  %v4841_v0 = vmul.f32 %v4837_v29, %v4837_v29  ;;  %v9950_v34 = vld [vmem:[%s14600_s8 + $0x130] sm:$0xff] }
0x1ee7   :  { %v4851_v40 = vsel %vm191_vm1, %v4841_v0, 0.0  ;;  %v4840_v57 = vmul.f32 %v4836_v38, %v4836_v38  ;;  %v9948_v0 = vld [vmem:[%s14600_s8 + $0x120] sm:$0xff] }
0x1ee8   :  { %4852 = vadd.xlane.f32.xlu1 %v4851_v40 }
0x1ee9   :  { %v4848_v1 = vsel %vm191_vm1, %v4840_v57, 0.0 }
0x1eea   :  { %4849 = vadd.xlane.f32.xlu0 %v4848_v1  ;;  %v13635_v1 = vld [vmem:[%s14631_s2] sm:$0xff] }
0x1f00   :  { %5015 = vperm.xlu0 %11938, %v9926_v63  }
0x1f69   :  { %v4847_v53 = vpop.xlane.xlu1 %4846 }
0x1f6a   :  { %v4855_v56 = vmul.f32 0.03125, %v4847_v53  ;;  %v13649_v53 = vld [vmem:[%s14631_s2 + $0x10] sm:$0xff] }
0x1f6b   :  { %v4844_v58 = vpop.xlane.xlu0 %4843 }
0x1f6c   :  { %v4859_v59 = vadd.f32 1e-05, %v4855_v56  ;;  %v4854_v61 = vmul.f32 0.03125, %v4844_v58 }
0x1f6e   :  { %12096 = vrsqrt.f32 %v4859_v59  ;;  %v4858_v49 = vadd.f32 1e-05, %v4854_v61  ;;  %v13655_v59 = vld [vmem:[%s14631_s2 + $0x18] sm:$0xff] }
0x1f70   :  { %12098 = vrsqrt.f32 %v4858_v49 }
0x1f71   :  { %v4853_v10 = vpop.xlane.xlu1 %4852 }
0x1f72   :  { %v4857_v26 = vmul.f32 0.03125, %v4853_v10 }
0x1f73   :  { %v4850_v62 = vpop.xlane.xlu0 %4849 }
0x1f74   :  { %v4861_v42 = vadd.f32 1e-05, %v4857_v26  ;;  %v4856_v22 = vmul.f32 0.03125, %v4850_v62 }
0x1f76   :  { %12100 = vrsqrt.f32 %v4861_v42  ;;  %v4860_v55 = vadd.f32 1e-05, %v4856_v22  ;;  %v13663_v22 = vld [vmem:[%s14601_s9 + $0x9] ss:$0 sm:$0xff] }
0x1f78   :  { %12102 = vrsqrt.f32 %v4860_v55 }
0x1f7b   :  { %v12097_v3 = vpop.eup %12096  ;;  %v5016_v4 = vpop.permute.xlu0 %5015 }
0x1f7c   :  { %v4867_v9 = vmul.f32 %v12097_v3, %v4835_v12  ;;  %v5088_v27 = vadd.f32 %v5087_v28, %v5016_v4 }
0x1f7d   :  { %v12099_v11 = vpop.eup %12098 }
0x1f7e   :  { %11417 = vmatprep.subr.mxu1 %v5088_v27  ;;  %v4866_v2 = vmul.f32 %v12099_v11, %v4834_v31  ;;  %v4877_v6 = vmul.f32 %v9911_v5, %v4867_v9 }
0x1f80   :  { %v4876_v21 = vmul.f32 %v9911_v5, %v4866_v2  ;;  %v13571_v17 = vadd.f32 %v9912_v16, %v4877_v6 }
0x1f82   :  { %v13569_v33 = vadd.f32 %v9912_v16, %v4876_v21 }
0x1f83   :  { %v12101_v8 = vpop.eup %12100 }
0x1f84   :  { %11400 = vmatprep.mubr.msk.f32.mxu1 %vm191_vm1, %v13569_v33  ;;  %v4869_v35 = vmul.f32 %v12101_v8, %v4837_v29 }
0x1f85   :  { %v12103_v23 = vpop.eup %12102  ;;  %11401 = vmatmul.mubr.msk.f32.vlgmr.msra.gmra.mxu1 %vm191_vm1, %v13571_v17 }
0x1f86   :  { %11418 = vmatpush3.msra.mxu1 %v5088_v27  ;;  %v4868_v36 = vmul.f32 %v12103_v23, %v4836_v38  ;;  %v4879_v46 = vmul.f32 %v9911_v5, %v4869_v35  ;;  %v9949_v38 = vld [vmem:[%s14600_s8 + $0x128] sm:$0xff] }
0x1f87   :  { %11425 = vmatprep.subr.mxu1 %v9939_v25 }
0x1f88   :  { %v4878_v39 = vmul.f32 %v9911_v5, %v4868_v36  ;;  %v13579_v50 = vadd.f32 %v9912_v16, %v4879_v46 }
0x1f8a   :  { %v13577_v24 = vadd.f32 %v9912_v16, %v4878_v39 }
0x1f8c   :  { %11403 = vmatprep.mubr.msk.f32.mxu1 %vm191_vm1, %v13577_v24 }
0x1f8d   :  { %11404 = vmatmul.mubr.msk.f32.gmra.mxu1 %vm191_vm1, %v13579_v50 }
0x2045   :  { %v11402_v13 = vpop.f32.mrf.mxu1 }
0x2046   :  { %v4996_v31 = vadd.f32 %v11402_v13, %v9920_v7 }
0x2047   :  { %v4990_v12 = vpop.f32.mrf.mxu1 }
0x2048   :  { %v4991_v54 = vadd.f32 %v9920_v7, %v4990_v12 }
0x204a   :  { %11419 = vmatprep.mubr.msk.f32.mxu1 %vm521_vm3, %v4991_v54 }
0x204b   :  { %11420 = vmatmul.mubr.msk.f32.vlgmr.msra.gmra.mxu1 %vm521_vm3, %v4996_v31 }
0x204c   :  { %11426 = vmatpush3.msra.mxu1 %v9939_v25 }
0x204d   :  { %v11405_v20 = vpop.f32.mrf.mxu1  ;;  %11427 = vmatprep.subr.mxu1 %v9938_v60 }
0x204e   :  { %11428 = vmatpush3.msra.mxu1 %v9938_v60  ;;  %v5006_v29 = vadd.f32 %v11405_v20, %v9920_v7 }
0x204f   :  { %v5000_v18 = vpop.f32.mrf.mxu1  ;;  %11429 = vmatprep.subr.mxu1 %v9937_v48 }
0x2050   :  { %v5001_v52 = vadd.f32 %v9920_v7, %v5000_v18  ;;  %11430 = vmatpush3.msra.mxu1 %v9937_v48  ;;  %v9959_v48 = vld [vmem:[%s14603_s11 + $0x48] sm:$0xff] }
0x2051   :  { %11431 = vmatprep.subr.mxu1 %v9936_v19 }
0x2052   :  { %11422 = vmatprep.mubr.msk.f32.mxu1 %vm521_vm3, %v5001_v52  ;;  %11432 = vmatpush3.msra.mxu1 %v9936_v19 }
0x2053   :  { %11423 = vmatmul.mubr.msk.f32.gmra.mxu1 %vm521_vm3, %v5006_v29  ;;  %11453 = vmatprep.subr.mxu1 %v9951_v14 }
0x2054   :  { %11433 = vmatprep.mubr.msk.f32.mxu1 %vm191_vm1, %v12555_v47 }
0x2057   :  { %11434 = vmatmul.mubr.msk.f32.vlgmr.msra.gmra.mxu1 %vm191_vm1, %v12550_v45 }
0x2058   :  { %11436 = vmatprep.mubr.msk.f32.mxu1 %vm191_vm1, %v12544_v43  ;;  %11454 = vmatpush3.msra.mxu1 %v9951_v14 }
0x2059   :  { %11455 = vmatprep.subr.mxu1 %v9950_v34 }
0x205a   :  { %11456 = vmatpush3.msra.mxu1 %v9950_v34 }
0x205b   :  { %11437 = vmatmul.mubr.msk.f32.gmra.mxu1 %vm191_vm1, %v12537_v37  ;;  %11457 = vmatprep.subr.mxu1 %v9949_v38 }
0x205c   :  { %11458 = vmatpush3.msra.mxu1 %v9949_v38  ;;  %11461 = vmatprep.mubr.msk.f32.mxu1 %vm191_vm1, %v13569_v33 }
0x205d   :  { %11459 = vmatprep.subr.mxu1 %v9948_v0 }
0x205e   :  { %11460 = vmatpush3.msra.mxu1 %v9948_v0 }
0x205f   :  { %11462 = vmatmul.mubr.msk.f32.vlgmr.msra.gmra.mxu1 %vm191_vm1, %v13571_v17 }
0x2060   :  { %11464 = vmatprep.mubr.msk.f32.mxu1 %vm191_vm1, %v13577_v24 }
0x2063   :  { %11465 = vmatmul.mubr.msk.f32.gmra.mxu1 %vm191_vm1, %v13579_v50 }
0x210b   :  { %v11421_v40 = vpop.f32.mrf.mxu1 }
0x210c   :  { %v5175_v32 = vadd.f32 %v13641_v44, %v11421_v40 }
0x210d   :  { %v5169_v57 = vpop.f32.mrf.mxu1 }
0x210e   :  { %v5170_v41 = vadd.f32 %v13635_v1, %v5169_v57  ;;  %v5191_v63 = vsel %vm191_vm1, %v5175_v32, -inf }
0x2110   :  { %v5188_v28 = vsel %vm191_vm1, %v5170_v41, -inf }
0x2111   :  { %5189 = vmax.xlane.f32.xlu1 %v5188_v28 }
0x2113   :  { %v11424_v30 = vpop.f32.mrf.mxu1 }
0x2114   :  { %v5185_v61 = vadd.f32 %v13655_v59, %v11424_v30 }
0x2115   :  { %v5179_v51 = vpop.f32.mrf.mxu1  ;;  %5192 = vmax.xlane.f32.xlu1 %v5191_v63 }
0x2116   :  { %v5180_v56 = vadd.f32 %v13649_v53, %v5179_v51  ;;  %v5197_v62 = vsel %vm191_vm1, %v5185_v61, -inf }
0x2117   :  { %v11435_v58 = vpop.f32.mrf.mxu1 }
0x2118   :  { %v5194_v49 = vsel %vm191_vm1, %v5180_v56, -inf }
0x2119   :  { %v5303_v10 = vpop.f32.mrf.mxu1  ;;  %5195 = vmax.xlane.f32.xlu1 %v5194_v49 }
0x211b   :  { %v11438_v26 = vpop.f32.mrf.mxu1 }
0x211c   :  { %11439 = vmatprep.subr.mxu0 %v11438_v26 }
0x211d   :  { %v5313_v42 = vpop.f32.mrf.mxu1  ;;  %11440 = vmatpush3.msra.mxu0 %v11438_v26  ;;  %5198 = vmax.xlane.f32.xlu1 %v5197_v62  ;;  %v9972_v62 = vld [vmem:[%s14604_s12 + $0x138] sm:$0xff] }
0x211e   :  { %11441 = vmatprep.subr.mxu0 %v5313_v42 }
0x211f   :  { %11442 = vmatpush3.msra.mxu0 %v5313_v42  ;;  %v11463_v55 = vpop.f32.mrf.mxu1 }
0x2120   :  { %v13666_v3 = vadd.f32 %v11463_v55, %v13663_v22  ;;  %11443 = vmatprep.subr.mxu0 %v11435_v58  ;;  %v9971_v55 = vld [vmem:[%s14604_s12 + $0x130] sm:$0xff] }
0x2121   :  { %11444 = vmatpush3.msra.mxu0 %v11435_v58  ;;  %v5502_v4 = vpop.f32.mrf.mxu1 }
0x2122   :  { %v5503_v5 = vadd.f32 %v13663_v22, %v5502_v4  ;;  %11445 = vmatprep.subr.mxu0 %v5303_v10  ;;  %v9970_v4 = vld [vmem:[%s14604_s12 + $0x128] sm:$0xff] }
0x2123   :  { %11446 = vmatpush3.msra.mxu0 %v5303_v10  ;;  %v11466_v51 = vpop.f32.mrf.mxu1 }
0x2124   :  { %11480 = vmatprep.mubr.msk.f32.mxu1 %vm521_vm3, %v5503_v5  ;;  %11467 = vmatprep.subr.mxu0 %v12286_v15  ;;  %v5518_v5 = vadd.f32 %v11466_v51, %v13663_v22 }
0x2125   :  { %v5512_v49 = vpop.f32.mrf.mxu1 }
0x2126   :  { %v5513_v42 = vadd.f32 %v13663_v22, %v5512_v49  ;;  %v9983_v22 = vld [vmem:[%s14600_s8 + $0x150] sm:$0xff] }
0x219a   :  { %v5190_v9 = vpop.xlane.xlu1 %5189 }
0x219b   :  { %v5200_v27 = vsub.f32 %v5170_v41, %v5190_v9  ;;  %v9969_v9 = vld [vmem:[%s14604_s12 + $0x120] sm:$0xff] }
0x219d   :  { %v5204_v11 = vmul.f32 1.442695, %v5200_v27  ;;  %v9982_v27 = vld [vmem:[%s14600_s8 + $0x148] sm:$0xff] }
0x219e   :  { %v5193_v2 = vpop.xlane.xlu1 %5192 }
0x219f   :  { %12104 = vpow2.f32 %v5204_v11  ;;  %v5201_v6 = vsub.f32 %v5175_v32, %v5193_v2  ;;  %v9958_v32 = vld [vmem:[%s14602_s10 + $0x48] sm:$0xff]  ;;  %v9981_v11 = vld [vmem:[%s14600_s8 + $0x140] sm:$0xff] }
0x21a1   :  { %v5206_v16 = vmul.f32 1.442695, %v5201_v6 }
0x21a2   :  { %v5196_v21 = vpop.xlane.xlu1 %5195 }
0x21a3   :  { %12106 = vpow2.f32 %v5206_v16  ;;  %v5202_v8 = vsub.f32 %v5180_v56, %v5196_v21 }
0x21a5   :  { %v5208_v35 = vmul.f32 1.442695, %v5202_v8 }
0x21a6   :  { %v5199_v23 = vpop.xlane.xlu1 %5198 }
0x21a7   :  { %12108 = vpow2.f32 %v5208_v35  ;;  %v5203_v36 = vsub.f32 %v5185_v61, %v5199_v23 }
0x21a9   :  { %v5210_v46 = vmul.f32 1.442695, %v5203_v36 }
0x21ab   :  { %12110 = vpow2.f32 %v5210_v46 }
0x21ac   :  { %v12105_v39 = vpop.eup %12104 }
0x21ad   :  { %v5212_v25 = vsel %vm191_vm1, %v12105_v39, 0.0 }
0x21ae   :  { %5213 = vadd.xlane.f32.xlu1 %v5212_v25 }
0x21b0   :  { %v12107_v13 = vpop.eup %12106 }
0x21b1   :  { %v5215_v7 = vsel %vm191_vm1, %v12107_v13, 0.0 }
0x21b2   :  { %5216 = vadd.xlane.f32.xlu0 %v5215_v7 }
0x21b4   :  { %v12109_v12 = vpop.eup %12108 }
0x21b5   :  { %v5218_v54 = vsel %vm191_vm1, %v12109_v12, 0.0 }
0x21b6   :  { %5219 = vadd.xlane.f32.xlu1 %v5218_v54 }
0x21b8   :  { %v12111_v31 = vpop.eup %12110 }
0x21b9   :  { %v5221_v60 = vsel %vm191_vm1, %v12111_v31, 0.0 }
0x21ba   :  { %5222 = vadd.xlane.f32.xlu1 %v5221_v60  ;;  %v13764_v60 = vld [vmem:[%s14601_s9 + $0xa] ss:$0 sm:$0xff] }
0x21cb   :  { %5527 = vperm.xlu1 %11939, %v9959_v48  }
0x2237   :  { %v5214_v20 = vpop.xlane.xlu1 %5213 }
0x2238   :  { %12112 = vrcp.f32 %v5214_v20 }
0x223b   :  { %v5217_v19 = vpop.xlane.xlu0 %5216 }
0x223c   :  { %12114 = vrcp.f32 %v5217_v19 }
0x223f   :  { %v5220_v18 = vpop.xlane.xlu1 %5219 }
0x2240   :  { %12116 = vrcp.f32 %v5220_v18 }
0x2243   :  { %v5223_v52 = vpop.xlane.xlu1 %5222 }
0x2244   :  { %12118 = vrcp.f32 %v5223_v52 }
0x2245   :  { %v12113_v14 = vpop.eup %12112 }
0x2246   :  { %v5228_v29 = vmul.f32 %v12113_v14, %v12105_v39 }
0x2247   :  { %v5528_v58 = vpop.permute.xlu1 %5527 }
0x2248   :  { %11447 = vmatprep.mubr.msk.f32.mxu0 %vm191_vm1, %v5228_v29 }
0x2249   :  { %v12115_v34 = vpop.eup %12114 }
0x224a   :  { %v5229_v38 = vmul.f32 %v12115_v34, %v12107_v13 }
0x224c   :  { %11448 = vmatmul.mubr.msk.f32.vlgmr.msra.gmra.mxu0 %vm191_vm1, %v5229_v38 }
0x224d   :  { %v12117_v0 = vpop.eup %12116  ;;  %11468 = vmatpush3.xpose.msk.msra.mxu0 %vm191_vm1, %v12537_v37 }
0x224e   :  { %11469 = vmatprep.subr.mxu0 %v12286_v15  ;;  %v5230_v40 = vmul.f32 %v12117_v0, %v12109_v12 }
0x2250   :  { %11450 = vmatprep.mubr.msk.f32.mxu0 %vm191_vm1, %v5230_v40 }
0x2251   :  { %v12119_v57 = vpop.eup %12118  ;;  %11470 = vmatpush3.xpose.msk.msra.mxu0 %vm191_vm1, %v12544_v43 }
0x2252   :  { %11471 = vmatprep.subr.mxu0 %v12286_v15  ;;  %v5231_v41 = vmul.f32 %v12119_v57, %v12111_v31 }
0x2254   :  { %11451 = vmatmul.mubr.msk.f32.gmra.mxu0 %vm191_vm1, %v5231_v41 }
0x2255   :  { %11472 = vmatpush3.xpose.msk.msra.mxu0 %vm191_vm1, %v12550_v45  ;;  %11475 = vmatprep.mubr.msk.f32.mxu0 %vm12287_vm2, %v12286_v15 }
0x2256   :  { %11473 = vmatprep.subr.mxu0 %v12286_v15 }
0x2259   :  { %11474 = vmatpush3.xpose.msk.msra.mxu0 %vm191_vm1, %v12555_v47 }
0x225c   :  { %11476 = vmatmul.mubr.msk.f32.vlgmr.msra.gmra.mxu0 %vm191_vm1, %v9958_v32 }
0x230c   :  { %v13699_v28 = vpop.f32.mrf.mxu0 }
0x230e   :  { %v13701_v30 = vpop.f32.mrf.mxu0 }
0x2314   :  { %v13703_v63 = vpop.f32.mrf.mxu0 }
0x2316   :  { %v13705_v56 = vpop.f32.mrf.mxu0 }
0x231c   :  { %v5599_v61 = vpop.f32.mrf.mxu0 }
0x231d   :  { %v5600_v10 = vadd.f32 %v5599_v61, %v5528_v58 }
0x231e   :  { %v11477_v26 = vpop.f32.mrf.mxu0 }
0x231f   :  { %11478 = vmatprep.subr.mxu1 %v5600_v10 }
0x2320   :  { %11479 = vmatpush3.msra.mxu1 %v5600_v10 }
0x2321   :  { %11481 = vmatmul.mubr.msk.f32.vlgmr.msra.gmra.mxu1 %vm521_vm3, %v13666_v3  ;;  %11486 = vmatprep.subr.mxu1 %v9972_v62  ;;  %v9984_v3 = vld [vmem:[%s14600_s8 + $0x158] sm:$0xff] }
0x2322   :  { %11483 = vmatprep.mubr.msk.f32.mxu1 %vm521_vm3, %v5513_v42  ;;  %11487 = vmatpush3.msra.mxu1 %v9972_v62 }
0x2323   :  { %11488 = vmatprep.subr.mxu1 %v9971_v55 }
0x2324   :  { %11489 = vmatpush3.msra.mxu1 %v9971_v55 }
0x2325   :  { %11484 = vmatmul.mubr.msk.f32.gmra.mxu1 %vm521_vm3, %v5518_v5  ;;  %11490 = vmatprep.subr.mxu1 %v9970_v4  ;;  %v9992_v5 = vld [vmem:[%s14603_s11 + $0x50] sm:$0xff] }
0x2326   :  { %11491 = vmatpush3.msra.mxu1 %v9970_v4  ;;  %11494 = vmatprep.mubr.msk.f32.mxu1 %vm191_vm1, %v12555_v47 }
0x2327   :  { %11492 = vmatprep.subr.mxu1 %v9969_v9 }
0x2328   :  { %11493 = vmatpush3.msra.mxu1 %v9969_v9 }
0x2329   :  { %11495 = vmatmul.mubr.msk.f32.vlgmr.msra.gmra.mxu1 %vm191_vm1, %v12550_v45  ;;  %11514 = vmatprep.subr.mxu1 %v9984_v3 }
0x232a   :  { %11497 = vmatprep.mubr.msk.f32.mxu1 %vm191_vm1, %v12544_v43  ;;  %11515 = vmatpush3.msra.mxu1 %v9984_v3 }
0x232b   :  { %11516 = vmatprep.subr.mxu1 %v9983_v22 }
0x232c   :  { %11517 = vmatpush3.msra.mxu1 %v9983_v22 }
0x232d   :  { %11498 = vmatmul.mubr.msk.f32.gmra.mxu1 %vm191_vm1, %v12537_v37  ;;  %11518 = vmatprep.subr.mxu1 %v9982_v27 }
0x232e   :  { %11519 = vmatpush3.msra.mxu1 %v9982_v27  ;;  %11522 = vmatprep.mubr.msk.f32.mxu1 %vm191_vm1, %v13569_v33 }
0x232f   :  { %11520 = vmatprep.subr.mxu1 %v9981_v11 }
0x2330   :  { %11521 = vmatpush3.msra.mxu1 %v9981_v11 }
0x2331   :  { %11523 = vmatmul.mubr.msk.f32.vlgmr.msra.gmra.mxu1 %vm191_vm1, %v13571_v17 }
0x2332   :  { %11525 = vmatprep.mubr.msk.f32.mxu1 %vm191_vm1, %v13577_v24 }
0x2335   :  { %11526 = vmatmul.mubr.msk.f32.gmra.mxu1 %vm191_vm1, %v13579_v50 }
0x23e1   :  { %v11482_v2 = vpop.f32.mrf.mxu1 }
0x23e2   :  { %v5687_v6 = vadd.f32 %v13641_v44, %v11482_v2 }
0x23e3   :  { %v5681_v16 = vpop.f32.mrf.mxu1 }
0x23e4   :  { %v5682_v21 = vadd.f32 %v13635_v1, %v5681_v16  ;;  %v5703_v8 = vsel %vm191_vm1, %v5687_v6, -inf }
0x23e5   :  { %5704 = vmax.xlane.f32.xlu0 %v5703_v8  ;;  %v11485_v35 = vpop.f32.mrf.mxu1 }
0x23e6   :  { %v5700_v23 = vsel %vm191_vm1, %v5682_v21, -inf  ;;  %v5697_v25 = vadd.f32 %v13655_v59, %v11485_v35 }
0x23e7   :  { %v5691_v36 = vpop.f32.mrf.mxu1  ;;  %5701 = vmax.xlane.f32.xlu1 %v5700_v23 }
0x23e8   :  { %v5692_v46 = vadd.f32 %v13649_v53, %v5691_v36  ;;  %v5709_v54 = vsel %vm191_vm1, %v5697_v25, -inf  ;;  %v9991_v36 = vld [vmem:[%s14602_s10 + $0x50] sm:$0xff] }
0x23e9   :  { %v11496_v39 = vpop.f32.mrf.mxu1 }
0x23ea   :  { %v5706_v13 = vsel %vm191_vm1, %v5692_v46, -inf }
0x23eb   :  { %v5815_v7 = vpop.f32.mrf.mxu1  ;;  %5707 = vmax.xlane.f32.xlu0 %v5706_v13 }
0x23ed   :  { %v11499_v12 = vpop.f32.mrf.mxu1 }
0x23ee   :  { %11500 = vmatprep.subr.mxu0 %v11499_v12 }
0x23ef   :  { %v5825_v31 = vpop.f32.mrf.mxu1  ;;  %11501 = vmatpush3.msra.mxu0 %v11499_v12  ;;  %5710 = vmax.xlane.f32.xlu0 %v5709_v54 }
0x23f0   :  { %11502 = vmatprep.subr.mxu0 %v5825_v31 }
0x23f1   :  { %11503 = vmatpush3.msra.mxu0 %v5825_v31  ;;  %v11524_v48 = vpop.f32.mrf.mxu1 }
0x23f2   :  { %v13767_v20 = vadd.f32 %v11524_v48, %v13764_v60  ;;  %11504 = vmatprep.subr.mxu0 %v11496_v39 }
0x23f3   :  { %11505 = vmatpush3.msra.mxu0 %v11496_v39  ;;  %v6014_v19 = vpop.f32.mrf.mxu1 }
0x23f4   :  { %v6015_v18 = vadd.f32 %v13764_v60, %v6014_v19  ;;  %11506 = vmatprep.subr.mxu0 %v5815_v7 }
0x23f5   :  { %11507 = vmatpush3.msra.mxu0 %v5815_v7 }
0x23f6   :  { %11541 = vmatprep.mubr.msk.f32.mxu1 %vm521_vm3, %v6015_v18  ;;  %11528 = vmatprep.subr.mxu0 %v12286_v15 }
0x246e   :  { %v5705_v52 = vpop.xlane.xlu0 %5704 }
0x246f   :  { %v5713_v14 = vsub.f32 %v5687_v6, %v5705_v52 }
0x2470   :  { %v5702_v29 = vpop.xlane.xlu1 %5701 }
0x2471   :  { %v5712_v34 = vsub.f32 %v5682_v21, %v5702_v29  ;;  %v5718_v38 = vmul.f32 1.442695, %v5713_v14  ;;  %v11527_v29 = vpop.f32.mrf.mxu1 }
0x2473   :  { %v5716_v0 = vmul.f32 1.442695, %v5712_v34 }
0x2474   :  { %v5708_v40 = vpop.xlane.xlu0 %5707 }
0x2475   :  { %12120 = vpow2.f32 %v5716_v0  ;;  %v5714_v57 = vsub.f32 %v5692_v46, %v5708_v40  ;;  %v9914_v46 = vld [vmem:[%s14605_s13 + $0x2] ss:$0 sm:$0xff]  ;;  %v10005_v40 = vld [vmem:[%s14604_s12 + $0x158] sm:$0xff] }
0x2476   :  { %12122 = vpow2.f32 %v5718_v38  ;;  %v5420_v39 = vadd.f32 %v13699_v28, %v9914_v46  ;;  %v5419_v13 = vadd.f32 %v9914_v46, %v13701_v30  ;;  %v5422_v31 = vadd.f32 %v13703_v63, %v9914_v46  ;;  %v6024_v38 = vpop.f32.mrf.mxu1 }
0x2477   :  { %v5720_v41 = vmul.f32 1.442695, %v5714_v57  ;;  %v5421_v19 = vadd.f32 %v9914_v46, %v13705_v56  ;;  %v6025_v63 = vadd.f32 %v13764_v60, %v6024_v38  ;;  %v10004_v56 = vld [vmem:[%s14604_s12 + $0x150] sm:$0xff]  ;;  %v10003_v57 = vld [vmem:[%s14604_s12 + $0x148] sm:$0xff] }
0x2478   :  { %v5711_v32 = vpop.xlane.xlu0 %5710 }
0x2479   :  { %v5715_v51 = vsub.f32 %v5697_v25, %v5711_v32  ;;  %12124 = vpow2.f32 %v5720_v41  ;;  %v6030_v41 = vadd.f32 %v11527_v29, %v13764_v60  ;;  %v10002_v32 = vld [vmem:[%s14604_s12 + $0x140] sm:$0xff]  ;;  %v10016_v60 = vld [vmem:[%s14600_s8 + $0x170] sm:$0xff] }
0x247b   :  { %v5722_v58 = vmul.f32 1.442695, %v5715_v51  ;;  %v10015_v51 = vld [vmem:[%s14600_s8 + $0x168] sm:$0xff] }
0x247d   :  { %12126 = vpow2.f32 %v5722_v58  ;;  %v10014_v58 = vld [vmem:[%s14600_s8 + $0x160] sm:$0xff] }
0x2482   :  { %v12121_v61 = vpop.eup %12120 }
0x2483   :  { %v5724_v49 = vsel %vm191_vm1, %v12121_v61, 0.0  ;;  %v12123_v10 = vpop.eup %12122 }
0x2484   :  { %5725 = vadd.xlane.f32.xlu0 %v5724_v49  ;;  %v5727_v26 = vsel %vm191_vm1, %v12123_v10, 0.0 }
0x2486   :  { %v12125_v62 = vpop.eup %12124 }
0x2487   :  { %v5730_v42 = vsel %vm191_vm1, %v12125_v62, 0.0 }
0x2488   :  { %5728 = vadd.xlane.f32.xlu0 %v5727_v26 }
0x248a   :  { %v12127_v55 = vpop.eup %12126 }
0x248b   :  { %v5733_v4 = vsel %vm191_vm1, %v12127_v55, 0.0 }
0x248c   :  { %5731 = vadd.xlane.f32.xlu0 %v5730_v42 }
0x2490   :  { %5734 = vadd.xlane.f32.xlu0 %v5733_v4 }
0x24a6   :  { %6039 = vperm.xlu0 %11938, %v9992_v5  }
0x250d   :  { %v5726_v9 = vpop.xlane.xlu0 %5725 }
0x250e   :  { %12128 = vrcp.f32 %v5726_v9 }
0x2511   :  { %v5729_v3 = vpop.xlane.xlu0 %5728 }
0x2512   :  { %12130 = vrcp.f32 %v5729_v3 }
0x2515   :  { %v5732_v22 = vpop.xlane.xlu0 %5731 }
0x2516   :  { %12132 = vrcp.f32 %v5732_v22 }
0x2519   :  { %v5735_v27 = vpop.xlane.xlu0 %5734 }
0x251a   :  { %12134 = vrcp.f32 %v5735_v27 }
0x251b   :  { %v12129_v11 = vpop.eup %12128 }
0x251c   :  { %v5740_v2 = vmul.f32 %v12129_v11, %v12121_v61 }
0x251e   :  { %11508 = vmatprep.mubr.msk.f32.mxu0 %vm191_vm1, %v5740_v2 }
0x251f   :  { %v12131_v6 = vpop.eup %12130 }
0x2520   :  { %v5741_v16 = vmul.f32 %v12131_v6, %v12123_v10  ;;  %v13871_v6 = vld [vmem:[%s14601_s9 + $0xb] ss:$0 sm:$0xff] }
0x2521   :  { %v6040_v28 = vpop.permute.xlu0 %6039 }
0x2522   :  { %11509 = vmatmul.mubr.msk.f32.vlgmr.msra.gmra.mxu0 %vm191_vm1, %v5741_v16 }
0x2523   :  { %v12133_v21 = vpop.eup %12132  ;;  %11529 = vmatpush3.xpose.msk.msra.mxu0 %vm191_vm1, %v12537_v37 }
0x2524   :  { %11530 = vmatprep.subr.mxu0 %v12286_v15  ;;  %v5742_v8 = vmul.f32 %v12133_v21, %v12125_v62 }
0x2526   :  { %11511 = vmatprep.mubr.msk.f32.mxu0 %vm191_vm1, %v5742_v8 }
0x2527   :  { %v12135_v35 = vpop.eup %12134  ;;  %11531 = vmatpush3.xpose.msk.msra.mxu0 %vm191_vm1, %v12544_v43 }
0x2528   :  { %11532 = vmatprep.subr.mxu0 %v12286_v15  ;;  %v5743_v23 = vmul.f32 %v12135_v35, %v12127_v55 }
0x252a   :  { %11512 = vmatmul.mubr.msk.f32.gmra.mxu0 %vm191_vm1, %v5743_v23 }
0x252b   :  { %11533 = vmatpush3.xpose.msk.msra.mxu0 %vm191_vm1, %v12550_v45  ;;  %11536 = vmatprep.mubr.msk.f32.mxu0 %vm12287_vm2, %v12286_v15 }
0x252c   :  { %11534 = vmatprep.subr.mxu0 %v12286_v15 }
0x252f   :  { %11535 = vmatpush3.xpose.msk.msra.mxu0 %vm191_vm1, %v12555_v47 }
0x2532   :  { %11537 = vmatmul.mubr.msk.f32.vlgmr.msra.gmra.mxu0 %vm191_vm1, %v9991_v36 }
0x25e2   :  { %v11510_v25 = vpop.f32.mrf.mxu0 }
0x25e3   :  { %v13805_v7 = vadd.f32 %v11510_v25, %v5420_v39 }
0x25e4   :  { %v5912_v12 = vpop.f32.mrf.mxu0 }
0x25e5   :  { %v13807_v54 = vadd.f32 %v5912_v12, %v5419_v13 }
0x25ea   :  { %v11513_v48 = vpop.f32.mrf.mxu0 }
0x25eb   :  { %v13811_v18 = vadd.f32 %v11513_v48, %v5422_v31 }
0x25ec   :  { %v5922_v52 = vpop.f32.mrf.mxu0 }
0x25ed   :  { %v13813_v14 = vadd.f32 %v5922_v52, %v5421_v19 }
0x25f2   :  { %v6111_v34 = vpop.f32.mrf.mxu0 }
0x25f3   :  { %v6112_v30 = vadd.f32 %v6111_v34, %v6040_v28 }
0x25f4   :  { %v11538_v0 = vpop.f32.mrf.mxu0 }
0x25f5   :  { %11539 = vmatprep.subr.mxu1 %v6112_v30 }
0x25f6   :  { %11540 = vmatpush3.msra.mxu1 %v6112_v30 }
0x25f7   :  { %11542 = vmatmul.mubr.msk.f32.vlgmr.msra.gmra.mxu1 %vm521_vm3, %v13767_v20  ;;  %11547 = vmatprep.subr.mxu1 %v10005_v40  ;;  %v10017_v20 = vld [vmem:[%s14600_s8 + $0x178] sm:$0xff] }
0x25f8   :  { %11544 = vmatprep.mubr.msk.f32.mxu1 %vm521_vm3, %v6025_v63  ;;  %11548 = vmatpush3.msra.mxu1 %v10005_v40 }
0x25f9   :  { %11549 = vmatprep.subr.mxu1 %v10004_v56 }
0x25fa   :  { %11550 = vmatpush3.msra.mxu1 %v10004_v56 }
0x25fb   :  { %11545 = vmatmul.mubr.msk.f32.gmra.mxu1 %vm521_vm3, %v6030_v41  ;;  %11551 = vmatprep.subr.mxu1 %v10003_v57  ;;  %v10025_v41 = vld [vmem:[%s14603_s11 + $0x58] sm:$0xff] }
0x25fc   :  { %11552 = vmatpush3.msra.mxu1 %v10003_v57  ;;  %11555 = vmatprep.mubr.msk.f32.mxu1 %vm191_vm1, %v12555_v47 }
0x25fd   :  { %11553 = vmatprep.subr.mxu1 %v10002_v32 }
0x25fe   :  { %11554 = vmatpush3.msra.mxu1 %v10002_v32 }
0x25ff   :  { %11556 = vmatmul.mubr.msk.f32.vlgmr.msra.gmra.mxu1 %vm191_vm1, %v12550_v45  ;;  %11575 = vmatprep.subr.mxu1 %v10017_v20 }
0x2600   :  { %11558 = vmatprep.mubr.msk.f32.mxu1 %vm191_vm1, %v12544_v43  ;;  %11576 = vmatpush3.msra.mxu1 %v10017_v20 }
0x2601   :  { %11577 = vmatprep.subr.mxu1 %v10016_v60 }
0x2602   :  { %11578 = vmatpush3.msra.mxu1 %v10016_v60 }
0x2603   :  { %11559 = vmatmul.mubr.msk.f32.gmra.mxu1 %vm191_vm1, %v12537_v37  ;;  %11579 = vmatprep.subr.mxu1 %v10015_v51 }
0x2604   :  { %11580 = vmatpush3.msra.mxu1 %v10015_v51  ;;  %11583 = vmatprep.mubr.msk.f32.mxu1 %vm191_vm1, %v13569_v33 }
0x2605   :  { %11581 = vmatprep.subr.mxu1 %v10014_v58 }
0x2606   :  { %11582 = vmatpush3.msra.mxu1 %v10014_v58 }
0x2607   :  { %11584 = vmatmul.mubr.msk.f32.vlgmr.msra.gmra.mxu1 %vm191_vm1, %v13571_v17 }
0x2608   :  { %11586 = vmatprep.mubr.msk.f32.mxu1 %vm191_vm1, %v13577_v24 }
0x260b   :  { %11587 = vmatmul.mubr.msk.f32.gmra.mxu1 %vm191_vm1, %v13579_v50 }
0x26b7   :  { %v11543_v61 = vpop.f32.mrf.mxu1 }
0x26b8   :  { %v6199_v62 = vadd.f32 %v13641_v44, %v11543_v61 }
0x26b9   :  { %v6193_v49 = vpop.f32.mrf.mxu1 }
0x26ba   :  { %v6194_v10 = vadd.f32 %v13635_v1, %v6193_v49  ;;  %v6215_v9 = vsel %vm191_vm1, %v6199_v62, -inf }
0x26bb   :  { %v11546_v26 = vpop.f32.mrf.mxu1 }
0x26bc   :  { %v6212_v42 = vsel %vm191_vm1, %v6194_v10, -inf  ;;  %v6209_v27 = vadd.f32 %v13655_v59, %v11546_v26 }
0x26bd   :  { %v6203_v55 = vpop.f32.mrf.mxu1  ;;  %6213 = vmax.xlane.f32.xlu1 %v6212_v42 }
0x26be   :  { %v6204_v5 = vadd.f32 %v13649_v53, %v6203_v55  ;;  %v6221_v8 = vsel %vm191_vm1, %v6209_v27, -inf }
0x26bf   :  { %v11557_v4 = vpop.f32.mrf.mxu1 }
0x26c0   :  { %v6218_v11 = vsel %vm191_vm1, %v6204_v5, -inf }
0x26c1   :  { %v6327_v3 = vpop.f32.mrf.mxu1  ;;  %6216 = vmax.xlane.f32.xlu1 %v6215_v9 }
0x26c3   :  { %v11560_v22 = vpop.f32.mrf.mxu1 }
0x26c4   :  { %11561 = vmatprep.subr.mxu0 %v11560_v22 }
0x26c5   :  { %v6337_v2 = vpop.f32.mrf.mxu1  ;;  %11562 = vmatpush3.msra.mxu0 %v11560_v22  ;;  %6219 = vmax.xlane.f32.xlu1 %v6218_v11 }
0x26c6   :  { %11563 = vmatprep.subr.mxu0 %v6337_v2 }
0x26c7   :  { %11564 = vmatpush3.msra.mxu0 %v6337_v2  ;;  %v11585_v16 = vpop.f32.mrf.mxu1 }
0x26c8   :  { %v13874_v21 = vadd.f32 %v11585_v16, %v13871_v6  ;;  %11565 = vmatprep.subr.mxu0 %v11557_v4 }
0x26c9   :  { %11566 = vmatpush3.msra.mxu0 %v11557_v4  ;;  %v6526_v35 = vpop.f32.mrf.mxu1  ;;  %6222 = vmax.xlane.f32.xlu1 %v6221_v8  ;;  %v10024_v4 = vld [vmem:[%s14602_s10 + $0x58] sm:$0xff] }
0x26ca   :  { %v6527_v23 = vadd.f32 %v13871_v6, %v6526_v35  ;;  %11567 = vmatprep.subr.mxu0 %v6327_v3 }
0x26cb   :  { %11568 = vmatpush3.msra.mxu0 %v6327_v3  ;;  %v11588_v8 = vpop.f32.mrf.mxu1 }
0x26cc   :  { %11602 = vmatprep.mubr.msk.f32.mxu1 %vm521_vm3, %v6527_v23  ;;  %11589 = vmatprep.subr.mxu0 %v12286_v15 }
0x2746   :  { %v6214_v36 = vpop.xlane.xlu1 %6213 }
0x2747   :  { %v6224_v46 = vsub.f32 %v6194_v10, %v6214_v36  ;;  %v6536_v36 = vpop.f32.mrf.mxu1 }
0x2749   :  { %v6228_v39 = vmul.f32 1.442695, %v6224_v46 }
0x274a   :  { %v6217_v25 = vpop.xlane.xlu1 %6216 }
0x274b   :  { %12136 = vpow2.f32 %v6228_v39  ;;  %v6225_v13 = vsub.f32 %v6199_v62, %v6217_v25  ;;  %v6542_v25 = vadd.f32 %v11588_v8, %v13871_v6 }
0x274d   :  { %v6230_v12 = vmul.f32 1.442695, %v6225_v13  ;;  %v10035_v13 = vld [vmem:[%s14604_s12 + $0x160] sm:$0xff] }
0x274e   :  { %v6220_v31 = vpop.xlane.xlu1 %6219 }
0x274f   :  { %12138 = vpow2.f32 %v6230_v12  ;;  %v6226_v48 = vsub.f32 %v6204_v5, %v6220_v31 }
0x2751   :  { %v6232_v19 = vmul.f32 1.442695, %v6226_v48 }
0x2752   :  { %v6223_v52 = vpop.xlane.xlu1 %6222 }
0x2753   :  { %12140 = vpow2.f32 %v6232_v19  ;;  %v6227_v29 = vsub.f32 %v6209_v27, %v6223_v52 }
0x2755   :  { %v6234_v28 = vmul.f32 1.442695, %v6227_v29 }
0x2757   :  { %12142 = vpow2.f32 %v6234_v28 }
0x2758   :  { %v12137_v34 = vpop.eup %12136 }
0x2759   :  { %v6236_v38 = vsel %vm191_vm1, %v12137_v34, 0.0 }
0x275a   :  { %6237 = vadd.xlane.f32.xlu1 %v6236_v38 }
0x275c   :  { %v12139_v30 = vpop.eup %12138 }
0x275d   :  { %v6239_v0 = vsel %vm191_vm1, %v12139_v30, 0.0 }
0x275e   :  { %6240 = vadd.xlane.f32.xlu0 %v6239_v0 }
0x2760   :  { %v12141_v40 = vpop.eup %12140 }
0x2761   :  { %v6242_v63 = vsel %vm191_vm1, %v12141_v40, 0.0 }
0x2762   :  { %6243 = vadd.xlane.f32.xlu1 %v6242_v63 }
0x2764   :  { %v12143_v56 = vpop.eup %12142 }
0x2765   :  { %v6245_v57 = vsel %vm191_vm1, %v12143_v56, 0.0 }
0x2766   :  { %6246 = vadd.xlane.f32.xlu1 %v6245_v57 }
0x2777   :  { %6551 = vperm.xlu1 %11939, %v10025_v41  }
0x27e3   :  { %v6238_v32 = vpop.xlane.xlu1 %6237 }
0x27e4   :  { %12144 = vrcp.f32 %v6238_v32 }
0x27e7   :  { %v6241_v20 = vpop.xlane.xlu0 %6240 }
0x27e8   :  { %12146 = vrcp.f32 %v6241_v20 }
0x27eb   :  { %v6244_v60 = vpop.xlane.xlu1 %6243 }
0x27ec   :  { %12148 = vrcp.f32 %v6244_v60 }
0x27ef   :  { %v6247_v51 = vpop.xlane.xlu1 %6246 }
0x27f0   :  { %12150 = vrcp.f32 %v6247_v51 }
0x27f1   :  { %v12145_v58 = vpop.eup %12144 }
0x27f2   :  { %v6252_v61 = vmul.f32 %v12145_v58, %v12137_v34 }
0x27f3   :  { %v6552_v35 = vpop.permute.xlu1 %6551 }
0x27f4   :  { %11569 = vmatprep.mubr.msk.f32.mxu0 %vm191_vm1, %v6252_v61 }
0x27f5   :  { %v12147_v49 = vpop.eup %12146 }
0x27f6   :  { %v6253_v10 = vmul.f32 %v12147_v49, %v12139_v30 }
0x27f8   :  { %11570 = vmatmul.mubr.msk.f32.vlgmr.msra.gmra.mxu0 %vm191_vm1, %v6253_v10 }
0x27f9   :  { %v12149_v26 = vpop.eup %12148  ;;  %11590 = vmatpush3.xpose.msk.msra.mxu0 %vm191_vm1, %v12537_v37 }
0x27fa   :  { %11591 = vmatprep.subr.mxu0 %v12286_v15  ;;  %v6254_v62 = vmul.f32 %v12149_v26, %v12141_v40 }
0x27fc   :  { %11572 = vmatprep.mubr.msk.f32.mxu0 %vm191_vm1, %v6254_v62 }
0x27fd   :  { %v12151_v42 = vpop.eup %12150  ;;  %11592 = vmatpush3.xpose.msk.msra.mxu0 %vm191_vm1, %v12544_v43 }
0x27fe   :  { %11593 = vmatprep.subr.mxu0 %v12286_v15  ;;  %v6255_v55 = vmul.f32 %v12151_v42, %v12143_v56 }
0x2800   :  { %11573 = vmatmul.mubr.msk.f32.gmra.mxu0 %vm191_vm1, %v6255_v55 }
0x2801   :  { %11594 = vmatpush3.xpose.msk.msra.mxu0 %vm191_vm1, %v12550_v45  ;;  %11597 = vmatprep.mubr.msk.f32.mxu0 %vm12287_vm2, %v12286_v15 }
0x2802   :  { %11595 = vmatprep.subr.mxu0 %v12286_v15 }
0x2805   :  { %11596 = vmatpush3.xpose.msk.msra.mxu0 %vm191_vm1, %v12555_v47 }
0x2808   :  { %11598 = vmatmul.mubr.msk.f32.vlgmr.msra.gmra.mxu0 %vm191_vm1, %v10024_v4 }
0x28b8   :  { %v11571_v5 = vpop.f32.mrf.mxu0 }
0x28b9   :  { %v13909_v9 = vadd.f32 %v11571_v5, %v13805_v7  ;;  %v10038_v7 = vld [vmem:[%s14604_s12 + $0x178] sm:$0xff] }
0x28ba   :  { %v6424_v3 = vpop.f32.mrf.mxu0 }
0x28bb   :  { %v13912_v22 = vadd.f32 %v6424_v3, %v13807_v54  ;;  %v6537_v54 = vadd.f32 %v13871_v6, %v6536_v36 }
0x28c0   :  { %v11574_v27 = vpop.f32.mrf.mxu0 }
0x28c1   :  { %v13915_v11 = vadd.f32 %v11574_v27, %v13811_v18  ;;  %v10037_v18 = vld [vmem:[%s14604_s12 + $0x170] sm:$0xff] }
0x28c2   :  { %v6434_v2 = vpop.f32.mrf.mxu0 }
0x28c3   :  { %v13918_v16 = vadd.f32 %v6434_v2, %v13813_v14  ;;  %v10036_v14 = vld [vmem:[%s14604_s12 + $0x168] sm:$0xff] }
0x28c8   :  { %v6623_v23 = vpop.f32.mrf.mxu0 }
0x28c9   :  { %v6624_v46 = vadd.f32 %v6623_v23, %v6552_v35 }
0x28ca   :  { %v11599_v39 = vpop.f32.mrf.mxu0 }
0x28cb   :  { %11600 = vmatprep.subr.mxu1 %v6624_v46 }
0x28cc   :  { %11601 = vmatpush3.msra.mxu1 %v6624_v46 }
0x28cd   :  { %11603 = vmatmul.mubr.msk.f32.vlgmr.msra.gmra.mxu1 %vm521_vm3, %v13874_v21  ;;  %11608 = vmatprep.subr.mxu1 %v10038_v7 }
0x28ce   :  { %11605 = vmatprep.mubr.msk.f32.mxu1 %vm521_vm3, %v6537_v54  ;;  %11609 = vmatpush3.msra.mxu1 %v10038_v7 }
0x28cf   :  { %11610 = vmatprep.subr.mxu1 %v10037_v18 }
0x28d0   :  { %11611 = vmatpush3.msra.mxu1 %v10037_v18 }
0x28d1   :  { %11606 = vmatmul.mubr.msk.f32.gmra.mxu1 %vm521_vm3, %v6542_v25  ;;  %11612 = vmatprep.subr.mxu1 %v10036_v14 }
0x28d2   :  { %11613 = vmatpush3.msra.mxu1 %v10036_v14  ;;  %11616 = vmatprep.mubr.msk.f32.mxu1 %vm191_vm1, %v12555_v47 }
0x28d3   :  { %11614 = vmatprep.subr.mxu1 %v10035_v13 }
0x28d4   :  { %11615 = vmatpush3.msra.mxu1 %v10035_v13 }
0x28d5   :  { %11617 = vmatmul.mubr.msk.f32.vlgmr.msra.gmra.mxu1 %vm191_vm1, %v12550_v45 }
0x28d6   :  { %11619 = vmatprep.mubr.msk.f32.mxu1 %vm191_vm1, %v12544_v43 }
0x28d9   :  { %11620 = vmatmul.mubr.msk.f32.gmra.mxu1 %vm191_vm1, %v12537_v37 }
0x298d   :  { %v11604_v6 = vpop.f32.mrf.mxu1 }
0x298e   :  { %v6711_v21 = vadd.f32 %v13641_v44, %v11604_v6 }
0x298f   :  { %v6705_v12 = vpop.f32.mrf.mxu1 }
0x2990   :  { %v6706_v31 = vadd.f32 %v13635_v1, %v6705_v12  ;;  %v6727_v48 = vsel %vm191_vm1, %v6711_v21, -inf }
0x2991   :  { %6728 = vmax.xlane.f32.xlu0 %v6727_v48  ;;  %v11607_v47 = vpop.f32.mrf.mxu1 }
0x2992   :  { %v6724_v19 = vsel %vm191_vm1, %v6706_v31, -inf  ;;  %v6721_v29 = vadd.f32 %v13655_v59, %v11607_v47 }
0x2993   :  { %v6715_v52 = vpop.f32.mrf.mxu1  ;;  %6725 = vmax.xlane.f32.xlu1 %v6724_v19 }
0x2994   :  { %v6716_v45 = vadd.f32 %v13649_v53, %v6715_v52  ;;  %v6733_v1 = vsel %vm191_vm1, %v6721_v29, -inf }
0x2995   :  { %v11618_v43 = vpop.f32.mrf.mxu1 }
0x2996   :  { %v6730_v37 = vsel %vm191_vm1, %v6716_v45, -inf }
0x2997   :  { %v6839_v28 = vpop.f32.mrf.mxu1  ;;  %6731 = vmax.xlane.f32.xlu0 %v6730_v37 }
0x2999   :  { %v11621_v44 = vpop.f32.mrf.mxu1 }
0x299a   :  { %11622 = vmatprep.subr.mxu0 %v11621_v44 }
0x299b   :  { %v6849_v34 = vpop.f32.mrf.mxu1  ;;  %11623 = vmatpush3.msra.mxu0 %v11621_v44  ;;  %6734 = vmax.xlane.f32.xlu0 %v6733_v1 }
0x299c   :  { %11624 = vmatprep.subr.mxu0 %v6849_v34 }
0x299d   :  { %11625 = vmatpush3.msra.mxu0 %v6849_v34 }
0x299e   :  { %11626 = vmatprep.subr.mxu0 %v11618_v43 }
0x299f   :  { %11627 = vmatpush3.msra.mxu0 %v11618_v43 }
0x29a0   :  { %11628 = vmatprep.subr.mxu0 %v6839_v28 }
0x29a1   :  { %11629 = vmatpush3.msra.mxu0 %v6839_v28 }
0x2a1a   :  { %v6729_v53 = vpop.xlane.xlu0 %6728 }
0x2a1b   :  { %v6737_v38 = vsub.f32 %v6711_v21, %v6729_v53 }
0x2a1c   :  { %v6726_v59 = vpop.xlane.xlu1 %6725 }
0x2a1d   :  { %v6742_v30 = vmul.f32 1.442695, %v6737_v38  ;;  %v6736_v0 = vsub.f32 %v6706_v31, %v6726_v59 }
0x2a1f   :  { %12152 = vpow2.f32 %v6742_v30  ;;  %v6740_v40 = vmul.f32 1.442695, %v6736_v0 }
0x2a20   :  { %v6732_v63 = vpop.xlane.xlu0 %6731 }
0x2a21   :  { %12154 = vpow2.f32 %v6740_v40  ;;  %v6738_v56 = vsub.f32 %v6716_v45, %v6732_v63  ;;  %v10088_v40 = vld [vmem:[%s14603_s11 + $0x60] sm:$0xff]  ;;  %v10050_v63 = vld [vmem:[%s14606_s14 + $0x38] sm:$0xff] }
0x2a22   :  { %11636 = vmatprep.subr.mxu1 %v10050_v63 }
0x2a23   :  { %v6744_v57 = vmul.f32 1.442695, %v6738_v56  ;;  %11637 = vmatpush3.msra.mxu1 %v10050_v63  ;;  %v10049_v56 = vld [vmem:[%s14606_s14 + $0x30] sm:$0xff]  ;;  %v10080_v63 = vld [vmem:[%s14600_s8 + $0x198] sm:$0xff] }
0x2a24   :  { %v6735_v41 = vpop.xlane.xlu0 %6734  ;;  %11638 = vmatprep.subr.mxu1 %v10049_v56 }
0x2a25   :  { %12156 = vpow2.f32 %v6744_v57  ;;  %v6739_v32 = vsub.f32 %v6721_v29, %v6735_v41  ;;  %11639 = vmatpush3.msra.mxu1 %v10049_v56  ;;  %v10048_v57 = vld [vmem:[%s14606_s14 + $0x28] sm:$0xff]  ;;  %v10047_v41 = vld [vmem:[%s14606_s14 + $0x20] sm:$0xff]  ;;  %v10101_v56 = vld [vmem:[%s14604_s12 + $0x198] sm:$0xff] }
0x2a26   :  { %11640 = vmatprep.subr.mxu1 %v10048_v57 }
0x2a27   :  { %v6746_v20 = vmul.f32 1.442695, %v6739_v32  ;;  %11641 = vmatpush3.msra.mxu1 %v10048_v57  ;;  %v10072_v32 = vld [vmem:[%s14608_s16 + $0xf8] sm:$0xff]  ;;  %v10079_v57 = vld [vmem:[%s14600_s8 + $0x190] sm:$0xff] }
0x2a28   :  { %11642 = vmatprep.subr.mxu1 %v10047_v41  ;;  %11650 = vmatprep.subr.mxu0 %v10072_v32 }
0x2a29   :  { %12158 = vpow2.f32 %v6746_v20  ;;  %11643 = vmatpush3.msra.mxu1 %v10047_v41  ;;  %v10071_v20 = vld [vmem:[%s14608_s16 + $0xf0] sm:$0xff] }
0x2a2a   :  { %11688 = vmatprep.subr.mxu1 %v10080_v63  ;;  %v10100_v41 = vld [vmem:[%s14604_s12 + $0x190] sm:$0xff] }
0x2a2c   :  { %v12153_v60 = vpop.eup %12152 }
0x2a2d   :  { %v6751_v51 = vsel %vm191_vm1, %v12153_v60, 0.0 }
0x2a2e   :  { %v12155_v58 = vpop.eup %12154  ;;  %6752 = vadd.xlane.f32.xlu0 %v6751_v51  ;;  %v10069_v51 = vld [vmem:[%s14608_s16 + $0xe0] sm:$0xff] }
0x2a2f   :  { %v6748_v61 = vsel %vm191_vm1, %v12155_v58, 0.0 }
0x2a32   :  { %v12157_v49 = vpop.eup %12156  ;;  %6749 = vadd.xlane.f32.xlu0 %v6748_v61  ;;  %v10067_v61 = vld [vmem:[%s14608_s16 + $0xd0] sm:$0xff] }
0x2a33   :  { %v6754_v10 = vsel %vm191_vm1, %v12157_v49, 0.0 }
0x2a36   :  { %v12159_v26 = vpop.eup %12158  ;;  %6755 = vadd.xlane.f32.xlu0 %v6754_v10  ;;  %v10065_v10 = vld [vmem:[%s14608_s16 + $0xc0] sm:$0xff] }
0x2a37   :  { %v6757_v62 = vsel %vm191_vm1, %v12159_v26, 0.0 }
0x2a3a   :  { %6758 = vadd.xlane.f32.xlu0 %v6757_v62  ;;  %v10063_v62 = vld [vmem:[%s14608_s16 + $0xb0] sm:$0xff] }
0x2ab7   :  { %v6753_v42 = vpop.xlane.xlu0 %6752 }
0x2ab8   :  { %12160 = vrcp.f32 %v6753_v42  ;;  %v10062_v42 = vld [vmem:[%s14608_s16 + $0xa8] sm:$0xff] }
0x2abb   :  { %v6750_v55 = vpop.xlane.xlu0 %6749 }
0x2abc   :  { %12162 = vrcp.f32 %v6750_v55  ;;  %v10061_v55 = vld [vmem:[%s14608_s16 + $0xa0] sm:$0xff] }
0x2abf   :  { %v6756_v4 = vpop.xlane.xlu0 %6755 }
0x2ac0   :  { %12164 = vrcp.f32 %v6756_v4 }
0x2ac3   :  { %v6759_v5 = vpop.xlane.xlu0 %6758 }
0x2ac4   :  { %12166 = vrcp.f32 %v6759_v5 }
0x2ac5   :  { %v12161_v3 = vpop.eup %12160 }
0x2ac6   :  { %v6765_v8 = vmul.f32 %v12161_v3, %v12153_v60  ;;  %v10070_v60 = vld [vmem:[%s14608_s16 + $0xe8] sm:$0xff] }
0x2ac9   :  { %v12163_v27 = vpop.eup %12162 }
0x2aca   :  { %v6764_v2 = vmul.f32 %v12163_v27, %v12155_v58  ;;  %v10068_v58 = vld [vmem:[%s14608_s16 + $0xd8] sm:$0xff] }
0x2acc   :  { %11630 = vmatprep.mubr.msk.f32.mxu0 %vm191_vm1, %v6764_v2 }
0x2acd   :  { %v12165_v35 = vpop.eup %12164  ;;  %11631 = vmatmul.mubr.msk.f32.vlgmr.msra.gmra.mxu0 %vm191_vm1, %v6765_v8 }
0x2ace   :  { %v6766_v23 = vmul.f32 %v12165_v35, %v12157_v49  ;;  %11651 = vmatpush3.msra.mxu0 %v10072_v32  ;;  %v10066_v49 = vld [vmem:[%s14608_s16 + $0xc8] sm:$0xff] }
0x2acf   :  { %11652 = vmatprep.subr.mxu0 %v10071_v20  ;;  %v10078_v32 = vld [vmem:[%s14600_s8 + $0x188] sm:$0xff] }
0x2ad0   :  { %11633 = vmatprep.mubr.msk.f32.mxu0 %vm191_vm1, %v6766_v23  ;;  %11653 = vmatpush3.msra.mxu0 %v10071_v20  ;;  %v10099_v20 = vld [vmem:[%s14604_s12 + $0x188] sm:$0xff] }
0x2ad1   :  { %v12167_v36 = vpop.eup %12166  ;;  %11654 = vmatprep.subr.mxu0 %v10070_v60 }
0x2ad2   :  { %v6767_v46 = vmul.f32 %v12167_v36, %v12159_v26  ;;  %11655 = vmatpush3.msra.mxu0 %v10070_v60  ;;  %v10064_v26 = vld [vmem:[%s14608_s16 + $0xb8] sm:$0xff]  ;;  %v10077_v60 = vld [vmem:[%s14600_s8 + $0x180] sm:$0xff] }
0x2ad3   :  { %11656 = vmatprep.subr.mxu0 %v10069_v51 }
0x2ad4   :  { %11634 = vmatmul.mubr.msk.f32.gmra.mxu0 %vm191_vm1, %v6767_v46 }
0x2ad5   :  { %11657 = vmatpush3.msra.mxu0 %v10069_v51  ;;  %v10098_v51 = vld [vmem:[%s14604_s12 + $0x180] sm:$0xff] }
0x2ad6   :  { %11658 = vmatprep.subr.mxu0 %v10068_v58 }
0x2ad7   :  { %11659 = vmatpush3.msra.mxu0 %v10068_v58  ;;  %v10113_v58 = vld [vmem:[%s14600_s8 + $0x1b8] sm:$0xff] }
0x2ad8   :  { %11660 = vmatprep.subr.mxu0 %v10067_v61 }
0x2ad9   :  { %11661 = vmatpush3.msra.mxu0 %v10067_v61 }
0x2ada   :  { %11662 = vmatprep.subr.mxu0 %v10066_v49 }
0x2adb   :  { %11663 = vmatpush3.msra.mxu0 %v10066_v49 }
0x2adc   :  { %11664 = vmatprep.subr.mxu0 %v10065_v10 }
0x2add   :  { %11665 = vmatpush3.msra.mxu0 %v10065_v10 }
0x2ade   :  { %11666 = vmatprep.subr.mxu0 %v10064_v26 }
0x2adf   :  { %11667 = vmatpush3.msra.mxu0 %v10064_v26  ;;  %v10074_v26 = vld [vmem:[%s14609_s17 + $0x1] ss:$0 sm:$0xff] }
0x2ae0   :  { %11668 = vmatprep.subr.mxu0 %v10063_v62 }
0x2ae1   :  { %11669 = vmatpush3.msra.mxu0 %v10063_v62 }
0x2ae2   :  { %11670 = vmatprep.subr.mxu0 %v10062_v42 }
0x2ae3   :  { %11671 = vmatpush3.msra.mxu0 %v10062_v42 }
0x2ae4   :  { %11672 = vmatprep.subr.mxu0 %v10061_v55 }
0x2ae5   :  { %11673 = vmatpush3.msra.mxu0 %v10061_v55 }
0x2b8d   :  { %v11632_v39 = vpop.f32.mrf.mxu0 }
0x2b8e   :  { %v6956_v7 = vadd.f32 %v11632_v39, %v13909_v9 }
0x2b8f   :  { %v6936_v54 = vpop.f32.mrf.mxu0 }
0x2b90   :  { %v6960_v18 = vadd.f32 %v6956_v7, %v13571_v17  ;;  %v6955_v14 = vadd.f32 %v6936_v54, %v13912_v22 }
0x2b92   :  { %v6959_v25 = vadd.f32 %v6955_v14, %v13569_v33  ;;  %v6966_v13 = vsel %vm191_vm1, %v6960_v18, 0.0 }
0x2b93   :  { %6967 = vadd.xlane.f32.xlu1 %v6966_v13  ;;  %v12256_v13 = vld [vmem:[%s14610_s18 + $0x1] ss:$0 sm:$0xff] }
0x2b94   :  { %v11635_v6 = vpop.f32.mrf.mxu0  ;;  %v6963_v21 = vsel %vm191_vm1, %v6959_v25, 0.0 }
0x2b95   :  { %v6958_v12 = vadd.f32 %v11635_v6, %v13915_v11  ;;  %6964 = vadd.xlane.f32.xlu0 %v6963_v21 }
0x2b96   :  { %v6946_v31 = vpop.f32.mrf.mxu0 }
0x2b97   :  { %v6962_v48 = vadd.f32 %v6958_v12, %v13579_v50  ;;  %v6957_v9 = vadd.f32 %v6946_v31, %v13918_v16  ;;  %v12257_v31 = vld [vmem:[%s14611_s19 + $0x1] ss:$0 sm:$0xff] }
0x2b99   :  { %v6961_v17 = vadd.f32 %v6957_v9, %v13577_v24  ;;  %v6972_v22 = vsel %vm191_vm1, %v6962_v48, 0.0 }
0x2b9a   :  { %6973 = vadd.xlane.f32.xlu1 %v6972_v22 }
0x2b9b   :  { %v6969_v33 = vsel %vm191_vm1, %v6961_v17, 0.0 }
0x2b9c   :  { %6970 = vadd.xlane.f32.xlu0 %v6969_v33 }
0x2c1c   :  { %v6968_v47 = vpop.xlane.xlu1 %6967 }
0x2c1d   :  { %v6976_v19 = vmul.f32 0.03125, %v6968_v47 }
0x2c1e   :  { %v6965_v52 = vpop.xlane.xlu0 %6964 }
0x2c1f   :  { %v13974_v45 = vsub.f32 %v6960_v18, %v6976_v19  ;;  %v6975_v11 = vmul.f32 0.03125, %v6965_v52 }
0x2c21   :  { %v13976_v43 = vsub.f32 %v6959_v25, %v6975_v11  ;;  %v6984_v50 = vmul.f32 %v13974_v45, %v13974_v45  ;;  %v10060_v11 = vld [vmem:[%s14608_s16 + $0x98] sm:$0xff] }
0x2c22   :  { %11674 = vmatprep.subr.mxu0 %v10060_v11 }
0x2c23   :  { %v6974_v16 = vpop.xlane.xlu1 %6973  ;;  %v6990_v24 = vsel %vm191_vm1, %v6984_v50, 0.0  ;;  %v6983_v29 = vmul.f32 %v13976_v43, %v13976_v43  ;;  %11675 = vmatpush3.msra.mxu0 %v10060_v11  ;;  %v10058_v50 = vld [vmem:[%s14608_s16 + $0x88] sm:$0xff] }
0x2c24   :  { %v6978_v37 = vmul.f32 0.03125, %v6974_v16  ;;  %6991 = vadd.xlane.f32.xlu1 %v6990_v24  ;;  %v10057_v16 = vld [vmem:[%s14608_s16 + $0x80] sm:$0xff] }
0x2c25   :  { %v6971_v28 = vpop.xlane.xlu0 %6970  ;;  %v6987_v44 = vsel %vm191_vm1, %v6983_v29, 0.0  ;;  %v10052_v24 = vld [vmem:[%s14607_s15 + $0x1] ss:$0 sm:$0xff] }
0x2c26   :  { %v13984_v1 = vsub.f32 %v6962_v48, %v6978_v37  ;;  %v6977_v34 = vmul.f32 0.03125, %v6971_v28  ;;  %6988 = vadd.xlane.f32.xlu0 %v6987_v44 }
0x2c28   :  { %v13986_v53 = vsub.f32 %v6961_v17, %v6977_v34  ;;  %v6986_v38 = vmul.f32 %v13984_v1, %v13984_v1 }
0x2c2a   :  { %v6996_v59 = vsel %vm191_vm1, %v6986_v38, 0.0  ;;  %v6985_v30 = vmul.f32 %v13986_v53, %v13986_v53 }
0x2c2b   :  { %6997 = vadd.xlane.f32.xlu1 %v6996_v59 }
0x2c2c   :  { %v6993_v0 = vsel %vm191_vm1, %v6985_v30, 0.0 }
0x2c2d   :  { %6994 = vadd.xlane.f32.xlu0 %v6993_v0 }
0x2c43   :  { %7380 = vperm.xlu0 %11938, %v10088_v40  }
0x2cad   :  { %v6992_v4 = vpop.xlane.xlu1 %6991 }
0x2cae   :  { %v7000_v5 = vmul.f32 0.03125, %v6992_v4 }
0x2caf   :  { %v6989_v3 = vpop.xlane.xlu0 %6988 }
0x2cb0   :  { %v7004_v27 = vadd.f32 1e-05, %v7000_v5  ;;  %v6999_v2 = vmul.f32 0.03125, %v6989_v3  ;;  %v10112_v5 = vld [vmem:[%s14600_s8 + $0x1b0] sm:$0xff] }
0x2cb2   :  { %12168 = vrsqrt.f32 %v7004_v27  ;;  %v7003_v8 = vadd.f32 1e-05, %v6999_v2  ;;  %v10111_v2 = vld [vmem:[%s14600_s8 + $0x1a8] sm:$0xff] }
0x2cb4   :  { %12170 = vrsqrt.f32 %v7003_v8  ;;  %v6998_v35 = vpop.xlane.xlu1 %6997 }
0x2cb5   :  { %v7002_v23 = vmul.f32 0.03125, %v6998_v35 }
0x2cb6   :  { %v6995_v36 = vpop.xlane.xlu0 %6994 }
0x2cb7   :  { %v7006_v46 = vadd.f32 1e-05, %v7002_v23  ;;  %v7001_v39 = vmul.f32 0.03125, %v6995_v36  ;;  %v10110_v36 = vld [vmem:[%s14600_s8 + $0x1a0] sm:$0xff] }
0x2cb9   :  { %12172 = vrsqrt.f32 %v7006_v46  ;;  %v7005_v7 = vadd.f32 1e-05, %v7001_v39  ;;  %v10087_v46 = vld [vmem:[%s14602_s10 + $0x60] sm:$0xff] }
0x2cbb   :  { %12174 = vrsqrt.f32 %v7005_v7 }
0x2cbf   :  { %v12169_v54 = vpop.eup %12168 }
0x2cc0   :  { %v7012_v18 = vmul.f32 %v12169_v54, %v13974_v45  ;;  %v10082_v54 = vld [vmem:[%s14601_s9 + $0xc] ss:$0 sm:$0xff] }
0x2cc1   :  { %v12171_v14 = vpop.eup %12170 }
0x2cc2   :  { %v7011_v25 = vmul.f32 %v12171_v14, %v13976_v43  ;;  %v7016_v6 = vmul.f32 %v12256_v13, %v7012_v18  ;;  %v10059_v43 = vld [vmem:[%s14608_s16 + $0x90] sm:$0xff] }
0x2cc3   :  { %11676 = vmatprep.subr.mxu0 %v10059_v43 }
0x2cc4   :  { %v7015_v21 = vmul.f32 %v12256_v13, %v7011_v25  ;;  %v14055_v9 = vadd.f32 %v12257_v31, %v7016_v6  ;;  %11677 = vmatpush3.msra.mxu0 %v10059_v43 }
0x2cc5   :  { %11678 = vmatprep.subr.mxu0 %v10058_v50 }
0x2cc6   :  { %v12173_v12 = vpop.eup %12172  ;;  %v14053_v48 = vadd.f32 %v12257_v31, %v7015_v21  ;;  %11679 = vmatpush3.msra.mxu0 %v10058_v50  ;;  %v14186_v21 = vld [vmem:[%s14601_s9 + $0xd] ss:$0 sm:$0xff] }
0x2cc7   :  { %v7014_v17 = vmul.f32 %v12173_v12, %v13984_v1  ;;  %11680 = vmatprep.subr.mxu0 %v10057_v16 }
0x2cc8   :  { %v12175_v22 = vpop.eup %12174  ;;  %11644 = vmatprep.mubr.msk.f32.mxu1 %vm191_vm1, %v14053_v48  ;;  %11681 = vmatpush3.msra.mxu0 %v10057_v16 }
0x2cc9   :  { %11645 = vmatmul.mubr.msk.f32.vlgmr.msra.gmra.mxu1 %vm191_vm1, %v14055_v9  ;;  %v7013_v33 = vmul.f32 %v12175_v22, %v13986_v53  ;;  %v7018_v47 = vmul.f32 %v12256_v13, %v7014_v17  ;;  %11721 = vmatprep.subr.mxu0 %v10101_v56 }
0x2cca   :  { %11689 = vmatpush3.msra.mxu1 %v10080_v63 }
0x2ccb   :  { %v7017_v19 = vmul.f32 %v12256_v13, %v7013_v33  ;;  %v14065_v45 = vadd.f32 %v12257_v31, %v7018_v47  ;;  %11690 = vmatprep.subr.mxu1 %v10079_v57 }
0x2ccc   :  { %11691 = vmatpush3.msra.mxu1 %v10079_v57 }
0x2ccd   :  { %v14063_v52 = vadd.f32 %v12257_v31, %v7017_v19  ;;  %11692 = vmatprep.subr.mxu1 %v10078_v32  ;;  %v7381_v19 = vpop.permute.xlu0 %7380 }
0x2cce   :  { %11693 = vmatpush3.msra.mxu1 %v10078_v32 }
0x2ccf   :  { %11647 = vmatprep.mubr.msk.f32.mxu1 %vm191_vm1, %v14063_v52  ;;  %11694 = vmatprep.subr.mxu1 %v10077_v60 }
0x2cd0   :  { %11648 = vmatmul.mubr.msk.f32.gmra.mxu1 %vm191_vm1, %v14065_v45 }
0x2cd1   :  { %11695 = vmatpush3.msra.mxu1 %v10077_v60 }
0x2cd2   :  { %11702 = vmatprep.subr.mxu1 %v12286_v15 }
0x2d89   :  { %v11646_v29 = vpop.f32.mrf.mxu1 }
0x2d8a   :  { %v7120_v37 = vadd.f32 %v11646_v29, %v10052_v24 }
0x2d8b   :  { %v7114_v28 = vpop.f32.mrf.mxu1 }
0x2d8c   :  { %v7115_v44 = vadd.f32 %v10052_v24, %v7114_v28  ;;  %v7134_v34 = vmax.f32 %v7120_v37, 0.0 }
0x2d8e   :  { %v7133_v1 = vmax.f32 %v7115_v44, 0.0  ;;  %v14200_v44 = vld [vmem:[%s14632_s25] sm:$0xff] }
0x2d90   :  { %v11649_v53 = vpop.f32.mrf.mxu1  ;;  %11682 = vmatprep.mubr.f32.mxu0 %v7133_v1 }
0x2d91   :  { %11683 = vmatmul.mubr.f32.vlgmr.msra.gmra.mxu0 %v7134_v34  ;;  %v7130_v38 = vadd.f32 %v11649_v53, %v10052_v24  ;;  %v14206_v53 = vld [vmem:[%s14632_s25 + $0x8] sm:$0xff] }
0x2d92   :  { %v7124_v59 = vpop.f32.mrf.mxu1  ;;  %11722 = vmatpush3.msra.mxu0 %v10101_v56  ;;  %v14220_v56 = vld [vmem:[%s14632_s25 + $0x18] sm:$0xff] }
0x2d93   :  { %v7125_v30 = vadd.f32 %v10052_v24, %v7124_v59  ;;  %v7136_v40 = vmax.f32 %v7130_v38, 0.0  ;;  %11723 = vmatprep.subr.mxu0 %v10100_v41 }
0x2d94   :  { %11724 = vmatpush3.msra.mxu0 %v10100_v41 }
0x2d95   :  { %v7135_v0 = vmax.f32 %v7125_v30, 0.0  ;;  %11725 = vmatprep.subr.mxu0 %v10099_v20 }
0x2d96   :  { %11726 = vmatpush3.msra.mxu0 %v10099_v20 }
0x2d97   :  { %11685 = vmatprep.mubr.f32.mxu0 %v7135_v0  ;;  %11727 = vmatprep.subr.mxu0 %v10098_v51  ;;  %v14213_v0 = vld [vmem:[%s14632_s25 + $0x10] sm:$0xff] }
0x2d98   :  { %11686 = vmatmul.mubr.f32.gmra.mxu0 %v7136_v40 }
0x2d99   :  { %11728 = vmatpush3.msra.mxu0 %v10098_v51 }
0x2d9a   :  { %11749 = vmatprep.subr.mxu0 %v10113_v58 }
0x2e51   :  { %v11684_v61 = vpop.f32.mrf.mxu0 }
0x2e52   :  { %v7240_v49 = vadd.f32 %v11684_v61, %v14055_v9 }
0x2e53   :  { %v7220_v10 = vpop.f32.mrf.mxu0 }
0x2e54   :  { %v7239_v62 = vadd.f32 %v7220_v10, %v14053_v48  ;;  %v14121_v55 = vadd.f32 %v10074_v26, %v7240_v49 }
0x2e56   :  { %v14119_v42 = vadd.f32 %v10074_v26, %v7239_v62 }
0x2e58   :  { %v11687_v4 = vpop.f32.mrf.mxu0  ;;  %11696 = vmatprep.mubr.msk.f32.mxu1 %vm191_vm1, %v14119_v42  ;;  %11729 = vmatprep.mubr.msk.f32.mxu0 %vm191_vm1, %v14119_v42 }
0x2e59   :  { %v7242_v3 = vadd.f32 %v11687_v4, %v14065_v45  ;;  %11697 = vmatmul.mubr.msk.f32.vlgmr.msra.gmra.mxu1 %vm191_vm1, %v14121_v55  ;;  %11730 = vmatmul.mubr.msk.f32.vlgmr.msra.gmra.mxu0 %vm191_vm1, %v14121_v55 }
0x2e5a   :  { %v7230_v27 = vpop.f32.mrf.mxu0  ;;  %11750 = vmatpush3.msra.mxu0 %v10113_v58 }
0x2e5b   :  { %v14138_v8 = vadd.f32 %v10074_v26, %v7242_v3  ;;  %v7241_v35 = vadd.f32 %v7230_v27, %v14063_v52  ;;  %11751 = vmatprep.subr.mxu0 %v10112_v5 }
0x2e5c   :  { %11752 = vmatpush3.msra.mxu0 %v10112_v5 }
0x2e5d   :  { %v14141_v23 = vadd.f32 %v10074_v26, %v7241_v35  ;;  %11703 = vmatpush3.xpose.msk.msra.mxu1 %vm191_vm1, %v14138_v8  ;;  %11753 = vmatprep.subr.mxu0 %v10111_v2 }
0x2e5e   :  { %11704 = vmatprep.subr.mxu1 %v12286_v15  ;;  %11754 = vmatpush3.msra.mxu0 %v10111_v2 }
0x2e5f   :  { %11699 = vmatprep.mubr.msk.f32.mxu1 %vm191_vm1, %v14141_v23  ;;  %11732 = vmatprep.mubr.msk.f32.mxu0 %vm191_vm1, %v14141_v23 }
0x2e60   :  { %11700 = vmatmul.mubr.msk.f32.gmra.mxu1 %vm191_vm1, %v14138_v8  ;;  %11733 = vmatmul.mubr.msk.f32.gmra.mxu0 %vm191_vm1, %v14138_v8 }
0x2e61   :  { %11705 = vmatpush3.xpose.msk.msra.mxu1 %vm191_vm1, %v14141_v23  ;;  %11757 = vmatprep.mubr.msk.f32.mxu0 %vm191_vm1, %v14119_v42 }
0x2e62   :  { %11755 = vmatprep.subr.mxu0 %v10110_v36  ;;  %11706 = vmatprep.subr.mxu1 %v12286_v15 }
0x2e63   :  { %11756 = vmatpush3.msra.mxu0 %v10110_v36  ;;  %11710 = vmatprep.mubr.msk.f32.mxu1 %vm12287_vm2, %v12286_v15 }
0x2e64   :  { %11758 = vmatmul.mubr.msk.f32.vlgmr.msra.gmra.mxu0 %vm191_vm1, %v14121_v55 }
0x2e65   :  { %11707 = vmatpush3.xpose.msk.msra.mxu1 %vm191_vm1, %v14121_v55  ;;  %11760 = vmatprep.mubr.msk.f32.mxu0 %vm191_vm1, %v14141_v23 }
0x2e66   :  { %11708 = vmatprep.subr.mxu1 %v12286_v15 }
0x2e68   :  { %11761 = vmatmul.mubr.msk.f32.gmra.mxu0 %vm191_vm1, %v14138_v8 }
0x2e69   :  { %11709 = vmatpush3.xpose.msk.msra.mxu1 %vm191_vm1, %v14119_v42 }
0x2e6c   :  { %11711 = vmatmul.mubr.msk.f32.vlgmr.msra.gmra.mxu1 %vm191_vm1, %v10087_v46 }
0x2f19   :  { %v11698_v39 = vpop.f32.mrf.mxu1  ;;  %v11731_v7 = vpop.f32.mrf.mxu0 }
0x2f1a   :  { %v7361_v16 = vadd.f32 %v11698_v39, %v10082_v54 }
0x2f1b   :  { %v7355_v18 = vpop.f32.mrf.mxu1  ;;  %v7668_v25 = vpop.f32.mrf.mxu0 }
0x2f1c   :  { %v7356_v14 = vadd.f32 %v10082_v54, %v7355_v18  ;;  %v10121_v18 = vld [vmem:[%s14603_s11 + $0x68] sm:$0xff] }
0x2f1e   :  { %11715 = vmatprep.mubr.msk.f32.mxu1 %vm521_vm3, %v7356_v14 }
0x2f20   :  { %v11734_v13 = vpop.f32.mrf.mxu0  ;;  %v11701_v17 = vpop.f32.mrf.mxu1 }
0x2f21   :  { %v7371_v29 = vadd.f32 %v11701_v17, %v10082_v54 }
0x2f22   :  { %v7678_v6 = vpop.f32.mrf.mxu0  ;;  %v7365_v47 = vpop.f32.mrf.mxu1 }
0x2f23   :  { %v7366_v24 = vadd.f32 %v10082_v54, %v7365_v47 }
0x2f24   :  { %v11759_v12 = vpop.f32.mrf.mxu0 }
0x2f25   :  { %v14189_v31 = vadd.f32 %v11759_v12, %v14186_v21 }
0x2f26   :  { %v7867_v22 = vpop.f32.mrf.mxu0 }
0x2f27   :  { %v7868_v33 = vadd.f32 %v14186_v21, %v7867_v22 }
0x2f29   :  { %11776 = vmatprep.mubr.msk.f32.mxu0 %vm521_vm3, %v7868_v33 }
0x2f2c   :  { %v7452_v11 = vpop.f32.mrf.mxu1 }
0x2f2d   :  { %v7453_v43 = vadd.f32 %v7452_v11, %v7381_v19 }
0x2f2e   :  { %v11712_v50 = vpop.f32.mrf.mxu1 }
0x2f2f   :  { %11713 = vmatprep.subr.mxu1 %v7453_v43  ;;  %v10120_v50 = vld [vmem:[%s14602_s10 + $0x68] sm:$0xff] }
0x2f30   :  { %11714 = vmatpush3.msra.mxu1 %v7453_v43 }
0x2f31   :  { %11716 = vmatmul.mubr.msk.f32.vlgmr.msra.gmra.mxu1 %vm521_vm3, %v7361_v16  ;;  %11735 = vmatprep.subr.mxu1 %v11734_v13 }
0x2f32   :  { %11718 = vmatprep.mubr.msk.f32.mxu1 %vm521_vm3, %v7366_v24  ;;  %11736 = vmatpush3.msra.mxu1 %v11734_v13 }
0x2f33   :  { %11737 = vmatprep.subr.mxu1 %v7678_v6 }
0x2f34   :  { %11738 = vmatpush3.msra.mxu1 %v7678_v6 }
0x2f35   :  { %11719 = vmatmul.mubr.msk.f32.gmra.mxu1 %vm521_vm3, %v7371_v29  ;;  %11739 = vmatprep.subr.mxu1 %v11731_v7 }
0x2f36   :  { %11740 = vmatpush3.msra.mxu1 %v11731_v7 }
0x2f37   :  { %11741 = vmatprep.subr.mxu1 %v7668_v25 }
0x2f38   :  { %11742 = vmatpush3.msra.mxu1 %v7668_v25 }
0x2f39   :  { %11763 = vmatprep.subr.mxu1 %v12286_v15 }
0x2ff1   :  { %v11717_v37 = vpop.f32.mrf.mxu1 }
0x2ff2   :  { %v7540_v38 = vadd.f32 %v14206_v53, %v11717_v37  ;;  %v11762_v37 = vpop.f32.mrf.mxu0 }
0x2ff3   :  { %v7534_v28 = vpop.f32.mrf.mxu1 }
0x2ff4   :  { %v7535_v1 = vadd.f32 %v14200_v44, %v7534_v28  ;;  %v7556_v63 = vsel %vm191_vm1, %v7540_v38, -inf }
0x2ff5   :  { %v11720_v34 = vpop.f32.mrf.mxu1 }
0x2ff6   :  { %v7553_v59 = vsel %vm191_vm1, %v7535_v1, -inf  ;;  %v7550_v57 = vadd.f32 %v14220_v56, %v11720_v34 }
0x2ff7   :  { %v7544_v30 = vpop.f32.mrf.mxu1  ;;  %7554 = vmax.xlane.f32.xlu1 %v7553_v59 }
0x2ff8   :  { %v7545_v40 = vadd.f32 %v14213_v0, %v7544_v30  ;;  %v7562_v32 = vsel %vm191_vm1, %v7550_v57, -inf }
0x2ffa   :  { %v7559_v41 = vsel %vm191_vm1, %v7545_v40, -inf }
0x2ffb   :  { %7557 = vmax.xlane.f32.xlu1 %v7556_v63 }
0x2fff   :  { %7560 = vmax.xlane.f32.xlu1 %v7559_v41  ;;  %v10132_v41 = vld [vmem:[%s14604_s12 + $0x1a8] sm:$0xff] }
0x3003   :  { %7563 = vmax.xlane.f32.xlu1 %v7562_v32  ;;  %v7883_v32 = vadd.f32 %v11762_v37, %v14186_v21 }
0x3080   :  { %v7555_v20 = vpop.xlane.xlu1 %7554 }
0x3081   :  { %v7565_v60 = vsub.f32 %v7535_v1, %v7555_v20  ;;  %v10131_v20 = vld [vmem:[%s14604_s12 + $0x1a0] sm:$0xff] }
0x3083   :  { %v7569_v51 = vmul.f32 1.442695, %v7565_v60  ;;  %v10144_v60 = vld [vmem:[%s14600_s8 + $0x1c8] sm:$0xff] }
0x3084   :  { %v7558_v58 = vpop.xlane.xlu1 %7557 }
0x3085   :  { %12176 = vpow2.f32 %v7569_v51  ;;  %v7566_v61 = vsub.f32 %v7540_v38, %v7558_v58  ;;  %v7877_v38 = vpop.f32.mrf.mxu0  ;;  %v10143_v51 = vld [vmem:[%s14600_s8 + $0x1c0] sm:$0xff] }
0x3086   :  { %v7878_v63 = vadd.f32 %v14186_v21, %v7877_v38  ;;  %v10145_v21 = vld [vmem:[%s14600_s8 + $0x1d0] sm:$0xff] }
0x3087   :  { %v7571_v49 = vmul.f32 1.442695, %v7566_v61 }
0x3088   :  { %v7561_v10 = vpop.xlane.xlu1 %7560 }
0x3089   :  { %12178 = vpow2.f32 %v7571_v49  ;;  %v7567_v26 = vsub.f32 %v7545_v40, %v7561_v10  ;;  %v10134_v40 = vld [vmem:[%s14604_s12 + $0x1b8] sm:$0xff] }
0x308b   :  { %v7573_v62 = vmul.f32 1.442695, %v7567_v26 }
0x308c   :  { %v7564_v4 = vpop.xlane.xlu1 %7563 }
0x308d   :  { %12180 = vpow2.f32 %v7573_v62  ;;  %v7568_v5 = vsub.f32 %v7550_v57, %v7564_v4  ;;  %v10133_v57 = vld [vmem:[%s14604_s12 + $0x1b0] sm:$0xff] }
0x308f   :  { %v7575_v3 = vmul.f32 1.442695, %v7568_v5 }
0x3091   :  { %12182 = vpow2.f32 %v7575_v3 }
0x3092   :  { %v12177_v27 = vpop.eup %12176 }
0x3093   :  { %v7577_v2 = vsel %vm191_vm1, %v12177_v27, 0.0 }
0x3094   :  { %7578 = vadd.xlane.f32.xlu1 %v7577_v2 }
0x3096   :  { %v12179_v35 = vpop.eup %12178 }
0x3097   :  { %v7580_v36 = vsel %vm191_vm1, %v12179_v35, 0.0 }
0x3098   :  { %7581 = vadd.xlane.f32.xlu0 %v7580_v36 }
0x309a   :  { %v12181_v46 = vpop.eup %12180 }
0x309b   :  { %v7583_v39 = vsel %vm191_vm1, %v12181_v46, 0.0 }
0x309c   :  { %7584 = vadd.xlane.f32.xlu1 %v7583_v39 }
0x309e   :  { %v12183_v7 = vpop.eup %12182 }
0x309f   :  { %v7586_v54 = vsel %vm191_vm1, %v12183_v7, 0.0 }
0x30a0   :  { %7587 = vadd.xlane.f32.xlu1 %v7586_v54  ;;  %v14318_v54 = vld [vmem:[%s14601_s9 + $0xe] ss:$0 sm:$0xff] }
0x30b1   :  { %7892 = vperm.xlu1 %11939, %v10121_v18  }
0x311d   :  { %v7579_v14 = vpop.xlane.xlu1 %7578 }
0x311e   :  { %12184 = vrcp.f32 %v7579_v14 }
0x3121   :  { %v7582_v25 = vpop.xlane.xlu0 %7581 }
0x3122   :  { %12186 = vrcp.f32 %v7582_v25 }
0x3125   :  { %v7585_v13 = vpop.xlane.xlu1 %7584 }
0x3126   :  { %12188 = vrcp.f32 %v7585_v13 }
0x3129   :  { %v7588_v6 = vpop.xlane.xlu1 %7587 }
0x312a   :  { %12190 = vrcp.f32 %v7588_v6 }
0x312b   :  { %v12185_v12 = vpop.eup %12184 }
0x312c   :  { %v7593_v17 = vmul.f32 %v12185_v12, %v12177_v27 }
0x312d   :  { %v7893_v1 = vpop.permute.xlu1 %7892 }
0x312e   :  { %11743 = vmatprep.mubr.msk.f32.mxu1 %vm191_vm1, %v7593_v17 }
0x312f   :  { %v12187_v22 = vpop.eup %12186 }
0x3130   :  { %v7594_v33 = vmul.f32 %v12187_v22, %v12179_v35 }
0x3132   :  { %11744 = vmatmul.mubr.msk.f32.vlgmr.msra.gmra.mxu1 %vm191_vm1, %v7594_v33 }
0x3133   :  { %v12189_v47 = vpop.eup %12188  ;;  %11764 = vmatpush3.xpose.msk.msra.mxu1 %vm191_vm1, %v14138_v8 }
0x3134   :  { %11765 = vmatprep.subr.mxu1 %v12286_v15  ;;  %v7595_v19 = vmul.f32 %v12189_v47, %v12181_v46 }
0x3136   :  { %11746 = vmatprep.mubr.msk.f32.mxu1 %vm191_vm1, %v7595_v19 }
0x3137   :  { %v12191_v11 = vpop.eup %12190  ;;  %11766 = vmatpush3.xpose.msk.msra.mxu1 %vm191_vm1, %v14141_v23 }
0x3138   :  { %11767 = vmatprep.subr.mxu1 %v12286_v15  ;;  %v7596_v43 = vmul.f32 %v12191_v11, %v12183_v7 }
0x313a   :  { %11747 = vmatmul.mubr.msk.f32.gmra.mxu1 %vm191_vm1, %v7596_v43 }
0x313b   :  { %11768 = vmatpush3.xpose.msk.msra.mxu1 %vm191_vm1, %v14121_v55  ;;  %11771 = vmatprep.mubr.msk.f32.mxu1 %vm12287_vm2, %v12286_v15 }
0x313c   :  { %11769 = vmatprep.subr.mxu1 %v12286_v15 }
0x313f   :  { %11770 = vmatpush3.xpose.msk.msra.mxu1 %vm191_vm1, %v14119_v42 }
0x3142   :  { %11772 = vmatmul.mubr.msk.f32.vlgmr.msra.gmra.mxu1 %vm191_vm1, %v10120_v50 }
0x31f2   :  { %v14253_v16 = vpop.f32.mrf.mxu1 }
0x31f4   :  { %v14255_v24 = vpop.f32.mrf.mxu1 }
0x31fa   :  { %v14257_v29 = vpop.f32.mrf.mxu1 }
0x31fc   :  { %v14259_v28 = vpop.f32.mrf.mxu1 }
0x3202   :  { %v7964_v34 = vpop.f32.mrf.mxu1 }
0x3203   :  { %v7965_v59 = vadd.f32 %v7964_v34, %v7893_v1 }
0x3204   :  { %v11773_v30 = vpop.f32.mrf.mxu1 }
0x3205   :  { %11774 = vmatprep.subr.mxu0 %v7965_v59 }
0x3206   :  { %11775 = vmatpush3.msra.mxu0 %v7965_v59 }
0x3207   :  { %11777 = vmatmul.mubr.msk.f32.vlgmr.msra.gmra.mxu0 %vm521_vm3, %v14189_v31  ;;  %11782 = vmatprep.subr.mxu0 %v10134_v40  ;;  %v10146_v31 = vld [vmem:[%s14600_s8 + $0x1d8] sm:$0xff] }
0x3208   :  { %11779 = vmatprep.mubr.msk.f32.mxu0 %vm521_vm3, %v7878_v63  ;;  %11783 = vmatpush3.msra.mxu0 %v10134_v40 }
0x3209   :  { %11784 = vmatprep.subr.mxu0 %v10133_v57 }
0x320a   :  { %11785 = vmatpush3.msra.mxu0 %v10133_v57 }
0x320b   :  { %11780 = vmatmul.mubr.msk.f32.gmra.mxu0 %vm521_vm3, %v7883_v32  ;;  %11786 = vmatprep.subr.mxu0 %v10132_v41  ;;  %v10154_v32 = vld [vmem:[%s14603_s11 + $0x70] sm:$0xff] }
0x320c   :  { %11787 = vmatpush3.msra.mxu0 %v10132_v41  ;;  %11790 = vmatprep.mubr.msk.f32.mxu0 %vm191_vm1, %v14119_v42 }
0x320d   :  { %11788 = vmatprep.subr.mxu0 %v10131_v20 }
0x320e   :  { %11789 = vmatpush3.msra.mxu0 %v10131_v20 }
0x320f   :  { %11791 = vmatmul.mubr.msk.f32.vlgmr.msra.gmra.mxu0 %vm191_vm1, %v14121_v55  ;;  %11810 = vmatprep.subr.mxu0 %v10146_v31 }
0x3210   :  { %11793 = vmatprep.mubr.msk.f32.mxu0 %vm191_vm1, %v14141_v23  ;;  %11811 = vmatpush3.msra.mxu0 %v10146_v31 }
0x3211   :  { %11812 = vmatprep.subr.mxu0 %v10145_v21 }
0x3212   :  { %11813 = vmatpush3.msra.mxu0 %v10145_v21 }
0x3213   :  { %11794 = vmatmul.mubr.msk.f32.gmra.mxu0 %vm191_vm1, %v14138_v8  ;;  %11814 = vmatprep.subr.mxu0 %v10144_v60 }
0x3214   :  { %11815 = vmatpush3.msra.mxu0 %v10144_v60  ;;  %11818 = vmatprep.mubr.msk.f32.mxu0 %vm191_vm1, %v14119_v42 }
0x3215   :  { %11816 = vmatprep.subr.mxu0 %v10143_v51 }
0x3216   :  { %11817 = vmatpush3.msra.mxu0 %v10143_v51 }
0x3217   :  { %11819 = vmatmul.mubr.msk.f32.vlgmr.msra.gmra.mxu0 %vm191_vm1, %v14121_v55 }
0x3218   :  { %11821 = vmatprep.mubr.msk.f32.mxu0 %vm191_vm1, %v14141_v23 }
0x321b   :  { %11822 = vmatmul.mubr.msk.f32.gmra.mxu0 %vm191_vm1, %v14138_v8 }
0x32c7   :  { %v11778_v58 = vpop.f32.mrf.mxu0 }
0x32c8   :  { %v8052_v61 = vadd.f32 %v14206_v53, %v11778_v58 }
0x32c9   :  { %v8046_v49 = vpop.f32.mrf.mxu0 }
0x32ca   :  { %v8047_v10 = vadd.f32 %v14200_v44, %v8046_v49  ;;  %v8068_v26 = vsel %vm191_vm1, %v8052_v61, -inf }
0x32cb   :  { %8069 = vmax.xlane.f32.xlu0 %v8068_v26  ;;  %v11781_v62 = vpop.f32.mrf.mxu0 }
0x32cc   :  { %v8065_v4 = vsel %vm191_vm1, %v8047_v10, -inf  ;;  %v8062_v2 = vadd.f32 %v14220_v56, %v11781_v62 }
0x32cd   :  { %v8056_v5 = vpop.f32.mrf.mxu0  ;;  %8066 = vmax.xlane.f32.xlu1 %v8065_v4 }
0x32ce   :  { %v8057_v3 = vadd.f32 %v14213_v0, %v8056_v5  ;;  %v8074_v39 = vsel %vm191_vm1, %v8062_v2, -inf  ;;  %v10153_v5 = vld [vmem:[%s14602_s10 + $0x70] sm:$0xff] }
0x32cf   :  { %v11792_v27 = vpop.f32.mrf.mxu0 }
0x32d0   :  { %v8071_v35 = vsel %vm191_vm1, %v8057_v3, -inf }
0x32d1   :  { %v8180_v36 = vpop.f32.mrf.mxu0  ;;  %8072 = vmax.xlane.f32.xlu0 %v8071_v35 }
0x32d3   :  { %v11795_v46 = vpop.f32.mrf.mxu0 }
0x32d4   :  { %11796 = vmatprep.subr.mxu1 %v11795_v46 }
0x32d5   :  { %v8190_v7 = vpop.f32.mrf.mxu0  ;;  %11797 = vmatpush3.msra.mxu1 %v11795_v46  ;;  %8075 = vmax.xlane.f32.xlu0 %v8074_v39 }
0x32d6   :  { %11798 = vmatprep.subr.mxu1 %v8190_v7 }
0x32d7   :  { %11799 = vmatpush3.msra.mxu1 %v8190_v7  ;;  %v11820_v18 = vpop.f32.mrf.mxu0 }
0x32d8   :  { %v14321_v14 = vadd.f32 %v11820_v18, %v14318_v54  ;;  %11800 = vmatprep.subr.mxu1 %v11792_v27 }
0x32d9   :  { %11801 = vmatpush3.msra.mxu1 %v11792_v27  ;;  %v8379_v25 = vpop.f32.mrf.mxu0 }
0x32da   :  { %v8380_v13 = vadd.f32 %v14318_v54, %v8379_v25  ;;  %11802 = vmatprep.subr.mxu1 %v8180_v36 }
0x32db   :  { %11803 = vmatpush3.msra.mxu1 %v8180_v36 }
0x32dc   :  { %11837 = vmatprep.mubr.msk.f32.mxu0 %vm521_vm3, %v8380_v13  ;;  %11824 = vmatprep.subr.mxu1 %v12286_v15 }
0x3354   :  { %v8070_v6 = vpop.xlane.xlu0 %8069 }
0x3355   :  { %v8078_v12 = vsub.f32 %v8052_v61, %v8070_v6 }
0x3356   :  { %v8067_v17 = vpop.xlane.xlu1 %8066 }
0x3357   :  { %v8077_v22 = vsub.f32 %v8047_v10, %v8067_v17  ;;  %v8083_v33 = vmul.f32 1.442695, %v8078_v12  ;;  %v11823_v17 = vpop.f32.mrf.mxu0 }
0x3359   :  { %v8081_v47 = vmul.f32 1.442695, %v8077_v22 }
0x335a   :  { %v8073_v19 = vpop.xlane.xlu0 %8072 }
0x335b   :  { %12192 = vpow2.f32 %v8081_v47  ;;  %v8079_v11 = vsub.f32 %v8057_v3, %v8073_v19  ;;  %v10076_v3 = vld [vmem:[%s14605_s13 + $0x3] ss:$0 sm:$0xff]  ;;  %v10167_v19 = vld [vmem:[%s14604_s12 + $0x1d8] sm:$0xff] }
0x335c   :  { %12194 = vpow2.f32 %v8083_v33  ;;  %v7785_v27 = vadd.f32 %v14253_v16, %v10076_v3  ;;  %v7784_v35 = vadd.f32 %v10076_v3, %v14255_v24  ;;  %v7787_v7 = vadd.f32 %v14257_v29, %v10076_v3  ;;  %v8389_v33 = vpop.f32.mrf.mxu0 }
0x335d   :  { %v8085_v43 = vmul.f32 1.442695, %v8079_v11  ;;  %v7786_v25 = vadd.f32 %v10076_v3, %v14259_v28  ;;  %v8390_v29 = vadd.f32 %v14318_v54, %v8389_v33  ;;  %v10166_v28 = vld [vmem:[%s14604_s12 + $0x1d0] sm:$0xff]  ;;  %v10165_v11 = vld [vmem:[%s14604_s12 + $0x1c8] sm:$0xff] }
0x335e   :  { %v8076_v50 = vpop.xlane.xlu0 %8075 }
0x335f   :  { %v8080_v37 = vsub.f32 %v8062_v2, %v8076_v50  ;;  %12196 = vpow2.f32 %v8085_v43  ;;  %v8395_v43 = vadd.f32 %v11823_v17, %v14318_v54  ;;  %v10164_v50 = vld [vmem:[%s14604_s12 + $0x1c0] sm:$0xff]  ;;  %v10178_v54 = vld [vmem:[%s14600_s8 + $0x1f0] sm:$0xff] }
0x3361   :  { %v8087_v1 = vmul.f32 1.442695, %v8080_v37  ;;  %v10177_v37 = vld [vmem:[%s14600_s8 + $0x1e8] sm:$0xff] }
0x3363   :  { %12198 = vpow2.f32 %v8087_v1  ;;  %v10176_v1 = vld [vmem:[%s14600_s8 + $0x1e0] sm:$0xff] }
0x3368   :  { %v12193_v34 = vpop.eup %12192 }
0x3369   :  { %v8089_v38 = vsel %vm191_vm1, %v12193_v34, 0.0  ;;  %v12195_v59 = vpop.eup %12194 }
0x336a   :  { %8090 = vadd.xlane.f32.xlu0 %v8089_v38  ;;  %v8092_v30 = vsel %vm191_vm1, %v12195_v59, 0.0 }
0x336c   :  { %v12197_v40 = vpop.eup %12196 }
0x336d   :  { %v8095_v63 = vsel %vm191_vm1, %v12197_v40, 0.0 }
0x336e   :  { %8093 = vadd.xlane.f32.xlu0 %v8092_v30 }
0x3370   :  { %v12199_v57 = vpop.eup %12198 }
0x3371   :  { %v8098_v41 = vsel %vm191_vm1, %v12199_v57, 0.0 }
0x3372   :  { %8096 = vadd.xlane.f32.xlu0 %v8095_v63 }
0x3376   :  { %8099 = vadd.xlane.f32.xlu0 %v8098_v41 }
0x338c   :  { %8404 = vperm.xlu0 %11938, %v10154_v32  }
0x33f3   :  { %v8091_v20 = vpop.xlane.xlu0 %8090 }
0x33f4   :  { %12200 = vrcp.f32 %v8091_v20 }
0x33f7   :  { %v8094_v31 = vpop.xlane.xlu0 %8093 }
0x33f8   :  { %12202 = vrcp.f32 %v8094_v31 }
0x33fb   :  { %v8097_v21 = vpop.xlane.xlu0 %8096 }
0x33fc   :  { %12204 = vrcp.f32 %v8097_v21 }
0x33ff   :  { %v8100_v60 = vpop.xlane.xlu0 %8099 }
0x3400   :  { %12206 = vrcp.f32 %v8100_v60 }
0x3401   :  { %v12201_v51 = vpop.eup %12200 }
0x3402   :  { %v8105_v58 = vmul.f32 %v12201_v51, %v12193_v34 }
0x3404   :  { %11804 = vmatprep.mubr.msk.f32.mxu1 %vm191_vm1, %v8105_v58 }
0x3405   :  { %v12203_v61 = vpop.eup %12202 }
0x3406   :  { %v8106_v49 = vmul.f32 %v12203_v61, %v12195_v59  ;;  %v14425_v61 = vld [vmem:[%s14601_s9 + $0xf] ss:$0 sm:$0xff] }
0x3407   :  { %v8405_v16 = vpop.permute.xlu0 %8404 }
0x3408   :  { %11805 = vmatmul.mubr.msk.f32.vlgmr.msra.gmra.mxu1 %vm191_vm1, %v8106_v49 }
0x3409   :  { %v12205_v10 = vpop.eup %12204  ;;  %11825 = vmatpush3.xpose.msk.msra.mxu1 %vm191_vm1, %v14138_v8 }
0x340a   :  { %11826 = vmatprep.subr.mxu1 %v12286_v15  ;;  %v8107_v26 = vmul.f32 %v12205_v10, %v12197_v40 }
0x340c   :  { %11807 = vmatprep.mubr.msk.f32.mxu1 %vm191_vm1, %v8107_v26 }
0x340d   :  { %v12207_v62 = vpop.eup %12206  ;;  %11827 = vmatpush3.xpose.msk.msra.mxu1 %vm191_vm1, %v14141_v23 }
0x340e   :  { %11828 = vmatprep.subr.mxu1 %v12286_v15  ;;  %v8108_v4 = vmul.f32 %v12207_v62, %v12199_v57 }
0x3410   :  { %11808 = vmatmul.mubr.msk.f32.gmra.mxu1 %vm191_vm1, %v8108_v4 }
0x3411   :  { %11829 = vmatpush3.xpose.msk.msra.mxu1 %vm191_vm1, %v14121_v55  ;;  %11832 = vmatprep.mubr.msk.f32.mxu1 %vm12287_vm2, %v12286_v15 }
0x3412   :  { %11830 = vmatprep.subr.mxu1 %v12286_v15 }
0x3415   :  { %11831 = vmatpush3.xpose.msk.msra.mxu1 %vm191_vm1, %v14119_v42 }
0x3418   :  { %11833 = vmatmul.mubr.msk.f32.vlgmr.msra.gmra.mxu1 %vm191_vm1, %v10153_v5 }
0x34c8   :  { %v11806_v2 = vpop.f32.mrf.mxu1 }
0x34c9   :  { %v14359_v36 = vadd.f32 %v11806_v2, %v7785_v27 }
0x34ca   :  { %v8277_v46 = vpop.f32.mrf.mxu1 }
0x34cb   :  { %v14361_v39 = vadd.f32 %v8277_v46, %v7784_v35 }
0x34d0   :  { %v11809_v18 = vpop.f32.mrf.mxu1 }
0x34d1   :  { %v14365_v13 = vadd.f32 %v11809_v18, %v7787_v7 }
0x34d2   :  { %v8287_v6 = vpop.f32.mrf.mxu1 }
0x34d3   :  { %v14367_v12 = vadd.f32 %v8287_v6, %v7786_v25 }
0x34d8   :  { %v8476_v22 = vpop.f32.mrf.mxu1 }
0x34d9   :  { %v8477_v24 = vadd.f32 %v8476_v22, %v8405_v16 }
0x34da   :  { %v11834_v47 = vpop.f32.mrf.mxu1 }
0x34db   :  { %11835 = vmatprep.subr.mxu0 %v8477_v24 }
0x34dc   :  { %11836 = vmatpush3.msra.mxu0 %v8477_v24 }
0x34dd   :  { %11838 = vmatmul.mubr.msk.f32.vlgmr.msra.gmra.mxu0 %vm521_vm3, %v14321_v14  ;;  %11843 = vmatprep.subr.mxu0 %v10167_v19  ;;  %v10179_v14 = vld [vmem:[%s14600_s8 + $0x1f8] sm:$0xff] }
0x34de   :  { %11840 = vmatprep.mubr.msk.f32.mxu0 %vm521_vm3, %v8390_v29  ;;  %11844 = vmatpush3.msra.mxu0 %v10167_v19 }
0x34df   :  { %11845 = vmatprep.subr.mxu0 %v10166_v28 }
0x34e0   :  { %11846 = vmatpush3.msra.mxu0 %v10166_v28 }
0x34e1   :  { %11841 = vmatmul.mubr.msk.f32.gmra.mxu0 %vm521_vm3, %v8395_v43  ;;  %11847 = vmatprep.subr.mxu0 %v10165_v11  ;;  %v10187_v43 = vld [vmem:[%s14603_s11 + $0x78] sm:$0xff] }
0x34e2   :  { %11848 = vmatpush3.msra.mxu0 %v10165_v11  ;;  %11851 = vmatprep.mubr.msk.f32.mxu0 %vm191_vm1, %v14119_v42 }
0x34e3   :  { %11849 = vmatprep.subr.mxu0 %v10164_v50 }
0x34e4   :  { %11850 = vmatpush3.msra.mxu0 %v10164_v50 }
0x34e5   :  { %11852 = vmatmul.mubr.msk.f32.vlgmr.msra.gmra.mxu0 %vm191_vm1, %v14121_v55  ;;  %11871 = vmatprep.subr.mxu0 %v10179_v14 }
0x34e6   :  { %11854 = vmatprep.mubr.msk.f32.mxu0 %vm191_vm1, %v14141_v23  ;;  %11872 = vmatpush3.msra.mxu0 %v10179_v14 }
0x34e7   :  { %11873 = vmatprep.subr.mxu0 %v10178_v54 }
0x34e8   :  { %11874 = vmatpush3.msra.mxu0 %v10178_v54 }
0x34e9   :  { %11855 = vmatmul.mubr.msk.f32.gmra.mxu0 %vm191_vm1, %v14138_v8  ;;  %11875 = vmatprep.subr.mxu0 %v10177_v37 }
0x34ea   :  { %11876 = vmatpush3.msra.mxu0 %v10177_v37  ;;  %11879 = vmatprep.mubr.msk.f32.mxu0 %vm191_vm1, %v14119_v42 }
0x34eb   :  { %11877 = vmatprep.subr.mxu0 %v10176_v1 }
0x34ec   :  { %11878 = vmatpush3.msra.mxu0 %v10176_v1 }
0x34ed   :  { %11880 = vmatmul.mubr.msk.f32.vlgmr.msra.gmra.mxu0 %vm191_vm1, %v14121_v55 }
0x34ee   :  { %11882 = vmatprep.mubr.msk.f32.mxu0 %vm191_vm1, %v14141_v23 }
0x34f1   :  { %11883 = vmatmul.mubr.msk.f32.gmra.mxu0 %vm191_vm1, %v14138_v8 }
0x359d   :  { %v11839_v34 = vpop.f32.mrf.mxu0 }
0x359e   :  { %v8564_v40 = vadd.f32 %v14206_v53, %v11839_v34 }
0x359f   :  { %v8558_v38 = vpop.f32.mrf.mxu0 }
0x35a0   :  { %v8559_v59 = vadd.f32 %v14200_v44, %v8558_v38  ;;  %v8580_v20 = vsel %vm191_vm1, %v8564_v40, -inf }
0x35a1   :  { %v11842_v30 = vpop.f32.mrf.mxu0 }
0x35a2   :  { %v8577_v63 = vsel %vm191_vm1, %v8559_v59, -inf  ;;  %v8574_v60 = vadd.f32 %v14220_v56, %v11842_v30 }
0x35a3   :  { %v8568_v57 = vpop.f32.mrf.mxu0  ;;  %8578 = vmax.xlane.f32.xlu1 %v8577_v63 }
0x35a4   :  { %v8569_v32 = vadd.f32 %v14213_v0, %v8568_v57  ;;  %v8586_v26 = vsel %vm191_vm1, %v8574_v60, -inf }
0x35a5   :  { %v11853_v41 = vpop.f32.mrf.mxu0 }
0x35a6   :  { %v8583_v51 = vsel %vm191_vm1, %v8569_v32, -inf }
0x35a7   :  { %v8692_v31 = vpop.f32.mrf.mxu0  ;;  %8581 = vmax.xlane.f32.xlu1 %v8580_v20 }
0x35a9   :  { %v11856_v21 = vpop.f32.mrf.mxu0 }
0x35aa   :  { %11857 = vmatprep.subr.mxu1 %v11856_v21 }
0x35ab   :  { %v8702_v58 = vpop.f32.mrf.mxu0  ;;  %11858 = vmatpush3.msra.mxu1 %v11856_v21  ;;  %8584 = vmax.xlane.f32.xlu1 %v8583_v51 }
0x35ac   :  { %11859 = vmatprep.subr.mxu1 %v8702_v58 }
0x35ad   :  { %11860 = vmatpush3.msra.mxu1 %v8702_v58  ;;  %v11881_v49 = vpop.f32.mrf.mxu0 }
0x35ae   :  { %v14428_v10 = vadd.f32 %v11881_v49, %v14425_v61  ;;  %11861 = vmatprep.subr.mxu1 %v11853_v41 }
0x35af   :  { %11862 = vmatpush3.msra.mxu1 %v11853_v41  ;;  %v8891_v62 = vpop.f32.mrf.mxu0  ;;  %8587 = vmax.xlane.f32.xlu1 %v8586_v26  ;;  %v10186_v41 = vld [vmem:[%s14602_s10 + $0x78] sm:$0xff] }
0x35b0   :  { %v8892_v4 = vadd.f32 %v14425_v61, %v8891_v62  ;;  %11863 = vmatprep.subr.mxu1 %v8692_v31 }
0x35b1   :  { %11864 = vmatpush3.msra.mxu1 %v8692_v31  ;;  %v11884_v49 = vpop.f32.mrf.mxu0 }
0x35b2   :  { %11898 = vmatprep.mubr.msk.f32.mxu0 %vm521_vm3, %v8892_v4  ;;  %11885 = vmatprep.subr.mxu1 %v12286_v15 }
0x35b3   :  { %v8901_v4 = vpop.f32.mrf.mxu0 }
0x362c   :  { %v8579_v5 = vpop.xlane.xlu1 %8578 }
0x362d   :  { %v8589_v3 = vsub.f32 %v8559_v59, %v8579_v5 }
0x362f   :  { %v8593_v27 = vmul.f32 1.442695, %v8589_v3 }
0x3630   :  { %v8582_v2 = vpop.xlane.xlu1 %8581 }
0x3631   :  { %12208 = vpow2.f32 %v8593_v27  ;;  %v8590_v35 = vsub.f32 %v8564_v40, %v8582_v2  ;;  %v8907_v27 = vadd.f32 %v11884_v49, %v14425_v61  ;;  %v10197_v2 = vld [vmem:[%s14604_s12 + $0x1e0] sm:$0xff] }
0x3633   :  { %v8595_v46 = vmul.f32 1.442695, %v8590_v35 }
0x3634   :  { %v8585_v7 = vpop.xlane.xlu1 %8584 }
0x3635   :  { %12210 = vpow2.f32 %v8595_v46  ;;  %v8591_v18 = vsub.f32 %v8569_v32, %v8585_v7 }
0x3637   :  { %v8597_v25 = vmul.f32 1.442695, %v8591_v18 }
0x3638   :  { %v8588_v6 = vpop.xlane.xlu1 %8587 }
0x3639   :  { %12212 = vpow2.f32 %v8597_v25  ;;  %v8592_v17 = vsub.f32 %v8574_v60, %v8588_v6 }
0x363b   :  { %v8599_v16 = vmul.f32 1.442695, %v8592_v17 }
0x363d   :  { %12214 = vpow2.f32 %v8599_v16 }
0x363e   :  { %v12209_v22 = vpop.eup %12208 }
0x363f   :  { %v8601_v33 = vsel %vm191_vm1, %v12209_v22, 0.0 }
0x3640   :  { %8602 = vadd.xlane.f32.xlu1 %v8601_v33 }
0x3642   :  { %v12211_v24 = vpop.eup %12210 }
0x3643   :  { %v8604_v47 = vsel %vm191_vm1, %v12211_v24, 0.0 }
0x3644   :  { %8605 = vadd.xlane.f32.xlu0 %v8604_v47 }
0x3646   :  { %v12213_v19 = vpop.eup %12212 }
0x3647   :  { %v8607_v29 = vsel %vm191_vm1, %v12213_v19, 0.0 }
0x3648   :  { %8608 = vadd.xlane.f32.xlu1 %v8607_v29 }
0x364a   :  { %v12215_v28 = vpop.eup %12214 }
0x364b   :  { %v8610_v11 = vsel %vm191_vm1, %v12215_v28, 0.0 }
0x364c   :  { %8611 = vadd.xlane.f32.xlu1 %v8610_v11 }
0x365d   :  { %8916 = vperm.xlu1 %11939, %v10187_v43  }
0x36c9   :  { %v8603_v50 = vpop.xlane.xlu1 %8602 }
0x36ca   :  { %12216 = vrcp.f32 %v8603_v50 }
0x36cd   :  { %v8606_v14 = vpop.xlane.xlu0 %8605 }
0x36ce   :  { %12218 = vrcp.f32 %v8606_v14 }
0x36d1   :  { %v8609_v54 = vpop.xlane.xlu1 %8608 }
0x36d2   :  { %12220 = vrcp.f32 %v8609_v54 }
0x36d5   :  { %v8612_v37 = vpop.xlane.xlu1 %8611 }
0x36d6   :  { %12222 = vrcp.f32 %v8612_v37 }
0x36d7   :  { %v12217_v1 = vpop.eup %12216 }
0x36d8   :  { %v8617_v34 = vmul.f32 %v12217_v1, %v12209_v22 }
0x36d9   :  { %v8917_v26 = vpop.permute.xlu1 %8916 }
0x36da   :  { %11865 = vmatprep.mubr.msk.f32.mxu1 %vm191_vm1, %v8617_v34 }
0x36db   :  { %v12219_v38 = vpop.eup %12218 }
0x36dc   :  { %v8618_v59 = vmul.f32 %v12219_v38, %v12211_v24 }
0x36de   :  { %11866 = vmatmul.mubr.msk.f32.vlgmr.msra.gmra.mxu1 %vm191_vm1, %v8618_v59 }
0x36df   :  { %v12221_v30 = vpop.eup %12220  ;;  %11886 = vmatpush3.xpose.msk.msra.mxu1 %vm191_vm1, %v14138_v8 }
0x36e0   :  { %11887 = vmatprep.subr.mxu1 %v12286_v15  ;;  %v8619_v40 = vmul.f32 %v12221_v30, %v12213_v19 }
0x36e2   :  { %11868 = vmatprep.mubr.msk.f32.mxu1 %vm191_vm1, %v8619_v40 }
0x36e3   :  { %v12223_v63 = vpop.eup %12222  ;;  %11888 = vmatpush3.xpose.msk.msra.mxu1 %vm191_vm1, %v14141_v23 }
0x36e4   :  { %11889 = vmatprep.subr.mxu1 %v12286_v15  ;;  %v8620_v57 = vmul.f32 %v12223_v63, %v12215_v28 }
0x36e6   :  { %11869 = vmatmul.mubr.msk.f32.gmra.mxu1 %vm191_vm1, %v8620_v57 }
0x36e7   :  { %11890 = vmatpush3.xpose.msk.msra.mxu1 %vm191_vm1, %v14121_v55  ;;  %11893 = vmatprep.mubr.msk.f32.mxu1 %vm12287_vm2, %v12286_v15 }
0x36e8   :  { %11891 = vmatprep.subr.mxu1 %v12286_v15 }
0x36eb   :  { %11892 = vmatpush3.xpose.msk.msra.mxu1 %vm191_vm1, %v14119_v42 }
0x36ee   :  { %11894 = vmatmul.mubr.msk.f32.vlgmr.msra.gmra.mxu1 %vm191_vm1, %v10186_v41 }
0x379e   :  { %v11867_v32 = vpop.f32.mrf.mxu1 }
0x379f   :  { %v14463_v20 = vadd.f32 %v11867_v32, %v14359_v36  ;;  %v10200_v36 = vld [vmem:[%s14604_s12 + $0x1f8] sm:$0xff] }
0x37a0   :  { %v8789_v31 = vpop.f32.mrf.mxu1 }
0x37a1   :  { %v14466_v21 = vadd.f32 %v8789_v31, %v14361_v39  ;;  %v8902_v39 = vadd.f32 %v14425_v61, %v8901_v4 }
0x37a6   :  { %v11870_v60 = vpop.f32.mrf.mxu1 }
0x37a7   :  { %v14469_v15 = vadd.f32 %v11870_v60, %v14365_v13  ;;  %v10199_v13 = vld [vmem:[%s14604_s12 + $0x1f0] sm:$0xff] }
0x37a8   :  { %v8799_v51 = vpop.f32.mrf.mxu1 }
0x37a9   :  { %v14472_v58 = vadd.f32 %v8799_v51, %v14367_v12  ;;  %v10198_v12 = vld [vmem:[%s14604_s12 + $0x1e8] sm:$0xff] }
0x37ae   :  { %v8988_v62 = vpop.f32.mrf.mxu1 }
0x37af   :  { %v8989_v5 = vadd.f32 %v8988_v62, %v8917_v26 }
0x37b0   :  { %v11895_v3 = vpop.f32.mrf.mxu1 }
0x37b1   :  { %11896 = vmatprep.subr.mxu0 %v8989_v5 }
0x37b2   :  { %11897 = vmatpush3.msra.mxu0 %v8989_v5 }
0x37b3   :  { %11899 = vmatmul.mubr.msk.f32.vlgmr.msra.gmra.mxu0 %vm521_vm3, %v14428_v10  ;;  %11904 = vmatprep.subr.mxu0 %v10200_v36 }
0x37b4   :  { %11901 = vmatprep.mubr.msk.f32.mxu0 %vm521_vm3, %v8902_v39  ;;  %11905 = vmatpush3.msra.mxu0 %v10200_v36 }
0x37b5   :  { %11906 = vmatprep.subr.mxu0 %v10199_v13 }
0x37b6   :  { %11907 = vmatpush3.msra.mxu0 %v10199_v13 }
0x37b7   :  { %11902 = vmatmul.mubr.msk.f32.gmra.mxu0 %vm521_vm3, %v8907_v27  ;;  %11908 = vmatprep.subr.mxu0 %v10198_v12 }
0x37b8   :  { %11909 = vmatpush3.msra.mxu0 %v10198_v12  ;;  %11912 = vmatprep.mubr.msk.f32.mxu0 %vm191_vm1, %v14119_v42 }
0x37b9   :  { %11910 = vmatprep.subr.mxu0 %v10197_v2 }
0x37ba   :  { %11911 = vmatpush3.msra.mxu0 %v10197_v2 }
0x37bb   :  { %11913 = vmatmul.mubr.msk.f32.vlgmr.msra.gmra.mxu0 %vm191_vm1, %v14121_v55 }
0x37bc   :  { %11915 = vmatprep.mubr.msk.f32.mxu0 %vm191_vm1, %v14141_v23 }
0x37bf   :  { %11916 = vmatmul.mubr.msk.f32.gmra.mxu0 %vm191_vm1, %v14138_v8 }
0x3873   :  { %v11900_v61 = vpop.f32.mrf.mxu0 }
0x3874   :  { %v9076_v10 = vadd.f32 %v14206_v53, %v11900_v61 }
0x3875   :  { %v9070_v35 = vpop.f32.mrf.mxu0 }
0x3876   :  { %v9071_v46 = vadd.f32 %v14200_v44, %v9070_v35  ;;  %v9092_v7 = vsel %vm191_vm1, %v9076_v10, -inf }
0x3877   :  { %9093 = vmax.xlane.f32.xlu0 %v9092_v7  ;;  %v11903_v42 = vpop.f32.mrf.mxu0 }
0x3878   :  { %v9089_v18 = vsel %vm191_vm1, %v9071_v46, -inf  ;;  %v9086_v6 = vadd.f32 %v14220_v56, %v11903_v42 }
0x3879   :  { %v9080_v25 = vpop.f32.mrf.mxu0  ;;  %9090 = vmax.xlane.f32.xlu1 %v9089_v18 }
0x387a   :  { %v9081_v55 = vadd.f32 %v14213_v0, %v9080_v25  ;;  %v9098_v44 = vsel %vm191_vm1, %v9086_v6, -inf }
0x387b   :  { %v11914_v23 = vpop.f32.mrf.mxu0 }
0x387c   :  { %v9095_v8 = vsel %vm191_vm1, %v9081_v55, -inf }
0x387d   :  { %v9204_v17 = vpop.f32.mrf.mxu0  ;;  %9096 = vmax.xlane.f32.xlu0 %v9095_v8 }
0x387f   :  { %v11917_v53 = vpop.f32.mrf.mxu0 }
0x3880   :  { %11918 = vmatprep.subr.mxu1 %v11917_v53 }
0x3881   :  { %v9214_v16 = vpop.f32.mrf.mxu0  ;;  %11919 = vmatpush3.msra.mxu1 %v11917_v53  ;;  %9099 = vmax.xlane.f32.xlu0 %v9098_v44 }
0x3882   :  { %11920 = vmatprep.subr.mxu1 %v9214_v16 }
0x3883   :  { %11921 = vmatpush3.msra.mxu1 %v9214_v16 }
0x3884   :  { %11922 = vmatprep.subr.mxu1 %v11914_v23 }
0x3885   :  { %11923 = vmatpush3.msra.mxu1 %v11914_v23 }
0x3886   :  { %11924 = vmatprep.subr.mxu1 %v9204_v17 }
0x3887   :  { %11925 = vmatpush3.msra.mxu1 %v9204_v17 }
0x3900   :  { %v9094_v0 = vpop.xlane.xlu0 %9093 }
0x3901   :  { %v9102_v22 = vsub.f32 %v9076_v10, %v9094_v0 }
0x3902   :  { %v9091_v56 = vpop.xlane.xlu1 %9090 }
0x3903   :  { %v9107_v33 = vmul.f32 1.442695, %v9102_v22  ;;  %v9101_v24 = vsub.f32 %v9071_v46, %v9091_v56 }
0x3905   :  { %12224 = vpow2.f32 %v9107_v33  ;;  %v9105_v47 = vmul.f32 1.442695, %v9101_v24  ;;  %v10209_v24 = vld [vmem:[%s14613_s21] ss:$0 sm:$0xff] }
0x3906   :  { %v9097_v19 = vpop.xlane.xlu0 %9096 }
0x3907   :  { %12226 = vpow2.f32 %v9105_v47  ;;  %v9103_v29 = vsub.f32 %v9081_v55, %v9097_v19  ;;  %v10213_v47 = vld [vmem:[%s14613_s21 + $0x1] ss:$0 sm:$0xff] }
0x3909   :  { %v9109_v28 = vmul.f32 1.442695, %v9103_v29 }
0x390a   :  { %v9100_v11 = vpop.xlane.xlu0 %9099 }
0x390b   :  { %12228 = vpow2.f32 %v9109_v28  ;;  %v9104_v43 = vsub.f32 %v9086_v6, %v9100_v11 }
0x390d   :  { %v9111_v50 = vmul.f32 1.442695, %v9104_v43 }
0x390f   :  { %12230 = vpow2.f32 %v9111_v50 }
0x3912   :  { %v12225_v14 = vpop.eup %12224 }
0x3913   :  { %v9116_v54 = vsel %vm191_vm1, %v12225_v14, 0.0 }
0x3914   :  { %v12227_v37 = vpop.eup %12226  ;;  %9117 = vadd.xlane.f32.xlu0 %v9116_v54 }
0x3915   :  { %v9113_v1 = vsel %vm191_vm1, %v12227_v37, 0.0 }
0x3918   :  { %v12229_v34 = vpop.eup %12228  ;;  %9114 = vadd.xlane.f32.xlu0 %v9113_v1 }
0x3919   :  { %v9119_v38 = vsel %vm191_vm1, %v12229_v34, 0.0 }
0x391c   :  { %v12231_v59 = vpop.eup %12230  ;;  %9120 = vadd.xlane.f32.xlu0 %v9119_v38 }
0x391d   :  { %v9122_v30 = vsel %vm191_vm1, %v12231_v59, 0.0 }
0x3920   :  { %9123 = vadd.xlane.f32.xlu0 %v9122_v30 }
0x399d   :  { %v9118_v40 = vpop.xlane.xlu0 %9117 }
0x399e   :  { %12232 = vrcp.f32 %v9118_v40 }
0x39a1   :  { %v9115_v63 = vpop.xlane.xlu0 %9114 }
0x39a2   :  { %12234 = vrcp.f32 %v9115_v63  ;;  %v12262_v63 = vld [vmem:[%s14610_s18 + $0x1] ss:$0 sm:$0xff] }
0x39a5   :  { %v9121_v57 = vpop.xlane.xlu0 %9120 }
0x39a6   :  { %12236 = vrcp.f32 %v9121_v57 }
0x39a9   :  { %v9124_v41 = vpop.xlane.xlu0 %9123 }
0x39aa   :  { %12238 = vrcp.f32 %v9124_v41 }
0x39ab   :  { %v12233_v32 = vpop.eup %12232 }
0x39ac   :  { %v9130_v51 = vmul.f32 %v12233_v32, %v12225_v14  ;;  %v9389_v32 = vld [vmem:[%s14612_s20 + $0x8] sm:$0xff] }
0x39af   :  { %v12235_v31 = vpop.eup %12234 }
0x39b0   :  { %v9129_v60 = vmul.f32 %v12235_v31, %v12227_v37  ;;  %v12263_v31 = vld [vmem:[%s14611_s19 + $0x1] ss:$0 sm:$0xff] }
0x39b2   :  { %11926 = vmatprep.mubr.msk.f32.mxu1 %vm191_vm1, %v9129_v60 }
0x39b3   :  { %v12237_v49 = vpop.eup %12236  ;;  %11927 = vmatmul.mubr.msk.f32.vlgmr.msra.gmra.mxu1 %vm191_vm1, %v9130_v51 }
0x39b4   :  { %v9131_v26 = vmul.f32 %v12237_v49, %v12229_v34  ;;  %v9388_v49 = vld [vmem:[%s14612_s20] sm:$0xff] }
0x39b6   :  { %11929 = vmatprep.mubr.msk.f32.mxu1 %vm191_vm1, %v9131_v26  ;;  %v10211_v26 = vld [vmem:[%s14612_s20 + $0x18] sm:$0xff] }
0x39b7   :  { %v12239_v62 = vpop.eup %12238 }
0x39b8   :  { %v9132_v4 = vmul.f32 %v12239_v62, %v12231_v59 }
0x39ba   :  { %11930 = vmatmul.mubr.msk.f32.gmra.mxu1 %vm191_vm1, %v9132_v4 }
0x3a73   :  { %v11928_v5 = vpop.f32.mrf.mxu1 }
0x3a74   :  { %v9321_v3 = vadd.f32 %v11928_v5, %v14463_v20 }
0x3a75   :  { %v9301_v36 = vpop.f32.mrf.mxu1 }
0x3a76   :  { %v9325_v39 = vadd.f32 %v9321_v3, %v14055_v9  ;;  %v9320_v13 = vadd.f32 %v9301_v36, %v14466_v21  ;;  %v10210_v3 = vld [vmem:[%s14612_s20 + $0x10] sm:$0xff] }
0x3a78   :  { %v9324_v12 = vadd.f32 %v9320_v13, %v14053_v48  ;;  %v9331_v27 = vsel %vm191_vm1, %v9325_v39, 0.0 }
0x3a79   :  { %9332 = vadd.xlane.f32.xlu1 %v9331_v27 }
0x3a7a   :  { %v11931_v2 = vpop.f32.mrf.mxu1  ;;  %v9328_v61 = vsel %vm191_vm1, %v9324_v12, 0.0 }
0x3a7b   :  { %v9323_v10 = vadd.f32 %v11931_v2, %v14469_v15  ;;  %9329 = vadd.xlane.f32.xlu0 %v9328_v61  ;;  %v10215_v2 = vld [vmem:[%s14612_s20 + $0x28] sm:$0xff] }
0x3a7c   :  { %v9311_v35 = vpop.f32.mrf.mxu1 }
0x3a7d   :  { %v9327_v46 = vadd.f32 %v9323_v10, %v14065_v45  ;;  %v9322_v20 = vadd.f32 %v9311_v35, %v14472_v58 }
0x3a7f   :  { %v9326_v9 = vadd.f32 %v9322_v20, %v14063_v52  ;;  %v9337_v21 = vsel %vm191_vm1, %v9327_v46, 0.0  ;;  %v10214_v20 = vld [vmem:[%s14612_s20 + $0x20] sm:$0xff] }
0x3a80   :  { %9338 = vadd.xlane.f32.xlu1 %v9337_v21 }
0x3a81   :  { %v9334_v48 = vsel %vm191_vm1, %v9326_v9, 0.0 }
0x3a82   :  { %9335 = vadd.xlane.f32.xlu0 %v9334_v48 }
0x3b02   :  { %v9333_v7 = vpop.xlane.xlu1 %9332 }
0x3b03   :  { %v9341_v42 = vmul.f32 0.03125, %v9333_v7 }
0x3b04   :  { %v9330_v18 = vpop.xlane.xlu0 %9329 }
0x3b05   :  { %v9345_v25 = vsub.f32 %v9325_v39, %v9341_v42  ;;  %v9340_v55 = vmul.f32 0.03125, %v9330_v18 }
0x3b07   :  { %v9344_v15 = vsub.f32 %v9324_v12, %v9340_v55  ;;  %v9349_v23 = vmul.f32 %v9345_v25, %v9345_v25 }
0x3b09   :  { %v9339_v6 = vpop.xlane.xlu1 %9338  ;;  %v9355_v45 = vsel %vm191_vm1, %v9349_v23, 0.0  ;;  %v9348_v8 = vmul.f32 %v9344_v15, %v9344_v15 }
0x3b0a   :  { %v9343_v58 = vmul.f32 0.03125, %v9339_v6  ;;  %9356 = vadd.xlane.f32.xlu1 %v9355_v45 }
0x3b0b   :  { %v9336_v52 = vpop.xlane.xlu0 %9335  ;;  %v9352_v17 = vsel %vm191_vm1, %v9348_v8, 0.0 }
0x3b0c   :  { %v9347_v53 = vsub.f32 %v9327_v46, %v9343_v58  ;;  %v9342_v44 = vmul.f32 0.03125, %v9336_v52  ;;  %9353 = vadd.xlane.f32.xlu0 %v9352_v17 }
0x3b0e   :  { %v9346_v16 = vsub.f32 %v9326_v9, %v9342_v44  ;;  %v9351_v0 = vmul.f32 %v9347_v53, %v9347_v53 }
0x3b10   :  { %v9361_v22 = vsel %vm191_vm1, %v9351_v0, 0.0  ;;  %v9350_v56 = vmul.f32 %v9346_v16, %v9346_v16 }
0x3b11   :  { %9362 = vadd.xlane.f32.xlu1 %v9361_v22 }
0x3b12   :  { %v9358_v33 = vsel %vm191_vm1, %v9350_v56, 0.0  ;;  %v10217_v56 = vld [vmem:[%s14613_s21 + $0x2] ss:$0 sm:$0xff]  ;;  %s12289_s21 = smov [#allocation2]  }
0x3b13   :  { %9359 = vadd.xlane.f32.xlu0 %v9358_v33  ;;  %s9627_s3 = sshll.u32 %s12289_s21, 4  ;;  %s9628_s3 = int_to_ptr.vmem [resolvable:$true] %s9627_s3 }
0x3b14   :  { %s12264_s29 = scalar_lea.vmem %s9628_s3, 96  ;;  %p12269_p1 = scmp.lt.s32.totalorder %s9628_s3, %s9628_s3 }
0x3b15   :  { %p12265_p0 = scmp.ne.s32.totalorder %s9628_s3, %s12264_s29  ;;  %p12270_p2 = scmp.lt.s32.totalorder %s12264_s29, %s12264_s29 }
0x3b17   :  { %p12271_p3 = por %p12270_p2, %p12269_p1 }
0x3b19   :  { %p12272_p4 = pnand %p12271_p3, %p12265_p0 }
0x3b22   :  { %9417 = vbcast.lane.b32.xlu1 %v10209_v24, 264 }
0x3b26   :  { %9495 = vbcast.lane.b32.xlu1 %v10213_v47, 256 }
0x3b29   :  { %9413 = vbcast.lane.b32.xlu0 %v10209_v24, 256 }
0x3b2d   :  { %9499 = vbcast.lane.b32.xlu0 %v10213_v47, 264 }
0x3b93   :  { %v9357_v19 = vpop.xlane.xlu1 %9356 }
0x3b94   :  { %v9365_v29 = vmul.f32 0.03125, %v9357_v19 }
0x3b95   :  { %v9354_v28 = vpop.xlane.xlu0 %9353 }
0x3b96   :  { %v9369_v11 = vadd.f32 1e-05, %v9365_v29  ;;  %v9364_v43 = vmul.f32 0.03125, %v9354_v28 }
0x3b98   :  { %12240 = vrsqrt.f32 %v9369_v11  ;;  %v9368_v50 = vadd.f32 1e-05, %v9364_v43 }
0x3b9a   :  { %12242 = vrsqrt.f32 %v9368_v50  ;;  %v9363_v14 = vpop.xlane.xlu1 %9362 }
0x3b9b   :  { %v9367_v54 = vmul.f32 0.03125, %v9363_v14 }
0x3b9c   :  { %v9360_v37 = vpop.xlane.xlu0 %9359 }
0x3b9d   :  { %v9371_v1 = vadd.f32 1e-05, %v9367_v54  ;;  %v9366_v34 = vmul.f32 0.03125, %v9360_v37 }
0x3b9e   :  { %v9418_v33 = vpop.permute.xlu1 %9417 }
0x3b9f   :  { %12244 = vrsqrt.f32 %v9371_v1  ;;  %v9370_v38 = vadd.f32 1e-05, %v9366_v34 }
0x3ba0   :  { %v9414_v24 = vpop.permute.xlu0 %9413 }
0x3ba1   :  { %12246 = vrsqrt.f32 %v9370_v38 }
0x3ba2   :  { %v9496_v47 = vpop.permute.xlu1 %9495 }
0x3ba4   :  { %v9500_v19 = vpop.permute.xlu0 %9499 }
0x3ba5   :  { %v12241_v59 = vpop.eup %12240 }
0x3ba6   :  { %v9377_v30 = vmul.f32 %v12241_v59, %v9345_v25 }
0x3ba7   :  { %v12243_v40 = vpop.eup %12242 }
0x3ba8   :  { %v9381_v57 = vmul.f32 %v12262_v63, %v9377_v30  ;;  %v9376_v41 = vmul.f32 %v12243_v40, %v9344_v15 }
0x3baa   :  { %v9385_v60 = vadd.f32 %v12263_v31, %v9381_v57  ;;  %v9380_v51 = vmul.f32 %v12262_v63, %v9376_v41 }
0x3bac   :  { %v12245_v62 = vpop.eup %12244  ;;  %v9391_v4 = vmul.f32 %v9389_v32, %v9385_v60  ;;  %v9384_v5 = vadd.f32 %v12263_v31, %v9380_v51  ;;  %v9472_v27 = vmul.f32 %v10211_v26, %v9385_v60  ;;  %v9549_v48 = vmul.f32 %v10215_v2, %v9385_v60 }
0x3bad   :  { %v9379_v36 = vmul.f32 %v12245_v62, %v9347_v53 }
0x3bae   :  { %v12247_v39 = vpop.eup %12246  ;;  %v9397_v13 = vsel %vm191_vm1, %v9391_v4, 0.0  ;;  %v9390_v12 = vmul.f32 %v9388_v49, %v9384_v5  ;;  %v9471_v46 = vmul.f32 %v10210_v3, %v9384_v5  ;;  %v9478_v21 = vsel %vm191_vm1, %v9472_v27, 0.0 }
0x3baf   :  { %9398 = vadd.xlane.f32.xlu1 %v9397_v13  ;;  %v9383_v61 = vmul.f32 %v12262_v63, %v9379_v36  ;;  %v9378_v10 = vmul.f32 %v12247_v39, %v9346_v16  ;;  %v9548_v18 = vmul.f32 %v10214_v20, %v9384_v5  ;;  %v9555_v55 = vsel %vm191_vm1, %v9549_v48, 0.0 }
0x3bb0   :  { %v9394_v35 = vsel %vm191_vm1, %v9390_v12, 0.0  ;;  %v9475_v42 = vsel %vm191_vm1, %v9471_v46, 0.0  ;;  %v9441_v36 = vlaneseq }
0x3bb1   :  { %9395 = vadd.xlane.f32.xlu0 %v9394_v35  ;;  %v9382_v9 = vmul.f32 %v12262_v63, %v9378_v10  ;;  %v9387_v7 = vadd.f32 %v12263_v31, %v9383_v61  ;;  %v9552_v23 = vsel %vm191_vm1, %v9548_v18, 0.0 }
0x3bb2   :  { %v9442_v13 = vand.u32 127, %v9441_v36 }
0x3bb3   :  { %9479 = vadd.xlane.f32.xlu1 %v9478_v21  ;;  %v9386_v25 = vadd.f32 %v12263_v31, %v9382_v9  ;;  %v9393_v15 = vmul.f32 %v9389_v32, %v9387_v7  ;;  %v9474_v8 = vmul.f32 %v10211_v26, %v9387_v7  ;;  %v9551_v53 = vmul.f32 %v10215_v2, %v9387_v7 }
0x3bb4   :  { %v9444_v2 = vshrl.u32 %v9441_v36, 7  ;;  %v9447_v61 = vadd.s32 4294967288, %v9442_v13 }
0x3bb5   :  { %9476 = vadd.xlane.f32.xlu0 %v9475_v42  ;;  %v9392_v6 = vmul.f32 %v9388_v49, %v9386_v25  ;;  %v9403_v45 = vsel %vm191_vm1, %v9393_v15, 0.0  ;;  %v9473_v52 = vmul.f32 %v10210_v3, %v9386_v25  ;;  %v9484_v17 = vsel %vm191_vm1, %v9474_v8, 0.0 }
0x3bb6   :  { %v9550_v16 = vmul.f32 %v10214_v20, %v9386_v25  ;;  %v9561_v0 = vsel %vm191_vm1, %v9551_v53, 0.0  ;;  %v9445_v35 = vsub.s32 %v9442_v13, %v9444_v2  ;;  %v9450_v20 = vsub.s32 %v9447_v61, %v9444_v2 }
0x3bb7   :  { %9556 = vadd.xlane.f32.xlu1 %v9555_v55  ;;  %v9400_v58 = vsel %vm191_vm1, %v9392_v6, 0.0  ;;  %v9481_v44 = vsel %vm191_vm1, %v9473_v52, 0.0 }
0x3bb8   :  { %v9558_v22 = vsel %vm191_vm1, %v9550_v16, 0.0 }
0x3bb9   :  { %9553 = vadd.xlane.f32.xlu0 %v9552_v23 }
0x3bbb   :  { %9404 = vadd.xlane.f32.xlu1 %v9403_v45 }
0x3bbd   :  { %9401 = vadd.xlane.f32.xlu0 %v9400_v58 }
0x3bbf   :  { %9485 = vadd.xlane.f32.xlu1 %v9484_v17 }
0x3bc1   :  { %9482 = vadd.xlane.f32.xlu0 %v9481_v44 }
0x3bc3   :  { %9562 = vadd.xlane.f32.xlu1 %v9561_v0 }
0x3bc5   :  { %9559 = vadd.xlane.f32.xlu0 %v9558_v22 }
0x3bd4   :  { %9572 = vbcast.lane.b32.xlu1 %v10217_v56, 256 }
0x3bdb   :  { %9576 = vbcast.lane.b32.xlu0 %v10217_v56, 264 }
0x3c38   :  { %v9399_v29 = vpop.xlane.xlu1 %9398 }
0x3c39   :  { %v9422_v28 = vadd.f32 %v9418_v33, %v9399_v29 }
0x3c3a   :  { %v9396_v11 = vpop.xlane.xlu0 %9395 }
0x3c3b   :  { %v9421_v43 = vadd.f32 %v9414_v24, %v9396_v11  ;;  %9433 = vperm.xlu0 %11938, %v9422_v28  }
0x3c3c   :  { %v9480_v50 = vpop.xlane.xlu1 %9479 }
0x3c3d   :  { %v9504_v14 = vadd.f32 %v9500_v19, %v9480_v50  ;;  %9430 = vperm.xlu1 %11939, %v9421_v43  }
0x3c3e   :  { %v9477_v54 = vpop.xlane.xlu0 %9476 }
0x3c3f   :  { %v9503_v37 = vadd.f32 %v9496_v47, %v9477_v54  ;;  %9515 = vperm.xlu0 %11938, %v9504_v14  }
0x3c40   :  { %v9557_v1 = vpop.xlane.xlu1 %9556 }
0x3c41   :  { %9512 = vperm.xlu1 %11939, %v9503_v37  }
0x3c42   :  { %v9554_v34 = vpop.xlane.xlu0 %9553 }
0x3c44   :  { %v9405_v38 = vpop.xlane.xlu1 %9404 }
0x3c45   :  { %v9424_v49 = vadd.f32 %v9418_v33, %v9405_v38 }
0x3c46   :  { %v9402_v59 = vpop.xlane.xlu0 %9401 }
0x3c47   :  { %v9423_v51 = vadd.f32 %v9414_v24, %v9402_v59 }
0x3c48   :  { %v9486_v30 = vpop.xlane.xlu1 %9485 }
0x3c49   :  { %v9506_v62 = vadd.f32 %v9500_v19, %v9486_v30 }
0x3c4a   :  { %v9483_v40 = vpop.xlane.xlu0 %9482 }
0x3c4b   :  { %v9505_v26 = vadd.f32 %v9496_v47, %v9483_v40 }
0x3c4c   :  { %v9563_v63 = vpop.xlane.xlu1 %9562 }
0x3c4e   :  { %v9560_v57 = vpop.xlane.xlu0 %9559 }
0x3c50   :  { %v9573_v41 = vpop.permute.xlu1 %9572 }
0x3c51   :  { %v9580_v32 = vadd.f32 %v9573_v41, %v9554_v34  ;;  %v9582_v4 = vadd.f32 %v9573_v41, %v9560_v57 }
0x3c52   :  { %v9577_v31 = vpop.permute.xlu0 %9576 }
0x3c53   :  { %v9581_v60 = vadd.f32 %v9577_v31, %v9557_v1  ;;  %9589 = vperm.xlu1 %11939, %v9580_v32   ;;  %v9583_v5 = vadd.f32 %v9577_v31, %v9563_v63 }
0x3c55   :  { %9592 = vperm.xlu0 %11938, %v9581_v60  }
0x3c57   :  { %9436 = vperm.xlu1 %11939, %v9423_v51  }
0x3c59   :  { %9439 = vperm.xlu0 %11938, %v9424_v49  }
0x3c5b   :  { %9518 = vperm.xlu1 %11939, %v9505_v26  }
0x3c5d   :  { %9521 = vperm.xlu0 %11938, %v9506_v62  }
0x3c5f   :  { %9595 = vperm.xlu1 %11939, %v9582_v4  }
0x3c61   :  { %9598 = vperm.xlu0 %11938, %v9583_v5  }
0x3cb6   :  { %v9434_v39 = vpop.permute.xlu0 %9433 }
0x3cb7   :  { %v9451_v7 = vrot.slane %v9434_v39, %v9450_v20 }
0x3cb8   :  { %v9431_v3 = vpop.permute.xlu1 %9430 }
0x3cb9   :  { %v9446_v21 = vrot.slane %v9431_v3, %v9445_v35 }
0x3cba   :  { %v9516_v27 = vpop.permute.xlu0 %9515 }
0x3cbb   :  { %v9453_v55 = vsel %vm9452_vm4, %v9451_v7, %v9446_v21  ;;  %v9530_v8 = vrot.slane %v9516_v27, %v9450_v20 }
0x3cbc   :  { %v9513_v12 = vpop.permute.xlu1 %9512 }
0x3cbd   :  { %v9526_v15 = vrot.slane %v9513_v12, %v9445_v35 }
0x3cbf   :  { %v9531_v53 = vsel %vm9452_vm4, %v9530_v8, %v9526_v15 }
0x3cce   :  { %v9590_v10 = vpop.permute.xlu1 %9589 }
0x3ccf   :  { %v9603_v56 = vrot.slane %v9590_v10, %v9445_v35 }
0x3cd0   :  { %v9593_v46 = vpop.permute.xlu0 %9592 }
0x3cd1   :  { %v9607_v44 = vrot.slane %v9593_v46, %v9450_v20 }
0x3cd2   :  { %v9437_v9 = vpop.permute.xlu1 %9436 }
0x3cd3   :  { %v9457_v42 = vrot.slane %v9437_v9, %v9445_v35  ;;  %v9608_v47 = vsel %vm9452_vm4, %v9607_v44, %v9603_v56 }
0x3cd4   :  { %v9440_v48 = vpop.permute.xlu0 %9439 }
0x3cd5   :  { %v9461_v18 = vrot.slane %v9440_v48, %v9450_v20 }
0x3cd6   :  { %v9519_v25 = vpop.permute.xlu1 %9518 }
0x3cd7   :  { %v9462_v23 = vsel %vm9452_vm4, %v9461_v18, %v9457_v42  ;;  %v9535_v58 = vrot.slane %v9519_v25, %v9445_v35 }
0x3cd8   :  { %v9464_v6 = vsel %vm9463_vm5, %v9462_v23, %v9453_v55  ;;  %v9522_v45 = vpop.permute.xlu0 %9521 }
0x3cd9   :  { %9467 = vst.msk [vmem:[#allocation2] sm:$0x3] %vm9466_vm6, %v9464_v6  ;;  %v9539_v52 = vrot.slane %v9522_v45, %v9450_v20 }
0x3cda   :  { %v9596_v17 = vpop.permute.xlu1 %9595 }
0x3cdb   :  { %v9540_v16 = vsel %vm9452_vm4, %v9539_v52, %v9535_v58  ;;  %v9612_v33 = vrot.slane %v9596_v17, %v9445_v35 }
0x3cdc   :  { %v9541_v0 = vsel %vm9463_vm5, %v9540_v16, %v9531_v53  ;;  %v9599_v22 = vpop.permute.xlu0 %9598 }
0x3cdd   :  { %9544 = vst.msk [vmem:[#allocation2 + $0x2] sm:$0x3] %vm9466_vm6, %v9541_v0  ;;  %v9616_v24 = vrot.slane %v9599_v22, %v9450_v20 }
0x3cdf   :  { %v9617_v19 = vsel %vm9452_vm4, %v9616_v24, %v9612_v33 }
0x3ce0   :  { %v9618_v29 = vsel %vm9463_vm5, %v9617_v19, %v9608_v47 }
0x3ce1   :  { %9621 = vst.msk [vmem:[#allocation2 + $0x4] sm:$0x3] %vm9466_vm6, %v9618_v29 }
0x3ce2   :  { %12275 = shalt.err (!%p12272_p4)
}
0x3ce3   :  { %s12290_s13 = smov 32   ;;  %s12291_s28 = smov 2  }
0x3ce4   :  { %9633 = dma.vmem_to_hbm [thread:$0]  %s9628_s3, 96, %s14614_s22, [#allocation3], %s12290_s13, %s12290_s13, %s12291_s28  }
0x3ce5   :  { %12284 = dma.done.wait [#allocation3], 96  }
0x3ce6   :  { %12285 = vsyncadd [#allocation3], 4294967200 }
0x3ce7   :  { %9637 = vsyncpa [#allocation3], 1 }

</bundles_post_ra>
